<compile_context>
chip_gen: v6e
topology: v6e:2x2x1
jax: 0.10.0
libtpu: 0.0.40
codegen_flags: <defaults>
</compile_context>

<pallas_src>
import functools

import jax
import jax.numpy as jnp
from jax.experimental import pallas as pl
from jax.experimental.pallas import tpu as pltpu


def _round_up(x, m):
    return (x + m - 1) // m * m


# ----------------------------- Pallas kernel --------------------------------
def _cone_kernel(ent_ref, rel_ref, pred_ref, nei_ref, aux_ref, out_ref, *,
                 is_head_batch: bool, chunk: int):
    """One batch tile (TB rows).

    ent_ref / rel_ref / pred_ref : (TB, D)      bf16
    nei_ref                      : (N, TB, D)   bf16   shared K/V neighbor slab
    aux_ref                      : (TB, N + 1)  f32    cols 0..N-1 = neighbor
                                   ids as f32 (only sign used), col N = gate logit
    out_ref                      : (TB // CH, CH) f32  lane-row per chunk
    """
    n_nei = nei_ref.shape[0]
    d = ent_ref.shape[1]
    n_chunks = ent_ref.shape[0] // chunk
    neg_big = jnp.float32(-1e30)

    def chunk_body(c, carry):
        row0 = pl.multiple_of(c * chunk, chunk)
        rows = pl.ds(row0, chunk)

        ent = ent_ref[rows, :].astype(jnp.float32)        # (CH, D)
        rel = rel_ref[rows, :].astype(jnp.float32)        # (CH, D)
        q = ent + rel                                     # attention query
        aux = aux_ref[rows, :]                            # (CH, N+1) f32

        # Online (flash-style) masked softmax over the neighbor axis.
        # Identical to the reference masked_fill(-1e30) + softmax, including
        # all-masked rows (uniform weights over the padding embedding).
        m = jnp.full((chunk, 1), neg_big, jnp.float32)
        l = jnp.zeros((chunk, 1), jnp.float32)
        acc = jnp.zeros((chunk, d), jnp.float32)
        for n in range(n_nei):                            # static: N is small
            x = nei_ref[n, rows, :].astype(jnp.float32)   # (CH, D) slab
            s = jnp.sum(q * x, axis=1, keepdims=True)     # (CH, 1) score
            # Mask convention from the reference: entity id 0 == padding.
            s = jnp.where(aux[:, n:n + 1] > 0.0, s, neg_big)
            m_new = jnp.maximum(m, s)
            alpha = jnp.exp(m - m_new)                    # EUP
            p = jnp.exp(s - m_new)                        # EUP
            l = alpha * l + p
            acc = alpha * acc + p * x                     # vreg-resident
            m = m_new
        nei_enc = acc * pl.reciprocal(l, approx=True)     # (CH, D)

        # Gate: sigmoid(weight) * nei_encode + (1 - weight) * ent
        w = jax.nn.sigmoid(aux[:, n_nei:n_nei + 1])       # (CH, 1), no relayout
        combined = w * nei_enc + (1.0 - w) * ent

        # Decoder (TransE): score = -||h + r - t||_1
        pred = pred_ref[rows, :].astype(jnp.float32)
        if is_head_batch:
            diff = pred + rel - combined
        else:
            diff = combined + rel - pred
        out_ref[c, :] = -jnp.sum(jnp.abs(diff), axis=1)   # (CH,) lane row
        return carry

    jax.lax.fori_loop(0, n_chunks, chunk_body, 0)


# ------------------------------- wrapper -------------------------------------
@functools.partial(jax.jit, static_argnames=('mode', 'block_b', 'chunk'))
def cone_forward(params, src, rel, dst, mode, *, block_b=512, chunk=32):
    """Reproduces CoNE_model.forward; src/rel/dst are int (B,) arrays."""
    if mode == 'head_batch':
        input_ent, predict_ent = dst, src
    else:
        input_ent, predict_ent = src, dst

    input_ent = input_ent.reshape(-1).astype(jnp.int32)
    predict_ent = predict_ent.reshape(-1).astype(jnp.int32)
    rel_idx = rel.reshape(-1).astype(jnp.int32)

    ent_tab = params['ent_embed']        # (E, D) bf16, D padded to 128-mult
    rel_tab = params['rel_embed']        # (R, D) bf16
    nei_tab = params['nei_embed']        # (E, D) bf16
    w_tab = params['weight_embed']       # (E, 1) f32
    nei_mat = params['neiMatrix']        # (E, N) int32

    D = int(ent_tab.shape[1])
    if D % 128:
        # TODO(synk): tables should be padded once at init (make_params does);
        # this per-call fallback copies the tables through HBM.
        p = 128 - D % 128
        ent_tab = jnp.pad(ent_tab, ((0, 0), (0, p)))
        rel_tab = jnp.pad(rel_tab, ((0, 0), (0, p)))
        nei_tab = jnp.pad(nei_tab, ((0, 0), (0, p)))
        D += p

    N = int(nei_mat.shape[1])
    B = int(input_ent.shape[0])
    CH = int(chunk)
    assert CH % 8 == 0

    # Batch tile: big enough to amortize the ~0.35us/grid-step overhead and
    # keep the neighbor DMA long; capped so the double-buffered (N, TB, D)
    # bf16 block stays <= ~12 MiB (safe on v7x's 64 MiB VMEM); multiple of
    # 8*CH so the chunked gate/output blocks satisfy the (8, 128) rule.
    # Sweep block_b 256..1024 per generation (bigger on v5e/v6e's 128 MiB
    # VMEM; keep >=2 grid steps on v7x so both TensorCores get work).
    step = 8 * CH
    nei_row_bytes = 2 * N * D * 2                    # double-buffered, bf16
    tb_cap = max(step, (12 * 1024 * 1024 // nei_row_bytes) // step * step)
    TB = max(step, min(block_b, tb_cap) // step * step)
    B_min = _round_up(B, CH)
    if B_min <= TB:
        TB = B_min
        B_pad = B_min
    else:
        B_pad = _round_up(B, TB)

    pad = B_pad - B
    if pad:
        zpad = jnp.zeros((pad,), jnp.int32)
        input_ent = jnp.concatenate([input_ent, zpad])
        predict_ent = jnp.concatenate([predict_ent, zpad])
        rel_idx = jnp.concatenate([rel_idx, zpad])

    # ---- embedding gathers (glue, plain JAX / XLA) ----
    input_nei = nei_mat[input_ent]                              # (B_pad, N) int32
    ent_e = ent_tab[input_ent]                                  # (B_pad, D) bf16
    pred_e = ent_tab[predict_ent]                               # (B_pad, D) bf16
    rel_e = rel_tab[rel_idx]                                    # (B_pad, D) bf16
    # Shared K/V gather (dedup), neighbor-major so the kernel slices
    # contiguous (CH, D) slabs per neighbor.
    nei_kv = nei_tab[input_nei.T]                               # (N, B_pad, D) bf16
    # Side-band stream: neighbor ids as f32 (mask = id > 0 in-kernel; ids are
    # never used for addressing, mirroring the reference's float nn.Embedding
    # storage) + gate logit packed into the spare lanes of the same block.
    wlog = w_tab[input_ent, 0].astype(jnp.float32)              # (B_pad,)
    aux = jnp.concatenate(
        [input_nei.astype(jnp.float32), wlog[:, None]], axis=1)  # (B_pad, N+1)

    kernel = functools.partial(_cone_kernel,
                               is_head_batch=(mode == 'head_batch'),
                               chunk=CH)

    out = pl.pallas_call(
        kernel,
        out_shape=jax.ShapeDtypeStruct((B_pad // CH, CH), jnp.float32),
        grid=(B_pad // TB,),
        in_specs=[
            pl.BlockSpec((TB, D), lambda i: (i, 0)),            # ent
            pl.BlockSpec((TB, D), lambda i: (i, 0)),            # rel
            pl.BlockSpec((TB, D), lambda i: (i, 0)),            # predict ent
            pl.BlockSpec((N, TB, D), lambda i: (0, i, 0)),      # neighbors (K=V)
            pl.BlockSpec((TB, N + 1), lambda i: (i, 0)),        # ids(f32)+gate logit
        ],
        out_specs=pl.BlockSpec((TB // CH, CH), lambda i: (i, 0)),
        compiler_params=pltpu.CompilerParams(
            dimension_semantics=("parallel",),
            vmem_limit_bytes=32 * 1024 * 1024),
    )(ent_e, rel_e, pred_e, nei_kv, aux)

    # One score per (src, rel, dst) triple, as in the reference forward().
    return out.reshape(-1)[:B].reshape(-1, 1)


# --------------------------- pure-JAX reference ------------------------------
def cone_reference(params, src, rel, dst, mode):
    """Straight transcription of the PyTorch forward (f32 math, same tables)."""
    if mode == 'head_batch':
        input_ent, predict_ent = dst, src
    else:
        input_ent, predict_ent = src, dst
    input_ent = input_ent.reshape(-1)
    predict_ent = predict_ent.reshape(-1)
    rel_idx = rel.reshape(-1)

    input_nei = params['neiMatrix'][input_ent]                      # (B, N)
    mask = input_nei > 0
    ent = params['ent_embed'][input_ent].astype(jnp.float32)
    pred = params['ent_embed'][predict_ent].astype(jnp.float32)
    nei = params['nei_embed'][input_nei].astype(jnp.float32)        # (B, N, D)
    relv = params['rel_embed'][rel_idx].astype(jnp.float32)
    wlog = params['weight_embed'][input_ent]                        # (B, 1)

    q = ent + relv
    s = jnp.einsum('bd,bnd->bn', q, nei)
    s = jnp.where(mask, s, -1e30)
    attn = jax.nn.softmax(s, axis=1)
    nei_enc = jnp.einsum('bn,bnd->bd', attn, nei)
    w = jax.nn.sigmoid(wlog)
    comb = w * nei_enc + (1.0 - w) * ent
    if mode == 'head_batch':
        diff = pred + relv - comb
    else:
        diff = comb + relv - pred
    return -jnp.sum(jnp.abs(diff), axis=1, keepdims=True)


# --------------------------- parameter construction --------------------------
def make_params(key, *, entity_num, relation_num, embedding_dim, nei_size):
    k1, k2, k3, k4, k5 = jax.random.split(key, 5)
    scale = 1.0 / (embedding_dim ** 0.5)
    d_pad = _round_up(embedding_dim, 128)          # pad tables once, here

    def table(k, rows):
        t = scale * jax.random.normal(k, (rows, embedding_dim), jnp.float32)
        if d_pad != embedding_dim:
            t = jnp.pad(t, ((0, 0), (0, d_pad - embedding_dim)))
        return t.astype(jnp.bfloat16)

    ent = table(k1, entity_num)
    rel = table(k2, relation_num)
    nei = table(k3, entity_num)
    wgt = scale * jax.random.normal(k4, (entity_num, 1), jnp.float32)
    # Neighbor indices kept int32 (the reference stores floats in nn.Embedding
    # and casts to long); id 0 is treated as padding, as in the reference.
    nei_mat = jax.random.randint(k5, (entity_num, nei_size), 0, entity_num,
                                 jnp.int32)
    return {
        'ent_embed': ent,
        'rel_embed': rel,
        'nei_embed': nei,
        'weight_embed': wgt,
        'neiMatrix': nei_mat,
    }


if __name__ == "__main__":
    ENTITY_NUM = 64
    RELATION_NUM = 8
    EMBED_DIM = 128      # multiple of 128 -> lane-dense vregs
    NEI_SIZE = 16
    BATCH = 1024         # TB=512 -> grid=(2,), pipelined / 2-TC-splittable

    key = jax.random.PRNGKey(0)
    pkey, skey, rkey, dkey = jax.random.split(key, 4)
    params = make_params(pkey, entity_num=ENTITY_NUM, relation_num=RELATION_NUM,
                         embedding_dim=EMBED_DIM, nei_size=NEI_SIZE)

    src = jax.random.randint(skey, (BATCH,), 0, ENTITY_NUM, jnp.int32)
    rel = jax.random.randint(rkey, (BATCH,), 0, RELATION_NUM, jnp.int32)
    dst = jax.random.randint(dkey, (BATCH,), 0, ENTITY_NUM, jnp.int32)

    out_tail = cone_forward(params, src, rel, dst, mode='tail_batch')
    out_head = cone_forward(params, src, rel, dst, mode='head_batch')
    jax.block_until_ready((out_tail, out_head))

    ref_tail = cone_reference(params, src, rel, dst, mode='tail_batch')
    ref_head = cone_reference(params, src, rel, dst, mode='head_batch')

    assert out_tail.shape == (BATCH, 1) and out_head.shape == (BATCH, 1)
    assert bool(jnp.all(jnp.isfinite(out_tail)))
    assert bool(jnp.all(jnp.isfinite(out_head)))
    # bf16 tables are shared by kernel and reference; residual error comes
    # from the approx reciprocal / online softmax ordering (~1e-3).
    assert bool(jnp.allclose(out_tail, ref_tail, rtol=5e-3, atol=5e-2)), \
        float(jnp.max(jnp.abs(out_tail - ref_tail)))
    assert bool(jnp.allclose(out_head, ref_head, rtol=5e-3, atol=5e-2)), \
        float(jnp.max(jnp.abs(out_head - ref_head)))
    print("KERNEL_OK")
</pallas_src>

<mosaic_0001>
module attributes {stable_mosaic.version = 11 : i64} {
  func.func @_cone_kernel(%arg0: i32, %arg1: memref<512x128xbf16, #tpu.memory_space<vmem>>, %arg2: memref<512x128xbf16, #tpu.memory_space<vmem>>, %arg3: memref<512x128xbf16, #tpu.memory_space<vmem>>, %arg4: memref<16x512x128xbf16, #tpu.memory_space<vmem>>, %arg5: memref<512x17xf32, #tpu.memory_space<vmem>>, %arg6: memref<16x32xf32, #tpu.memory_space<vmem>>) attributes {dimension_semantics = [#tpu.dimension_semantics<parallel>], iteration_bounds = array<i64: 2>, scalar_prefetch = 0 : i64, scratch_operands = 0 : i64, tpu.core_type = #tpu.core_type<tc>, window_params = [{transform_indices = @transform_0, window_bounds = array<i64: 512, 128>}, {transform_indices = @transform_1, window_bounds = array<i64: 512, 128>}, {transform_indices = @transform_2, window_bounds = array<i64: 512, 128>}, {transform_indices = @transform_3, window_bounds = array<i64: 16, 512, 128>}, {transform_indices = @transform_4, window_bounds = array<i64: 512, 17>}, {transform_indices = @transform_5, window_bounds = array<i64: 16, 32>}]} {
    %cst = arith.constant -1.000000e+30 : f32
    %c0_i32 = arith.constant 0 : i32
    %c16_i32 = arith.constant 16 : i32
    %0 = arith.addi %c0_i32, %c16_i32 : i32
    %c1_i32 = arith.constant 1 : i32
    scf.for %arg7 = %c0_i32 to %0 step %c1_i32  : i32 {
      %c32_i32 = arith.constant 32 : i32
      %1 = arith.muli %arg7, %c32_i32 : i32
      %2 = tpu.assume_multiple %1, 32 : i32
      %3 = arith.index_cast %2 : i32 to index
      %c0 = arith.constant 0 : index
      %4 = vector.load %arg1[%3, %c0] : memref<512x128xbf16, #tpu.memory_space<vmem>>, vector<32x128xbf16>
      %5 = arith.extf %4 : vector<32x128xbf16> to vector<32x128xf32>
      %6 = arith.index_cast %2 : i32 to index
      %c0_1 = arith.constant 0 : index
      %7 = vector.load %arg2[%6, %c0_1] : memref<512x128xbf16, #tpu.memory_space<vmem>>, vector<32x128xbf16>
      %8 = arith.extf %7 : vector<32x128xbf16> to vector<32x128xf32>
      %9 = arith.addf %5, %8 : vector<32x128xf32>
      %10 = arith.index_cast %2 : i32 to index
      %c0_2 = arith.constant 0 : index
      %11 = vector.load %arg5[%10, %c0_2] : memref<512x17xf32, #tpu.memory_space<vmem>>, vector<32x17xf32>
      %12 = vector.broadcast %cst : f32 to vector<32x1xf32>
      %cst_3 = arith.constant 0.000000e+00 : f32
      %13 = vector.broadcast %cst_3 : f32 to vector<32x1xf32>
      %cst_4 = arith.constant 0.000000e+00 : f32
      %14 = vector.broadcast %cst_4 : f32 to vector<32x128xf32>
      %c0_5 = arith.constant 0 : index
      %15 = arith.index_cast %2 : i32 to index
      %c0_6 = arith.constant 0 : index
      %16 = vector.load %arg4[%c0_5, %15, %c0_6] : memref<16x512x128xbf16, #tpu.memory_space<vmem>>, vector<1x32x128xbf16>
      %17 = vector.shape_cast %16 : vector<1x32x128xbf16> to vector<32x128xbf16>
      %18 = arith.extf %17 : vector<32x128xbf16> to vector<32x128xf32>
      %19 = arith.mulf %9, %18 : vector<32x128xf32>
      %cst_7 = arith.constant dense<0.000000e+00> : vector<32xf32>
      %20 = vector.multi_reduction <add>, %19, %cst_7 [1] : vector<32x128xf32> to vector<32xf32>
      %21 = vector.shape_cast %20 : vector<32xf32> to vector<32x1xf32>
      %22 = vector.extract_strided_slice %11 {offsets = [0, 0], sizes = [32, 1], strides = [1, 1]} : vector<32x17xf32> to vector<32x1xf32>
      %cst_8 = arith.constant 0.000000e+00 : f32
      %23 = vector.broadcast %cst_8 : f32 to vector<32x1xf32>
      %24 = arith.cmpf ogt, %22, %23 : vector<32x1xf32>
      %25 = vector.broadcast %cst : f32 to vector<32x1xf32>
      %26 = arith.select %24, %21, %25 : vector<32x1xi1>, vector<32x1xf32>
      %27 = arith.maximumf %12, %26 : vector<32x1xf32>
      %28 = arith.subf %12, %27 : vector<32x1xf32>
      %29 = math.exp %28 : vector<32x1xf32>
      %30 = arith.subf %26, %27 : vector<32x1xf32>
      %31 = math.exp %30 : vector<32x1xf32>
      %32 = arith.mulf %29, %13 : vector<32x1xf32>
      %33 = arith.addf %32, %31 : vector<32x1xf32>
      %34 = vector.broadcast %29 : vector<32x1xf32> to vector<32x128xf32>
      %35 = arith.mulf %34, %14 : vector<32x128xf32>
      %36 = vector.broadcast %31 : vector<32x1xf32> to vector<32x128xf32>
      %37 = arith.mulf %36, %18 : vector<32x128xf32>
      %38 = arith.addf %35, %37 : vector<32x128xf32>
      %c1 = arith.constant 1 : index
      %39 = arith.index_cast %2 : i32 to index
      %c0_9 = arith.constant 0 : index
      %40 = vector.load %arg4[%c1, %39, %c0_9] : memref<16x512x128xbf16, #tpu.memory_space<vmem>>, vector<1x32x128xbf16>
      %41 = vector.shape_cast %40 : vector<1x32x128xbf16> to vector<32x128xbf16>
      %42 = arith.extf %41 : vector<32x128xbf16> to vector<32x128xf32>
      %43 = arith.mulf %9, %42 : vector<32x128xf32>
      %cst_10 = arith.constant dense<0.000000e+00> : vector<32xf32>
      %44 = vector.multi_reduction <add>, %43, %cst_10 [1] : vector<32x128xf32> to vector<32xf32>
      %45 = vector.shape_cast %44 : vector<32xf32> to vector<32x1xf32>
      %46 = vector.extract_strided_slice %11 {offsets = [0, 1], sizes = [32, 1], strides = [1, 1]} : vector<32x17xf32> to vector<32x1xf32>
      %cst_11 = arith.constant 0.000000e+00 : f32
      %47 = vector.broadcast %cst_11 : f32 to vector<32x1xf32>
      %48 = arith.cmpf ogt, %46, %47 : vector<32x1xf32>
      %49 = vector.broadcast %cst : f32 to vector<32x1xf32>
      %50 = arith.select %48, %45, %49 : vector<32x1xi1>, vector<32x1xf32>
      %51 = arith.maximumf %27, %50 : vector<32x1xf32>
      %52 = arith.subf %27, %51 : vector<32x1xf32>
      %53 = math.exp %52 : vector<32x1xf32>
      %54 = arith.subf %50, %51 : vector<32x1xf32>
      %55 = math.exp %54 : vector<32x1xf32>
      %56 = arith.mulf %53, %33 : vector<32x1xf32>
      %57 = arith.addf %56, %55 : vector<32x1xf32>
      %58 = vector.broadcast %53 : vector<32x1xf32> to vector<32x128xf32>
      %59 = arith.mulf %58, %38 : vector<32x128xf32>
      %60 = vector.broadcast %55 : vector<32x1xf32> to vector<32x128xf32>
      %61 = arith.mulf %60, %42 : vector<32x128xf32>
      %62 = arith.addf %59, %61 : vector<32x128xf32>
      %c2 = arith.constant 2 : index
      %63 = arith.index_cast %2 : i32 to index
      %c0_12 = arith.constant 0 : index
      %64 = vector.load %arg4[%c2, %63, %c0_12] : memref<16x512x128xbf16, #tpu.memory_space<vmem>>, vector<1x32x128xbf16>
      %65 = vector.shape_cast %64 : vector<1x32x128xbf16> to vector<32x128xbf16>
      %66 = arith.extf %65 : vector<32x128xbf16> to vector<32x128xf32>
      %67 = arith.mulf %9, %66 : vector<32x128xf32>
      %cst_13 = arith.constant dense<0.000000e+00> : vector<32xf32>
      %68 = vector.multi_reduction <add>, %67, %cst_13 [1] : vector<32x128xf32> to vector<32xf32>
      %69 = vector.shape_cast %68 : vector<32xf32> to vector<32x1xf32>
      %70 = vector.extract_strided_slice %11 {offsets = [0, 2], sizes = [32, 1], strides = [1, 1]} : vector<32x17xf32> to vector<32x1xf32>
      %cst_14 = arith.constant 0.000000e+00 : f32
      %71 = vector.broadcast %cst_14 : f32 to vector<32x1xf32>
      %72 = arith.cmpf ogt, %70, %71 : vector<32x1xf32>
      %73 = vector.broadcast %cst : f32 to vector<32x1xf32>
      %74 = arith.select %72, %69, %73 : vector<32x1xi1>, vector<32x1xf32>
      %75 = arith.maximumf %51, %74 : vector<32x1xf32>
      %76 = arith.subf %51, %75 : vector<32x1xf32>
      %77 = math.exp %76 : vector<32x1xf32>
      %78 = arith.subf %74, %75 : vector<32x1xf32>
      %79 = math.exp %78 : vector<32x1xf32>
      %80 = arith.mulf %77, %57 : vector<32x1xf32>
      %81 = arith.addf %80, %79 : vector<32x1xf32>
      %82 = vector.broadcast %77 : vector<32x1xf32> to vector<32x128xf32>
      %83 = arith.mulf %82, %62 : vector<32x128xf32>
      %84 = vector.broadcast %79 : vector<32x1xf32> to vector<32x128xf32>
      %85 = arith.mulf %84, %66 : vector<32x128xf32>
      %86 = arith.addf %83, %85 : vector<32x128xf32>
      %c3 = arith.constant 3 : index
      %87 = arith.index_cast %2 : i32 to index
      %c0_15 = arith.constant 0 : index
      %88 = vector.load %arg4[%c3, %87, %c0_15] : memref<16x512x128xbf16, #tpu.memory_space<vmem>>, vector<1x32x128xbf16>
      %89 = vector.shape_cast %88 : vector<1x32x128xbf16> to vector<32x128xbf16>
      %90 = arith.extf %89 : vector<32x128xbf16> to vector<32x128xf32>
      %91 = arith.mulf %9, %90 : vector<32x128xf32>
      %cst_16 = arith.constant dense<0.000000e+00> : vector<32xf32>
      %92 = vector.multi_reduction <add>, %91, %cst_16 [1] : vector<32x128xf32> to vector<32xf32>
      %93 = vector.shape_cast %92 : vector<32xf32> to vector<32x1xf32>
      %94 = vector.extract_strided_slice %11 {offsets = [0, 3], sizes = [32, 1], strides = [1, 1]} : vector<32x17xf32> to vector<32x1xf32>
      %cst_17 = arith.constant 0.000000e+00 : f32
      %95 = vector.broadcast %cst_17 : f32 to vector<32x1xf32>
      %96 = arith.cmpf ogt, %94, %95 : vector<32x1xf32>
      %97 = vector.broadcast %cst : f32 to vector<32x1xf32>
      %98 = arith.select %96, %93, %97 : vector<32x1xi1>, vector<32x1xf32>
      %99 = arith.maximumf %75, %98 : vector<32x1xf32>
      %100 = arith.subf %75, %99 : vector<32x1xf32>
      %101 = math.exp %100 : vector<32x1xf32>
      %102 = arith.subf %98, %99 : vector<32x1xf32>
      %103 = math.exp %102 : vector<32x1xf32>
      %104 = arith.mulf %101, %81 : vector<32x1xf32>
      %105 = arith.addf %104, %103 : vector<32x1xf32>
      %106 = vector.broadcast %101 : vector<32x1xf32> to vector<32x128xf32>
      %107 = arith.mulf %106, %86 : vector<32x128xf32>
      %108 = vector.broadcast %103 : vector<32x1xf32> to vector<32x128xf32>
      %109 = arith.mulf %108, %90 : vector<32x128xf32>
      %110 = arith.addf %107, %109 : vector<32x128xf32>
      %c4 = arith.constant 4 : index
      %111 = arith.index_cast %2 : i32 to index
      %c0_18 = arith.constant 0 : index
      %112 = vector.load %arg4[%c4, %111, %c0_18] : memref<16x512x128xbf16, #tpu.memory_space<vmem>>, vector<1x32x128xbf16>
      %113 = vector.shape_cast %112 : vector<1x32x128xbf16> to vector<32x128xbf16>
      %114 = arith.extf %113 : vector<32x128xbf16> to vector<32x128xf32>
      %115 = arith.mulf %9, %114 : vector<32x128xf32>
      %cst_19 = arith.constant dense<0.000000e+00> : vector<32xf32>
      %116 = vector.multi_reduction <add>, %115, %cst_19 [1] : vector<32x128xf32> to vector<32xf32>
      %117 = vector.shape_cast %116 : vector<32xf32> to vector<32x1xf32>
      %118 = vector.extract_strided_slice %11 {offsets = [0, 4], sizes = [32, 1], strides = [1, 1]} : vector<32x17xf32> to vector<32x1xf32>
      %cst_20 = arith.constant 0.000000e+00 : f32
      %119 = vector.broadcast %cst_20 : f32 to vector<32x1xf32>
      %120 = arith.cmpf ogt, %118, %119 : vector<32x1xf32>
      %121 = vector.broadcast %cst : f32 to vector<32x1xf32>
      %122 = arith.select %120, %117, %121 : vector<32x1xi1>, vector<32x1xf32>
      %123 = arith.maximumf %99, %122 : vector<32x1xf32>
      %124 = arith.subf %99, %123 : vector<32x1xf32>
      %125 = math.exp %124 : vector<32x1xf32>
      %126 = arith.subf %122, %123 : vector<32x1xf32>
      %127 = math.exp %126 : vector<32x1xf32>
      %128 = arith.mulf %125, %105 : vector<32x1xf32>
      %129 = arith.addf %128, %127 : vector<32x1xf32>
      %130 = vector.broadcast %125 : vector<32x1xf32> to vector<32x128xf32>
      %131 = arith.mulf %130, %110 : vector<32x128xf32>
      %132 = vector.broadcast %127 : vector<32x1xf32> to vector<32x128xf32>
      %133 = arith.mulf %132, %114 : vector<32x128xf32>
      %134 = arith.addf %131, %133 : vector<32x128xf32>
      %c5 = arith.constant 5 : index
      %135 = arith.index_cast %2 : i32 to index
      %c0_21 = arith.constant 0 : index
      %136 = vector.load %arg4[%c5, %135, %c0_21] : memref<16x512x128xbf16, #tpu.memory_space<vmem>>, vector<1x32x128xbf16>
      %137 = vector.shape_cast %136 : vector<1x32x128xbf16> to vector<32x128xbf16>
      %138 = arith.extf %137 : vector<32x128xbf16> to vector<32x128xf32>
      %139 = arith.mulf %9, %138 : vector<32x128xf32>
      %cst_22 = arith.constant dense<0.000000e+00> : vector<32xf32>
      %140 = vector.multi_reduction <add>, %139, %cst_22 [1] : vector<32x128xf32> to vector<32xf32>
      %141 = vector.shape_cast %140 : vector<32xf32> to vector<32x1xf32>
      %142 = vector.extract_strided_slice %11 {offsets = [0, 5], sizes = [32, 1], strides = [1, 1]} : vector<32x17xf32> to vector<32x1xf32>
      %cst_23 = arith.constant 0.000000e+00 : f32
      %143 = vector.broadcast %cst_23 : f32 to vector<32x1xf32>
      %144 = arith.cmpf ogt, %142, %143 : vector<32x1xf32>
      %145 = vector.broadcast %cst : f32 to vector<32x1xf32>
      %146 = arith.select %144, %141, %145 : vector<32x1xi1>, vector<32x1xf32>
      %147 = arith.maximumf %123, %146 : vector<32x1xf32>
      %148 = arith.subf %123, %147 : vector<32x1xf32>
      %149 = math.exp %148 : vector<32x1xf32>
      %150 = arith.subf %146, %147 : vector<32x1xf32>
      %151 = math.exp %150 : vector<32x1xf32>
      %152 = arith.mulf %149, %129 : vector<32x1xf32>
      %153 = arith.addf %152, %151 : vector<32x1xf32>
      %154 = vector.broadcast %149 : vector<32x1xf32> to vector<32x128xf32>
      %155 = arith.mulf %154, %134 : vector<32x128xf32>
      %156 = vector.broadcast %151 : vector<32x1xf32> to vector<32x128xf32>
      %157 = arith.mulf %156, %138 : vector<32x128xf32>
      %158 = arith.addf %155, %157 : vector<32x128xf32>
      %c6 = arith.constant 6 : index
      %159 = arith.index_cast %2 : i32 to index
      %c0_24 = arith.constant 0 : index
      %160 = vector.load %arg4[%c6, %159, %c0_24] : memref<16x512x128xbf16, #tpu.memory_space<vmem>>, vector<1x32x128xbf16>
      %161 = vector.shape_cast %160 : vector<1x32x128xbf16> to vector<32x128xbf16>
      %162 = arith.extf %161 : vector<32x128xbf16> to vector<32x128xf32>
      %163 = arith.mulf %9, %162 : vector<32x128xf32>
      %cst_25 = arith.constant dense<0.000000e+00> : vector<32xf32>
      %164 = vector.multi_reduction <add>, %163, %cst_25 [1] : vector<32x128xf32> to vector<32xf32>
      %165 = vector.shape_cast %164 : vector<32xf32> to vector<32x1xf32>
      %166 = vector.extract_strided_slice %11 {offsets = [0, 6], sizes = [32, 1], strides = [1, 1]} : vector<32x17xf32> to vector<32x1xf32>
      %cst_26 = arith.constant 0.000000e+00 : f32
      %167 = vector.broadcast %cst_26 : f32 to vector<32x1xf32>
      %168 = arith.cmpf ogt, %166, %167 : vector<32x1xf32>
      %169 = vector.broadcast %cst : f32 to vector<32x1xf32>
      %170 = arith.select %168, %165, %169 : vector<32x1xi1>, vector<32x1xf32>
      %171 = arith.maximumf %147, %170 : vector<32x1xf32>
      %172 = arith.subf %147, %171 : vector<32x1xf32>
      %173 = math.exp %172 : vector<32x1xf32>
      %174 = arith.subf %170, %171 : vector<32x1xf32>
      %175 = math.exp %174 : vector<32x1xf32>
      %176 = arith.mulf %173, %153 : vector<32x1xf32>
      %177 = arith.addf %176, %175 : vector<32x1xf32>
      %178 = vector.broadcast %173 : vector<32x1xf32> to vector<32x128xf32>
      %179 = arith.mulf %178, %158 : vector<32x128xf32>
      %180 = vector.broadcast %175 : vector<32x1xf32> to vector<32x128xf32>
      %181 = arith.mulf %180, %162 : vector<32x128xf32>
      %182 = arith.addf %179, %181 : vector<32x128xf32>
      %c7 = arith.constant 7 : index
      %183 = arith.index_cast %2 : i32 to index
      %c0_27 = arith.constant 0 : index
      %184 = vector.load %arg4[%c7, %183, %c0_27] : memref<16x512x128xbf16, #tpu.memory_space<vmem>>, vector<1x32x128xbf16>
      %185 = vector.shape_cast %184 : vector<1x32x128xbf16> to vector<32x128xbf16>
      %186 = arith.extf %185 : vector<32x128xbf16> to vector<32x128xf32>
      %187 = arith.mulf %9, %186 : vector<32x128xf32>
      %cst_28 = arith.constant dense<0.000000e+00> : vector<32xf32>
      %188 = vector.multi_reduction <add>, %187, %cst_28 [1] : vector<32x128xf32> to vector<32xf32>
      %189 = vector.shape_cast %188 : vector<32xf32> to vector<32x1xf32>
      %190 = vector.extract_strided_slice %11 {offsets = [0, 7], sizes = [32, 1], strides = [1, 1]} : vector<32x17xf32> to vector<32x1xf32>
      %cst_29 = arith.constant 0.000000e+00 : f32
      %191 = vector.broadcast %cst_29 : f32 to vector<32x1xf32>
      %192 = arith.cmpf ogt, %190, %191 : vector<32x1xf32>
      %193 = vector.broadcast %cst : f32 to vector<32x1xf32>
      %194 = arith.select %192, %189, %193 : vector<32x1xi1>, vector<32x1xf32>
      %195 = arith.maximumf %171, %194 : vector<32x1xf32>
      %196 = arith.subf %171, %195 : vector<32x1xf32>
      %197 = math.exp %196 : vector<32x1xf32>
      %198 = arith.subf %194, %195 : vector<32x1xf32>
      %199 = math.exp %198 : vector<32x1xf32>
      %200 = arith.mulf %197, %177 : vector<32x1xf32>
      %201 = arith.addf %200, %199 : vector<32x1xf32>
      %202 = vector.broadcast %197 : vector<32x1xf32> to vector<32x128xf32>
      %203 = arith.mulf %202, %182 : vector<32x128xf32>
      %204 = vector.broadcast %199 : vector<32x1xf32> to vector<32x128xf32>
      %205 = arith.mulf %204, %186 : vector<32x128xf32>
      %206 = arith.addf %203, %205 : vector<32x128xf32>
      %c8 = arith.constant 8 : index
      %207 = arith.index_cast %2 : i32 to index
      %c0_30 = arith.constant 0 : index
      %208 = vector.load %arg4[%c8, %207, %c0_30] : memref<16x512x128xbf16, #tpu.memory_space<vmem>>, vector<1x32x128xbf16>
      %209 = vector.shape_cast %208 : vector<1x32x128xbf16> to vector<32x128xbf16>
      %210 = arith.extf %209 : vector<32x128xbf16> to vector<32x128xf32>
      %211 = arith.mulf %9, %210 : vector<32x128xf32>
      %cst_31 = arith.constant dense<0.000000e+00> : vector<32xf32>
      %212 = vector.multi_reduction <add>, %211, %cst_31 [1] : vector<32x128xf32> to vector<32xf32>
      %213 = vector.shape_cast %212 : vector<32xf32> to vector<32x1xf32>
      %214 = vector.extract_strided_slice %11 {offsets = [0, 8], sizes = [32, 1], strides = [1, 1]} : vector<32x17xf32> to vector<32x1xf32>
      %cst_32 = arith.constant 0.000000e+00 : f32
      %215 = vector.broadcast %cst_32 : f32 to vector<32x1xf32>
      %216 = arith.cmpf ogt, %214, %215 : vector<32x1xf32>
      %217 = vector.broadcast %cst : f32 to vector<32x1xf32>
      %218 = arith.select %216, %213, %217 : vector<32x1xi1>, vector<32x1xf32>
      %219 = arith.maximumf %195, %218 : vector<32x1xf32>
      %220 = arith.subf %195, %219 : vector<32x1xf32>
      %221 = math.exp %220 : vector<32x1xf32>
      %222 = arith.subf %218, %219 : vector<32x1xf32>
      %223 = math.exp %222 : vector<32x1xf32>
      %224 = arith.mulf %221, %201 : vector<32x1xf32>
      %225 = arith.addf %224, %223 : vector<32x1xf32>
      %226 = vector.broadcast %221 : vector<32x1xf32> to vector<32x128xf32>
      %227 = arith.mulf %226, %206 : vector<32x128xf32>
      %228 = vector.broadcast %223 : vector<32x1xf32> to vector<32x128xf32>
      %229 = arith.mulf %228, %210 : vector<32x128xf32>
      %230 = arith.addf %227, %229 : vector<32x128xf32>
      %c9 = arith.constant 9 : index
      %231 = arith.index_cast %2 : i32 to index
      %c0_33 = arith.constant 0 : index
      %232 = vector.load %arg4[%c9, %231, %c0_33] : memref<16x512x128xbf16, #tpu.memory_space<vmem>>, vector<1x32x128xbf16>
      %233 = vector.shape_cast %232 : vector<1x32x128xbf16> to vector<32x128xbf16>
      %234 = arith.extf %233 : vector<32x128xbf16> to vector<32x128xf32>
      %235 = arith.mulf %9, %234 : vector<32x128xf32>
      %cst_34 = arith.constant dense<0.000000e+00> : vector<32xf32>
      %236 = vector.multi_reduction <add>, %235, %cst_34 [1] : vector<32x128xf32> to vector<32xf32>
      %237 = vector.shape_cast %236 : vector<32xf32> to vector<32x1xf32>
      %238 = vector.extract_strided_slice %11 {offsets = [0, 9], sizes = [32, 1], strides = [1, 1]} : vector<32x17xf32> to vector<32x1xf32>
      %cst_35 = arith.constant 0.000000e+00 : f32
      %239 = vector.broadcast %cst_35 : f32 to vector<32x1xf32>
      %240 = arith.cmpf ogt, %238, %239 : vector<32x1xf32>
      %241 = vector.broadcast %cst : f32 to vector<32x1xf32>
      %242 = arith.select %240, %237, %241 : vector<32x1xi1>, vector<32x1xf32>
      %243 = arith.maximumf %219, %242 : vector<32x1xf32>
      %244 = arith.subf %219, %243 : vector<32x1xf32>
      %245 = math.exp %244 : vector<32x1xf32>
      %246 = arith.subf %242, %243 : vector<32x1xf32>
      %247 = math.exp %246 : vector<32x1xf32>
      %248 = arith.mulf %245, %225 : vector<32x1xf32>
      %249 = arith.addf %248, %247 : vector<32x1xf32>
      %250 = vector.broadcast %245 : vector<32x1xf32> to vector<32x128xf32>
      %251 = arith.mulf %250, %230 : vector<32x128xf32>
      %252 = vector.broadcast %247 : vector<32x1xf32> to vector<32x128xf32>
      %253 = arith.mulf %252, %234 : vector<32x128xf32>
      %254 = arith.addf %251, %253 : vector<32x128xf32>
      %c10 = arith.constant 10 : index
      %255 = arith.index_cast %2 : i32 to index
      %c0_36 = arith.constant 0 : index
      %256 = vector.load %arg4[%c10, %255, %c0_36] : memref<16x512x128xbf16, #tpu.memory_space<vmem>>, vector<1x32x128xbf16>
      %257 = vector.shape_cast %256 : vector<1x32x128xbf16> to vector<32x128xbf16>
      %258 = arith.extf %257 : vector<32x128xbf16> to vector<32x128xf32>
      %259 = arith.mulf %9, %258 : vector<32x128xf32>
      %cst_37 = arith.constant dense<0.000000e+00> : vector<32xf32>
      %260 = vector.multi_reduction <add>, %259, %cst_37 [1] : vector<32x128xf32> to vector<32xf32>
      %261 = vector.shape_cast %260 : vector<32xf32> to vector<32x1xf32>
      %262 = vector.extract_strided_slice %11 {offsets = [0, 10], sizes = [32, 1], strides = [1, 1]} : vector<32x17xf32> to vector<32x1xf32>
      %cst_38 = arith.constant 0.000000e+00 : f32
      %263 = vector.broadcast %cst_38 : f32 to vector<32x1xf32>
      %264 = arith.cmpf ogt, %262, %263 : vector<32x1xf32>
      %265 = vector.broadcast %cst : f32 to vector<32x1xf32>
      %266 = arith.select %264, %261, %265 : vector<32x1xi1>, vector<32x1xf32>
      %267 = arith.maximumf %243, %266 : vector<32x1xf32>
      %268 = arith.subf %243, %267 : vector<32x1xf32>
      %269 = math.exp %268 : vector<32x1xf32>
      %270 = arith.subf %266, %267 : vector<32x1xf32>
      %271 = math.exp %270 : vector<32x1xf32>
      %272 = arith.mulf %269, %249 : vector<32x1xf32>
      %273 = arith.addf %272, %271 : vector<32x1xf32>
      %274 = vector.broadcast %269 : vector<32x1xf32> to vector<32x128xf32>
      %275 = arith.mulf %274, %254 : vector<32x128xf32>
      %276 = vector.broadcast %271 : vector<32x1xf32> to vector<32x128xf32>
      %277 = arith.mulf %276, %258 : vector<32x128xf32>
      %278 = arith.addf %275, %277 : vector<32x128xf32>
      %c11 = arith.constant 11 : index
      %279 = arith.index_cast %2 : i32 to index
      %c0_39 = arith.constant 0 : index
      %280 = vector.load %arg4[%c11, %279, %c0_39] : memref<16x512x128xbf16, #tpu.memory_space<vmem>>, vector<1x32x128xbf16>
      %281 = vector.shape_cast %280 : vector<1x32x128xbf16> to vector<32x128xbf16>
      %282 = arith.extf %281 : vector<32x128xbf16> to vector<32x128xf32>
      %283 = arith.mulf %9, %282 : vector<32x128xf32>
      %cst_40 = arith.constant dense<0.000000e+00> : vector<32xf32>
      %284 = vector.multi_reduction <add>, %283, %cst_40 [1] : vector<32x128xf32> to vector<32xf32>
      %285 = vector.shape_cast %284 : vector<32xf32> to vector<32x1xf32>
      %286 = vector.extract_strided_slice %11 {offsets = [0, 11], sizes = [32, 1], strides = [1, 1]} : vector<32x17xf32> to vector<32x1xf32>
      %cst_41 = arith.constant 0.000000e+00 : f32
      %287 = vector.broadcast %cst_41 : f32 to vector<32x1xf32>
      %288 = arith.cmpf ogt, %286, %287 : vector<32x1xf32>
      %289 = vector.broadcast %cst : f32 to vector<32x1xf32>
      %290 = arith.select %288, %285, %289 : vector<32x1xi1>, vector<32x1xf32>
      %291 = arith.maximumf %267, %290 : vector<32x1xf32>
      %292 = arith.subf %267, %291 : vector<32x1xf32>
      %293 = math.exp %292 : vector<32x1xf32>
      %294 = arith.subf %290, %291 : vector<32x1xf32>
      %295 = math.exp %294 : vector<32x1xf32>
      %296 = arith.mulf %293, %273 : vector<32x1xf32>
      %297 = arith.addf %296, %295 : vector<32x1xf32>
      %298 = vector.broadcast %293 : vector<32x1xf32> to vector<32x128xf32>
      %299 = arith.mulf %298, %278 : vector<32x128xf32>
      %300 = vector.broadcast %295 : vector<32x1xf32> to vector<32x128xf32>
      %301 = arith.mulf %300, %282 : vector<32x128xf32>
      %302 = arith.addf %299, %301 : vector<32x128xf32>
      %c12 = arith.constant 12 : index
      %303 = arith.index_cast %2 : i32 to index
      %c0_42 = arith.constant 0 : index
      %304 = vector.load %arg4[%c12, %303, %c0_42] : memref<16x512x128xbf16, #tpu.memory_space<vmem>>, vector<1x32x128xbf16>
      %305 = vector.shape_cast %304 : vector<1x32x128xbf16> to vector<32x128xbf16>
      %306 = arith.extf %305 : vector<32x128xbf16> to vector<32x128xf32>
      %307 = arith.mulf %9, %306 : vector<32x128xf32>
      %cst_43 = arith.constant dense<0.000000e+00> : vector<32xf32>
      %308 = vector.multi_reduction <add>, %307, %cst_43 [1] : vector<32x128xf32> to vector<32xf32>
      %309 = vector.shape_cast %308 : vector<32xf32> to vector<32x1xf32>
      %310 = vector.extract_strided_slice %11 {offsets = [0, 12], sizes = [32, 1], strides = [1, 1]} : vector<32x17xf32> to vector<32x1xf32>
      %cst_44 = arith.constant 0.000000e+00 : f32
      %311 = vector.broadcast %cst_44 : f32 to vector<32x1xf32>
      %312 = arith.cmpf ogt, %310, %311 : vector<32x1xf32>
      %313 = vector.broadcast %cst : f32 to vector<32x1xf32>
      %314 = arith.select %312, %309, %313 : vector<32x1xi1>, vector<32x1xf32>
      %315 = arith.maximumf %291, %314 : vector<32x1xf32>
      %316 = arith.subf %291, %315 : vector<32x1xf32>
      %317 = math.exp %316 : vector<32x1xf32>
      %318 = arith.subf %314, %315 : vector<32x1xf32>
      %319 = math.exp %318 : vector<32x1xf32>
      %320 = arith.mulf %317, %297 : vector<32x1xf32>
      %321 = arith.addf %320, %319 : vector<32x1xf32>
      %322 = vector.broadcast %317 : vector<32x1xf32> to vector<32x128xf32>
      %323 = arith.mulf %322, %302 : vector<32x128xf32>
      %324 = vector.broadcast %319 : vector<32x1xf32> to vector<32x128xf32>
      %325 = arith.mulf %324, %306 : vector<32x128xf32>
      %326 = arith.addf %323, %325 : vector<32x128xf32>
      %c13 = arith.constant 13 : index
      %327 = arith.index_cast %2 : i32 to index
      %c0_45 = arith.constant 0 : index
      %328 = vector.load %arg4[%c13, %327, %c0_45] : memref<16x512x128xbf16, #tpu.memory_space<vmem>>, vector<1x32x128xbf16>
      %329 = vector.shape_cast %328 : vector<1x32x128xbf16> to vector<32x128xbf16>
      %330 = arith.extf %329 : vector<32x128xbf16> to vector<32x128xf32>
      %331 = arith.mulf %9, %330 : vector<32x128xf32>
      %cst_46 = arith.constant dense<0.000000e+00> : vector<32xf32>
      %332 = vector.multi_reduction <add>, %331, %cst_46 [1] : vector<32x128xf32> to vector<32xf32>
      %333 = vector.shape_cast %332 : vector<32xf32> to vector<32x1xf32>
      %334 = vector.extract_strided_slice %11 {offsets = [0, 13], sizes = [32, 1], strides = [1, 1]} : vector<32x17xf32> to vector<32x1xf32>
      %cst_47 = arith.constant 0.000000e+00 : f32
      %335 = vector.broadcast %cst_47 : f32 to vector<32x1xf32>
      %336 = arith.cmpf ogt, %334, %335 : vector<32x1xf32>
      %337 = vector.broadcast %cst : f32 to vector<32x1xf32>
      %338 = arith.select %336, %333, %337 : vector<32x1xi1>, vector<32x1xf32>
      %339 = arith.maximumf %315, %338 : vector<32x1xf32>
      %340 = arith.subf %315, %339 : vector<32x1xf32>
      %341 = math.exp %340 : vector<32x1xf32>
      %342 = arith.subf %338, %339 : vector<32x1xf32>
      %343 = math.exp %342 : vector<32x1xf32>
      %344 = arith.mulf %341, %321 : vector<32x1xf32>
      %345 = arith.addf %344, %343 : vector<32x1xf32>
      %346 = vector.broadcast %341 : vector<32x1xf32> to vector<32x128xf32>
      %347 = arith.mulf %346, %326 : vector<32x128xf32>
      %348 = vector.broadcast %343 : vector<32x1xf32> to vector<32x128xf32>
      %349 = arith.mulf %348, %330 : vector<32x128xf32>
      %350 = arith.addf %347, %349 : vector<32x128xf32>
      %c14 = arith.constant 14 : index
      %351 = arith.index_cast %2 : i32 to index
      %c0_48 = arith.constant 0 : index
      %352 = vector.load %arg4[%c14, %351, %c0_48] : memref<16x512x128xbf16, #tpu.memory_space<vmem>>, vector<1x32x128xbf16>
      %353 = vector.shape_cast %352 : vector<1x32x128xbf16> to vector<32x128xbf16>
      %354 = arith.extf %353 : vector<32x128xbf16> to vector<32x128xf32>
      %355 = arith.mulf %9, %354 : vector<32x128xf32>
      %cst_49 = arith.constant dense<0.000000e+00> : vector<32xf32>
      %356 = vector.multi_reduction <add>, %355, %cst_49 [1] : vector<32x128xf32> to vector<32xf32>
      %357 = vector.shape_cast %356 : vector<32xf32> to vector<32x1xf32>
      %358 = vector.extract_strided_slice %11 {offsets = [0, 14], sizes = [32, 1], strides = [1, 1]} : vector<32x17xf32> to vector<32x1xf32>
      %cst_50 = arith.constant 0.000000e+00 : f32
      %359 = vector.broadcast %cst_50 : f32 to vector<32x1xf32>
      %360 = arith.cmpf ogt, %358, %359 : vector<32x1xf32>
      %361 = vector.broadcast %cst : f32 to vector<32x1xf32>
      %362 = arith.select %360, %357, %361 : vector<32x1xi1>, vector<32x1xf32>
      %363 = arith.maximumf %339, %362 : vector<32x1xf32>
      %364 = arith.subf %339, %363 : vector<32x1xf32>
      %365 = math.exp %364 : vector<32x1xf32>
      %366 = arith.subf %362, %363 : vector<32x1xf32>
      %367 = math.exp %366 : vector<32x1xf32>
      %368 = arith.mulf %365, %345 : vector<32x1xf32>
      %369 = arith.addf %368, %367 : vector<32x1xf32>
      %370 = vector.broadcast %365 : vector<32x1xf32> to vector<32x128xf32>
      %371 = arith.mulf %370, %350 : vector<32x128xf32>
      %372 = vector.broadcast %367 : vector<32x1xf32> to vector<32x128xf32>
      %373 = arith.mulf %372, %354 : vector<32x128xf32>
      %374 = arith.addf %371, %373 : vector<32x128xf32>
      %c15 = arith.constant 15 : index
      %375 = arith.index_cast %2 : i32 to index
      %c0_51 = arith.constant 0 : index
      %376 = vector.load %arg4[%c15, %375, %c0_51] : memref<16x512x128xbf16, #tpu.memory_space<vmem>>, vector<1x32x128xbf16>
      %377 = vector.shape_cast %376 : vector<1x32x128xbf16> to vector<32x128xbf16>
      %378 = arith.extf %377 : vector<32x128xbf16> to vector<32x128xf32>
      %379 = arith.mulf %9, %378 : vector<32x128xf32>
      %cst_52 = arith.constant dense<0.000000e+00> : vector<32xf32>
      %380 = vector.multi_reduction <add>, %379, %cst_52 [1] : vector<32x128xf32> to vector<32xf32>
      %381 = vector.shape_cast %380 : vector<32xf32> to vector<32x1xf32>
      %382 = vector.extract_strided_slice %11 {offsets = [0, 15], sizes = [32, 1], strides = [1, 1]} : vector<32x17xf32> to vector<32x1xf32>
      %cst_53 = arith.constant 0.000000e+00 : f32
      %383 = vector.broadcast %cst_53 : f32 to vector<32x1xf32>
      %384 = arith.cmpf ogt, %382, %383 : vector<32x1xf32>
      %385 = vector.broadcast %cst : f32 to vector<32x1xf32>
      %386 = arith.select %384, %381, %385 : vector<32x1xi1>, vector<32x1xf32>
      %387 = arith.maximumf %363, %386 : vector<32x1xf32>
      %388 = arith.subf %363, %387 : vector<32x1xf32>
      %389 = math.exp %388 : vector<32x1xf32>
      %390 = arith.subf %386, %387 : vector<32x1xf32>
      %391 = math.exp %390 : vector<32x1xf32>
      %392 = arith.mulf %389, %369 : vector<32x1xf32>
      %393 = arith.addf %392, %391 : vector<32x1xf32>
      %394 = vector.broadcast %389 : vector<32x1xf32> to vector<32x128xf32>
      %395 = arith.mulf %394, %374 : vector<32x128xf32>
      %396 = vector.broadcast %391 : vector<32x1xf32> to vector<32x128xf32>
      %397 = arith.mulf %396, %378 : vector<32x128xf32>
      %398 = arith.addf %395, %397 : vector<32x128xf32>
      %399 = tpu.reciprocal %393 {approx = true} : vector<32x1xf32> -> vector<32x1xf32>
      %400 = vector.broadcast %399 : vector<32x1xf32> to vector<32x128xf32>
      %401 = arith.mulf %398, %400 : vector<32x128xf32>
      %402 = vector.extract_strided_slice %11 {offsets = [0, 16], sizes = [32, 1], strides = [1, 1]} : vector<32x17xf32> to vector<32x1xf32>
      %403 = arith.negf %402 : vector<32x1xf32>
      %404 = math.exp %403 : vector<32x1xf32>
      %cst_54 = arith.constant 1.000000e+00 : f32
      %405 = vector.broadcast %cst_54 : f32 to vector<32x1xf32>
      %406 = arith.addf %405, %404 : vector<32x1xf32>
      %407 = arith.divf %405, %406 : vector<32x1xf32>
      %408 = vector.broadcast %407 : vector<32x1xf32> to vector<32x128xf32>
      %409 = arith.mulf %408, %401 : vector<32x128xf32>
      %cst_55 = arith.constant 1.000000e+00 : f32
      %410 = vector.broadcast %cst_55 : f32 to vector<32x1xf32>
      %411 = arith.subf %410, %407 : vector<32x1xf32>
      %412 = vector.broadcast %411 : vector<32x1xf32> to vector<32x128xf32>
      %413 = arith.mulf %412, %5 : vector<32x128xf32>
      %414 = arith.addf %409, %413 : vector<32x128xf32>
      %415 = arith.index_cast %2 : i32 to index
      %c0_56 = arith.constant 0 : index
      %416 = vector.load %arg3[%415, %c0_56] : memref<512x128xbf16, #tpu.memory_space<vmem>>, vector<32x128xbf16>
      %417 = arith.extf %416 : vector<32x128xbf16> to vector<32x128xf32>
      %418 = arith.addf %414, %8 : vector<32x128xf32>
      %419 = arith.subf %418, %417 : vector<32x128xf32>
      %420 = math.absf %419 : vector<32x128xf32>
      %cst_57 = arith.constant dense<0.000000e+00> : vector<32xf32>
      %421 = vector.multi_reduction <add>, %420, %cst_57 [1] : vector<32x128xf32> to vector<32xf32>
      %cst_58 = arith.constant 0.000000e+00 : f32
      %422 = vector.broadcast %cst_58 : f32 to vector<32xf32>
      %423 = arith.subf %422, %421 : vector<32xf32>
      %424 = arith.index_cast %arg7 : i32 to index
      %c0_59 = arith.constant 0 : index
      %425 = vector.load %arg6[%424, %c0_59] : memref<16x32xf32, #tpu.memory_space<vmem>>, vector<1x32xf32>
      %426 = vector.shape_cast %425 : vector<1x32xf32> to vector<32xf32>
      %427 = vector.shape_cast %423 : vector<32xf32> to vector<1x32xf32>
      tpu.vector_store %arg6[%424, %c0_59], %427 {strides = array<i32>} : memref<16x32xf32, #tpu.memory_space<vmem>>, vector<1x32xf32>,
    }
    %c16_i32_0 = arith.constant 16 : i32
    return
  }
  func.func @transform_0(%arg0: i32) -> (i32, i32) {
    %c0_i32 = arith.constant 0 : i32
    %c0_i32_0 = arith.constant 0 : i32
    return %arg0, %c0_i32 : i32, i32
  }
  func.func @transform_1(%arg0: i32) -> (i32, i32) {
    %c0_i32 = arith.constant 0 : i32
    %c0_i32_0 = arith.constant 0 : i32
    return %arg0, %c0_i32 : i32, i32
  }
  func.func @transform_2(%arg0: i32) -> (i32, i32) {
    %c0_i32 = arith.constant 0 : i32
    %c0_i32_0 = arith.constant 0 : i32
    return %arg0, %c0_i32 : i32, i32
  }
  func.func @transform_3(%arg0: i32) -> (i32, i32, i32) {
    %c0_i32 = arith.constant 0 : i32
    %c0_i32_0 = arith.constant 0 : i32
    %c0_i32_1 = arith.constant 0 : i32
    return %c0_i32, %arg0, %c0_i32_0 : i32, i32, i32
  }
  func.func @transform_4(%arg0: i32) -> (i32, i32) {
    %c0_i32 = arith.constant 0 : i32
    %c0_i32_0 = arith.constant 0 : i32
    return %arg0, %c0_i32 : i32, i32
  }
  func.func @transform_5(%arg0: i32) -> (i32, i32) {
    %c0_i32 = arith.constant 0 : i32
    %c0_i32_0 = arith.constant 0 : i32
    return %arg0, %c0_i32 : i32, i32
  }
}

</mosaic_0001>

<bundles_post_ra>
// kernel: cone_forward.1
= control target key start
LH: loop header
LB: loop body
LE: loop exit
PB: predicated region body
PF: predicated region fallthrough
CT: control target
= control target key end

     0   :  { %s12279_s18 = smov 0   ;;  %s12281_s19 = smov 0   ;;  %s15475_s0 = inlined_call_operand.vmem [shape: bf16[1024,128], index: 0, kind: input, shape index: {}]   ;;  %s15476_s1 = inlined_call_operand.vmem [shape: bf16[1024,128], index: 1, kind: input, shape index: {}]   ;;  %s15477_s2 = inlined_call_operand.vmem [shape: bf16[1024,128], index: 2, kind: input, shape index: {}]   ;;  %s15478_s3 = inlined_call_operand.vmem [shape: bf16[16,1024,128], index: 3, kind: input, shape index: {}]   ;;  %s15479_s4 = inlined_call_operand.vmem [shape: f32[1024,17], index: 4, kind: input, shape index: {}]   ;;  %s15480_s5 = inlined_call_operand.vmem [shape: f32[32,32], index: 5, kind: output, shape index: {}]  }
   0x1   :  { %s12283_s20 = smov 0  }
   0x2 LB: > { %s11474_s21 = sadd.s32 4294967295, %s12196_s20   ;;  %s12296_s22 = sadd.s32 1, %s12196_s20   ;;  %s12196_s20 = sphi %s12283_s20, %s16149_s20   ;;  %s12192_s19 = sphi %s12281_s19, %s16148_s19   ;;  %s12188_s18 = sphi %s12279_s18, %s16147_s18  }
   0x3   : > { %s97_s23 = ssub.s32 %s12196_s20, %s12296_s22  ;;  %s100_s24 = sadd.s32 1, %s12192_s19 }
   0x4   : > { %p98_p0 = scmp.eq.s32.totalorder %s97_s23, 0  ;;  %p107_p1 = scmp.ne.s32.totalorder %s12192_s19, %s12188_s18 }
   0x5   : > { %p108_p2 = scmp.eq.s32.totalorder %s12196_s20, 0  ;;  %p11477_p4 = scmp.ge.s32.totalorder %s12196_s20, 2 }
   0x6   : > { %s12305_s25 = scalar_select %p98_p0, %s12192_s19, %s100_s24  }
   0x7   : > { %p109_p3 = por %p108_p2, %p107_p1  ;;  %185 = sbr.rel (%p11477_p4) target bundleno = 272 (0x110), region = 16 }
   0xc   : > { %215 = sbr.rel (!%p109_p3) target bundleno = 272 (0x110), region = 32  ;;  %s217_s26 = sand.u32 (%p109_p3), 1, %s12192_s19  }
   0xd   : > { %s11579_s27 = sshll.u32 (%p109_p3), %s12196_s20, 8  ;;  %s11478_s28 = sshll.u32 (%p109_p3), %s217_s26, 12 }
   0xe   : > { %s12313_s6 = scalar_lea.vmem (%p109_p3), %s15478_s3, %s11579_s27  ;;  %s12318_s7 = scalar_lea.vmem (%p109_p3), [#allocation2], %s11478_s28 }
   0xf   : > { %v239_v0 = vld [vmem:[%s12313_s6] sm:$0xff] (%p109_p3)   ;;  %v243_v1 = vld [vmem:[%s12313_s6 + $0x8] sm:$0xff] (%p109_p3)   ;;  %v247_v2 = vld [vmem:[%s12313_s6 + $0x10] sm:$0xff] (%p109_p3)  }
  0x10   : > { %240 = vst [vmem:[%s12318_s7] sm:$0xff] (%p109_p3), %v239_v0   ;;  %244 = vst [vmem:[%s12318_s7 + $0x8] sm:$0xff] (%p109_p3), %v243_v1   ;;  %v251_v3 = vld [vmem:[%s12313_s6 + $0x18] sm:$0xff] (%p109_p3)   ;;  %v255_v4 = vld [vmem:[%s12313_s6 + $0x20] sm:$0xff] (%p109_p3)  }
  0x11   : > { %248 = vst [vmem:[%s12318_s7 + $0x10] sm:$0xff] %v247_v2   ;;  %v259_v5 = vld [vmem:[%s12313_s6 + $0x28] sm:$0xff]   ;;  %252 = vst [vmem:[%s12318_s7 + $0x18] sm:$0xff] %v251_v3   ;;  %v263_v6 = vld [vmem:[%s12313_s6 + $0x30] sm:$0xff]  }
  0x12   : > { %256 = vst [vmem:[%s12318_s7 + $0x20] sm:$0xff] %v255_v4   ;;  %260 = vst [vmem:[%s12318_s7 + $0x28] sm:$0xff] %v259_v5   ;;  %v267_v7 = vld [vmem:[%s12313_s6 + $0x38] sm:$0xff]   ;;  %v271_v8 = vld [vmem:[%s12313_s6 + $0x40] sm:$0xff]  }
  0x13   : > { %264 = vst [vmem:[%s12318_s7 + $0x30] sm:$0xff] %v263_v6   ;;  %268 = vst [vmem:[%s12318_s7 + $0x38] sm:$0xff] %v267_v7   ;;  %v275_v9 = vld [vmem:[%s12313_s6 + $0x48] sm:$0xff]   ;;  %v279_v10 = vld [vmem:[%s12313_s6 + $0x50] sm:$0xff]  }
  0x14   : > { %272 = vst [vmem:[%s12318_s7 + $0x40] sm:$0xff] %v271_v8   ;;  %v283_v11 = vld [vmem:[%s12313_s6 + $0x58] sm:$0xff]   ;;  %276 = vst [vmem:[%s12318_s7 + $0x48] sm:$0xff] %v275_v9   ;;  %v287_v12 = vld [vmem:[%s12313_s6 + $0x60] sm:$0xff]  }
  0x15   : > { %280 = vst [vmem:[%s12318_s7 + $0x50] sm:$0xff] %v279_v10   ;;  %284 = vst [vmem:[%s12318_s7 + $0x58] sm:$0xff] %v283_v11   ;;  %v291_v13 = vld [vmem:[%s12313_s6 + $0x68] sm:$0xff]   ;;  %v295_v14 = vld [vmem:[%s12313_s6 + $0x70] sm:$0xff]  }
  0x16   : > { %288 = vst [vmem:[%s12318_s7 + $0x60] sm:$0xff] %v287_v12   ;;  %292 = vst [vmem:[%s12318_s7 + $0x68] sm:$0xff] %v291_v13   ;;  %v299_v15 = vld [vmem:[%s12313_s6 + $0x78] sm:$0xff]   ;;  %v303_v16 = vld [vmem:[%s12313_s6 + $0x80] sm:$0xff]  }
  0x17   : > { %296 = vst [vmem:[%s12318_s7 + $0x70] sm:$0xff] %v295_v14   ;;  %v307_v17 = vld [vmem:[%s12313_s6 + $0x88] sm:$0xff]   ;;  %300 = vst [vmem:[%s12318_s7 + $0x78] sm:$0xff] %v299_v15   ;;  %v311_v18 = vld [vmem:[%s12313_s6 + $0x90] sm:$0xff]  }
  0x18   : > { %304 = vst [vmem:[%s12318_s7 + $0x80] sm:$0xff] %v303_v16   ;;  %308 = vst [vmem:[%s12318_s7 + $0x88] sm:$0xff] %v307_v17   ;;  %v315_v19 = vld [vmem:[%s12313_s6 + $0x98] sm:$0xff]   ;;  %v319_v20 = vld [vmem:[%s12313_s6 + $0xa0] sm:$0xff]  }
  0x19   : > { %312 = vst [vmem:[%s12318_s7 + $0x90] sm:$0xff] %v311_v18   ;;  %316 = vst [vmem:[%s12318_s7 + $0x98] sm:$0xff] %v315_v19   ;;  %v323_v21 = vld [vmem:[%s12313_s6 + $0xa8] sm:$0xff]   ;;  %v327_v22 = vld [vmem:[%s12313_s6 + $0xb0] sm:$0xff]  }
  0x1a   : > { %320 = vst [vmem:[%s12318_s7 + $0xa0] sm:$0xff] %v319_v20   ;;  %v331_v23 = vld [vmem:[%s12313_s6 + $0xb8] sm:$0xff]   ;;  %324 = vst [vmem:[%s12318_s7 + $0xa8] sm:$0xff] %v323_v21   ;;  %v335_v24 = vld [vmem:[%s12313_s6 + $0xc0] sm:$0xff]  }
  0x1b   : > { %328 = vst [vmem:[%s12318_s7 + $0xb0] sm:$0xff] %v327_v22   ;;  %332 = vst [vmem:[%s12318_s7 + $0xb8] sm:$0xff] %v331_v23   ;;  %v339_v25 = vld [vmem:[%s12313_s6 + $0xc8] sm:$0xff]   ;;  %v343_v26 = vld [vmem:[%s12313_s6 + $0xd0] sm:$0xff]  }
  0x1c   : > { %336 = vst [vmem:[%s12318_s7 + $0xc0] sm:$0xff] %v335_v24   ;;  %340 = vst [vmem:[%s12318_s7 + $0xc8] sm:$0xff] %v339_v25   ;;  %v347_v27 = vld [vmem:[%s12313_s6 + $0xd8] sm:$0xff]   ;;  %v351_v28 = vld [vmem:[%s12313_s6 + $0xe0] sm:$0xff]  }
  0x1d   : > { %344 = vst [vmem:[%s12318_s7 + $0xd0] sm:$0xff] %v343_v26   ;;  %v355_v29 = vld [vmem:[%s12313_s6 + $0xe8] sm:$0xff]   ;;  %348 = vst [vmem:[%s12318_s7 + $0xd8] sm:$0xff] %v347_v27   ;;  %v359_v30 = vld [vmem:[%s12313_s6 + $0xf0] sm:$0xff]  }
  0x1e   : > { %352 = vst [vmem:[%s12318_s7 + $0xe0] sm:$0xff] %v351_v28   ;;  %356 = vst [vmem:[%s12318_s7 + $0xe8] sm:$0xff] %v355_v29   ;;  %v363_v31 = vld [vmem:[%s12313_s6 + $0xf8] sm:$0xff]   ;;  %v367_v32 = vld [vmem:[%s12313_s6 + $0x200] sm:$0xff]  }
  0x1f   : > { %360 = vst [vmem:[%s12318_s7 + $0xf0] sm:$0xff] %v359_v30   ;;  %364 = vst [vmem:[%s12318_s7 + $0xf8] sm:$0xff] %v363_v31   ;;  %v371_v33 = vld [vmem:[%s12313_s6 + $0x208] sm:$0xff]   ;;  %v375_v34 = vld [vmem:[%s12313_s6 + $0x210] sm:$0xff]  }
  0x20   : > { %368 = vst [vmem:[%s12318_s7 + $0x100] sm:$0xff] %v367_v32   ;;  %v379_v35 = vld [vmem:[%s12313_s6 + $0x218] sm:$0xff]   ;;  %372 = vst [vmem:[%s12318_s7 + $0x108] sm:$0xff] %v371_v33   ;;  %v383_v36 = vld [vmem:[%s12313_s6 + $0x220] sm:$0xff]  }
  0x21   : > { %376 = vst [vmem:[%s12318_s7 + $0x110] sm:$0xff] %v375_v34   ;;  %380 = vst [vmem:[%s12318_s7 + $0x118] sm:$0xff] %v379_v35   ;;  %v387_v37 = vld [vmem:[%s12313_s6 + $0x228] sm:$0xff]   ;;  %v391_v38 = vld [vmem:[%s12313_s6 + $0x230] sm:$0xff]  }
  0x22   : > { %384 = vst [vmem:[%s12318_s7 + $0x120] sm:$0xff] %v383_v36   ;;  %388 = vst [vmem:[%s12318_s7 + $0x128] sm:$0xff] %v387_v37   ;;  %v395_v39 = vld [vmem:[%s12313_s6 + $0x238] sm:$0xff]   ;;  %v399_v40 = vld [vmem:[%s12313_s6 + $0x240] sm:$0xff]  }
  0x23   : > { %392 = vst [vmem:[%s12318_s7 + $0x130] sm:$0xff] %v391_v38   ;;  %v403_v41 = vld [vmem:[%s12313_s6 + $0x248] sm:$0xff]   ;;  %396 = vst [vmem:[%s12318_s7 + $0x138] sm:$0xff] %v395_v39   ;;  %v407_v42 = vld [vmem:[%s12313_s6 + $0x250] sm:$0xff]  }
  0x24   : > { %400 = vst [vmem:[%s12318_s7 + $0x140] sm:$0xff] %v399_v40   ;;  %404 = vst [vmem:[%s12318_s7 + $0x148] sm:$0xff] %v403_v41   ;;  %v411_v43 = vld [vmem:[%s12313_s6 + $0x258] sm:$0xff]   ;;  %v415_v44 = vld [vmem:[%s12313_s6 + $0x260] sm:$0xff]  }
  0x25   : > { %408 = vst [vmem:[%s12318_s7 + $0x150] sm:$0xff] %v407_v42   ;;  %412 = vst [vmem:[%s12318_s7 + $0x158] sm:$0xff] %v411_v43   ;;  %v419_v45 = vld [vmem:[%s12313_s6 + $0x268] sm:$0xff]   ;;  %v423_v46 = vld [vmem:[%s12313_s6 + $0x270] sm:$0xff]  }
  0x26   : > { %416 = vst [vmem:[%s12318_s7 + $0x160] sm:$0xff] %v415_v44   ;;  %v427_v47 = vld [vmem:[%s12313_s6 + $0x278] sm:$0xff]   ;;  %420 = vst [vmem:[%s12318_s7 + $0x168] sm:$0xff] %v419_v45   ;;  %v431_v48 = vld [vmem:[%s12313_s6 + $0x280] sm:$0xff]  }
  0x27   : > { %424 = vst [vmem:[%s12318_s7 + $0x170] sm:$0xff] %v423_v46   ;;  %428 = vst [vmem:[%s12318_s7 + $0x178] sm:$0xff] %v427_v47   ;;  %v435_v49 = vld [vmem:[%s12313_s6 + $0x288] sm:$0xff]   ;;  %v439_v50 = vld [vmem:[%s12313_s6 + $0x290] sm:$0xff]  }
  0x28   : > { %432 = vst [vmem:[%s12318_s7 + $0x180] sm:$0xff] %v431_v48   ;;  %436 = vst [vmem:[%s12318_s7 + $0x188] sm:$0xff] %v435_v49   ;;  %v443_v51 = vld [vmem:[%s12313_s6 + $0x298] sm:$0xff]   ;;  %v447_v52 = vld [vmem:[%s12313_s6 + $0x2a0] sm:$0xff]  }
  0x29   : > { %440 = vst [vmem:[%s12318_s7 + $0x190] sm:$0xff] %v439_v50   ;;  %v451_v53 = vld [vmem:[%s12313_s6 + $0x2a8] sm:$0xff]   ;;  %444 = vst [vmem:[%s12318_s7 + $0x198] sm:$0xff] %v443_v51   ;;  %v455_v54 = vld [vmem:[%s12313_s6 + $0x2b0] sm:$0xff]  }
  0x2a   : > { %448 = vst [vmem:[%s12318_s7 + $0x1a0] sm:$0xff] %v447_v52   ;;  %452 = vst [vmem:[%s12318_s7 + $0x1a8] sm:$0xff] %v451_v53   ;;  %v459_v55 = vld [vmem:[%s12313_s6 + $0x2b8] sm:$0xff]   ;;  %v463_v56 = vld [vmem:[%s12313_s6 + $0x2c0] sm:$0xff]  }
  0x2b   : > { %456 = vst [vmem:[%s12318_s7 + $0x1b0] sm:$0xff] %v455_v54   ;;  %460 = vst [vmem:[%s12318_s7 + $0x1b8] sm:$0xff] %v459_v55   ;;  %v467_v57 = vld [vmem:[%s12313_s6 + $0x2c8] sm:$0xff]   ;;  %v471_v58 = vld [vmem:[%s12313_s6 + $0x2d0] sm:$0xff]  }
  0x2c   : > { %464 = vst [vmem:[%s12318_s7 + $0x1c0] sm:$0xff] %v463_v56   ;;  %v475_v59 = vld [vmem:[%s12313_s6 + $0x2d8] sm:$0xff]   ;;  %468 = vst [vmem:[%s12318_s7 + $0x1c8] sm:$0xff] %v467_v57   ;;  %v479_v60 = vld [vmem:[%s12313_s6 + $0x2e0] sm:$0xff]  }
  0x2d   : > { %472 = vst [vmem:[%s12318_s7 + $0x1d0] sm:$0xff] %v471_v58   ;;  %476 = vst [vmem:[%s12318_s7 + $0x1d8] sm:$0xff] %v475_v59   ;;  %v483_v61 = vld [vmem:[%s12313_s6 + $0x2e8] sm:$0xff]   ;;  %v487_v62 = vld [vmem:[%s12313_s6 + $0x2f0] sm:$0xff]  }
  0x2e   : > { %480 = vst [vmem:[%s12318_s7 + $0x1e0] sm:$0xff] %v479_v60   ;;  %484 = vst [vmem:[%s12318_s7 + $0x1e8] sm:$0xff] %v483_v61   ;;  %v491_v63 = vld [vmem:[%s12313_s6 + $0x2f8] sm:$0xff]   ;;  %v495_v0 = vld [vmem:[%s12313_s6 + $0x400] sm:$0xff]  }
  0x2f   : > { %488 = vst [vmem:[%s12318_s7 + $0x1f0] sm:$0xff] %v487_v62   ;;  %v499_v1 = vld [vmem:[%s12313_s6 + $0x408] sm:$0xff]   ;;  %492 = vst [vmem:[%s12318_s7 + $0x1f8] sm:$0xff] %v491_v63   ;;  %v503_v2 = vld [vmem:[%s12313_s6 + $0x410] sm:$0xff]  }
  0x30   : > { %496 = vst [vmem:[%s12318_s7 + $0x200] sm:$0xff] %v495_v0   ;;  %500 = vst [vmem:[%s12318_s7 + $0x208] sm:$0xff] %v499_v1   ;;  %v507_v3 = vld [vmem:[%s12313_s6 + $0x418] sm:$0xff]   ;;  %v511_v4 = vld [vmem:[%s12313_s6 + $0x420] sm:$0xff]  }
  0x31   : > { %504 = vst [vmem:[%s12318_s7 + $0x210] sm:$0xff] %v503_v2   ;;  %508 = vst [vmem:[%s12318_s7 + $0x218] sm:$0xff] %v507_v3   ;;  %v515_v5 = vld [vmem:[%s12313_s6 + $0x428] sm:$0xff]   ;;  %v519_v6 = vld [vmem:[%s12313_s6 + $0x430] sm:$0xff]  }
  0x32   : > { %512 = vst [vmem:[%s12318_s7 + $0x220] sm:$0xff] %v511_v4   ;;  %v523_v7 = vld [vmem:[%s12313_s6 + $0x438] sm:$0xff]   ;;  %516 = vst [vmem:[%s12318_s7 + $0x228] sm:$0xff] %v515_v5   ;;  %v527_v8 = vld [vmem:[%s12313_s6 + $0x440] sm:$0xff]  }
  0x33   : > { %520 = vst [vmem:[%s12318_s7 + $0x230] sm:$0xff] %v519_v6   ;;  %524 = vst [vmem:[%s12318_s7 + $0x238] sm:$0xff] %v523_v7   ;;  %v531_v9 = vld [vmem:[%s12313_s6 + $0x448] sm:$0xff]   ;;  %v535_v10 = vld [vmem:[%s12313_s6 + $0x450] sm:$0xff]  }
  0x34   : > { %528 = vst [vmem:[%s12318_s7 + $0x240] sm:$0xff] %v527_v8   ;;  %532 = vst [vmem:[%s12318_s7 + $0x248] sm:$0xff] %v531_v9   ;;  %v539_v11 = vld [vmem:[%s12313_s6 + $0x458] sm:$0xff]   ;;  %v543_v12 = vld [vmem:[%s12313_s6 + $0x460] sm:$0xff]  }
  0x35   : > { %536 = vst [vmem:[%s12318_s7 + $0x250] sm:$0xff] %v535_v10   ;;  %v547_v13 = vld [vmem:[%s12313_s6 + $0x468] sm:$0xff]   ;;  %540 = vst [vmem:[%s12318_s7 + $0x258] sm:$0xff] %v539_v11   ;;  %v551_v14 = vld [vmem:[%s12313_s6 + $0x470] sm:$0xff]  }
  0x36   : > { %544 = vst [vmem:[%s12318_s7 + $0x260] sm:$0xff] %v543_v12   ;;  %548 = vst [vmem:[%s12318_s7 + $0x268] sm:$0xff] %v547_v13   ;;  %v555_v15 = vld [vmem:[%s12313_s6 + $0x478] sm:$0xff]   ;;  %v559_v16 = vld [vmem:[%s12313_s6 + $0x480] sm:$0xff]  }
  0x37   : > { %552 = vst [vmem:[%s12318_s7 + $0x270] sm:$0xff] %v551_v14   ;;  %556 = vst [vmem:[%s12318_s7 + $0x278] sm:$0xff] %v555_v15   ;;  %v563_v17 = vld [vmem:[%s12313_s6 + $0x488] sm:$0xff]   ;;  %v567_v18 = vld [vmem:[%s12313_s6 + $0x490] sm:$0xff]  }
  0x38   : > { %560 = vst [vmem:[%s12318_s7 + $0x280] sm:$0xff] %v559_v16   ;;  %v571_v19 = vld [vmem:[%s12313_s6 + $0x498] sm:$0xff]   ;;  %564 = vst [vmem:[%s12318_s7 + $0x288] sm:$0xff] %v563_v17   ;;  %v575_v20 = vld [vmem:[%s12313_s6 + $0x4a0] sm:$0xff]  }
  0x39   : > { %568 = vst [vmem:[%s12318_s7 + $0x290] sm:$0xff] %v567_v18   ;;  %572 = vst [vmem:[%s12318_s7 + $0x298] sm:$0xff] %v571_v19   ;;  %v579_v21 = vld [vmem:[%s12313_s6 + $0x4a8] sm:$0xff]   ;;  %v583_v22 = vld [vmem:[%s12313_s6 + $0x4b0] sm:$0xff]  }
  0x3a   : > { %576 = vst [vmem:[%s12318_s7 + $0x2a0] sm:$0xff] %v575_v20   ;;  %580 = vst [vmem:[%s12318_s7 + $0x2a8] sm:$0xff] %v579_v21   ;;  %v587_v23 = vld [vmem:[%s12313_s6 + $0x4b8] sm:$0xff]   ;;  %v591_v24 = vld [vmem:[%s12313_s6 + $0x4c0] sm:$0xff]  }
  0x3b   : > { %584 = vst [vmem:[%s12318_s7 + $0x2b0] sm:$0xff] %v583_v22   ;;  %v595_v25 = vld [vmem:[%s12313_s6 + $0x4c8] sm:$0xff]   ;;  %588 = vst [vmem:[%s12318_s7 + $0x2b8] sm:$0xff] %v587_v23   ;;  %v599_v26 = vld [vmem:[%s12313_s6 + $0x4d0] sm:$0xff]  }
  0x3c   : > { %592 = vst [vmem:[%s12318_s7 + $0x2c0] sm:$0xff] %v591_v24   ;;  %596 = vst [vmem:[%s12318_s7 + $0x2c8] sm:$0xff] %v595_v25   ;;  %v603_v27 = vld [vmem:[%s12313_s6 + $0x4d8] sm:$0xff]   ;;  %v607_v28 = vld [vmem:[%s12313_s6 + $0x4e0] sm:$0xff]  }
  0x3d   : > { %600 = vst [vmem:[%s12318_s7 + $0x2d0] sm:$0xff] %v599_v26   ;;  %604 = vst [vmem:[%s12318_s7 + $0x2d8] sm:$0xff] %v603_v27   ;;  %v611_v29 = vld [vmem:[%s12313_s6 + $0x4e8] sm:$0xff]   ;;  %v615_v30 = vld [vmem:[%s12313_s6 + $0x4f0] sm:$0xff]  }
  0x3e   : > { %608 = vst [vmem:[%s12318_s7 + $0x2e0] sm:$0xff] %v607_v28   ;;  %v619_v31 = vld [vmem:[%s12313_s6 + $0x4f8] sm:$0xff]   ;;  %612 = vst [vmem:[%s12318_s7 + $0x2e8] sm:$0xff] %v611_v29   ;;  %v623_v32 = vld [vmem:[%s12313_s6 + $0x600] sm:$0xff]  }
  0x3f   : > { %616 = vst [vmem:[%s12318_s7 + $0x2f0] sm:$0xff] %v615_v30   ;;  %620 = vst [vmem:[%s12318_s7 + $0x2f8] sm:$0xff] %v619_v31   ;;  %v627_v33 = vld [vmem:[%s12313_s6 + $0x608] sm:$0xff]   ;;  %v631_v34 = vld [vmem:[%s12313_s6 + $0x610] sm:$0xff]  }
  0x40   : > { %624 = vst [vmem:[%s12318_s7 + $0x300] sm:$0xff] %v623_v32   ;;  %628 = vst [vmem:[%s12318_s7 + $0x308] sm:$0xff] %v627_v33   ;;  %v635_v35 = vld [vmem:[%s12313_s6 + $0x618] sm:$0xff]   ;;  %v639_v36 = vld [vmem:[%s12313_s6 + $0x620] sm:$0xff]  }
  0x41   : > { %632 = vst [vmem:[%s12318_s7 + $0x310] sm:$0xff] %v631_v34   ;;  %v643_v37 = vld [vmem:[%s12313_s6 + $0x628] sm:$0xff]   ;;  %636 = vst [vmem:[%s12318_s7 + $0x318] sm:$0xff] %v635_v35   ;;  %v647_v38 = vld [vmem:[%s12313_s6 + $0x630] sm:$0xff]  }
  0x42   : > { %640 = vst [vmem:[%s12318_s7 + $0x320] sm:$0xff] %v639_v36   ;;  %644 = vst [vmem:[%s12318_s7 + $0x328] sm:$0xff] %v643_v37   ;;  %v651_v39 = vld [vmem:[%s12313_s6 + $0x638] sm:$0xff]   ;;  %v655_v40 = vld [vmem:[%s12313_s6 + $0x640] sm:$0xff]  }
  0x43   : > { %648 = vst [vmem:[%s12318_s7 + $0x330] sm:$0xff] %v647_v38   ;;  %652 = vst [vmem:[%s12318_s7 + $0x338] sm:$0xff] %v651_v39   ;;  %v659_v41 = vld [vmem:[%s12313_s6 + $0x648] sm:$0xff]   ;;  %v663_v42 = vld [vmem:[%s12313_s6 + $0x650] sm:$0xff]  }
  0x44   : > { %656 = vst [vmem:[%s12318_s7 + $0x340] sm:$0xff] %v655_v40   ;;  %v667_v43 = vld [vmem:[%s12313_s6 + $0x658] sm:$0xff]   ;;  %660 = vst [vmem:[%s12318_s7 + $0x348] sm:$0xff] %v659_v41   ;;  %v671_v44 = vld [vmem:[%s12313_s6 + $0x660] sm:$0xff]  }
  0x45   : > { %664 = vst [vmem:[%s12318_s7 + $0x350] sm:$0xff] %v663_v42   ;;  %668 = vst [vmem:[%s12318_s7 + $0x358] sm:$0xff] %v667_v43   ;;  %v675_v45 = vld [vmem:[%s12313_s6 + $0x668] sm:$0xff]   ;;  %v679_v46 = vld [vmem:[%s12313_s6 + $0x670] sm:$0xff]  }
  0x46   : > { %672 = vst [vmem:[%s12318_s7 + $0x360] sm:$0xff] %v671_v44   ;;  %676 = vst [vmem:[%s12318_s7 + $0x368] sm:$0xff] %v675_v45   ;;  %v683_v47 = vld [vmem:[%s12313_s6 + $0x678] sm:$0xff]   ;;  %v687_v48 = vld [vmem:[%s12313_s6 + $0x680] sm:$0xff]  }
  0x47   : > { %680 = vst [vmem:[%s12318_s7 + $0x370] sm:$0xff] %v679_v46   ;;  %v691_v49 = vld [vmem:[%s12313_s6 + $0x688] sm:$0xff]   ;;  %684 = vst [vmem:[%s12318_s7 + $0x378] sm:$0xff] %v683_v47   ;;  %v695_v50 = vld [vmem:[%s12313_s6 + $0x690] sm:$0xff]  }
  0x48   : > { %688 = vst [vmem:[%s12318_s7 + $0x380] sm:$0xff] %v687_v48   ;;  %692 = vst [vmem:[%s12318_s7 + $0x388] sm:$0xff] %v691_v49   ;;  %v699_v51 = vld [vmem:[%s12313_s6 + $0x698] sm:$0xff]   ;;  %v703_v52 = vld [vmem:[%s12313_s6 + $0x6a0] sm:$0xff]  }
  0x49   : > { %696 = vst [vmem:[%s12318_s7 + $0x390] sm:$0xff] %v695_v50   ;;  %700 = vst [vmem:[%s12318_s7 + $0x398] sm:$0xff] %v699_v51   ;;  %v707_v53 = vld [vmem:[%s12313_s6 + $0x6a8] sm:$0xff]   ;;  %v711_v54 = vld [vmem:[%s12313_s6 + $0x6b0] sm:$0xff]  }
  0x4a   : > { %704 = vst [vmem:[%s12318_s7 + $0x3a0] sm:$0xff] %v703_v52   ;;  %v715_v55 = vld [vmem:[%s12313_s6 + $0x6b8] sm:$0xff]   ;;  %708 = vst [vmem:[%s12318_s7 + $0x3a8] sm:$0xff] %v707_v53   ;;  %v719_v56 = vld [vmem:[%s12313_s6 + $0x6c0] sm:$0xff]  }
  0x4b   : > { %712 = vst [vmem:[%s12318_s7 + $0x3b0] sm:$0xff] %v711_v54   ;;  %716 = vst [vmem:[%s12318_s7 + $0x3b8] sm:$0xff] %v715_v55   ;;  %v723_v57 = vld [vmem:[%s12313_s6 + $0x6c8] sm:$0xff]   ;;  %v727_v58 = vld [vmem:[%s12313_s6 + $0x6d0] sm:$0xff]  }
  0x4c   : > { %720 = vst [vmem:[%s12318_s7 + $0x3c0] sm:$0xff] %v719_v56   ;;  %724 = vst [vmem:[%s12318_s7 + $0x3c8] sm:$0xff] %v723_v57   ;;  %v731_v59 = vld [vmem:[%s12313_s6 + $0x6d8] sm:$0xff]   ;;  %v735_v60 = vld [vmem:[%s12313_s6 + $0x6e0] sm:$0xff]  }
  0x4d   : > { %728 = vst [vmem:[%s12318_s7 + $0x3d0] sm:$0xff] %v727_v58   ;;  %v739_v61 = vld [vmem:[%s12313_s6 + $0x6e8] sm:$0xff]   ;;  %732 = vst [vmem:[%s12318_s7 + $0x3d8] sm:$0xff] %v731_v59   ;;  %v743_v62 = vld [vmem:[%s12313_s6 + $0x6f0] sm:$0xff]  }
  0x4e   : > { %736 = vst [vmem:[%s12318_s7 + $0x3e0] sm:$0xff] %v735_v60   ;;  %740 = vst [vmem:[%s12318_s7 + $0x3e8] sm:$0xff] %v739_v61   ;;  %v747_v63 = vld [vmem:[%s12313_s6 + $0x6f8] sm:$0xff]   ;;  %v751_v0 = vld [vmem:[%s12313_s6 + $0x800] sm:$0xff]  }
  0x4f   : > { %744 = vst [vmem:[%s12318_s7 + $0x3f0] sm:$0xff] %v743_v62   ;;  %748 = vst [vmem:[%s12318_s7 + $0x3f8] sm:$0xff] %v747_v63   ;;  %v755_v1 = vld [vmem:[%s12313_s6 + $0x808] sm:$0xff]   ;;  %v759_v2 = vld [vmem:[%s12313_s6 + $0x810] sm:$0xff]  }
  0x50   : > { %752 = vst [vmem:[%s12318_s7 + $0x400] sm:$0xff] %v751_v0   ;;  %v763_v3 = vld [vmem:[%s12313_s6 + $0x818] sm:$0xff]   ;;  %756 = vst [vmem:[%s12318_s7 + $0x408] sm:$0xff] %v755_v1   ;;  %v767_v4 = vld [vmem:[%s12313_s6 + $0x820] sm:$0xff]  }
  0x51   : > { %760 = vst [vmem:[%s12318_s7 + $0x410] sm:$0xff] %v759_v2   ;;  %764 = vst [vmem:[%s12318_s7 + $0x418] sm:$0xff] %v763_v3   ;;  %v771_v5 = vld [vmem:[%s12313_s6 + $0x828] sm:$0xff]   ;;  %v775_v6 = vld [vmem:[%s12313_s6 + $0x830] sm:$0xff]  }
  0x52   : > { %768 = vst [vmem:[%s12318_s7 + $0x420] sm:$0xff] %v767_v4   ;;  %772 = vst [vmem:[%s12318_s7 + $0x428] sm:$0xff] %v771_v5   ;;  %v779_v7 = vld [vmem:[%s12313_s6 + $0x838] sm:$0xff]   ;;  %v783_v8 = vld [vmem:[%s12313_s6 + $0x840] sm:$0xff]  }
  0x53   : > { %776 = vst [vmem:[%s12318_s7 + $0x430] sm:$0xff] %v775_v6   ;;  %v787_v9 = vld [vmem:[%s12313_s6 + $0x848] sm:$0xff]   ;;  %780 = vst [vmem:[%s12318_s7 + $0x438] sm:$0xff] %v779_v7   ;;  %v791_v10 = vld [vmem:[%s12313_s6 + $0x850] sm:$0xff]  }
  0x54   : > { %784 = vst [vmem:[%s12318_s7 + $0x440] sm:$0xff] %v783_v8   ;;  %788 = vst [vmem:[%s12318_s7 + $0x448] sm:$0xff] %v787_v9   ;;  %v795_v11 = vld [vmem:[%s12313_s6 + $0x858] sm:$0xff]   ;;  %v799_v12 = vld [vmem:[%s12313_s6 + $0x860] sm:$0xff]  }
  0x55   : > { %792 = vst [vmem:[%s12318_s7 + $0x450] sm:$0xff] %v791_v10   ;;  %796 = vst [vmem:[%s12318_s7 + $0x458] sm:$0xff] %v795_v11   ;;  %v803_v13 = vld [vmem:[%s12313_s6 + $0x868] sm:$0xff]   ;;  %v807_v14 = vld [vmem:[%s12313_s6 + $0x870] sm:$0xff]  }
  0x56   : > { %800 = vst [vmem:[%s12318_s7 + $0x460] sm:$0xff] %v799_v12   ;;  %v811_v15 = vld [vmem:[%s12313_s6 + $0x878] sm:$0xff]   ;;  %804 = vst [vmem:[%s12318_s7 + $0x468] sm:$0xff] %v803_v13   ;;  %v815_v16 = vld [vmem:[%s12313_s6 + $0x880] sm:$0xff]  }
  0x57   : > { %808 = vst [vmem:[%s12318_s7 + $0x470] sm:$0xff] %v807_v14   ;;  %812 = vst [vmem:[%s12318_s7 + $0x478] sm:$0xff] %v811_v15   ;;  %v819_v17 = vld [vmem:[%s12313_s6 + $0x888] sm:$0xff]   ;;  %v823_v18 = vld [vmem:[%s12313_s6 + $0x890] sm:$0xff]  }
  0x58   : > { %816 = vst [vmem:[%s12318_s7 + $0x480] sm:$0xff] %v815_v16   ;;  %820 = vst [vmem:[%s12318_s7 + $0x488] sm:$0xff] %v819_v17   ;;  %v827_v19 = vld [vmem:[%s12313_s6 + $0x898] sm:$0xff]   ;;  %v831_v20 = vld [vmem:[%s12313_s6 + $0x8a0] sm:$0xff]  }
  0x59   : > { %824 = vst [vmem:[%s12318_s7 + $0x490] sm:$0xff] %v823_v18   ;;  %v835_v21 = vld [vmem:[%s12313_s6 + $0x8a8] sm:$0xff]   ;;  %828 = vst [vmem:[%s12318_s7 + $0x498] sm:$0xff] %v827_v19   ;;  %v839_v22 = vld [vmem:[%s12313_s6 + $0x8b0] sm:$0xff]  }
  0x5a   : > { %832 = vst [vmem:[%s12318_s7 + $0x4a0] sm:$0xff] %v831_v20   ;;  %836 = vst [vmem:[%s12318_s7 + $0x4a8] sm:$0xff] %v835_v21   ;;  %v843_v23 = vld [vmem:[%s12313_s6 + $0x8b8] sm:$0xff]   ;;  %v847_v24 = vld [vmem:[%s12313_s6 + $0x8c0] sm:$0xff]  }
  0x5b   : > { %840 = vst [vmem:[%s12318_s7 + $0x4b0] sm:$0xff] %v839_v22   ;;  %844 = vst [vmem:[%s12318_s7 + $0x4b8] sm:$0xff] %v843_v23   ;;  %v851_v25 = vld [vmem:[%s12313_s6 + $0x8c8] sm:$0xff]   ;;  %v855_v26 = vld [vmem:[%s12313_s6 + $0x8d0] sm:$0xff]  }
  0x5c   : > { %848 = vst [vmem:[%s12318_s7 + $0x4c0] sm:$0xff] %v847_v24   ;;  %v859_v27 = vld [vmem:[%s12313_s6 + $0x8d8] sm:$0xff]   ;;  %852 = vst [vmem:[%s12318_s7 + $0x4c8] sm:$0xff] %v851_v25   ;;  %v863_v28 = vld [vmem:[%s12313_s6 + $0x8e0] sm:$0xff]  }
  0x5d   : > { %856 = vst [vmem:[%s12318_s7 + $0x4d0] sm:$0xff] %v855_v26   ;;  %860 = vst [vmem:[%s12318_s7 + $0x4d8] sm:$0xff] %v859_v27   ;;  %v867_v29 = vld [vmem:[%s12313_s6 + $0x8e8] sm:$0xff]   ;;  %v871_v30 = vld [vmem:[%s12313_s6 + $0x8f0] sm:$0xff]  }
  0x5e   : > { %864 = vst [vmem:[%s12318_s7 + $0x4e0] sm:$0xff] %v863_v28   ;;  %868 = vst [vmem:[%s12318_s7 + $0x4e8] sm:$0xff] %v867_v29   ;;  %v875_v31 = vld [vmem:[%s12313_s6 + $0x8f8] sm:$0xff]   ;;  %v879_v32 = vld [vmem:[%s12313_s6 + $0xa00] sm:$0xff]  }
  0x5f   : > { %872 = vst [vmem:[%s12318_s7 + $0x4f0] sm:$0xff] %v871_v30   ;;  %v883_v33 = vld [vmem:[%s12313_s6 + $0xa08] sm:$0xff]   ;;  %876 = vst [vmem:[%s12318_s7 + $0x4f8] sm:$0xff] %v875_v31   ;;  %v887_v34 = vld [vmem:[%s12313_s6 + $0xa10] sm:$0xff]  }
  0x60   : > { %880 = vst [vmem:[%s12318_s7 + $0x500] sm:$0xff] %v879_v32   ;;  %884 = vst [vmem:[%s12318_s7 + $0x508] sm:$0xff] %v883_v33   ;;  %v891_v35 = vld [vmem:[%s12313_s6 + $0xa18] sm:$0xff]   ;;  %v895_v36 = vld [vmem:[%s12313_s6 + $0xa20] sm:$0xff]  }
  0x61   : > { %888 = vst [vmem:[%s12318_s7 + $0x510] sm:$0xff] %v887_v34   ;;  %892 = vst [vmem:[%s12318_s7 + $0x518] sm:$0xff] %v891_v35   ;;  %v899_v37 = vld [vmem:[%s12313_s6 + $0xa28] sm:$0xff]   ;;  %v903_v38 = vld [vmem:[%s12313_s6 + $0xa30] sm:$0xff]  }
  0x62   : > { %896 = vst [vmem:[%s12318_s7 + $0x520] sm:$0xff] %v895_v36   ;;  %v907_v39 = vld [vmem:[%s12313_s6 + $0xa38] sm:$0xff]   ;;  %900 = vst [vmem:[%s12318_s7 + $0x528] sm:$0xff] %v899_v37   ;;  %v911_v40 = vld [vmem:[%s12313_s6 + $0xa40] sm:$0xff]  }
  0x63   : > { %904 = vst [vmem:[%s12318_s7 + $0x530] sm:$0xff] %v903_v38   ;;  %908 = vst [vmem:[%s12318_s7 + $0x538] sm:$0xff] %v907_v39   ;;  %v915_v41 = vld [vmem:[%s12313_s6 + $0xa48] sm:$0xff]   ;;  %v919_v42 = vld [vmem:[%s12313_s6 + $0xa50] sm:$0xff]  }
  0x64   : > { %912 = vst [vmem:[%s12318_s7 + $0x540] sm:$0xff] %v911_v40   ;;  %916 = vst [vmem:[%s12318_s7 + $0x548] sm:$0xff] %v915_v41   ;;  %v923_v43 = vld [vmem:[%s12313_s6 + $0xa58] sm:$0xff]   ;;  %v927_v44 = vld [vmem:[%s12313_s6 + $0xa60] sm:$0xff]  }
  0x65   : > { %920 = vst [vmem:[%s12318_s7 + $0x550] sm:$0xff] %v919_v42   ;;  %v931_v45 = vld [vmem:[%s12313_s6 + $0xa68] sm:$0xff]   ;;  %924 = vst [vmem:[%s12318_s7 + $0x558] sm:$0xff] %v923_v43   ;;  %v935_v46 = vld [vmem:[%s12313_s6 + $0xa70] sm:$0xff]  }
  0x66   : > { %928 = vst [vmem:[%s12318_s7 + $0x560] sm:$0xff] %v927_v44   ;;  %932 = vst [vmem:[%s12318_s7 + $0x568] sm:$0xff] %v931_v45   ;;  %v939_v47 = vld [vmem:[%s12313_s6 + $0xa78] sm:$0xff]   ;;  %v943_v48 = vld [vmem:[%s12313_s6 + $0xa80] sm:$0xff]  }
  0x67   : > { %936 = vst [vmem:[%s12318_s7 + $0x570] sm:$0xff] %v935_v46   ;;  %940 = vst [vmem:[%s12318_s7 + $0x578] sm:$0xff] %v939_v47   ;;  %v947_v49 = vld [vmem:[%s12313_s6 + $0xa88] sm:$0xff]   ;;  %v951_v50 = vld [vmem:[%s12313_s6 + $0xa90] sm:$0xff]  }
  0x68   : > { %944 = vst [vmem:[%s12318_s7 + $0x580] sm:$0xff] %v943_v48   ;;  %v955_v51 = vld [vmem:[%s12313_s6 + $0xa98] sm:$0xff]   ;;  %948 = vst [vmem:[%s12318_s7 + $0x588] sm:$0xff] %v947_v49   ;;  %v959_v52 = vld [vmem:[%s12313_s6 + $0xaa0] sm:$0xff]  }
  0x69   : > { %952 = vst [vmem:[%s12318_s7 + $0x590] sm:$0xff] %v951_v50   ;;  %956 = vst [vmem:[%s12318_s7 + $0x598] sm:$0xff] %v955_v51   ;;  %v963_v53 = vld [vmem:[%s12313_s6 + $0xaa8] sm:$0xff]   ;;  %v967_v54 = vld [vmem:[%s12313_s6 + $0xab0] sm:$0xff]  }
  0x6a   : > { %960 = vst [vmem:[%s12318_s7 + $0x5a0] sm:$0xff] %v959_v52   ;;  %964 = vst [vmem:[%s12318_s7 + $0x5a8] sm:$0xff] %v963_v53   ;;  %v971_v55 = vld [vmem:[%s12313_s6 + $0xab8] sm:$0xff]   ;;  %v975_v56 = vld [vmem:[%s12313_s6 + $0xac0] sm:$0xff]  }
  0x6b   : > { %968 = vst [vmem:[%s12318_s7 + $0x5b0] sm:$0xff] %v967_v54   ;;  %v979_v57 = vld [vmem:[%s12313_s6 + $0xac8] sm:$0xff]   ;;  %972 = vst [vmem:[%s12318_s7 + $0x5b8] sm:$0xff] %v971_v55   ;;  %v983_v58 = vld [vmem:[%s12313_s6 + $0xad0] sm:$0xff]  }
  0x6c   : > { %976 = vst [vmem:[%s12318_s7 + $0x5c0] sm:$0xff] %v975_v56   ;;  %980 = vst [vmem:[%s12318_s7 + $0x5c8] sm:$0xff] %v979_v57   ;;  %v987_v59 = vld [vmem:[%s12313_s6 + $0xad8] sm:$0xff]   ;;  %v991_v60 = vld [vmem:[%s12313_s6 + $0xae0] sm:$0xff]  }
  0x6d   : > { %984 = vst [vmem:[%s12318_s7 + $0x5d0] sm:$0xff] %v983_v58   ;;  %988 = vst [vmem:[%s12318_s7 + $0x5d8] sm:$0xff] %v987_v59   ;;  %v995_v61 = vld [vmem:[%s12313_s6 + $0xae8] sm:$0xff]   ;;  %v999_v62 = vld [vmem:[%s12313_s6 + $0xaf0] sm:$0xff]  }
  0x6e   : > { %992 = vst [vmem:[%s12318_s7 + $0x5e0] sm:$0xff] %v991_v60   ;;  %v1003_v63 = vld [vmem:[%s12313_s6 + $0xaf8] sm:$0xff]   ;;  %996 = vst [vmem:[%s12318_s7 + $0x5e8] sm:$0xff] %v995_v61   ;;  %v1007_v0 = vld [vmem:[%s12313_s6 + $0xc00] sm:$0xff]  }
  0x6f   : > { %1000 = vst [vmem:[%s12318_s7 + $0x5f0] sm:$0xff] %v999_v62   ;;  %1004 = vst [vmem:[%s12318_s7 + $0x5f8] sm:$0xff] %v1003_v63   ;;  %v1011_v1 = vld [vmem:[%s12313_s6 + $0xc08] sm:$0xff]   ;;  %v1015_v2 = vld [vmem:[%s12313_s6 + $0xc10] sm:$0xff]  }
  0x70   : > { %1008 = vst [vmem:[%s12318_s7 + $0x600] sm:$0xff] %v1007_v0   ;;  %1012 = vst [vmem:[%s12318_s7 + $0x608] sm:$0xff] %v1011_v1   ;;  %v1019_v3 = vld [vmem:[%s12313_s6 + $0xc18] sm:$0xff]   ;;  %v1023_v4 = vld [vmem:[%s12313_s6 + $0xc20] sm:$0xff]  }
  0x71   : > { %1016 = vst [vmem:[%s12318_s7 + $0x610] sm:$0xff] %v1015_v2   ;;  %v1027_v5 = vld [vmem:[%s12313_s6 + $0xc28] sm:$0xff]   ;;  %1020 = vst [vmem:[%s12318_s7 + $0x618] sm:$0xff] %v1019_v3   ;;  %v1031_v6 = vld [vmem:[%s12313_s6 + $0xc30] sm:$0xff]  }
  0x72   : > { %1024 = vst [vmem:[%s12318_s7 + $0x620] sm:$0xff] %v1023_v4   ;;  %1028 = vst [vmem:[%s12318_s7 + $0x628] sm:$0xff] %v1027_v5   ;;  %v1035_v7 = vld [vmem:[%s12313_s6 + $0xc38] sm:$0xff]   ;;  %v1039_v8 = vld [vmem:[%s12313_s6 + $0xc40] sm:$0xff]  }
  0x73   : > { %1032 = vst [vmem:[%s12318_s7 + $0x630] sm:$0xff] %v1031_v6   ;;  %1036 = vst [vmem:[%s12318_s7 + $0x638] sm:$0xff] %v1035_v7   ;;  %v1043_v9 = vld [vmem:[%s12313_s6 + $0xc48] sm:$0xff]   ;;  %v1047_v10 = vld [vmem:[%s12313_s6 + $0xc50] sm:$0xff]  }
  0x74   : > { %1040 = vst [vmem:[%s12318_s7 + $0x640] sm:$0xff] %v1039_v8   ;;  %v1051_v11 = vld [vmem:[%s12313_s6 + $0xc58] sm:$0xff]   ;;  %1044 = vst [vmem:[%s12318_s7 + $0x648] sm:$0xff] %v1043_v9   ;;  %v1055_v12 = vld [vmem:[%s12313_s6 + $0xc60] sm:$0xff]  }
  0x75   : > { %1048 = vst [vmem:[%s12318_s7 + $0x650] sm:$0xff] %v1047_v10   ;;  %1052 = vst [vmem:[%s12318_s7 + $0x658] sm:$0xff] %v1051_v11   ;;  %v1059_v13 = vld [vmem:[%s12313_s6 + $0xc68] sm:$0xff]   ;;  %v1063_v14 = vld [vmem:[%s12313_s6 + $0xc70] sm:$0xff]  }
  0x76   : > { %1056 = vst [vmem:[%s12318_s7 + $0x660] sm:$0xff] %v1055_v12   ;;  %1060 = vst [vmem:[%s12318_s7 + $0x668] sm:$0xff] %v1059_v13   ;;  %v1067_v15 = vld [vmem:[%s12313_s6 + $0xc78] sm:$0xff]   ;;  %v1071_v16 = vld [vmem:[%s12313_s6 + $0xc80] sm:$0xff]  }
  0x77   : > { %1064 = vst [vmem:[%s12318_s7 + $0x670] sm:$0xff] %v1063_v14   ;;  %v1075_v17 = vld [vmem:[%s12313_s6 + $0xc88] sm:$0xff]   ;;  %1068 = vst [vmem:[%s12318_s7 + $0x678] sm:$0xff] %v1067_v15   ;;  %v1079_v18 = vld [vmem:[%s12313_s6 + $0xc90] sm:$0xff]  }
  0x78   : > { %1072 = vst [vmem:[%s12318_s7 + $0x680] sm:$0xff] %v1071_v16   ;;  %1076 = vst [vmem:[%s12318_s7 + $0x688] sm:$0xff] %v1075_v17   ;;  %v1083_v19 = vld [vmem:[%s12313_s6 + $0xc98] sm:$0xff]   ;;  %v1087_v20 = vld [vmem:[%s12313_s6 + $0xca0] sm:$0xff]  }
  0x79   : > { %1080 = vst [vmem:[%s12318_s7 + $0x690] sm:$0xff] %v1079_v18   ;;  %1084 = vst [vmem:[%s12318_s7 + $0x698] sm:$0xff] %v1083_v19   ;;  %v1091_v21 = vld [vmem:[%s12313_s6 + $0xca8] sm:$0xff]   ;;  %v1095_v22 = vld [vmem:[%s12313_s6 + $0xcb0] sm:$0xff]  }
  0x7a   : > { %1088 = vst [vmem:[%s12318_s7 + $0x6a0] sm:$0xff] %v1087_v20   ;;  %v1099_v23 = vld [vmem:[%s12313_s6 + $0xcb8] sm:$0xff]   ;;  %1092 = vst [vmem:[%s12318_s7 + $0x6a8] sm:$0xff] %v1091_v21   ;;  %v1103_v24 = vld [vmem:[%s12313_s6 + $0xcc0] sm:$0xff]  }
  0x7b   : > { %1096 = vst [vmem:[%s12318_s7 + $0x6b0] sm:$0xff] %v1095_v22   ;;  %1100 = vst [vmem:[%s12318_s7 + $0x6b8] sm:$0xff] %v1099_v23   ;;  %v1107_v25 = vld [vmem:[%s12313_s6 + $0xcc8] sm:$0xff]   ;;  %v1111_v26 = vld [vmem:[%s12313_s6 + $0xcd0] sm:$0xff]  }
  0x7c   : > { %1104 = vst [vmem:[%s12318_s7 + $0x6c0] sm:$0xff] %v1103_v24   ;;  %1108 = vst [vmem:[%s12318_s7 + $0x6c8] sm:$0xff] %v1107_v25   ;;  %v1115_v27 = vld [vmem:[%s12313_s6 + $0xcd8] sm:$0xff]   ;;  %v1119_v28 = vld [vmem:[%s12313_s6 + $0xce0] sm:$0xff]  }
  0x7d   : > { %1112 = vst [vmem:[%s12318_s7 + $0x6d0] sm:$0xff] %v1111_v26   ;;  %v1123_v29 = vld [vmem:[%s12313_s6 + $0xce8] sm:$0xff]   ;;  %1116 = vst [vmem:[%s12318_s7 + $0x6d8] sm:$0xff] %v1115_v27   ;;  %v1127_v30 = vld [vmem:[%s12313_s6 + $0xcf0] sm:$0xff]  }
  0x7e   : > { %1120 = vst [vmem:[%s12318_s7 + $0x6e0] sm:$0xff] %v1119_v28   ;;  %1124 = vst [vmem:[%s12318_s7 + $0x6e8] sm:$0xff] %v1123_v29   ;;  %v1131_v31 = vld [vmem:[%s12313_s6 + $0xcf8] sm:$0xff]   ;;  %v1135_v32 = vld [vmem:[%s12313_s6 + $0xe00] sm:$0xff]  }
  0x7f   : > { %1128 = vst [vmem:[%s12318_s7 + $0x6f0] sm:$0xff] %v1127_v30   ;;  %1132 = vst [vmem:[%s12318_s7 + $0x6f8] sm:$0xff] %v1131_v31   ;;  %v1139_v33 = vld [vmem:[%s12313_s6 + $0xe08] sm:$0xff]   ;;  %v1143_v34 = vld [vmem:[%s12313_s6 + $0xe10] sm:$0xff]  }
  0x80   : > { %1136 = vst [vmem:[%s12318_s7 + $0x700] sm:$0xff] %v1135_v32   ;;  %v1147_v35 = vld [vmem:[%s12313_s6 + $0xe18] sm:$0xff]   ;;  %1140 = vst [vmem:[%s12318_s7 + $0x708] sm:$0xff] %v1139_v33   ;;  %v1151_v36 = vld [vmem:[%s12313_s6 + $0xe20] sm:$0xff]  }
  0x81   : > { %1144 = vst [vmem:[%s12318_s7 + $0x710] sm:$0xff] %v1143_v34   ;;  %1148 = vst [vmem:[%s12318_s7 + $0x718] sm:$0xff] %v1147_v35   ;;  %v1155_v37 = vld [vmem:[%s12313_s6 + $0xe28] sm:$0xff]   ;;  %v1159_v38 = vld [vmem:[%s12313_s6 + $0xe30] sm:$0xff]  }
  0x82   : > { %1152 = vst [vmem:[%s12318_s7 + $0x720] sm:$0xff] %v1151_v36   ;;  %1156 = vst [vmem:[%s12318_s7 + $0x728] sm:$0xff] %v1155_v37   ;;  %v1163_v39 = vld [vmem:[%s12313_s6 + $0xe38] sm:$0xff]   ;;  %v1167_v40 = vld [vmem:[%s12313_s6 + $0xe40] sm:$0xff]  }
  0x83   : > { %1160 = vst [vmem:[%s12318_s7 + $0x730] sm:$0xff] %v1159_v38   ;;  %v1171_v41 = vld [vmem:[%s12313_s6 + $0xe48] sm:$0xff]   ;;  %1164 = vst [vmem:[%s12318_s7 + $0x738] sm:$0xff] %v1163_v39   ;;  %v1175_v42 = vld [vmem:[%s12313_s6 + $0xe50] sm:$0xff]  }
  0x84   : > { %1168 = vst [vmem:[%s12318_s7 + $0x740] sm:$0xff] %v1167_v40   ;;  %1172 = vst [vmem:[%s12318_s7 + $0x748] sm:$0xff] %v1171_v41   ;;  %v1179_v43 = vld [vmem:[%s12313_s6 + $0xe58] sm:$0xff]   ;;  %v1183_v44 = vld [vmem:[%s12313_s6 + $0xe60] sm:$0xff]  }
  0x85   : > { %1176 = vst [vmem:[%s12318_s7 + $0x750] sm:$0xff] %v1175_v42   ;;  %1180 = vst [vmem:[%s12318_s7 + $0x758] sm:$0xff] %v1179_v43   ;;  %v1187_v45 = vld [vmem:[%s12313_s6 + $0xe68] sm:$0xff]   ;;  %v1191_v46 = vld [vmem:[%s12313_s6 + $0xe70] sm:$0xff]  }
  0x86   : > { %1184 = vst [vmem:[%s12318_s7 + $0x760] sm:$0xff] %v1183_v44   ;;  %v1195_v47 = vld [vmem:[%s12313_s6 + $0xe78] sm:$0xff]   ;;  %1188 = vst [vmem:[%s12318_s7 + $0x768] sm:$0xff] %v1187_v45   ;;  %v1199_v48 = vld [vmem:[%s12313_s6 + $0xe80] sm:$0xff]  }
  0x87   : > { %1192 = vst [vmem:[%s12318_s7 + $0x770] sm:$0xff] %v1191_v46   ;;  %1196 = vst [vmem:[%s12318_s7 + $0x778] sm:$0xff] %v1195_v47   ;;  %v1203_v49 = vld [vmem:[%s12313_s6 + $0xe88] sm:$0xff]   ;;  %v1207_v50 = vld [vmem:[%s12313_s6 + $0xe90] sm:$0xff]  }
  0x88   : > { %1200 = vst [vmem:[%s12318_s7 + $0x780] sm:$0xff] %v1199_v48   ;;  %1204 = vst [vmem:[%s12318_s7 + $0x788] sm:$0xff] %v1203_v49   ;;  %v1211_v51 = vld [vmem:[%s12313_s6 + $0xe98] sm:$0xff]   ;;  %v1215_v52 = vld [vmem:[%s12313_s6 + $0xea0] sm:$0xff]  }
  0x89   : > { %1208 = vst [vmem:[%s12318_s7 + $0x790] sm:$0xff] %v1207_v50   ;;  %v1219_v53 = vld [vmem:[%s12313_s6 + $0xea8] sm:$0xff]   ;;  %1212 = vst [vmem:[%s12318_s7 + $0x798] sm:$0xff] %v1211_v51   ;;  %v1223_v54 = vld [vmem:[%s12313_s6 + $0xeb0] sm:$0xff]  }
  0x8a   : > { %1216 = vst [vmem:[%s12318_s7 + $0x7a0] sm:$0xff] %v1215_v52   ;;  %1220 = vst [vmem:[%s12318_s7 + $0x7a8] sm:$0xff] %v1219_v53   ;;  %v1227_v55 = vld [vmem:[%s12313_s6 + $0xeb8] sm:$0xff]   ;;  %v1231_v56 = vld [vmem:[%s12313_s6 + $0xec0] sm:$0xff]  }
  0x8b   : > { %1224 = vst [vmem:[%s12318_s7 + $0x7b0] sm:$0xff] %v1223_v54   ;;  %1228 = vst [vmem:[%s12318_s7 + $0x7b8] sm:$0xff] %v1227_v55   ;;  %v1235_v57 = vld [vmem:[%s12313_s6 + $0xec8] sm:$0xff]   ;;  %v1239_v58 = vld [vmem:[%s12313_s6 + $0xed0] sm:$0xff]  }
  0x8c   : > { %1232 = vst [vmem:[%s12318_s7 + $0x7c0] sm:$0xff] %v1231_v56   ;;  %v1243_v59 = vld [vmem:[%s12313_s6 + $0xed8] sm:$0xff]   ;;  %1236 = vst [vmem:[%s12318_s7 + $0x7c8] sm:$0xff] %v1235_v57   ;;  %v1247_v60 = vld [vmem:[%s12313_s6 + $0xee0] sm:$0xff]  }
  0x8d   : > { %1240 = vst [vmem:[%s12318_s7 + $0x7d0] sm:$0xff] %v1239_v58   ;;  %1244 = vst [vmem:[%s12318_s7 + $0x7d8] sm:$0xff] %v1243_v59   ;;  %v1251_v61 = vld [vmem:[%s12313_s6 + $0xee8] sm:$0xff]   ;;  %v1255_v62 = vld [vmem:[%s12313_s6 + $0xef0] sm:$0xff]  }
  0x8e   : > { %1248 = vst [vmem:[%s12318_s7 + $0x7e0] sm:$0xff] %v1247_v60   ;;  %1252 = vst [vmem:[%s12318_s7 + $0x7e8] sm:$0xff] %v1251_v61   ;;  %v1259_v63 = vld [vmem:[%s12313_s6 + $0xef8] sm:$0xff]   ;;  %v1263_v0 = vld [vmem:[%s12313_s6 + $0x1000] sm:$0xff]  }
  0x8f   : > { %1256 = vst [vmem:[%s12318_s7 + $0x7f0] sm:$0xff] %v1255_v62   ;;  %v1267_v1 = vld [vmem:[%s12313_s6 + $0x1008] sm:$0xff]   ;;  %1260 = vst [vmem:[%s12318_s7 + $0x7f8] sm:$0xff] %v1259_v63   ;;  %v1271_v2 = vld [vmem:[%s12313_s6 + $0x1010] sm:$0xff]  }
  0x90   : > { %1264 = vst [vmem:[%s12318_s7 + $0x800] sm:$0xff] %v1263_v0   ;;  %1268 = vst [vmem:[%s12318_s7 + $0x808] sm:$0xff] %v1267_v1   ;;  %v1275_v3 = vld [vmem:[%s12313_s6 + $0x1018] sm:$0xff]   ;;  %v1279_v4 = vld [vmem:[%s12313_s6 + $0x1020] sm:$0xff]  }
  0x91   : > { %1272 = vst [vmem:[%s12318_s7 + $0x810] sm:$0xff] %v1271_v2   ;;  %1276 = vst [vmem:[%s12318_s7 + $0x818] sm:$0xff] %v1275_v3   ;;  %v1283_v5 = vld [vmem:[%s12313_s6 + $0x1028] sm:$0xff]   ;;  %v1287_v6 = vld [vmem:[%s12313_s6 + $0x1030] sm:$0xff]  }
  0x92   : > { %1280 = vst [vmem:[%s12318_s7 + $0x820] sm:$0xff] %v1279_v4   ;;  %v1291_v7 = vld [vmem:[%s12313_s6 + $0x1038] sm:$0xff]   ;;  %1284 = vst [vmem:[%s12318_s7 + $0x828] sm:$0xff] %v1283_v5   ;;  %v1295_v8 = vld [vmem:[%s12313_s6 + $0x1040] sm:$0xff]  }
  0x93   : > { %1288 = vst [vmem:[%s12318_s7 + $0x830] sm:$0xff] %v1287_v6   ;;  %1292 = vst [vmem:[%s12318_s7 + $0x838] sm:$0xff] %v1291_v7   ;;  %v1299_v9 = vld [vmem:[%s12313_s6 + $0x1048] sm:$0xff]   ;;  %v1303_v10 = vld [vmem:[%s12313_s6 + $0x1050] sm:$0xff]  }
  0x94   : > { %1296 = vst [vmem:[%s12318_s7 + $0x840] sm:$0xff] %v1295_v8   ;;  %1300 = vst [vmem:[%s12318_s7 + $0x848] sm:$0xff] %v1299_v9   ;;  %v1307_v11 = vld [vmem:[%s12313_s6 + $0x1058] sm:$0xff]   ;;  %v1311_v12 = vld [vmem:[%s12313_s6 + $0x1060] sm:$0xff]  }
  0x95   : > { %1304 = vst [vmem:[%s12318_s7 + $0x850] sm:$0xff] %v1303_v10   ;;  %v1315_v13 = vld [vmem:[%s12313_s6 + $0x1068] sm:$0xff]   ;;  %1308 = vst [vmem:[%s12318_s7 + $0x858] sm:$0xff] %v1307_v11   ;;  %v1319_v14 = vld [vmem:[%s12313_s6 + $0x1070] sm:$0xff]  }
  0x96   : > { %1312 = vst [vmem:[%s12318_s7 + $0x860] sm:$0xff] %v1311_v12   ;;  %1316 = vst [vmem:[%s12318_s7 + $0x868] sm:$0xff] %v1315_v13   ;;  %v1323_v15 = vld [vmem:[%s12313_s6 + $0x1078] sm:$0xff]   ;;  %v1327_v16 = vld [vmem:[%s12313_s6 + $0x1080] sm:$0xff]  }
  0x97   : > { %1320 = vst [vmem:[%s12318_s7 + $0x870] sm:$0xff] %v1319_v14   ;;  %1324 = vst [vmem:[%s12318_s7 + $0x878] sm:$0xff] %v1323_v15   ;;  %v1331_v17 = vld [vmem:[%s12313_s6 + $0x1088] sm:$0xff]   ;;  %v1335_v18 = vld [vmem:[%s12313_s6 + $0x1090] sm:$0xff]  }
  0x98   : > { %1328 = vst [vmem:[%s12318_s7 + $0x880] sm:$0xff] %v1327_v16   ;;  %v1339_v19 = vld [vmem:[%s12313_s6 + $0x1098] sm:$0xff]   ;;  %1332 = vst [vmem:[%s12318_s7 + $0x888] sm:$0xff] %v1331_v17   ;;  %v1343_v20 = vld [vmem:[%s12313_s6 + $0x10a0] sm:$0xff]  }
  0x99   : > { %1336 = vst [vmem:[%s12318_s7 + $0x890] sm:$0xff] %v1335_v18   ;;  %1340 = vst [vmem:[%s12318_s7 + $0x898] sm:$0xff] %v1339_v19   ;;  %v1347_v21 = vld [vmem:[%s12313_s6 + $0x10a8] sm:$0xff]   ;;  %v1351_v22 = vld [vmem:[%s12313_s6 + $0x10b0] sm:$0xff]  }
  0x9a   : > { %1344 = vst [vmem:[%s12318_s7 + $0x8a0] sm:$0xff] %v1343_v20   ;;  %1348 = vst [vmem:[%s12318_s7 + $0x8a8] sm:$0xff] %v1347_v21   ;;  %v1355_v23 = vld [vmem:[%s12313_s6 + $0x10b8] sm:$0xff]   ;;  %v1359_v24 = vld [vmem:[%s12313_s6 + $0x10c0] sm:$0xff]  }
  0x9b   : > { %1352 = vst [vmem:[%s12318_s7 + $0x8b0] sm:$0xff] %v1351_v22   ;;  %v1363_v25 = vld [vmem:[%s12313_s6 + $0x10c8] sm:$0xff]   ;;  %1356 = vst [vmem:[%s12318_s7 + $0x8b8] sm:$0xff] %v1355_v23   ;;  %v1367_v26 = vld [vmem:[%s12313_s6 + $0x10d0] sm:$0xff]  }
  0x9c   : > { %1360 = vst [vmem:[%s12318_s7 + $0x8c0] sm:$0xff] %v1359_v24   ;;  %1364 = vst [vmem:[%s12318_s7 + $0x8c8] sm:$0xff] %v1363_v25   ;;  %v1371_v27 = vld [vmem:[%s12313_s6 + $0x10d8] sm:$0xff]   ;;  %v1375_v28 = vld [vmem:[%s12313_s6 + $0x10e0] sm:$0xff]  }
  0x9d   : > { %1368 = vst [vmem:[%s12318_s7 + $0x8d0] sm:$0xff] %v1367_v26   ;;  %1372 = vst [vmem:[%s12318_s7 + $0x8d8] sm:$0xff] %v1371_v27   ;;  %v1379_v29 = vld [vmem:[%s12313_s6 + $0x10e8] sm:$0xff]   ;;  %v1383_v30 = vld [vmem:[%s12313_s6 + $0x10f0] sm:$0xff]  }
  0x9e   : > { %1376 = vst [vmem:[%s12318_s7 + $0x8e0] sm:$0xff] %v1375_v28   ;;  %v1387_v31 = vld [vmem:[%s12313_s6 + $0x10f8] sm:$0xff]   ;;  %1380 = vst [vmem:[%s12318_s7 + $0x8e8] sm:$0xff] %v1379_v29   ;;  %v1391_v32 = vld [vmem:[%s12313_s6 + $0x1200] sm:$0xff]  }
  0x9f   : > { %1384 = vst [vmem:[%s12318_s7 + $0x8f0] sm:$0xff] %v1383_v30   ;;  %1388 = vst [vmem:[%s12318_s7 + $0x8f8] sm:$0xff] %v1387_v31   ;;  %v1395_v33 = vld [vmem:[%s12313_s6 + $0x1208] sm:$0xff]   ;;  %v1399_v34 = vld [vmem:[%s12313_s6 + $0x1210] sm:$0xff]  }
  0xa0   : > { %1392 = vst [vmem:[%s12318_s7 + $0x900] sm:$0xff] %v1391_v32   ;;  %1396 = vst [vmem:[%s12318_s7 + $0x908] sm:$0xff] %v1395_v33   ;;  %v1403_v35 = vld [vmem:[%s12313_s6 + $0x1218] sm:$0xff]   ;;  %v1407_v36 = vld [vmem:[%s12313_s6 + $0x1220] sm:$0xff]  }
  0xa1   : > { %1400 = vst [vmem:[%s12318_s7 + $0x910] sm:$0xff] %v1399_v34   ;;  %v1411_v37 = vld [vmem:[%s12313_s6 + $0x1228] sm:$0xff]   ;;  %1404 = vst [vmem:[%s12318_s7 + $0x918] sm:$0xff] %v1403_v35   ;;  %v1415_v38 = vld [vmem:[%s12313_s6 + $0x1230] sm:$0xff]  }
  0xa2   : > { %1408 = vst [vmem:[%s12318_s7 + $0x920] sm:$0xff] %v1407_v36   ;;  %1412 = vst [vmem:[%s12318_s7 + $0x928] sm:$0xff] %v1411_v37   ;;  %v1419_v39 = vld [vmem:[%s12313_s6 + $0x1238] sm:$0xff]   ;;  %v1423_v40 = vld [vmem:[%s12313_s6 + $0x1240] sm:$0xff]  }
  0xa3   : > { %1416 = vst [vmem:[%s12318_s7 + $0x930] sm:$0xff] %v1415_v38   ;;  %1420 = vst [vmem:[%s12318_s7 + $0x938] sm:$0xff] %v1419_v39   ;;  %v1427_v41 = vld [vmem:[%s12313_s6 + $0x1248] sm:$0xff]   ;;  %v1431_v42 = vld [vmem:[%s12313_s6 + $0x1250] sm:$0xff]  }
  0xa4   : > { %1424 = vst [vmem:[%s12318_s7 + $0x940] sm:$0xff] %v1423_v40   ;;  %v1435_v43 = vld [vmem:[%s12313_s6 + $0x1258] sm:$0xff]   ;;  %1428 = vst [vmem:[%s12318_s7 + $0x948] sm:$0xff] %v1427_v41   ;;  %v1439_v44 = vld [vmem:[%s12313_s6 + $0x1260] sm:$0xff]  }
  0xa5   : > { %1432 = vst [vmem:[%s12318_s7 + $0x950] sm:$0xff] %v1431_v42   ;;  %1436 = vst [vmem:[%s12318_s7 + $0x958] sm:$0xff] %v1435_v43   ;;  %v1443_v45 = vld [vmem:[%s12313_s6 + $0x1268] sm:$0xff]   ;;  %v1447_v46 = vld [vmem:[%s12313_s6 + $0x1270] sm:$0xff]  }
  0xa6   : > { %1440 = vst [vmem:[%s12318_s7 + $0x960] sm:$0xff] %v1439_v44   ;;  %1444 = vst [vmem:[%s12318_s7 + $0x968] sm:$0xff] %v1443_v45   ;;  %v1451_v47 = vld [vmem:[%s12313_s6 + $0x1278] sm:$0xff]   ;;  %v1455_v48 = vld [vmem:[%s12313_s6 + $0x1280] sm:$0xff]  }
  0xa7   : > { %1448 = vst [vmem:[%s12318_s7 + $0x970] sm:$0xff] %v1447_v46   ;;  %v1459_v49 = vld [vmem:[%s12313_s6 + $0x1288] sm:$0xff]   ;;  %1452 = vst [vmem:[%s12318_s7 + $0x978] sm:$0xff] %v1451_v47   ;;  %v1463_v50 = vld [vmem:[%s12313_s6 + $0x1290] sm:$0xff]  }
  0xa8   : > { %1456 = vst [vmem:[%s12318_s7 + $0x980] sm:$0xff] %v1455_v48   ;;  %1460 = vst [vmem:[%s12318_s7 + $0x988] sm:$0xff] %v1459_v49   ;;  %v1467_v51 = vld [vmem:[%s12313_s6 + $0x1298] sm:$0xff]   ;;  %v1471_v52 = vld [vmem:[%s12313_s6 + $0x12a0] sm:$0xff]  }
  0xa9   : > { %1464 = vst [vmem:[%s12318_s7 + $0x990] sm:$0xff] %v1463_v50   ;;  %1468 = vst [vmem:[%s12318_s7 + $0x998] sm:$0xff] %v1467_v51   ;;  %v1475_v53 = vld [vmem:[%s12313_s6 + $0x12a8] sm:$0xff]   ;;  %v1479_v54 = vld [vmem:[%s12313_s6 + $0x12b0] sm:$0xff]  }
  0xaa   : > { %1472 = vst [vmem:[%s12318_s7 + $0x9a0] sm:$0xff] %v1471_v52   ;;  %v1483_v55 = vld [vmem:[%s12313_s6 + $0x12b8] sm:$0xff]   ;;  %1476 = vst [vmem:[%s12318_s7 + $0x9a8] sm:$0xff] %v1475_v53   ;;  %v1487_v56 = vld [vmem:[%s12313_s6 + $0x12c0] sm:$0xff]  }
  0xab   : > { %1480 = vst [vmem:[%s12318_s7 + $0x9b0] sm:$0xff] %v1479_v54   ;;  %1484 = vst [vmem:[%s12318_s7 + $0x9b8] sm:$0xff] %v1483_v55   ;;  %v1491_v57 = vld [vmem:[%s12313_s6 + $0x12c8] sm:$0xff]   ;;  %v1495_v58 = vld [vmem:[%s12313_s6 + $0x12d0] sm:$0xff]  }
  0xac   : > { %1488 = vst [vmem:[%s12318_s7 + $0x9c0] sm:$0xff] %v1487_v56   ;;  %1492 = vst [vmem:[%s12318_s7 + $0x9c8] sm:$0xff] %v1491_v57   ;;  %v1499_v59 = vld [vmem:[%s12313_s6 + $0x12d8] sm:$0xff]   ;;  %v1503_v60 = vld [vmem:[%s12313_s6 + $0x12e0] sm:$0xff]  }
  0xad   : > { %1496 = vst [vmem:[%s12318_s7 + $0x9d0] sm:$0xff] %v1495_v58   ;;  %v1507_v61 = vld [vmem:[%s12313_s6 + $0x12e8] sm:$0xff]   ;;  %1500 = vst [vmem:[%s12318_s7 + $0x9d8] sm:$0xff] %v1499_v59   ;;  %v1511_v62 = vld [vmem:[%s12313_s6 + $0x12f0] sm:$0xff]  }
  0xae   : > { %1504 = vst [vmem:[%s12318_s7 + $0x9e0] sm:$0xff] %v1503_v60   ;;  %1508 = vst [vmem:[%s12318_s7 + $0x9e8] sm:$0xff] %v1507_v61   ;;  %v1515_v63 = vld [vmem:[%s12313_s6 + $0x12f8] sm:$0xff]   ;;  %v1519_v0 = vld [vmem:[%s12313_s6 + $0x1400] sm:$0xff]  }
  0xaf   : > { %1512 = vst [vmem:[%s12318_s7 + $0x9f0] sm:$0xff] %v1511_v62   ;;  %1516 = vst [vmem:[%s12318_s7 + $0x9f8] sm:$0xff] %v1515_v63   ;;  %v1523_v1 = vld [vmem:[%s12313_s6 + $0x1408] sm:$0xff]   ;;  %v1527_v2 = vld [vmem:[%s12313_s6 + $0x1410] sm:$0xff]  }
  0xb0   : > { %1520 = vst [vmem:[%s12318_s7 + $0xa00] sm:$0xff] %v1519_v0   ;;  %v1531_v3 = vld [vmem:[%s12313_s6 + $0x1418] sm:$0xff]   ;;  %1524 = vst [vmem:[%s12318_s7 + $0xa08] sm:$0xff] %v1523_v1   ;;  %v1535_v4 = vld [vmem:[%s12313_s6 + $0x1420] sm:$0xff]  }
  0xb1   : > { %1528 = vst [vmem:[%s12318_s7 + $0xa10] sm:$0xff] %v1527_v2   ;;  %1532 = vst [vmem:[%s12318_s7 + $0xa18] sm:$0xff] %v1531_v3   ;;  %v1539_v5 = vld [vmem:[%s12313_s6 + $0x1428] sm:$0xff]   ;;  %v1543_v6 = vld [vmem:[%s12313_s6 + $0x1430] sm:$0xff]  }
  0xb2   : > { %1536 = vst [vmem:[%s12318_s7 + $0xa20] sm:$0xff] %v1535_v4   ;;  %1540 = vst [vmem:[%s12318_s7 + $0xa28] sm:$0xff] %v1539_v5   ;;  %v1547_v7 = vld [vmem:[%s12313_s6 + $0x1438] sm:$0xff]   ;;  %v1551_v8 = vld [vmem:[%s12313_s6 + $0x1440] sm:$0xff]  }
  0xb3   : > { %1544 = vst [vmem:[%s12318_s7 + $0xa30] sm:$0xff] %v1543_v6   ;;  %v1555_v9 = vld [vmem:[%s12313_s6 + $0x1448] sm:$0xff]   ;;  %1548 = vst [vmem:[%s12318_s7 + $0xa38] sm:$0xff] %v1547_v7   ;;  %v1559_v10 = vld [vmem:[%s12313_s6 + $0x1450] sm:$0xff]  }
  0xb4   : > { %1552 = vst [vmem:[%s12318_s7 + $0xa40] sm:$0xff] %v1551_v8   ;;  %1556 = vst [vmem:[%s12318_s7 + $0xa48] sm:$0xff] %v1555_v9   ;;  %v1563_v11 = vld [vmem:[%s12313_s6 + $0x1458] sm:$0xff]   ;;  %v1567_v12 = vld [vmem:[%s12313_s6 + $0x1460] sm:$0xff]  }
  0xb5   : > { %1560 = vst [vmem:[%s12318_s7 + $0xa50] sm:$0xff] %v1559_v10   ;;  %1564 = vst [vmem:[%s12318_s7 + $0xa58] sm:$0xff] %v1563_v11   ;;  %v1571_v13 = vld [vmem:[%s12313_s6 + $0x1468] sm:$0xff]   ;;  %v1575_v14 = vld [vmem:[%s12313_s6 + $0x1470] sm:$0xff]  }
  0xb6   : > { %1568 = vst [vmem:[%s12318_s7 + $0xa60] sm:$0xff] %v1567_v12   ;;  %v1579_v15 = vld [vmem:[%s12313_s6 + $0x1478] sm:$0xff]   ;;  %1572 = vst [vmem:[%s12318_s7 + $0xa68] sm:$0xff] %v1571_v13   ;;  %v1583_v16 = vld [vmem:[%s12313_s6 + $0x1480] sm:$0xff]  }
  0xb7   : > { %1576 = vst [vmem:[%s12318_s7 + $0xa70] sm:$0xff] %v1575_v14   ;;  %1580 = vst [vmem:[%s12318_s7 + $0xa78] sm:$0xff] %v1579_v15   ;;  %v1587_v17 = vld [vmem:[%s12313_s6 + $0x1488] sm:$0xff]   ;;  %v1591_v18 = vld [vmem:[%s12313_s6 + $0x1490] sm:$0xff]  }
  0xb8   : > { %1584 = vst [vmem:[%s12318_s7 + $0xa80] sm:$0xff] %v1583_v16   ;;  %1588 = vst [vmem:[%s12318_s7 + $0xa88] sm:$0xff] %v1587_v17   ;;  %v1595_v19 = vld [vmem:[%s12313_s6 + $0x1498] sm:$0xff]   ;;  %v1599_v20 = vld [vmem:[%s12313_s6 + $0x14a0] sm:$0xff]  }
  0xb9   : > { %1592 = vst [vmem:[%s12318_s7 + $0xa90] sm:$0xff] %v1591_v18   ;;  %v1603_v21 = vld [vmem:[%s12313_s6 + $0x14a8] sm:$0xff]   ;;  %1596 = vst [vmem:[%s12318_s7 + $0xa98] sm:$0xff] %v1595_v19   ;;  %v1607_v22 = vld [vmem:[%s12313_s6 + $0x14b0] sm:$0xff]  }
  0xba   : > { %1600 = vst [vmem:[%s12318_s7 + $0xaa0] sm:$0xff] %v1599_v20   ;;  %1604 = vst [vmem:[%s12318_s7 + $0xaa8] sm:$0xff] %v1603_v21   ;;  %v1611_v23 = vld [vmem:[%s12313_s6 + $0x14b8] sm:$0xff]   ;;  %v1615_v24 = vld [vmem:[%s12313_s6 + $0x14c0] sm:$0xff]  }
  0xbb   : > { %1608 = vst [vmem:[%s12318_s7 + $0xab0] sm:$0xff] %v1607_v22   ;;  %1612 = vst [vmem:[%s12318_s7 + $0xab8] sm:$0xff] %v1611_v23   ;;  %v1619_v25 = vld [vmem:[%s12313_s6 + $0x14c8] sm:$0xff]   ;;  %v1623_v26 = vld [vmem:[%s12313_s6 + $0x14d0] sm:$0xff]  }
  0xbc   : > { %1616 = vst [vmem:[%s12318_s7 + $0xac0] sm:$0xff] %v1615_v24   ;;  %v1627_v27 = vld [vmem:[%s12313_s6 + $0x14d8] sm:$0xff]   ;;  %1620 = vst [vmem:[%s12318_s7 + $0xac8] sm:$0xff] %v1619_v25   ;;  %v1631_v28 = vld [vmem:[%s12313_s6 + $0x14e0] sm:$0xff]  }
  0xbd   : > { %1624 = vst [vmem:[%s12318_s7 + $0xad0] sm:$0xff] %v1623_v26   ;;  %1628 = vst [vmem:[%s12318_s7 + $0xad8] sm:$0xff] %v1627_v27   ;;  %v1635_v29 = vld [vmem:[%s12313_s6 + $0x14e8] sm:$0xff]   ;;  %v1639_v30 = vld [vmem:[%s12313_s6 + $0x14f0] sm:$0xff]  }
  0xbe   : > { %1632 = vst [vmem:[%s12318_s7 + $0xae0] sm:$0xff] %v1631_v28   ;;  %1636 = vst [vmem:[%s12318_s7 + $0xae8] sm:$0xff] %v1635_v29   ;;  %v1643_v31 = vld [vmem:[%s12313_s6 + $0x14f8] sm:$0xff]   ;;  %v1647_v32 = vld [vmem:[%s12313_s6 + $0x1600] sm:$0xff]  }
  0xbf   : > { %1640 = vst [vmem:[%s12318_s7 + $0xaf0] sm:$0xff] %v1639_v30   ;;  %v1651_v33 = vld [vmem:[%s12313_s6 + $0x1608] sm:$0xff]   ;;  %1644 = vst [vmem:[%s12318_s7 + $0xaf8] sm:$0xff] %v1643_v31   ;;  %v1655_v34 = vld [vmem:[%s12313_s6 + $0x1610] sm:$0xff]  }
  0xc0   : > { %1648 = vst [vmem:[%s12318_s7 + $0xb00] sm:$0xff] %v1647_v32   ;;  %1652 = vst [vmem:[%s12318_s7 + $0xb08] sm:$0xff] %v1651_v33   ;;  %v1659_v35 = vld [vmem:[%s12313_s6 + $0x1618] sm:$0xff]   ;;  %v1663_v36 = vld [vmem:[%s12313_s6 + $0x1620] sm:$0xff]  }
  0xc1   : > { %1656 = vst [vmem:[%s12318_s7 + $0xb10] sm:$0xff] %v1655_v34   ;;  %1660 = vst [vmem:[%s12318_s7 + $0xb18] sm:$0xff] %v1659_v35   ;;  %v1667_v37 = vld [vmem:[%s12313_s6 + $0x1628] sm:$0xff]   ;;  %v1671_v38 = vld [vmem:[%s12313_s6 + $0x1630] sm:$0xff]  }
  0xc2   : > { %1664 = vst [vmem:[%s12318_s7 + $0xb20] sm:$0xff] %v1663_v36   ;;  %v1675_v39 = vld [vmem:[%s12313_s6 + $0x1638] sm:$0xff]   ;;  %1668 = vst [vmem:[%s12318_s7 + $0xb28] sm:$0xff] %v1667_v37   ;;  %v1679_v40 = vld [vmem:[%s12313_s6 + $0x1640] sm:$0xff]  }
  0xc3   : > { %1672 = vst [vmem:[%s12318_s7 + $0xb30] sm:$0xff] %v1671_v38   ;;  %1676 = vst [vmem:[%s12318_s7 + $0xb38] sm:$0xff] %v1675_v39   ;;  %v1683_v41 = vld [vmem:[%s12313_s6 + $0x1648] sm:$0xff]   ;;  %v1687_v42 = vld [vmem:[%s12313_s6 + $0x1650] sm:$0xff]  }
  0xc4   : > { %1680 = vst [vmem:[%s12318_s7 + $0xb40] sm:$0xff] %v1679_v40   ;;  %1684 = vst [vmem:[%s12318_s7 + $0xb48] sm:$0xff] %v1683_v41   ;;  %v1691_v43 = vld [vmem:[%s12313_s6 + $0x1658] sm:$0xff]   ;;  %v1695_v44 = vld [vmem:[%s12313_s6 + $0x1660] sm:$0xff]  }
  0xc5   : > { %1688 = vst [vmem:[%s12318_s7 + $0xb50] sm:$0xff] %v1687_v42   ;;  %v1699_v45 = vld [vmem:[%s12313_s6 + $0x1668] sm:$0xff]   ;;  %1692 = vst [vmem:[%s12318_s7 + $0xb58] sm:$0xff] %v1691_v43   ;;  %v1703_v46 = vld [vmem:[%s12313_s6 + $0x1670] sm:$0xff]  }
  0xc6   : > { %1696 = vst [vmem:[%s12318_s7 + $0xb60] sm:$0xff] %v1695_v44   ;;  %1700 = vst [vmem:[%s12318_s7 + $0xb68] sm:$0xff] %v1699_v45   ;;  %v1707_v47 = vld [vmem:[%s12313_s6 + $0x1678] sm:$0xff]   ;;  %v1711_v48 = vld [vmem:[%s12313_s6 + $0x1680] sm:$0xff]  }
  0xc7   : > { %1704 = vst [vmem:[%s12318_s7 + $0xb70] sm:$0xff] %v1703_v46   ;;  %1708 = vst [vmem:[%s12318_s7 + $0xb78] sm:$0xff] %v1707_v47   ;;  %v1715_v49 = vld [vmem:[%s12313_s6 + $0x1688] sm:$0xff]   ;;  %v1719_v50 = vld [vmem:[%s12313_s6 + $0x1690] sm:$0xff]  }
  0xc8   : > { %1712 = vst [vmem:[%s12318_s7 + $0xb80] sm:$0xff] %v1711_v48   ;;  %v1723_v51 = vld [vmem:[%s12313_s6 + $0x1698] sm:$0xff]   ;;  %1716 = vst [vmem:[%s12318_s7 + $0xb88] sm:$0xff] %v1715_v49   ;;  %v1727_v52 = vld [vmem:[%s12313_s6 + $0x16a0] sm:$0xff]  }
  0xc9   : > { %1720 = vst [vmem:[%s12318_s7 + $0xb90] sm:$0xff] %v1719_v50   ;;  %1724 = vst [vmem:[%s12318_s7 + $0xb98] sm:$0xff] %v1723_v51   ;;  %v1731_v53 = vld [vmem:[%s12313_s6 + $0x16a8] sm:$0xff]   ;;  %v1735_v54 = vld [vmem:[%s12313_s6 + $0x16b0] sm:$0xff]  }
  0xca   : > { %1728 = vst [vmem:[%s12318_s7 + $0xba0] sm:$0xff] %v1727_v52   ;;  %1732 = vst [vmem:[%s12318_s7 + $0xba8] sm:$0xff] %v1731_v53   ;;  %v1739_v55 = vld [vmem:[%s12313_s6 + $0x16b8] sm:$0xff]   ;;  %v1743_v56 = vld [vmem:[%s12313_s6 + $0x16c0] sm:$0xff]  }
  0xcb   : > { %1736 = vst [vmem:[%s12318_s7 + $0xbb0] sm:$0xff] %v1735_v54   ;;  %v1747_v57 = vld [vmem:[%s12313_s6 + $0x16c8] sm:$0xff]   ;;  %1740 = vst [vmem:[%s12318_s7 + $0xbb8] sm:$0xff] %v1739_v55   ;;  %v1751_v58 = vld [vmem:[%s12313_s6 + $0x16d0] sm:$0xff]  }
  0xcc   : > { %1744 = vst [vmem:[%s12318_s7 + $0xbc0] sm:$0xff] %v1743_v56   ;;  %1748 = vst [vmem:[%s12318_s7 + $0xbc8] sm:$0xff] %v1747_v57   ;;  %v1755_v59 = vld [vmem:[%s12313_s6 + $0x16d8] sm:$0xff]   ;;  %v1759_v60 = vld [vmem:[%s12313_s6 + $0x16e0] sm:$0xff]  }
  0xcd   : > { %1752 = vst [vmem:[%s12318_s7 + $0xbd0] sm:$0xff] %v1751_v58   ;;  %1756 = vst [vmem:[%s12318_s7 + $0xbd8] sm:$0xff] %v1755_v59   ;;  %v1763_v61 = vld [vmem:[%s12313_s6 + $0x16e8] sm:$0xff]   ;;  %v1767_v62 = vld [vmem:[%s12313_s6 + $0x16f0] sm:$0xff]  }
  0xce   : > { %1760 = vst [vmem:[%s12318_s7 + $0xbe0] sm:$0xff] %v1759_v60   ;;  %v1771_v63 = vld [vmem:[%s12313_s6 + $0x16f8] sm:$0xff]   ;;  %1764 = vst [vmem:[%s12318_s7 + $0xbe8] sm:$0xff] %v1763_v61   ;;  %v1775_v0 = vld [vmem:[%s12313_s6 + $0x1800] sm:$0xff]  }
  0xcf   : > { %1768 = vst [vmem:[%s12318_s7 + $0xbf0] sm:$0xff] %v1767_v62   ;;  %1772 = vst [vmem:[%s12318_s7 + $0xbf8] sm:$0xff] %v1771_v63   ;;  %v1779_v1 = vld [vmem:[%s12313_s6 + $0x1808] sm:$0xff]   ;;  %v1783_v2 = vld [vmem:[%s12313_s6 + $0x1810] sm:$0xff]  }
  0xd0   : > { %1776 = vst [vmem:[%s12318_s7 + $0xc00] sm:$0xff] %v1775_v0   ;;  %1780 = vst [vmem:[%s12318_s7 + $0xc08] sm:$0xff] %v1779_v1   ;;  %v1787_v3 = vld [vmem:[%s12313_s6 + $0x1818] sm:$0xff]   ;;  %v1791_v4 = vld [vmem:[%s12313_s6 + $0x1820] sm:$0xff]  }
  0xd1   : > { %1784 = vst [vmem:[%s12318_s7 + $0xc10] sm:$0xff] %v1783_v2   ;;  %v1795_v5 = vld [vmem:[%s12313_s6 + $0x1828] sm:$0xff]   ;;  %1788 = vst [vmem:[%s12318_s7 + $0xc18] sm:$0xff] %v1787_v3   ;;  %v1799_v6 = vld [vmem:[%s12313_s6 + $0x1830] sm:$0xff]  }
  0xd2   : > { %1792 = vst [vmem:[%s12318_s7 + $0xc20] sm:$0xff] %v1791_v4   ;;  %1796 = vst [vmem:[%s12318_s7 + $0xc28] sm:$0xff] %v1795_v5   ;;  %v1803_v7 = vld [vmem:[%s12313_s6 + $0x1838] sm:$0xff]   ;;  %v1807_v8 = vld [vmem:[%s12313_s6 + $0x1840] sm:$0xff]  }
  0xd3   : > { %1800 = vst [vmem:[%s12318_s7 + $0xc30] sm:$0xff] %v1799_v6   ;;  %1804 = vst [vmem:[%s12318_s7 + $0xc38] sm:$0xff] %v1803_v7   ;;  %v1811_v9 = vld [vmem:[%s12313_s6 + $0x1848] sm:$0xff]   ;;  %v1815_v10 = vld [vmem:[%s12313_s6 + $0x1850] sm:$0xff]  }
  0xd4   : > { %1808 = vst [vmem:[%s12318_s7 + $0xc40] sm:$0xff] %v1807_v8   ;;  %v1819_v11 = vld [vmem:[%s12313_s6 + $0x1858] sm:$0xff]   ;;  %1812 = vst [vmem:[%s12318_s7 + $0xc48] sm:$0xff] %v1811_v9   ;;  %v1823_v12 = vld [vmem:[%s12313_s6 + $0x1860] sm:$0xff]  }
  0xd5   : > { %1816 = vst [vmem:[%s12318_s7 + $0xc50] sm:$0xff] %v1815_v10   ;;  %1820 = vst [vmem:[%s12318_s7 + $0xc58] sm:$0xff] %v1819_v11   ;;  %v1827_v13 = vld [vmem:[%s12313_s6 + $0x1868] sm:$0xff]   ;;  %v1831_v14 = vld [vmem:[%s12313_s6 + $0x1870] sm:$0xff]  }
  0xd6   : > { %1824 = vst [vmem:[%s12318_s7 + $0xc60] sm:$0xff] %v1823_v12   ;;  %1828 = vst [vmem:[%s12318_s7 + $0xc68] sm:$0xff] %v1827_v13   ;;  %v1835_v15 = vld [vmem:[%s12313_s6 + $0x1878] sm:$0xff]   ;;  %v1839_v16 = vld [vmem:[%s12313_s6 + $0x1880] sm:$0xff]  }
  0xd7   : > { %1832 = vst [vmem:[%s12318_s7 + $0xc70] sm:$0xff] %v1831_v14   ;;  %v1843_v17 = vld [vmem:[%s12313_s6 + $0x1888] sm:$0xff]   ;;  %1836 = vst [vmem:[%s12318_s7 + $0xc78] sm:$0xff] %v1835_v15   ;;  %v1847_v18 = vld [vmem:[%s12313_s6 + $0x1890] sm:$0xff]  }
  0xd8   : > { %1840 = vst [vmem:[%s12318_s7 + $0xc80] sm:$0xff] %v1839_v16   ;;  %1844 = vst [vmem:[%s12318_s7 + $0xc88] sm:$0xff] %v1843_v17   ;;  %v1851_v19 = vld [vmem:[%s12313_s6 + $0x1898] sm:$0xff]   ;;  %v1855_v20 = vld [vmem:[%s12313_s6 + $0x18a0] sm:$0xff]  }
  0xd9   : > { %1848 = vst [vmem:[%s12318_s7 + $0xc90] sm:$0xff] %v1847_v18   ;;  %1852 = vst [vmem:[%s12318_s7 + $0xc98] sm:$0xff] %v1851_v19   ;;  %v1859_v21 = vld [vmem:[%s12313_s6 + $0x18a8] sm:$0xff]   ;;  %v1863_v22 = vld [vmem:[%s12313_s6 + $0x18b0] sm:$0xff]  }
  0xda   : > { %1856 = vst [vmem:[%s12318_s7 + $0xca0] sm:$0xff] %v1855_v20   ;;  %v1867_v23 = vld [vmem:[%s12313_s6 + $0x18b8] sm:$0xff]   ;;  %1860 = vst [vmem:[%s12318_s7 + $0xca8] sm:$0xff] %v1859_v21   ;;  %v1871_v24 = vld [vmem:[%s12313_s6 + $0x18c0] sm:$0xff]  }
  0xdb   : > { %1864 = vst [vmem:[%s12318_s7 + $0xcb0] sm:$0xff] %v1863_v22   ;;  %1868 = vst [vmem:[%s12318_s7 + $0xcb8] sm:$0xff] %v1867_v23   ;;  %v1875_v25 = vld [vmem:[%s12313_s6 + $0x18c8] sm:$0xff]   ;;  %v1879_v26 = vld [vmem:[%s12313_s6 + $0x18d0] sm:$0xff]  }
  0xdc   : > { %1872 = vst [vmem:[%s12318_s7 + $0xcc0] sm:$0xff] %v1871_v24   ;;  %1876 = vst [vmem:[%s12318_s7 + $0xcc8] sm:$0xff] %v1875_v25   ;;  %v1883_v27 = vld [vmem:[%s12313_s6 + $0x18d8] sm:$0xff]   ;;  %v1887_v28 = vld [vmem:[%s12313_s6 + $0x18e0] sm:$0xff]  }
  0xdd   : > { %1880 = vst [vmem:[%s12318_s7 + $0xcd0] sm:$0xff] %v1879_v26   ;;  %v1891_v29 = vld [vmem:[%s12313_s6 + $0x18e8] sm:$0xff]   ;;  %1884 = vst [vmem:[%s12318_s7 + $0xcd8] sm:$0xff] %v1883_v27   ;;  %v1895_v30 = vld [vmem:[%s12313_s6 + $0x18f0] sm:$0xff]  }
  0xde   : > { %1888 = vst [vmem:[%s12318_s7 + $0xce0] sm:$0xff] %v1887_v28   ;;  %1892 = vst [vmem:[%s12318_s7 + $0xce8] sm:$0xff] %v1891_v29   ;;  %v1899_v31 = vld [vmem:[%s12313_s6 + $0x18f8] sm:$0xff]   ;;  %v1903_v32 = vld [vmem:[%s12313_s6 + $0x1a00] sm:$0xff]  }
  0xdf   : > { %1896 = vst [vmem:[%s12318_s7 + $0xcf0] sm:$0xff] %v1895_v30   ;;  %1900 = vst [vmem:[%s12318_s7 + $0xcf8] sm:$0xff] %v1899_v31   ;;  %v1907_v33 = vld [vmem:[%s12313_s6 + $0x1a08] sm:$0xff]   ;;  %v1911_v34 = vld [vmem:[%s12313_s6 + $0x1a10] sm:$0xff]  }
  0xe0   : > { %1904 = vst [vmem:[%s12318_s7 + $0xd00] sm:$0xff] %v1903_v32   ;;  %v1915_v35 = vld [vmem:[%s12313_s6 + $0x1a18] sm:$0xff]   ;;  %1908 = vst [vmem:[%s12318_s7 + $0xd08] sm:$0xff] %v1907_v33   ;;  %v1919_v36 = vld [vmem:[%s12313_s6 + $0x1a20] sm:$0xff]  }
  0xe1   : > { %1912 = vst [vmem:[%s12318_s7 + $0xd10] sm:$0xff] %v1911_v34   ;;  %1916 = vst [vmem:[%s12318_s7 + $0xd18] sm:$0xff] %v1915_v35   ;;  %v1923_v37 = vld [vmem:[%s12313_s6 + $0x1a28] sm:$0xff]   ;;  %v1927_v38 = vld [vmem:[%s12313_s6 + $0x1a30] sm:$0xff]  }
  0xe2   : > { %1920 = vst [vmem:[%s12318_s7 + $0xd20] sm:$0xff] %v1919_v36   ;;  %1924 = vst [vmem:[%s12318_s7 + $0xd28] sm:$0xff] %v1923_v37   ;;  %v1931_v39 = vld [vmem:[%s12313_s6 + $0x1a38] sm:$0xff]   ;;  %v1935_v40 = vld [vmem:[%s12313_s6 + $0x1a40] sm:$0xff]  }
  0xe3   : > { %1928 = vst [vmem:[%s12318_s7 + $0xd30] sm:$0xff] %v1927_v38   ;;  %v1939_v41 = vld [vmem:[%s12313_s6 + $0x1a48] sm:$0xff]   ;;  %1932 = vst [vmem:[%s12318_s7 + $0xd38] sm:$0xff] %v1931_v39   ;;  %v1943_v42 = vld [vmem:[%s12313_s6 + $0x1a50] sm:$0xff]  }
  0xe4   : > { %1936 = vst [vmem:[%s12318_s7 + $0xd40] sm:$0xff] %v1935_v40   ;;  %1940 = vst [vmem:[%s12318_s7 + $0xd48] sm:$0xff] %v1939_v41   ;;  %v1947_v43 = vld [vmem:[%s12313_s6 + $0x1a58] sm:$0xff]   ;;  %v1951_v44 = vld [vmem:[%s12313_s6 + $0x1a60] sm:$0xff]  }
  0xe5   : > { %1944 = vst [vmem:[%s12318_s7 + $0xd50] sm:$0xff] %v1943_v42   ;;  %1948 = vst [vmem:[%s12318_s7 + $0xd58] sm:$0xff] %v1947_v43   ;;  %v1955_v45 = vld [vmem:[%s12313_s6 + $0x1a68] sm:$0xff]   ;;  %v1959_v46 = vld [vmem:[%s12313_s6 + $0x1a70] sm:$0xff]  }
  0xe6   : > { %1952 = vst [vmem:[%s12318_s7 + $0xd60] sm:$0xff] %v1951_v44   ;;  %v1963_v47 = vld [vmem:[%s12313_s6 + $0x1a78] sm:$0xff]   ;;  %1956 = vst [vmem:[%s12318_s7 + $0xd68] sm:$0xff] %v1955_v45   ;;  %v1967_v48 = vld [vmem:[%s12313_s6 + $0x1a80] sm:$0xff]  }
  0xe7   : > { %1960 = vst [vmem:[%s12318_s7 + $0xd70] sm:$0xff] %v1959_v46   ;;  %1964 = vst [vmem:[%s12318_s7 + $0xd78] sm:$0xff] %v1963_v47   ;;  %v1971_v49 = vld [vmem:[%s12313_s6 + $0x1a88] sm:$0xff]   ;;  %v1975_v50 = vld [vmem:[%s12313_s6 + $0x1a90] sm:$0xff]  }
  0xe8   : > { %1968 = vst [vmem:[%s12318_s7 + $0xd80] sm:$0xff] %v1967_v48   ;;  %1972 = vst [vmem:[%s12318_s7 + $0xd88] sm:$0xff] %v1971_v49   ;;  %v1979_v51 = vld [vmem:[%s12313_s6 + $0x1a98] sm:$0xff]   ;;  %v1983_v52 = vld [vmem:[%s12313_s6 + $0x1aa0] sm:$0xff]  }
  0xe9   : > { %1976 = vst [vmem:[%s12318_s7 + $0xd90] sm:$0xff] %v1975_v50   ;;  %v1987_v53 = vld [vmem:[%s12313_s6 + $0x1aa8] sm:$0xff]   ;;  %1980 = vst [vmem:[%s12318_s7 + $0xd98] sm:$0xff] %v1979_v51   ;;  %v1991_v54 = vld [vmem:[%s12313_s6 + $0x1ab0] sm:$0xff]  }
  0xea   : > { %1984 = vst [vmem:[%s12318_s7 + $0xda0] sm:$0xff] %v1983_v52   ;;  %1988 = vst [vmem:[%s12318_s7 + $0xda8] sm:$0xff] %v1987_v53   ;;  %v1995_v55 = vld [vmem:[%s12313_s6 + $0x1ab8] sm:$0xff]   ;;  %v1999_v56 = vld [vmem:[%s12313_s6 + $0x1ac0] sm:$0xff]  }
  0xeb   : > { %1992 = vst [vmem:[%s12318_s7 + $0xdb0] sm:$0xff] %v1991_v54   ;;  %1996 = vst [vmem:[%s12318_s7 + $0xdb8] sm:$0xff] %v1995_v55   ;;  %v2003_v57 = vld [vmem:[%s12313_s6 + $0x1ac8] sm:$0xff]   ;;  %v2007_v58 = vld [vmem:[%s12313_s6 + $0x1ad0] sm:$0xff]  }
  0xec   : > { %2000 = vst [vmem:[%s12318_s7 + $0xdc0] sm:$0xff] %v1999_v56   ;;  %v2011_v59 = vld [vmem:[%s12313_s6 + $0x1ad8] sm:$0xff]   ;;  %2004 = vst [vmem:[%s12318_s7 + $0xdc8] sm:$0xff] %v2003_v57   ;;  %v2015_v60 = vld [vmem:[%s12313_s6 + $0x1ae0] sm:$0xff]  }
  0xed   : > { %2008 = vst [vmem:[%s12318_s7 + $0xdd0] sm:$0xff] %v2007_v58   ;;  %2012 = vst [vmem:[%s12318_s7 + $0xdd8] sm:$0xff] %v2011_v59   ;;  %v2019_v61 = vld [vmem:[%s12313_s6 + $0x1ae8] sm:$0xff]   ;;  %v2023_v62 = vld [vmem:[%s12313_s6 + $0x1af0] sm:$0xff]  }
  0xee   : > { %2016 = vst [vmem:[%s12318_s7 + $0xde0] sm:$0xff] %v2015_v60   ;;  %2020 = vst [vmem:[%s12318_s7 + $0xde8] sm:$0xff] %v2019_v61   ;;  %v2027_v63 = vld [vmem:[%s12313_s6 + $0x1af8] sm:$0xff]   ;;  %v2031_v0 = vld [vmem:[%s12313_s6 + $0x1c00] sm:$0xff]  }
  0xef   : > { %2024 = vst [vmem:[%s12318_s7 + $0xdf0] sm:$0xff] %v2023_v62   ;;  %v2035_v1 = vld [vmem:[%s12313_s6 + $0x1c08] sm:$0xff]   ;;  %2028 = vst [vmem:[%s12318_s7 + $0xdf8] sm:$0xff] %v2027_v63   ;;  %v2039_v2 = vld [vmem:[%s12313_s6 + $0x1c10] sm:$0xff]  }
  0xf0   : > { %2032 = vst [vmem:[%s12318_s7 + $0xe00] sm:$0xff] %v2031_v0   ;;  %2036 = vst [vmem:[%s12318_s7 + $0xe08] sm:$0xff] %v2035_v1   ;;  %v2043_v3 = vld [vmem:[%s12313_s6 + $0x1c18] sm:$0xff]   ;;  %v2047_v4 = vld [vmem:[%s12313_s6 + $0x1c20] sm:$0xff]  }
  0xf1   : > { %2040 = vst [vmem:[%s12318_s7 + $0xe10] sm:$0xff] %v2039_v2   ;;  %2044 = vst [vmem:[%s12318_s7 + $0xe18] sm:$0xff] %v2043_v3   ;;  %v2051_v5 = vld [vmem:[%s12313_s6 + $0x1c28] sm:$0xff]   ;;  %v2055_v6 = vld [vmem:[%s12313_s6 + $0x1c30] sm:$0xff]  }
  0xf2   : > { %2048 = vst [vmem:[%s12318_s7 + $0xe20] sm:$0xff] %v2047_v4   ;;  %v2059_v7 = vld [vmem:[%s12313_s6 + $0x1c38] sm:$0xff]   ;;  %2052 = vst [vmem:[%s12318_s7 + $0xe28] sm:$0xff] %v2051_v5   ;;  %v2063_v8 = vld [vmem:[%s12313_s6 + $0x1c40] sm:$0xff]  }
  0xf3   : > { %2056 = vst [vmem:[%s12318_s7 + $0xe30] sm:$0xff] %v2055_v6   ;;  %2060 = vst [vmem:[%s12318_s7 + $0xe38] sm:$0xff] %v2059_v7   ;;  %v2067_v9 = vld [vmem:[%s12313_s6 + $0x1c48] sm:$0xff]   ;;  %v2071_v10 = vld [vmem:[%s12313_s6 + $0x1c50] sm:$0xff]  }
  0xf4   : > { %2064 = vst [vmem:[%s12318_s7 + $0xe40] sm:$0xff] %v2063_v8   ;;  %2068 = vst [vmem:[%s12318_s7 + $0xe48] sm:$0xff] %v2067_v9   ;;  %v2075_v11 = vld [vmem:[%s12313_s6 + $0x1c58] sm:$0xff]   ;;  %v2079_v12 = vld [vmem:[%s12313_s6 + $0x1c60] sm:$0xff]  }
  0xf5   : > { %2072 = vst [vmem:[%s12318_s7 + $0xe50] sm:$0xff] %v2071_v10   ;;  %v2083_v13 = vld [vmem:[%s12313_s6 + $0x1c68] sm:$0xff]   ;;  %2076 = vst [vmem:[%s12318_s7 + $0xe58] sm:$0xff] %v2075_v11   ;;  %v2087_v14 = vld [vmem:[%s12313_s6 + $0x1c70] sm:$0xff]  }
  0xf6   : > { %2080 = vst [vmem:[%s12318_s7 + $0xe60] sm:$0xff] %v2079_v12   ;;  %2084 = vst [vmem:[%s12318_s7 + $0xe68] sm:$0xff] %v2083_v13   ;;  %v2091_v15 = vld [vmem:[%s12313_s6 + $0x1c78] sm:$0xff]   ;;  %v2095_v16 = vld [vmem:[%s12313_s6 + $0x1c80] sm:$0xff]  }
  0xf7   : > { %2088 = vst [vmem:[%s12318_s7 + $0xe70] sm:$0xff] %v2087_v14   ;;  %2092 = vst [vmem:[%s12318_s7 + $0xe78] sm:$0xff] %v2091_v15   ;;  %v2099_v17 = vld [vmem:[%s12313_s6 + $0x1c88] sm:$0xff]   ;;  %v2103_v18 = vld [vmem:[%s12313_s6 + $0x1c90] sm:$0xff]  }
  0xf8   : > { %2096 = vst [vmem:[%s12318_s7 + $0xe80] sm:$0xff] %v2095_v16   ;;  %v2107_v19 = vld [vmem:[%s12313_s6 + $0x1c98] sm:$0xff]   ;;  %2100 = vst [vmem:[%s12318_s7 + $0xe88] sm:$0xff] %v2099_v17   ;;  %v2111_v20 = vld [vmem:[%s12313_s6 + $0x1ca0] sm:$0xff]  }
  0xf9   : > { %2104 = vst [vmem:[%s12318_s7 + $0xe90] sm:$0xff] %v2103_v18   ;;  %2108 = vst [vmem:[%s12318_s7 + $0xe98] sm:$0xff] %v2107_v19   ;;  %v2115_v21 = vld [vmem:[%s12313_s6 + $0x1ca8] sm:$0xff]   ;;  %v2119_v22 = vld [vmem:[%s12313_s6 + $0x1cb0] sm:$0xff]  }
  0xfa   : > { %2112 = vst [vmem:[%s12318_s7 + $0xea0] sm:$0xff] %v2111_v20   ;;  %2116 = vst [vmem:[%s12318_s7 + $0xea8] sm:$0xff] %v2115_v21   ;;  %v2123_v23 = vld [vmem:[%s12313_s6 + $0x1cb8] sm:$0xff]   ;;  %v2127_v24 = vld [vmem:[%s12313_s6 + $0x1cc0] sm:$0xff]  }
  0xfb   : > { %2120 = vst [vmem:[%s12318_s7 + $0xeb0] sm:$0xff] %v2119_v22   ;;  %v2131_v25 = vld [vmem:[%s12313_s6 + $0x1cc8] sm:$0xff]   ;;  %2124 = vst [vmem:[%s12318_s7 + $0xeb8] sm:$0xff] %v2123_v23   ;;  %v2135_v26 = vld [vmem:[%s12313_s6 + $0x1cd0] sm:$0xff]  }
  0xfc   : > { %2128 = vst [vmem:[%s12318_s7 + $0xec0] sm:$0xff] %v2127_v24   ;;  %2132 = vst [vmem:[%s12318_s7 + $0xec8] sm:$0xff] %v2131_v25   ;;  %v2139_v27 = vld [vmem:[%s12313_s6 + $0x1cd8] sm:$0xff]   ;;  %v2143_v28 = vld [vmem:[%s12313_s6 + $0x1ce0] sm:$0xff]  }
  0xfd   : > { %2136 = vst [vmem:[%s12318_s7 + $0xed0] sm:$0xff] %v2135_v26   ;;  %2140 = vst [vmem:[%s12318_s7 + $0xed8] sm:$0xff] %v2139_v27   ;;  %v2147_v29 = vld [vmem:[%s12313_s6 + $0x1ce8] sm:$0xff]   ;;  %v2151_v30 = vld [vmem:[%s12313_s6 + $0x1cf0] sm:$0xff]  }
  0xfe   : > { %2144 = vst [vmem:[%s12318_s7 + $0xee0] sm:$0xff] %v2143_v28   ;;  %v2155_v31 = vld [vmem:[%s12313_s6 + $0x1cf8] sm:$0xff]   ;;  %2148 = vst [vmem:[%s12318_s7 + $0xee8] sm:$0xff] %v2147_v29   ;;  %v2159_v32 = vld [vmem:[%s12313_s6 + $0x1e00] sm:$0xff]  }
  0xff   : > { %2152 = vst [vmem:[%s12318_s7 + $0xef0] sm:$0xff] %v2151_v30   ;;  %2156 = vst [vmem:[%s12318_s7 + $0xef8] sm:$0xff] %v2155_v31   ;;  %v2163_v33 = vld [vmem:[%s12313_s6 + $0x1e08] sm:$0xff]   ;;  %v2167_v34 = vld [vmem:[%s12313_s6 + $0x1e10] sm:$0xff]  }
 0x100   : > { %2160 = vst [vmem:[%s12318_s7 + $0xf00] sm:$0xff] %v2159_v32   ;;  %2164 = vst [vmem:[%s12318_s7 + $0xf08] sm:$0xff] %v2163_v33   ;;  %v2171_v35 = vld [vmem:[%s12313_s6 + $0x1e18] sm:$0xff]   ;;  %v2175_v36 = vld [vmem:[%s12313_s6 + $0x1e20] sm:$0xff]  }
 0x101   : > { %2168 = vst [vmem:[%s12318_s7 + $0xf10] sm:$0xff] %v2167_v34   ;;  %v2179_v37 = vld [vmem:[%s12313_s6 + $0x1e28] sm:$0xff]   ;;  %2172 = vst [vmem:[%s12318_s7 + $0xf18] sm:$0xff] %v2171_v35   ;;  %v2183_v38 = vld [vmem:[%s12313_s6 + $0x1e30] sm:$0xff]  }
 0x102   : > { %2176 = vst [vmem:[%s12318_s7 + $0xf20] sm:$0xff] %v2175_v36   ;;  %2180 = vst [vmem:[%s12318_s7 + $0xf28] sm:$0xff] %v2179_v37   ;;  %v2187_v39 = vld [vmem:[%s12313_s6 + $0x1e38] sm:$0xff]   ;;  %v2191_v40 = vld [vmem:[%s12313_s6 + $0x1e40] sm:$0xff]  }
 0x103   : > { %2184 = vst [vmem:[%s12318_s7 + $0xf30] sm:$0xff] %v2183_v38   ;;  %2188 = vst [vmem:[%s12318_s7 + $0xf38] sm:$0xff] %v2187_v39   ;;  %v2195_v41 = vld [vmem:[%s12313_s6 + $0x1e48] sm:$0xff]   ;;  %v2199_v42 = vld [vmem:[%s12313_s6 + $0x1e50] sm:$0xff]  }
 0x104   : > { %2192 = vst [vmem:[%s12318_s7 + $0xf40] sm:$0xff] %v2191_v40   ;;  %v2203_v43 = vld [vmem:[%s12313_s6 + $0x1e58] sm:$0xff]   ;;  %2196 = vst [vmem:[%s12318_s7 + $0xf48] sm:$0xff] %v2195_v41   ;;  %v2207_v44 = vld [vmem:[%s12313_s6 + $0x1e60] sm:$0xff]  }
 0x105   : > { %2200 = vst [vmem:[%s12318_s7 + $0xf50] sm:$0xff] %v2199_v42   ;;  %2204 = vst [vmem:[%s12318_s7 + $0xf58] sm:$0xff] %v2203_v43   ;;  %v2211_v45 = vld [vmem:[%s12313_s6 + $0x1e68] sm:$0xff]   ;;  %v2215_v46 = vld [vmem:[%s12313_s6 + $0x1e70] sm:$0xff]  }
 0x106   : > { %2208 = vst [vmem:[%s12318_s7 + $0xf60] sm:$0xff] %v2207_v44   ;;  %2212 = vst [vmem:[%s12318_s7 + $0xf68] sm:$0xff] %v2211_v45   ;;  %v2219_v47 = vld [vmem:[%s12313_s6 + $0x1e78] sm:$0xff]   ;;  %v2223_v48 = vld [vmem:[%s12313_s6 + $0x1e80] sm:$0xff]  }
 0x107   : > { %2216 = vst [vmem:[%s12318_s7 + $0xf70] sm:$0xff] %v2215_v46   ;;  %v2227_v49 = vld [vmem:[%s12313_s6 + $0x1e88] sm:$0xff]   ;;  %2220 = vst [vmem:[%s12318_s7 + $0xf78] sm:$0xff] %v2219_v47   ;;  %v2231_v50 = vld [vmem:[%s12313_s6 + $0x1e90] sm:$0xff]  }
 0x108   : > { %2224 = vst [vmem:[%s12318_s7 + $0xf80] sm:$0xff] %v2223_v48   ;;  %2228 = vst [vmem:[%s12318_s7 + $0xf88] sm:$0xff] %v2227_v49   ;;  %v2235_v51 = vld [vmem:[%s12313_s6 + $0x1e98] sm:$0xff]   ;;  %v2239_v52 = vld [vmem:[%s12313_s6 + $0x1ea0] sm:$0xff]  }
 0x109   : > { %2232 = vst [vmem:[%s12318_s7 + $0xf90] sm:$0xff] %v2231_v50   ;;  %2236 = vst [vmem:[%s12318_s7 + $0xf98] sm:$0xff] %v2235_v51   ;;  %v2243_v53 = vld [vmem:[%s12313_s6 + $0x1ea8] sm:$0xff]   ;;  %v2247_v54 = vld [vmem:[%s12313_s6 + $0x1eb0] sm:$0xff]  }
 0x10a   : > { %2240 = vst [vmem:[%s12318_s7 + $0xfa0] sm:$0xff] %v2239_v52   ;;  %v2251_v55 = vld [vmem:[%s12313_s6 + $0x1eb8] sm:$0xff]   ;;  %2244 = vst [vmem:[%s12318_s7 + $0xfa8] sm:$0xff] %v2243_v53   ;;  %v2255_v56 = vld [vmem:[%s12313_s6 + $0x1ec0] sm:$0xff]  }
 0x10b   : > { %2248 = vst [vmem:[%s12318_s7 + $0xfb0] sm:$0xff] %v2247_v54   ;;  %2252 = vst [vmem:[%s12318_s7 + $0xfb8] sm:$0xff] %v2251_v55   ;;  %v2259_v57 = vld [vmem:[%s12313_s6 + $0x1ec8] sm:$0xff]   ;;  %v2263_v58 = vld [vmem:[%s12313_s6 + $0x1ed0] sm:$0xff]  }
 0x10c   : > { %2256 = vst [vmem:[%s12318_s7 + $0xfc0] sm:$0xff] %v2255_v56   ;;  %2260 = vst [vmem:[%s12318_s7 + $0xfc8] sm:$0xff] %v2259_v57   ;;  %v2267_v59 = vld [vmem:[%s12313_s6 + $0x1ed8] sm:$0xff]   ;;  %v2271_v60 = vld [vmem:[%s12313_s6 + $0x1ee0] sm:$0xff]  }
 0x10d   : > { %2264 = vst [vmem:[%s12318_s7 + $0xfd0] sm:$0xff] %v2263_v58   ;;  %v2275_v61 = vld [vmem:[%s12313_s6 + $0x1ee8] sm:$0xff]   ;;  %2268 = vst [vmem:[%s12318_s7 + $0xfd8] sm:$0xff] %v2267_v59   ;;  %v2279_v62 = vld [vmem:[%s12313_s6 + $0x1ef0] sm:$0xff]  }
 0x10e   : > { %2272 = vst [vmem:[%s12318_s7 + $0xfe0] sm:$0xff] %v2271_v60   ;;  %2276 = vst [vmem:[%s12318_s7 + $0xfe8] sm:$0xff] %v2275_v61   ;;  %v2283_v63 = vld [vmem:[%s12313_s6 + $0x1ef8] sm:$0xff]  }
 0x10f   : > { %2280 = vst [vmem:[%s12318_s7 + $0xff0] sm:$0xff] %v2279_v62   ;;  %2284 = vst [vmem:[%s12318_s7 + $0xff8] sm:$0xff] %v2283_v63  }
 0x110 PF: > { %p11481_p5 = scmp.ge.s32.totalorder %s12196_s20, 1  ;;  %p8492_p6 = scmp.lt.s32.totalorder %s12196_s20, 3 }
 0x112   : > { %p8493_p7 = pnand %p11481_p5, %p8492_p6 }
 0x113   : > { %s8499_s8 = sand.u32 (!%p8493_p7), 1, %s12188_s18   ;;  %s11483_s9 = sshll.u32 (!%p8493_p7), %s11474_s21, 6 }
 0x114   : > { %8496 = sbr.rel (%p8493_p7) target bundleno = 5036 (0x13ac), region = 88  ;;  %s13346_s10 = sshll.u32 (!%p8493_p7), %s8499_s8, 12 }
 0x115   : > { %p8547_p8 = scmp.lt.s32.totalorder (!%p8493_p7), %s11483_s9, 127  ;;  %s11491_s11 = sshll.u32 (!%p8493_p7), %s11474_s21, 1 }
 0x116   : > { %p8572_p9 = scmp.lt.s32.totalorder (!%p8493_p7), %s11491_s11, 3  ;;  %s8501_s8 = scalar_lea.vmem (!%p8493_p7), [#allocation2], %s13346_s10 }
 0x119   : > { %s16151_s9 = smov (!%p8547_p8, %s11483_s9), 127  ;;  %s16153_s11 = smov (!%p8572_p9, %s11491_s11), 3 }
 0x11a   : > { %s13350_s12 = sshll.u32 %s16151_s9, 2  ;;  %s11490_s13 = sshll.u32 %s16151_s9, 3 }
 0x11b   : > { %s8550_s16 = scalar_lea.vmem %s15475_s0, %s13350_s12  ;;  %s8556_s23 = scalar_lea.vmem %s15476_s1, %s13350_s12 }
 0x11c   : > { %s8562_s20 = scalar_lea.vmem %s15477_s2, %s13350_s12  ;;  %s13367_s28 = scalar_lea.vmem %s15479_s4, %s11490_s13 }
 0x11d   : > { %s11492_s29 = sshll.u32 %s16153_s11, 3  ;;  %s13375_s9 = smov 0  }
 0x11e   : > { %s13372_s7 = scalar_lea.vmem %s15480_s5, %s11492_s29 }
 0x11f LB: >> { %s11493_s13 = sshll.u32 %s12200_s9, 5  ;;  %s12202_s30 = smov 127   ;;  %vm11275_vm4 = vcmask 130112   ;;  %vm11282_vm5 = vcmask 195712   ;;  %vm11289_vm6 = vcmask 261312   ;;  %vm11293_vm7 = vcmask 253952   ;;  %s12200_s9 = sphi %s13375_s9, %s8582_s9  }
 0x120   : >> { %s8584_s11 = sshra.s32 %s11493_s13, 3  ;;  %s13515_s29 = scalar_lea.vmem %s13367_s28, %s11493_s13 }
 0x121   : >> { %s13383_s14 = sshll.u32 %s8584_s11, 2  ;;  %v13520_v49 = vld [vmem:[%s13515_s29] sm:$0xff]  ;;  %v13525_v51 = vld [vmem:[%s13515_s29 + $0x8] sm:$0xff]  ;;  %v13529_v53 = vld [vmem:[%s13515_s29 + $0x18] sm:$0xff]  ;;  %s12203_s6 = smov 126  }
 0x122   : >> { %s8587_s18 = scalar_lea.vmem %s8550_s16, %s13383_s14  ;;  %s8597_s21 = scalar_lea.vmem %s8556_s23, %s13383_s14  ;;  %vm8637_vm0 = vcmp.gt.f32.partialorder %v13520_v49, 0.0  ;;  %v13536_v56 = vld [vmem:[%s13515_s29 + $0x10] sm:$0xff]  ;;  %vm8638_vm1 = vcmp.gt.f32.partialorder %v13525_v51, 0.0  ;;  %vm8640_vm2 = vcmp.gt.f32.partialorder %v13529_v53, 0.0  ;;  %v15882_v51 = vmov 0  }
 0x123   : >> { %v13397_v0 = vld [vmem:[%s8587_s18 + $0x8] sm:$0xff]   ;;  %s13404_s27 = scalar_lea.vmem %s8501_s8, %s13383_s14 [#allocation2]  ;;  %v13406_v2 = vld [vmem:[%s8587_s18] sm:$0xff]   ;;  %vm8639_vm3 = vcmp.gt.f32.partialorder %v13536_v56, 0.0  ;;  %s12204_s13 = smov 125  }
 0x124   : >> { %15697 = vst [vmem:[#allocation3_spill] sm:$0xff] %v13397_v0  ;;  %v13399_v1 = vld [vmem:[%s8597_s21 + $0x8] sm:$0xff]   ;;  %15699 = vst [vmem:[#allocation5_spill] sm:$0xff] %v13406_v2  ;;  %v15485_v3 = vunpack.c.l.bf16 %v13397_v0  ;;  %v15488_v6 = vunpack.c.l.bf16 %v13406_v2  ;;  %v13414_v7 = vld [vmem:[%s8597_s21] sm:$0xff]   ;;  %v15483_v9 = vunpack.c.h.bf16 %v13397_v0  ;;  %v15486_v16 = vunpack.c.h.bf16 %v13406_v2  ;;  %s12205_s11 = smov 124   ;;  %s12206_s15 = smov 1  }
 0x125   : >> { %15698 = vst [vmem:[#allocation4_spill] sm:$0xff] %v13399_v1  ;;  %v15482_v4 = vunpack.c.l.bf16 %v13399_v1  ;;  %v13411_v5 = vld [vmem:[%s13404_s27 + $0x8] sm:$0xff]   ;;  %15701 = vst [vmem:[#allocation7_spill] sm:$0xff] %v13414_v7  ;;  %v13417_v8 = vld [vmem:[%s13404_s27] sm:$0xff]   ;;  %v15487_v11 = vunpack.c.l.bf16 %v13414_v7  ;;  %v15481_v13 = vunpack.c.h.bf16 %v13399_v1  ;;  %v15484_v17 = vunpack.c.h.bf16 %v13414_v7  ;;  %s12207_s17 = smov 2   ;;  %s12208_s18 = smov 3  }
 0x126   : >> { %15700 = vst [vmem:[#allocation6_spill] sm:$0xff] %v13411_v5  ;;  %15702 = vst [vmem:[#allocation8_spill] sm:$0xff] %v13417_v8  ;;  %v15497_v10 = vunpack.c.l.bf16 %v13411_v5  ;;  %v15496_v12 = vunpack.c.l.bf16 %v13417_v8  ;;  %v15506_v15 = vunpack.c.h.bf16 %v13411_v5  ;;  %v15508_v20 = vunpack.c.h.bf16 %v13417_v8  ;;  %v13447_v21 = vld [vmem:[%s13404_s27 + $0x100] sm:$0xff]   ;;  %v13470_v29 = vld [vmem:[%s13404_s27 + $0x108] sm:$0xff]   ;;  %s12210_s24 = smov 4   ;;  %s12214_s26 = smov 123  }
 0x127   : >> { %v13428_v14 = vadd.f32 %v15482_v4, %v15485_v3  ;;  %v13437_v18 = vadd.f32 %v15487_v11, %v15488_v6  ;;  %v13443_v19 = vadd.f32 %v15481_v13, %v15483_v9  ;;  %15703 = vst [vmem:[#allocation9_spill] sm:$0xff] %v13447_v21  ;;  %v13456_v23 = vadd.f32 %v15484_v17, %v15486_v16  ;;  %v13481_v34 = vld [vmem:[%s13404_s27 + $0x200] sm:$0xff]   ;;  %v13492_v39 = vld [vmem:[%s13404_s27 + $0x208] sm:$0xff]   ;;  %s12215_s21 = smov 5  }
 0x128   : >> { %v15494_v26 = vunpack.c.l.bf16 %v13447_v21  ;;  %v15507_v28 = vunpack.c.h.bf16 %v13447_v21  ;;  %15704 = vst [vmem:[#allocation10_spill] sm:$0xff] %v13470_v29  ;;  %v15504_v31 = vunpack.c.h.bf16 %v13470_v29  ;;  %v15495_v33 = vunpack.c.l.bf16 %v13470_v29  ;;  %15705 = vst [vmem:[#allocation11_spill] sm:$0xff] %v13481_v34  ;;  %v13787_v7 = vld [vmem:[%s13404_s27 + $0x508] sm:$0xff]  }
 0x129   : >> { %v8627_v22 = vmul.f32 %v15497_v10, %v13428_v14  ;;  %v8625_v24 = vmul.f32 %v15496_v12, %v13437_v18  ;;  %v8628_v25 = vmul.f32 %v15506_v15, %v13443_v19  ;;  %v8626_v27 = vmul.f32 %v15508_v20, %v13456_v23  ;;  %15706 = vst [vmem:[#allocation12_spill] sm:$0xff] %v13492_v39 }
 0x12a   : >> { %v8744_v30 = vmul.f32 %v15494_v26, %v13437_v18  ;;  %v8745_v32 = vmul.f32 %v15507_v28, %v13456_v23  ;;  %v8747_v35 = vmul.f32 %v15504_v31, %v13443_v19  ;;  %v15505_v36 = vunpack.c.h.bf16 %v13481_v34  ;;  %15722 = vst [vmem:[#allocation28_spill] sm:$0xff] %v13787_v7 }
 0x12b   : >> { %8633 = vadd.xlane.f32.xlu1 %v8627_v22  ;;  %8629 = vadd.xlane.f32.xlu0 %v8625_v24  ;;  %v8746_v37 = vmul.f32 %v15495_v33, %v13428_v14  ;;  %v15492_v38 = vunpack.c.l.bf16 %v13481_v34  ;;  %v15493_v42 = vunpack.c.l.bf16 %v13492_v39  ;;  %v15500_v44 = vunpack.c.h.bf16 %v13492_v39 }
 0x12c   : >> { %v8904_v40 = vmul.f32 %v15505_v36, %v13456_v23 }
 0x12d   : >> { %v8903_v41 = vmul.f32 %v15492_v38, %v13437_v18  ;;  %v8905_v43 = vmul.f32 %v15493_v42, %v13428_v14  ;;  %v8906_v45 = vmul.f32 %v15500_v44, %v13443_v19 }
 0x12f   : >> { %8635 = vadd.xlane.f32.xlu1 %v8628_v25  ;;  %8631 = vadd.xlane.f32.xlu0 %v8626_v27 }
 0x133   : >> { %8748 = vadd.xlane.f32.xlu1 %v8744_v30  ;;  %8750 = vadd.xlane.f32.xlu0 %v8745_v32 }
 0x137   : >> { %8754 = vadd.xlane.f32.xlu1 %v8747_v35  ;;  %8752 = vadd.xlane.f32.xlu0 %v8746_v37  ;;  %v13586_v35 = vld [vmem:[%s13404_s27 + $0x300] sm:$0xff]  }
 0x138   : >> { %15707 = vst [vmem:[#allocation13_spill] sm:$0xff] %v13586_v35  ;;  %v15490_v37 = vunpack.c.l.bf16 %v13586_v35 }
 0x13b   : >> { %8909 = vadd.xlane.f32.xlu1 %v8904_v40  ;;  %8907 = vadd.xlane.f32.xlu0 %v8903_v41  ;;  %v13590_v40 = vld [vmem:[%s13404_s27 + $0x308] sm:$0xff]   ;;  %v9062_v41 = vmul.f32 %v15490_v37, %v13437_v18 }
 0x13c   : >> { %15708 = vst [vmem:[#allocation14_spill] sm:$0xff] %v13590_v40 }
 0x13f   : >> { %8911 = vadd.xlane.f32.xlu0 %v8905_v43  ;;  %v15491_v43 = vunpack.c.l.bf16 %v13590_v40 }
 0x143   : >> { %8913 = vadd.xlane.f32.xlu0 %v8906_v45  ;;  %v9064_v45 = vmul.f32 %v15491_v43, %v13428_v14 }
 0x1b4   : >> { %v13508_v46 = vpop.xlane.xlu1 %8633  ;;  %v13510_v47 = vpop.xlane.xlu0 %8629 }
 0x1b8   : >> { %v13517_v48 = vpop.xlane.xlu1 %8635  ;;  %v13522_v50 = vpop.xlane.xlu0 %8631 }
 0x1bc   : >> { %v8749_v52 = vpop.xlane.xlu1 %8748  ;;  %v8751_v54 = vpop.xlane.xlu0 %8750 }
 0x1bd   : >> { %v13533_v55 = vsel %vm8637_vm0, %v8749_v52, -1e+30  ;;  %v13543_v57 = vsel %vm8638_vm1, %v8751_v54, -1e+30  ;;  %v15489_v52 = vunpack.c.h.bf16 %v13590_v40  ;;  %v15539_v40 = vunpack.c.h.bf16 %v13787_v7 }
 0x1be   : >> { %8764 = vrot.lane.b32.xlu0 %v13533_v55, %s12202_s30  ;;  %8766 = vrot.lane.b32.xlu1 %v13543_v57, %s12202_s30 }
 0x1bf   : >> { %v9065_v54 = vmul.f32 %v15489_v52, %v13443_v19  ;;  %v13643_v52 = vld [vmem:[%s13404_s27 + $0x408] sm:$0xff]  }
 0x1c0   : >> { %v8755_v58 = vpop.xlane.xlu1 %8754  ;;  %v8753_v59 = vpop.xlane.xlu0 %8752  ;;  %15710 = vst [vmem:[#allocation16_spill] sm:$0xff] %v13643_v52  ;;  %v15499_v43 = vunpack.c.l.bf16 %v13643_v52  ;;  %v15501_v42 = vunpack.c.h.bf16 %v13643_v52 }
 0x1c1   : >> { %v13551_v60 = vsel %vm8640_vm2, %v8755_v58, -1e+30  ;;  %v13557_v61 = vsel %vm8639_vm3, %v8753_v59, -1e+30  ;;  %v15503_v58 = vunpack.c.h.bf16 %v13586_v35 }
 0x1c2   : >> { %8770 = vrot.lane.b32.xlu0 %v13551_v60, %s12202_s30  ;;  %8768 = vrot.lane.b32.xlu1 %v13557_v61, %s12202_s30  ;;  %v9223_v38 = vmul.f32 %v15499_v43, %v13428_v14  ;;  %v9224_v26 = vmul.f32 %v15501_v42, %v13443_v19  ;;  %v13690_v42 = vsel %vm8637_vm0, %v13510_v47, -1e+30  ;;  %v13711_v47 = vsel %vm8639_vm3, %v13508_v46, -1e+30 }
 0x1c3   : >> { %v9063_v59 = vmul.f32 %v15503_v58, %v13456_v23 }
 0x1c4   : >> { %v8910_v62 = vpop.xlane.xlu1 %8909  ;;  %v8908_v63 = vpop.xlane.xlu0 %8907 }
 0x1c5   : >> { %v13563_v22 = vsel %vm8638_vm1, %v8910_v62, -1e+30  ;;  %v13569_v24 = vsel %vm8637_vm0, %v8908_v63, -1e+30 }
 0x1c6   : >> { %8925 = vrot.lane.b32.xlu0 %v13563_v22, %s12203_s6  ;;  %8923 = vrot.lane.b32.xlu1 %v13569_v24, %s12203_s6 }
 0x1c8   : >> { %v8912_v25 = vpop.xlane.xlu0 %8911 }
 0x1c9   : >> { %v13575_v27 = vsel %vm8639_vm3, %v8912_v25, -1e+30 }
 0x1ca   : >> { %8927 = vrot.lane.b32.xlu1 %v13575_v27, %s12203_s6 }
 0x1cc   : >> { %v8914_v30 = vpop.xlane.xlu0 %8913 }
 0x1cd   : >> { %v13581_v32 = vsel %vm8640_vm2, %v8914_v30, -1e+30 }
 0x1ce   : >> { %8929 = vrot.lane.b32.xlu1 %v13581_v32, %s12203_s6 }
 0x1e5   : >> { %9066 = vadd.xlane.f32.xlu0 %v9062_v41 }
 0x1e9   : >> { %9070 = vadd.xlane.f32.xlu0 %v9064_v45 }
 0x1ed   : >> { %9072 = vadd.xlane.f32.xlu0 %v9065_v54 }
 0x1f2   : >> { %9068 = vadd.xlane.f32.xlu1 %v9063_v59 }
 0x230   : >> { %v8765_v62 = vpop.permute.xlu0 %8764  ;;  %v8767_v63 = vpop.permute.xlu1 %8766 }
 0x234   : >> { %v8771_v25 = vpop.permute.xlu0 %8770  ;;  %v13607_v30 = vpop.permute.xlu1 %8768 }
 0x238   : >> { %v13609_v41 = vpop.permute.xlu0 %8925  ;;  %v8924_v45 = vpop.permute.xlu1 %8923 }
 0x23c   : >> { %v8928_v59 = vpop.permute.xlu1 %8927 }
 0x26e   : >> { %v9067_v13 = vpop.xlane.xlu0 %9066 }
 0x26f   : >> { %v13613_v4 = vsel %vm8637_vm0, %v9067_v13, -1e+30  ;;  %v13629_v13 = vpop.permute.xlu1 %8929 }
 0x270   : >> { %9082 = vrot.lane.b32.xlu1 %v13613_v4, %s12204_s13 }
 0x272   : >> { %v9071_v54 = vpop.xlane.xlu0 %9070 }
 0x273   : >> { %v13619_v9 = vsel %vm8639_vm3, %v9071_v54, -1e+30  ;;  %v13638_v54 = vld [vmem:[%s13404_s27 + $0x400] sm:$0xff]  }
 0x274   : >> { %9086 = vrot.lane.b32.xlu1 %v13619_v9, %s12204_s13  ;;  %15709 = vst [vmem:[#allocation15_spill] sm:$0xff] %v13638_v54  ;;  %v15502_v6 = vunpack.c.h.bf16 %v13638_v54 }
 0x276   : >> { %v9073_v17 = vpop.xlane.xlu0 %9072  ;;  %v9222_v37 = vmul.f32 %v15502_v6, %v13456_v23 }
 0x277   : >> { %v13625_v3 = vsel %vm8640_vm2, %v9073_v17, -1e+30  ;;  %v15498_v17 = vunpack.c.l.bf16 %v13638_v54 }
 0x278   : >> { %9088 = vrot.lane.b32.xlu1 %v13625_v3, %s12204_s13 }
 0x27b   : >> { %v9069_v16 = vpop.xlane.xlu1 %9068 }
 0x27c   : >> { %v13633_v11 = vsel %vm8638_vm1, %v9069_v16, -1e+30  ;;  %v9221_v16 = vmul.f32 %v15498_v17, %v13437_v18 }
 0x27d   : >> { %9084 = vrot.lane.b32.xlu0 %v13633_v11, %s12204_s13 }
 0x29c   : >> { %9227 = vadd.xlane.f32.xlu1 %v9222_v37  ;;  %9225 = vadd.xlane.f32.xlu0 %v9221_v16  ;;  %v13662_v37 = vsel %vm8638_vm1, %v13522_v50, -1e+30 }
 0x2a0   : >> { %9229 = vadd.xlane.f32.xlu0 %v9223_v38  ;;  %v13669_v38 = vmax.f32 %v13662_v37, -1e+30 }
 0x2a4   : >> { %9231 = vadd.xlane.f32.xlu0 %v9224_v26  ;;  %v13676_v26 = vsel %vm8640_vm2, %v13517_v48, -1e+30 }
 0x2a5   : >> { %v13693_v6 = vmax.f32 %v13676_v26, -1e+30 }
 0x2a7   : >> { %15711 = vst [vmem:[#allocation17_spill] sm:$0xff] %v13693_v6  ;;  %v13704_v58 = vmax.f32 %v13693_v6, %v8771_v25  ;;  %v13722_v25 = vmax.f32 %v13711_v47, -1e+30 }
 0x2a9   : >> { %15713 = vst [vmem:[#allocation19_spill] sm:$0xff] %v13704_v58  ;;  %v13731_v46 = vmax.f32 %v13722_v25, %v13607_v30 }
 0x2e2   : >> { %v9083_v33 = vpop.permute.xlu1 %9082 }
 0x2e6   : >> { %v9087_v12 = vpop.permute.xlu1 %9086 }
 0x2ea   : >> { %v9089_v10 = vpop.permute.xlu1 %9088 }
 0x2ef   : >> { %v9085_v17 = vpop.permute.xlu0 %9084 }
 0x325   : >> { %v9228_v16 = vpop.xlane.xlu1 %9227  ;;  %v9226_v44 = vpop.xlane.xlu0 %9225 }
 0x326   : >> { %v13666_v43 = vsel %vm8638_vm1, %v9228_v16, -1e+30  ;;  %v13680_v50 = vsel %vm8637_vm0, %v9226_v44, -1e+30  ;;  %v13683_v16 = vmax.f32 %v13669_v38, %v8767_v63  ;;  %v13701_v63 = vmax.f32 %v13690_v42, -1e+30 }
 0x327   : >> { %9243 = vrot.lane.b32.xlu0 %v13666_v43, %s12205_s11  ;;  %9241 = vrot.lane.b32.xlu1 %v13680_v50, %s12205_s11 }
 0x328   : >> { %15712 = vst [vmem:[#allocation18_spill] sm:$0xff] %v13701_v63  ;;  %v13714_v31 = vmax.f32 %v13701_v63, %v8765_v62  ;;  %v13735_v62 = vmax.f32 %v13731_v46, %v8928_v59  ;;  %v13754_v59 = vmax.f32 %v13704_v58, %v13629_v13 }
 0x329   : >> { %v9230_v48 = vpop.xlane.xlu0 %9229 }
 0x32a   : >> { %v13698_v44 = vsel %vm8639_vm3, %v9230_v48, -1e+30  ;;  %15714 = vst [vmem:[#allocation20_spill] sm:$0xff] %v13714_v31  ;;  %v13725_v15 = vmax.f32 %v13714_v31, %v8924_v45  ;;  %v13745_v45 = vmax.f32 %v13683_v16, %v13609_v41  ;;  %v13749_v30 = vmax.f32 %v13735_v62, %v9087_v12  ;;  %15717 = vst [vmem:[#allocation23_spill] sm:$0xff] %v13754_v59 }
 0x32b   : >> { %8798 = vrot.lane.b32.xlu0 %v13683_v16, %s12206_s15  ;;  %9245 = vrot.lane.b32.xlu1 %v13698_v44, %s12205_s11  ;;  %v13763_v41 = vmax.f32 %v13754_v59, %v9089_v10  ;;  %v12209_v12 = vmov 1  }
 0x32c   : >> { %15715 = vst [vmem:[#allocation21_spill] sm:$0xff] %v13725_v15  ;;  %11845 = vset.pattern.permute.xlu1 %v12209_v12  ;;  %11846 = vset.pattern.permute.xlu0 %v12209_v12 }
 0x32d   : >> { %v9232_v36 = vpop.xlane.xlu0 %9231  ;;  %15718 = vst [vmem:[#allocation24_spill] sm:$0xff] %v13763_v41 }
 0x32e   : >> { %v13719_v48 = vsel %vm8640_vm2, %v9232_v36, -1e+30  ;;  %v13740_v36 = vmax.f32 %v13725_v15, %v9083_v33  ;;  %v13759_v33 = vmax.f32 %v13745_v45, %v9085_v17 }
 0x32f   : >> { %8802 = vrot.lane.b32.xlu0 %v13704_v58, %s12206_s15  ;;  %9247 = vrot.lane.b32.xlu1 %v13719_v48, %s12205_s11 }
 0x330   : >> { %15716 = vst [vmem:[#allocation22_spill] sm:$0xff] %v13740_v36 }
 0x333   : >> { %8955 = vrot.lane.b32.xlu0 %v13725_v15, %s12207_s17  ;;  %8796 = vrot.lane.b32.xlu1 %v13714_v31, %s12206_s15 }
 0x337   : >> { %8959 = vrot.lane.b32.xlu0 %v13735_v62, %s12207_s17  ;;  %8800 = vrot.lane.b32.xlu1 %v13731_v46, %s12206_s15  ;;  %s12223_s15 = smov 120  }
 0x33b   : >> { %9114 = vrot.lane.b32.xlu0 %v13740_v36, %s12208_s18  ;;  %8957 = vrot.lane.b32.xlu1 %v13745_v45, %s12207_s17 }
 0x33f   : >> { %9118 = vrot.lane.b32.xlu0 %v13749_v30, %s12208_s18  ;;  %8961 = vrot.lane.b32.xlu1 %v13754_v59, %s12207_s17  ;;  %s12224_s17 = smov 8  }
 0x343   : >> { %9116 = vrot.lane.b32.xlu1 %v13759_v33, %s12208_s18 }
 0x347   : >> { %9120 = vrot.lane.b32.xlu1 %v13763_v41, %s12208_s18  ;;  %s12226_s18 = smov 119  }
 0x399   : >> { %v9244_v13 = vpop.permute.xlu0 %9243  ;;  %v9242_v20 = vpop.permute.xlu1 %9241 }
 0x39a   : >> { %v13767_v28 = vmax.f32 %v13759_v33, %v9244_v13  ;;  %v13770_v17 = vmax.f32 %v13740_v36, %v9242_v20  ;;  %v13783_v13 = vld [vmem:[%s13404_s27 + $0x500] sm:$0xff]  }
 0x39b   : >> { %15721 = vst [vmem:[#allocation27_spill] sm:$0xff] %v13783_v13  ;;  %v15527_v20 = vunpack.c.l.bf16 %v13783_v13  ;;  %v15542_v39 = vunpack.c.h.bf16 %v13783_v13 }
 0x39c   : >> { %15719 = vst [vmem:[#allocation25_spill] sm:$0xff] %v13770_v17  ;;  %9275 = vrot.lane.b32.xlu1 %v13767_v28, %s12210_s24  ;;  %9273 = vrot.lane.b32.xlu0 %v13770_v17, %s12210_s24 }
 0x39d   : >> { %v9246_v10 = vpop.permute.xlu1 %9245  ;;  %v9380_v2 = vmul.f32 %v15527_v20, %v13437_v18  ;;  %v8799_v54 = vpop.permute.xlu0 %8798  ;;  %v9383_v20 = vmul.f32 %v15539_v40, %v13443_v19 }
 0x39e   : >> { %v13775_v1 = vmax.f32 %v13749_v30, %v9246_v10  ;;  %v15532_v10 = vunpack.c.l.bf16 %v13787_v7  ;;  %v8809_v34 = vsub.f32 %v13543_v57, %v8799_v54 }
 0x3a0   : >> { %9277 = vrot.lane.b32.xlu0 %v13775_v1, %s12210_s24  ;;  %v8814_v8 = vmul.f32 1.442695, %v8809_v34 }
 0x3a1   : >> { %v9248_v12 = vpop.permute.xlu1 %9247 }
 0x3a2   : >> { %v13779_v0 = vmax.f32 %v13763_v41, %v9248_v12  ;;  %v9382_v12 = vmul.f32 %v15532_v10, %v13428_v14  ;;  %v8803_v10 = vpop.permute.xlu0 %8802 }
 0x3a4   : >> { %15720 = vst [vmem:[#allocation26_spill] sm:$0xff] %v13779_v0  ;;  %9279 = vrot.lane.b32.xlu1 %v13779_v0, %s12210_s24  ;;  %s12227_s24 = smov 9  }
 0x3a5   : >> { %v8797_v52 = vpop.permute.xlu1 %8796 }
 0x3a6   : >> { %v8808_v35 = vsub.f32 %v13533_v55, %v8797_v52  ;;  %v8811_v55 = vsub.f32 %v13551_v60, %v8803_v10 }
 0x3a8   : >> { %v8812_v5 = vmul.f32 1.442695, %v8808_v35  ;;  %v8818_v40 = vmul.f32 1.442695, %v8811_v55 }
 0x3a9   : >> { %v8801_v29 = vpop.permute.xlu1 %8800 }
 0x3aa   : >> { %v8810_v21 = vsub.f32 %v13557_v61, %v8801_v29  ;;  %11886 = vpow2.f32 %v8812_v5 }
 0x3ab   : >> { %11888 = vpow2.f32 %v8814_v8 }
 0x3ac   : >> { %v8816_v52 = vmul.f32 1.442695, %v8810_v21 }
 0x3ad   : >> { %v8958_v7 = vpop.permute.xlu1 %8957 }
 0x3ae   : >> { %11890 = vpow2.f32 %v8816_v52  ;;  %v8968_v29 = vsub.f32 %v13563_v22, %v8958_v7 }
 0x3af   : >> { %11892 = vpow2.f32 %v8818_v40 }
 0x3b0   : >> { %v8973_v8 = vmul.f32 1.442695, %v8968_v29 }
 0x3b1   : >> { %v8962_v34 = vpop.permute.xlu1 %8961 }
 0x3b7   : >> { %v11887_v61 = vpop.eup %11886 }
 0x3b8   : >> { %v11889_v60 = vpop.eup %11888 }
 0x3bb   : >> { %v11891_v40 = vpop.eup %11890 }
 0x3bc   : >> { %v11893_v22 = vpop.eup %11892 }
 0x3bf   : >> { %9384 = vadd.xlane.f32.xlu0 %v9380_v2  ;;  %v9381_v2 = vmul.f32 %v15542_v39, %v13456_v23 }
 0x3c3   : >> { %9388 = vadd.xlane.f32.xlu0 %v9382_v12  ;;  %v8956_v12 = vpop.permute.xlu0 %8955 }
 0x3c4   : >> { %v8967_v39 = vsub.f32 %v13569_v24, %v8956_v12 }
 0x3c6   : >> { %v8971_v54 = vmul.f32 1.442695, %v8967_v39 }
 0x3c7   : >> { %9390 = vadd.xlane.f32.xlu0 %v9383_v20  ;;  %v8960_v57 = vpop.permute.xlu0 %8959  ;;  %v8970_v20 = vsub.f32 %v13581_v32, %v8962_v34  ;;  %v9117_v32 = vpop.permute.xlu1 %9116  ;;  %v12212_v34 = vmov 3  }
 0x3c8   : >> { %9386 = vadd.xlane.f32.xlu1 %v9381_v2  ;;  %v8969_v35 = vsub.f32 %v13575_v27, %v8960_v57  ;;  %11894 = vpow2.f32 %v8971_v54  ;;  %v9127_v55 = vsub.f32 %v13633_v11, %v9117_v32 }
 0x3c9   : >> { %v8977_v39 = vmul.f32 1.442695, %v8970_v20 }
 0x3ca   : >> { %v8975_v5 = vmul.f32 1.442695, %v8969_v35  ;;  %v9132_v57 = vmul.f32 1.442695, %v9127_v55 }
 0x3cb   : >> { %v9115_v21 = vpop.permute.xlu0 %9114  ;;  %v9121_v54 = vpop.permute.xlu1 %9120 }
 0x3cc   : >> { %11896 = vpow2.f32 %v8975_v5  ;;  %v9126_v7 = vsub.f32 %v13613_v4, %v9115_v21  ;;  %v12211_v4 = vmov 2  }
 0x3cd   : >> { %11898 = vpow2.f32 %v8973_v8 }
 0x3ce   : >> { %v9130_v27 = vmul.f32 1.442695, %v9126_v7  ;;  %11900 = vpow2.f32 %v8977_v39 }
 0x3cf   : >> { %v9119_v24 = vpop.permute.xlu0 %9118 }
 0x3d0   : >> { %v9128_v10 = vsub.f32 %v13619_v9, %v9119_v24  ;;  %11902 = vpow2.f32 %v9130_v27  ;;  %v9129_v9 = vsub.f32 %v13625_v3, %v9121_v54  ;;  %v12213_v3 = vmov 4  }
 0x3d2   : >> { %v9134_v2 = vmul.f32 1.442695, %v9128_v10  ;;  %v9136_v29 = vmul.f32 1.442695, %v9129_v9 }
 0x3d4   : >> { %11904 = vpow2.f32 %v9134_v2 }
 0x3d5   : >> { %v11895_v52 = vpop.eup %11894  ;;  %11906 = vpow2.f32 %v9132_v57 }
 0x3d6   : >> { %11908 = vpow2.f32 %v9136_v29 }
 0x3d9   : >> { %8828 = vrot.lane.b32.xlu1 %v11887_v61, %s12202_s30  ;;  %v11897_v12 = vpop.eup %11896 }
 0x3da   : >> { %v11899_v35 = vpop.eup %11898 }
 0x3db   : >> { %v11901_v11 = vpop.eup %11900 }
 0x3dd   : >> { %8832 = vrot.lane.b32.xlu1 %v11891_v40, %s12202_s30  ;;  %8830 = vrot.lane.b32.xlu0 %v11889_v60, %s12202_s30 }
 0x3e1   : >> { %8869 = vperm.xlu1 %11845, %v11887_v61   ;;  %8834 = vrot.lane.b32.xlu0 %v11893_v22, %s12202_s30  ;;  %v11903_v61 = vpop.eup %11902  ;;  %s12217_s30 = smov 122  }
 0x3e2   : >> { %v11905_v5 = vpop.eup %11904 }
 0x3e3   : >> { %v11907_v21 = vpop.eup %11906 }
 0x3e5   : >> { %8877 = vperm.xlu1 %11845, %v11891_v40   ;;  %8873 = vperm.xlu0 %11846, %v11889_v60   ;;  %v11909_v60 = vpop.eup %11908 }
 0x3e9   : >> { %8881 = vperm.xlu1 %11845, %v11893_v22   ;;  %8987 = vrot.lane.b32.xlu0 %v11895_v52, %s12203_s6 }
 0x3ea   : >> { %11848 = vset.pattern.permute.xlu0 %v12211_v4 }
 0x3ed   : >> { %8989 = vrot.lane.b32.xlu1 %v11899_v35, %s12203_s6  ;;  %8991 = vrot.lane.b32.xlu0 %v11897_v12, %s12203_s6 }
 0x3ee   : >> { %11847 = vset.pattern.permute.xlu1 %v12211_v4 }
 0x3f1   : >> { %8993 = vrot.lane.b32.xlu1 %v11901_v11, %s12203_s6  ;;  %9032 = vperm.xlu0 %11848, %v11899_v35   ;;  %s12218_s6 = smov 6  }
 0x3f5   : >> { %9028 = vperm.xlu1 %11847, %v11895_v52   ;;  %9146 = vrot.lane.b32.xlu0 %v11903_v61, %s12204_s13 }
 0x3f6   : >> { %11850 = vset.pattern.permute.xlu0 %v12212_v34 }
 0x3f9   : >> { %9036 = vperm.xlu1 %11847, %v11897_v12   ;;  %9150 = vrot.lane.b32.xlu0 %v11905_v5, %s12204_s13 }
 0x3fd   : >> { %9040 = vperm.xlu1 %11847, %v11901_v11   ;;  %9191 = vperm.xlu0 %11850, %v11907_v21  }
 0x401   : >> { %9148 = vrot.lane.b32.xlu1 %v11907_v21, %s12204_s13  ;;  %11852 = vset.pattern.permute.xlu0 %v12213_v3 }
 0x402   : >> { %11849 = vset.pattern.permute.xlu1 %v12212_v34 }
 0x405   : >> { %9152 = vrot.lane.b32.xlu1 %v11909_v60, %s12204_s13  ;;  %s12220_s13 = smov 121  }
 0x409   : >> { %9187 = vperm.xlu1 %11849, %v11903_v61  }
 0x40d   : >> { %9195 = vperm.xlu1 %11849, %v11905_v5  }
 0x40e   : >> { %v9276_v8 = vpop.permute.xlu1 %9275  ;;  %v9274_v40 = vpop.permute.xlu0 %9273 }
 0x40f   : >> { %v9286_v20 = vsub.f32 %v13666_v43, %v9276_v8  ;;  %v9285_v39 = vsub.f32 %v13680_v50, %v9274_v40 }
 0x411   : >> { %v9291_v7 = vmul.f32 1.442695, %v9286_v20  ;;  %v9289_v22 = vmul.f32 1.442695, %v9285_v39  ;;  %9199 = vperm.xlu1 %11849, %v11909_v60  }
 0x412   : >> { %v9278_v24 = vpop.permute.xlu0 %9277 }
 0x413   : >> { %11910 = vpow2.f32 %v9291_v7  ;;  %v9287_v27 = vsub.f32 %v13698_v44, %v9278_v24 }
 0x414   : >> { %11912 = vpow2.f32 %v9289_v22 }
 0x415   : >> { %v9293_v10 = vmul.f32 1.442695, %v9287_v27  ;;  %11851 = vset.pattern.permute.xlu1 %v12213_v3 }
 0x416   : >> { %v9280_v32 = vpop.permute.xlu1 %9279 }
 0x417   : >> { %11914 = vpow2.f32 %v9293_v10  ;;  %v9288_v2 = vsub.f32 %v13719_v48, %v9280_v32 }
 0x419   : >> { %v9295_v55 = vmul.f32 1.442695, %v9288_v2 }
 0x41b   : >> { %11916 = vpow2.f32 %v9295_v55 }
 0x420   : >> { %v11911_v43 = vpop.eup %11910 }
 0x421   : >> { %9307 = vrot.lane.b32.xlu1 %v11911_v43, %s12205_s11  ;;  %v11913_v52 = vpop.eup %11912 }
 0x422   : >> { %9305 = vrot.lane.b32.xlu0 %v11913_v52, %s12205_s11 }
 0x424   : >> { %v11915_v50 = vpop.eup %11914 }
 0x426   : >> { %9309 = vrot.lane.b32.xlu0 %v11915_v50, %s12205_s11 }
 0x428   : >> { %v11917_v4 = vpop.eup %11916 }
 0x429   : >> { %9311 = vrot.lane.b32.xlu1 %v11917_v4, %s12205_s11  ;;  %s12221_s11 = smov 7  }
 0x42a   : >> { %9350 = vperm.xlu0 %11852, %v11911_v43  }
 0x42d   : >> { %9346 = vperm.xlu1 %11851, %v11913_v52  }
 0x431   : >> { %9354 = vperm.xlu1 %11851, %v11915_v50  }
 0x435   : >> { %9358 = vperm.xlu1 %11851, %v11917_v4  }
 0x448   : >> { %v9385_v44 = vpop.xlane.xlu0 %9384 }
 0x449   : >> { %v9392_v48 = vsel %vm8637_vm0, %v9385_v44, -1e+30 }
 0x44a   : >> { %9400 = vrot.lane.b32.xlu1 %v9392_v48, %s12214_s26 }
 0x44c   : >> { %v9389_v12 = vpop.xlane.xlu0 %9388 }
 0x44d   : >> { %v9394_v57 = vsel %vm8639_vm3, %v9389_v12, -1e+30 }
 0x44e   : >> { %9404 = vrot.lane.b32.xlu1 %v9394_v57, %s12214_s26 }
 0x450   : >> { %v9391_v35 = vpop.xlane.xlu0 %9390 }
 0x451   : >> { %v13844_v54 = vsel %vm8640_vm2, %v9391_v35, -1e+30  ;;  %v9387_v9 = vpop.xlane.xlu1 %9386 }
 0x452   : >> { %9406 = vrot.lane.b32.xlu1 %v13844_v54, %s12214_s26  ;;  %v9393_v11 = vsel %vm8638_vm1, %v9387_v9, -1e+30 }
 0x453   : >> { %9402 = vrot.lane.b32.xlu0 %v9393_v11, %s12214_s26 }
 0x454   : >> { %v13871_v7 = vpop.permute.xlu0 %8830 }
 0x455   : >> { %v13851_v29 = vpop.permute.xlu1 %8828 }
 0x456   : >> { %15723 = vst [vmem:[#allocation29_spill] sm:$0xff] %v13851_v29 }
 0x458   : >> { %v13875_v22 = vpop.permute.xlu0 %8834 }
 0x459   : >> { %v13853_v61 = vpop.permute.xlu1 %8832  ;;  %15732 = vst [vmem:[#allocation38_spill] sm:$0xff] %v13875_v22 }
 0x45a   : >> { %15724 = vst [vmem:[#allocation30_spill] sm:$0xff] %v13853_v61 }
 0x45d   : >> { %v13855_v34 = vpop.permute.xlu1 %8869 }
 0x45e   : >> { %15725 = vst [vmem:[#allocation31_spill] sm:$0xff] %v13855_v34 }
 0x460   : >> { %v13879_v27 = vpop.permute.xlu0 %8873 }
 0x461   : >> { %v13857_v5 = vpop.permute.xlu1 %8877  ;;  %15734 = vst [vmem:[#allocation40_spill] sm:$0xff] %v13879_v27 }
 0x462   : >> { %15726 = vst [vmem:[#allocation32_spill] sm:$0xff] %v13857_v5 }
 0x464   : >> { %v13883_v32 = vpop.permute.xlu0 %8987 }
 0x465   : >> { %v13859_v21 = vpop.permute.xlu1 %8881  ;;  %15736 = vst [vmem:[#allocation42_spill] sm:$0xff] %v13883_v32 }
 0x466   : >> { %15727 = vst [vmem:[#allocation33_spill] sm:$0xff] %v13859_v21 }
 0x468   : >> { %v13887_v55 = vpop.permute.xlu0 %8991 }
 0x469   : >> { %v13861_v3 = vpop.permute.xlu1 %8989  ;;  %15738 = vst [vmem:[#allocation44_spill] sm:$0xff] %v13887_v55 }
 0x46c   : >> { %v13891_v52 = vpop.permute.xlu0 %9032 }
 0x46d   : >> { %v13863_v60 = vpop.permute.xlu1 %8993  ;;  %15740 = vst [vmem:[#allocation46_spill] sm:$0xff] %v13891_v52 }
 0x46e   : >> { %15728 = vst [vmem:[#allocation34_spill] sm:$0xff] %v13863_v60 }
 0x470   : >> { %v13895_v4 = vpop.permute.xlu0 %9146 }
 0x471   : >> { %v13865_v8 = vpop.permute.xlu1 %9028  ;;  %15741 = vst [vmem:[#allocation47_spill] sm:$0xff] %v13895_v4 }
 0x472   : >> { %15729 = vst [vmem:[#allocation35_spill] sm:$0xff] %v13865_v8 }
 0x474   : >> { %v13901_v35 = vpop.permute.xlu0 %9150 }
 0x475   : >> { %v13867_v20 = vpop.permute.xlu1 %9036  ;;  %15744 = vst [vmem:[#allocation50_spill] sm:$0xff] %v13901_v35 }
 0x476   : >> { %15730 = vst [vmem:[#allocation36_spill] sm:$0xff] %v13867_v20 }
 0x479   : >> { %v13869_v40 = vpop.permute.xlu1 %9040 }
 0x47a   : >> { %15731 = vst [vmem:[#allocation37_spill] sm:$0xff] %v13869_v40 }
 0x47d   : >> { %v13873_v39 = vpop.permute.xlu1 %9148 }
 0x481   : >> { %v13877_v24 = vpop.permute.xlu1 %9152 }
 0x482   : >> { %15733 = vst [vmem:[#allocation39_spill] sm:$0xff] %v13877_v24 }
 0x485   : >> { %v13881_v10 = vpop.permute.xlu1 %9187 }
 0x486   : >> { %15735 = vst [vmem:[#allocation41_spill] sm:$0xff] %v13881_v10  ;;  %v13905_v10 = vpop.permute.xlu0 %9191 }
 0x487   : >> { %15746 = vst [vmem:[#allocation52_spill] sm:$0xff] %v13905_v10 }
 0x489   : >> { %v13885_v2 = vpop.permute.xlu1 %9195 }
 0x48a   : >> { %15737 = vst [vmem:[#allocation43_spill] sm:$0xff] %v13885_v2 }
 0x48d   : >> { %v13889_v43 = vpop.permute.xlu1 %9199 }
 0x48e   : >> { %15739 = vst [vmem:[#allocation45_spill] sm:$0xff] %v13889_v43 }
 0x493   : >> { %v13893_v50 = vpop.permute.xlu1 %9307 }
 0x494   : >> { %v13907_v2 = vpop.permute.xlu0 %9305 }
 0x495   : >> { %15747 = vst [vmem:[#allocation53_spill] sm:$0xff] %v13907_v2 }
 0x498   : >> { %v13911_v20 = vpop.permute.xlu0 %9309 }
 0x499   : >> { %15749 = vst [vmem:[#allocation55_spill] sm:$0xff] %v13911_v20 }
 0x49b   : >> { %v13897_v44 = vpop.permute.xlu1 %9311 }
 0x49c   : >> { %15742 = vst [vmem:[#allocation48_spill] sm:$0xff] %v13897_v44 }
 0x4a5   : >> { %v13917_v5 = vpop.permute.xlu0 %9350 }
 0x4a6   : >> { %15751 = vst [vmem:[#allocation57_spill] sm:$0xff] %v13917_v5 }
 0x4a8   : >> { %v13899_v12 = vpop.permute.xlu1 %9346 }
 0x4a9   : >> { %15743 = vst [vmem:[#allocation49_spill] sm:$0xff] %v13899_v12 }
 0x4ac   : >> { %v13903_v9 = vpop.permute.xlu1 %9354 }
 0x4ad   : >> { %15745 = vst [vmem:[#allocation51_spill] sm:$0xff] %v13903_v9 }
 0x4b0   : >> { %v13909_v8 = vpop.permute.xlu1 %9358 }
 0x4b1   : >> { %15748 = vst [vmem:[#allocation54_spill] sm:$0xff] %v13909_v8 }
 0x4bc   : >> { %v9401_v43 = vpop.permute.xlu1 %9400 }
 0x4bd   : >> { %v13914_v34 = vmax.f32 %v13770_v17, %v9401_v43  ;;  %v12216_v43 = vmov 5  }
 0x4be   : >> { %11854 = vset.pattern.permute.xlu0 %v12216_v43  ;;  %11853 = vset.pattern.permute.xlu1 %v12216_v43 }
 0x4bf   : >> { %15750 = vst [vmem:[#allocation56_spill] sm:$0xff] %v13914_v34  ;;  %9432 = vrot.lane.b32.xlu0 %v13914_v34, %s12215_s21 }
 0x4c0   : >> { %v9405_v12 = vpop.permute.xlu1 %9404 }
 0x4c1   : >> { %v13920_v9 = vmax.f32 %v13775_v1, %v9405_v12 }
 0x4c3   : >> { %9436 = vrot.lane.b32.xlu0 %v13920_v9, %s12215_s21 }
 0x4c4   : >> { %v9407_v40 = vpop.permute.xlu1 %9406 }
 0x4c5   : >> { %v9403_v13 = vpop.permute.xlu0 %9402  ;;  %v13928_v10 = vmax.f32 %v13779_v0, %v9407_v40 }
 0x4c6   : >> { %v13924_v8 = vmax.f32 %v13767_v28, %v9403_v13 }
 0x4c7   : >> { %15752 = vst [vmem:[#allocation58_spill] sm:$0xff] %v13928_v10 }
 0x4c8   : >> { %9434 = vrot.lane.b32.xlu1 %v13924_v8, %s12215_s21 }
 0x4cc   : >> { %9438 = vrot.lane.b32.xlu1 %v13928_v10, %s12215_s21  ;;  %s12230_s21 = smov 10  }
 0x531   : >> { %v9433_v5 = vpop.permute.xlu0 %9432 }
 0x532   : >> { %v9444_v12 = vsub.f32 %v9392_v48, %v9433_v5 }
 0x534   : >> { %v9448_v21 = vmul.f32 1.442695, %v9444_v12 }
 0x535   : >> { %v9437_v52 = vpop.permute.xlu0 %9436 }
 0x536   : >> { %11918 = vpow2.f32 %v9448_v21  ;;  %v9446_v27 = vsub.f32 %v9394_v57, %v9437_v52  ;;  %v13941_v21 = vld [vmem:[%s13404_s27 + $0x608] sm:$0xff]  }
 0x537   : >> { %15754 = vst [vmem:[#allocation60_spill] sm:$0xff] %v13941_v21 }
 0x538   : >> { %v9452_v44 = vmul.f32 1.442695, %v9446_v27 }
 0x53a   : >> { %11920 = vpow2.f32 %v9452_v44  ;;  %v9435_v13 = vpop.permute.xlu1 %9434 }
 0x53b   : >> { %v9445_v24 = vsub.f32 %v9393_v11, %v9435_v13 }
 0x53d   : >> { %v9450_v60 = vmul.f32 1.442695, %v9445_v24  ;;  %v15545_v24 = vunpack.c.h.bf16 %v13941_v21 }
 0x53e   : >> { %v9439_v22 = vpop.permute.xlu1 %9438 }
 0x53f   : >> { %11922 = vpow2.f32 %v9450_v60  ;;  %v9447_v43 = vsub.f32 %v13844_v54, %v9439_v22  ;;  %v13937_v54 = vld [vmem:[%s13404_s27 + $0x600] sm:$0xff]   ;;  %v15547_v22 = vunpack.c.l.bf16 %v13941_v21  ;;  %v9542_v27 = vmul.f32 %v15545_v24, %v13443_v19 }
 0x540   : >> { %15753 = vst [vmem:[#allocation59_spill] sm:$0xff] %v13937_v54  ;;  %v15546_v5 = vunpack.c.l.bf16 %v13937_v54  ;;  %v15548_v52 = vunpack.c.h.bf16 %v13937_v54 }
 0x541   : >> { %v9454_v40 = vmul.f32 1.442695, %v9447_v43 }
 0x542   : >> { %v9539_v60 = vmul.f32 %v15546_v5, %v13437_v18  ;;  %v9540_v44 = vmul.f32 %v15548_v52, %v13456_v23 }
 0x543   : >> { %v11919_v20 = vpop.eup %11918  ;;  %11924 = vpow2.f32 %v9454_v40 }
 0x544   : >> { %9464 = vrot.lane.b32.xlu0 %v11919_v20, %s12214_s26 }
 0x547   : >> { %v11921_v48 = vpop.eup %11920 }
 0x548   : >> { %9468 = vrot.lane.b32.xlu0 %v11921_v48, %s12214_s26 }
 0x54c   : >> { %v11923_v57 = vpop.eup %11922 }
 0x54d   : >> { %9466 = vrot.lane.b32.xlu1 %v11923_v57, %s12214_s26  ;;  %9509 = vperm.xlu0 %11854, %v11923_v57  }
 0x550   : >> { %v11925_v11 = vpop.eup %11924 }
 0x551   : >> { %9470 = vrot.lane.b32.xlu1 %v11925_v11, %s12214_s26  ;;  %s12229_s26 = smov 118  }
 0x555   : >> { %9505 = vperm.xlu1 %11853, %v11919_v20   ;;  %v9541_v20 = vmul.f32 %v15547_v22, %v13428_v14 }
 0x559   : >> { %9513 = vperm.xlu1 %11853, %v11921_v48  }
 0x55d   : >> { %9517 = vperm.xlu1 %11853, %v11925_v11  }
 0x56c   : >> { %9543 = vadd.xlane.f32.xlu0 %v9539_v60 }
 0x570   : >> { %9547 = vadd.xlane.f32.xlu0 %v9541_v20 }
 0x574   : >> { %9549 = vadd.xlane.f32.xlu0 %v9542_v27 }
 0x581   : >> { %9545 = vadd.xlane.f32.xlu1 %v9540_v44 }
 0x5b6   : >> { %v13958_v12 = vpop.permute.xlu0 %9464 }
 0x5b7   : >> { %15755 = vst [vmem:[#allocation61_spill] sm:$0xff] %v13958_v12 }
 0x5ba   : >> { %v13960_v13 = vpop.permute.xlu0 %9468 }
 0x5bb   : >> { %15756 = vst [vmem:[#allocation62_spill] sm:$0xff] %v13960_v13 }
 0x5bf   : >> { %v13962_v43 = vpop.permute.xlu1 %9466 }
 0x5c3   : >> { %v13966_v57 = vpop.permute.xlu1 %9470 }
 0x5c4   : >> { %15758 = vst [vmem:[#allocation64_spill] sm:$0xff] %v13966_v57 }
 0x5c8   : >> { %v13964_v40 = vpop.permute.xlu0 %9509 }
 0x5c9   : >> { %15757 = vst [vmem:[#allocation63_spill] sm:$0xff] %v13964_v40 }
 0x5d0   : >> { %v13971_v20 = vpop.permute.xlu1 %9505 }
 0x5d1   : >> { %15759 = vst [vmem:[#allocation65_spill] sm:$0xff] %v13971_v20 }
 0x5d4   : >> { %v13979_v5 = vpop.permute.xlu1 %9513 }
 0x5d5   : >> { %15760 = vst [vmem:[#allocation66_spill] sm:$0xff] %v13979_v5 }
 0x5f5   : >> { %v9544_v48 = vpop.xlane.xlu0 %9543 }
 0x5f6   : >> { %v9551_v11 = vsel %vm8637_vm0, %v9544_v48, -1e+30  ;;  %v13981_v48 = vpop.permute.xlu1 %9517 }
 0x5f7   : >> { %9559 = vrot.lane.b32.xlu1 %v9551_v11, %s12217_s30  ;;  %15761 = vst [vmem:[#allocation67_spill] sm:$0xff] %v13981_v48  ;;  %v12219_v48 = vmov 6  }
 0x5f8   : >> { %11856 = vset.pattern.permute.xlu0 %v12219_v48  ;;  %11855 = vset.pattern.permute.xlu1 %v12219_v48 }
 0x5f9   : >> { %v9548_v60 = vpop.xlane.xlu0 %9547 }
 0x5fa   : >> { %v9553_v27 = vsel %vm8639_vm3, %v9548_v60, -1e+30 }
 0x5fb   : >> { %9563 = vrot.lane.b32.xlu1 %v9553_v27, %s12217_s30 }
 0x5fd   : >> { %v9550_v44 = vpop.xlane.xlu0 %9549 }
 0x5fe   : >> { %v9554_v24 = vsel %vm8640_vm2, %v9550_v44, -1e+30 }
 0x5ff   : >> { %9565 = vrot.lane.b32.xlu1 %v9554_v24, %s12217_s30 }
 0x60a   : >> { %v9546_v22 = vpop.xlane.xlu1 %9545 }
 0x60b   : >> { %v9552_v52 = vsel %vm8638_vm1, %v9546_v22, -1e+30 }
 0x60c   : >> { %9561 = vrot.lane.b32.xlu0 %v9552_v52, %s12217_s30 }
 0x669   : >> { %v9560_v21 = vpop.permute.xlu1 %9559 }
 0x66a   : >> { %v13987_v60 = vmax.f32 %v13914_v34, %v9560_v21 }
 0x66c   : >> { %15762 = vst [vmem:[#allocation68_spill] sm:$0xff] %v13987_v60  ;;  %9591 = vrot.lane.b32.xlu0 %v13987_v60, %s12218_s6 }
 0x66d   : >> { %v9564_v44 = vpop.permute.xlu1 %9563 }
 0x66e   : >> { %v13991_v20 = vmax.f32 %v13920_v9, %v9564_v44 }
 0x670   : >> { %9595 = vrot.lane.b32.xlu0 %v13991_v20, %s12218_s6 }
 0x671   : >> { %v9566_v54 = vpop.permute.xlu1 %9565 }
 0x672   : >> { %v13999_v21 = vmax.f32 %v13928_v10, %v9566_v54 }
 0x674   : >> { %15763 = vst [vmem:[#allocation69_spill] sm:$0xff] %v13999_v21 }
 0x67e   : >> { %v9562_v5 = vpop.permute.xlu0 %9561 }
 0x67f   : >> { %v13995_v22 = vmax.f32 %v13924_v8, %v9562_v5 }
 0x681   : >> { %9593 = vrot.lane.b32.xlu1 %v13995_v22, %s12218_s6 }
 0x685   : >> { %9597 = vrot.lane.b32.xlu1 %v13999_v21, %s12218_s6  ;;  %s12234_s6 = smov 11  }
 0x6de   : >> { %v9592_v40 = vpop.permute.xlu0 %9591 }
 0x6df   : >> { %v9603_v44 = vsub.f32 %v9551_v11, %v9592_v40 }
 0x6e1   : >> { %v9607_v57 = vmul.f32 1.442695, %v9603_v44 }
 0x6e2   : >> { %v9596_v13 = vpop.permute.xlu0 %9595 }
 0x6e3   : >> { %11926 = vpow2.f32 %v9607_v57  ;;  %v9605_v12 = vsub.f32 %v9553_v27, %v9596_v13 }
 0x6e5   : >> { %v9611_v2 = vmul.f32 1.442695, %v9605_v12  ;;  %v14011_v12 = vld [vmem:[%s13404_s27 + $0x708] sm:$0xff]  }
 0x6e6   : >> { %15765 = vst [vmem:[#allocation71_spill] sm:$0xff] %v14011_v12 }
 0x6e7   : >> { %11928 = vpow2.f32 %v9611_v2 }
 0x6f0   : >> { %v11927_v48 = vpop.eup %11926 }
 0x6f1   : >> { %9623 = vrot.lane.b32.xlu0 %v11927_v48, %s12217_s30 }
 0x6f3   : >> { %v9594_v5 = vpop.permute.xlu1 %9593 }
 0x6f4   : >> { %v11929_v35 = vpop.eup %11928  ;;  %v9604_v4 = vsub.f32 %v9552_v52, %v9594_v5  ;;  %v14007_v52 = vld [vmem:[%s13404_s27 + $0x700] sm:$0xff]  }
 0x6f5   : >> { %9627 = vrot.lane.b32.xlu0 %v11929_v35, %s12217_s30  ;;  %15764 = vst [vmem:[#allocation70_spill] sm:$0xff] %v14007_v52  ;;  %v15556_v44 = vunpack.c.h.bf16 %v14007_v52 }
 0x6f6   : >> { %v9609_v54 = vmul.f32 1.442695, %v9604_v4  ;;  %v15554_v4 = vunpack.c.l.bf16 %v14007_v52 }
 0x6f7   : >> { %v9598_v55 = vpop.permute.xlu1 %9597 }
 0x6f8   : >> { %11930 = vpow2.f32 %v9609_v54  ;;  %v9606_v40 = vsub.f32 %v9554_v24, %v9598_v55  ;;  %v9698_v55 = vmul.f32 %v15554_v4, %v13437_v18  ;;  %v15555_v24 = vunpack.c.l.bf16 %v14011_v12 }
 0x6fa   : >> { %v9613_v11 = vmul.f32 1.442695, %v9606_v40  ;;  %v9700_v13 = vmul.f32 %v15555_v24, %v13428_v14 }
 0x6fc   : >> { %11932 = vpow2.f32 %v9613_v11 }
 0x705   : >> { %v11931_v57 = vpop.eup %11930 }
 0x706   : >> { %9625 = vrot.lane.b32.xlu1 %v11931_v57, %s12217_s30  ;;  %9668 = vperm.xlu0 %11856, %v11931_v57  }
 0x709   : >> { %v11933_v2 = vpop.eup %11932 }
 0x70a   : >> { %9629 = vrot.lane.b32.xlu1 %v11933_v2, %s12217_s30  ;;  %s12233_s30 = smov 117  }
 0x70e   : >> { %9664 = vperm.xlu1 %11855, %v11927_v48   ;;  %v9699_v48 = vmul.f32 %v15556_v44, %v13456_v23 }
 0x712   : >> { %9672 = vperm.xlu1 %11855, %v11929_v35   ;;  %v15553_v35 = vunpack.c.h.bf16 %v14011_v12 }
 0x714   : >> { %v9701_v27 = vmul.f32 %v15553_v35, %v13443_v19 }
 0x716   : >> { %9676 = vperm.xlu1 %11855, %v11933_v2  }
 0x725   : >> { %9702 = vadd.xlane.f32.xlu0 %v9698_v55 }
 0x729   : >> { %9706 = vadd.xlane.f32.xlu0 %v9700_v13 }
 0x72d   : >> { %9708 = vadd.xlane.f32.xlu0 %v9701_v27 }
 0x73a   : >> { %9704 = vadd.xlane.f32.xlu1 %v9699_v48 }
 0x763   : >> { %v14028_v5 = vpop.permute.xlu0 %9623 }
 0x764   : >> { %15766 = vst [vmem:[#allocation72_spill] sm:$0xff] %v14028_v5 }
 0x767   : >> { %v14030_v54 = vpop.permute.xlu0 %9627 }
 0x768   : >> { %15767 = vst [vmem:[#allocation73_spill] sm:$0xff] %v14030_v54 }
 0x778   : >> { %v14032_v40 = vpop.permute.xlu1 %9625 }
 0x77c   : >> { %v14036_v2 = vpop.permute.xlu1 %9629 }
 0x77d   : >> { %15769 = vst [vmem:[#allocation75_spill] sm:$0xff] %v14036_v2 }
 0x781   : >> { %v14034_v11 = vpop.permute.xlu0 %9668 }
 0x782   : >> { %15768 = vst [vmem:[#allocation74_spill] sm:$0xff] %v14034_v11 }
 0x789   : >> { %v14041_v27 = vpop.permute.xlu1 %9664 }
 0x78a   : >> { %15770 = vst [vmem:[#allocation76_spill] sm:$0xff] %v14041_v27 }
 0x78d   : >> { %v14049_v24 = vpop.permute.xlu1 %9672 }
 0x78e   : >> { %15771 = vst [vmem:[#allocation77_spill] sm:$0xff] %v14049_v24 }
 0x7ae   : >> { %v9703_v57 = vpop.xlane.xlu0 %9702 }
 0x7af   : >> { %v9710_v55 = vsel %vm8637_vm0, %v9703_v57, -1e+30  ;;  %v14051_v57 = vpop.permute.xlu1 %9676 }
 0x7b0   : >> { %9718 = vrot.lane.b32.xlu1 %v9710_v55, %s12220_s13  ;;  %15772 = vst [vmem:[#allocation78_spill] sm:$0xff] %v14051_v57  ;;  %v12222_v57 = vmov 7  }
 0x7b1   : >> { %11858 = vset.pattern.permute.xlu0 %v12222_v57  ;;  %11857 = vset.pattern.permute.xlu1 %v12222_v57 }
 0x7b2   : >> { %v9707_v13 = vpop.xlane.xlu0 %9706 }
 0x7b3   : >> { %v9712_v48 = vsel %vm8639_vm3, %v9707_v13, -1e+30 }
 0x7b4   : >> { %9722 = vrot.lane.b32.xlu1 %v9712_v48, %s12220_s13 }
 0x7b6   : >> { %v9709_v35 = vpop.xlane.xlu0 %9708 }
 0x7b7   : >> { %v9713_v4 = vsel %vm8640_vm2, %v9709_v35, -1e+30 }
 0x7b8   : >> { %9724 = vrot.lane.b32.xlu1 %v9713_v4, %s12220_s13 }
 0x7c3   : >> { %v9705_v44 = vpop.xlane.xlu1 %9704 }
 0x7c4   : >> { %v9711_v12 = vsel %vm8638_vm1, %v9705_v44, -1e+30 }
 0x7c5   : >> { %9720 = vrot.lane.b32.xlu0 %v9711_v12, %s12220_s13 }
 0x822   : >> { %v9719_v27 = vpop.permute.xlu1 %9718 }
 0x823   : >> { %v14057_v13 = vmax.f32 %v13987_v60, %v9719_v27 }
 0x825   : >> { %15773 = vst [vmem:[#allocation79_spill] sm:$0xff] %v14057_v13  ;;  %9750 = vrot.lane.b32.xlu0 %v14057_v13, %s12221_s11 }
 0x826   : >> { %v9723_v35 = vpop.permute.xlu1 %9722 }
 0x827   : >> { %v14061_v52 = vmax.f32 %v13991_v20, %v9723_v35 }
 0x829   : >> { %9754 = vrot.lane.b32.xlu0 %v14061_v52, %s12221_s11 }
 0x82a   : >> { %v9725_v11 = vpop.permute.xlu1 %9724 }
 0x82b   : >> { %v14069_v27 = vmax.f32 %v13999_v21, %v9725_v11 }
 0x82d   : >> { %15774 = vst [vmem:[#allocation80_spill] sm:$0xff] %v14069_v27 }
 0x837   : >> { %v9721_v24 = vpop.permute.xlu0 %9720 }
 0x838   : >> { %v14065_v44 = vmax.f32 %v13995_v22, %v9721_v24 }
 0x83a   : >> { %9752 = vrot.lane.b32.xlu1 %v14065_v44, %s12221_s11 }
 0x83e   : >> { %9756 = vrot.lane.b32.xlu1 %v14069_v27, %s12221_s11  ;;  %s12238_s11 = smov 114  }
 0x897   : >> { %v9751_v2 = vpop.permute.xlu0 %9750 }
 0x898   : >> { %v9762_v35 = vsub.f32 %v9710_v55, %v9751_v2 }
 0x89a   : >> { %v9766_v54 = vmul.f32 1.442695, %v9762_v35 }
 0x89b   : >> { %v9755_v5 = vpop.permute.xlu0 %9754 }
 0x89c   : >> { %11934 = vpow2.f32 %v9766_v54  ;;  %v9764_v32 = vsub.f32 %v9712_v48, %v9755_v5 }
 0x89e   : >> { %v9770_v61 = vmul.f32 1.442695, %v9764_v32  ;;  %v14077_v32 = vld [vmem:[%s13404_s27 + $0x800] sm:$0xff]  }
 0x89f   : >> { %15775 = vst [vmem:[#allocation81_spill] sm:$0xff] %v14077_v32  ;;  %v15568_v35 = vunpack.c.h.bf16 %v14077_v32 }
 0x8a0   : >> { %11936 = vpow2.f32 %v9770_v61 }
 0x8a9   : >> { %v11935_v57 = vpop.eup %11934 }
 0x8aa   : >> { %9782 = vrot.lane.b32.xlu0 %v11935_v57, %s12220_s13 }
 0x8ac   : >> { %v9753_v24 = vpop.permute.xlu1 %9752 }
 0x8ad   : >> { %v11937_v29 = vpop.eup %11936  ;;  %v9763_v60 = vsub.f32 %v9711_v12, %v9753_v24  ;;  %v14081_v12 = vld [vmem:[%s13404_s27 + $0x808] sm:$0xff]  }
 0x8ae   : >> { %9786 = vrot.lane.b32.xlu0 %v11937_v29, %s12220_s13  ;;  %15776 = vst [vmem:[#allocation82_spill] sm:$0xff] %v14081_v12 }
 0x8af   : >> { %v9768_v11 = vmul.f32 1.442695, %v9763_v60  ;;  %v15566_v60 = vunpack.c.l.bf16 %v14077_v32 }
 0x8b0   : >> { %v9757_v21 = vpop.permute.xlu1 %9756 }
 0x8b1   : >> { %11938 = vpow2.f32 %v9768_v11  ;;  %v9765_v2 = vsub.f32 %v9713_v4, %v9757_v21  ;;  %v9857_v21 = vmul.f32 %v15566_v60, %v13437_v18  ;;  %v15567_v4 = vunpack.c.l.bf16 %v14081_v12 }
 0x8b3   : >> { %v9772_v55 = vmul.f32 1.442695, %v9765_v2  ;;  %v9859_v5 = vmul.f32 %v15567_v4, %v13428_v14 }
 0x8b5   : >> { %11940 = vpow2.f32 %v9772_v55 }
 0x8be   : >> { %v11939_v54 = vpop.eup %11938 }
 0x8bf   : >> { %9784 = vrot.lane.b32.xlu1 %v11939_v54, %s12220_s13  ;;  %9827 = vperm.xlu0 %11858, %v11939_v54  }
 0x8c2   : >> { %v11941_v61 = vpop.eup %11940 }
 0x8c3   : >> { %9788 = vrot.lane.b32.xlu1 %v11941_v61, %s12220_s13  ;;  %s12237_s13 = smov 115  }
 0x8c7   : >> { %9823 = vperm.xlu1 %11857, %v11935_v57   ;;  %v9858_v57 = vmul.f32 %v15568_v35, %v13456_v23 }
 0x8cb   : >> { %9831 = vperm.xlu1 %11857, %v11937_v29   ;;  %v15565_v29 = vunpack.c.h.bf16 %v14081_v12 }
 0x8cd   : >> { %v9860_v48 = vmul.f32 %v15565_v29, %v13443_v19 }
 0x8cf   : >> { %9835 = vperm.xlu1 %11857, %v11941_v61  }
 0x8de   : >> { %9861 = vadd.xlane.f32.xlu0 %v9857_v21 }
 0x8e2   : >> { %9865 = vadd.xlane.f32.xlu0 %v9859_v5 }
 0x8e6   : >> { %9867 = vadd.xlane.f32.xlu0 %v9860_v48 }
 0x8f3   : >> { %9863 = vadd.xlane.f32.xlu1 %v9858_v57 }
 0x91c   : >> { %v14098_v24 = vpop.permute.xlu0 %9782 }
 0x91d   : >> { %15777 = vst [vmem:[#allocation83_spill] sm:$0xff] %v14098_v24 }
 0x920   : >> { %v14100_v11 = vpop.permute.xlu0 %9786 }
 0x921   : >> { %15778 = vst [vmem:[#allocation84_spill] sm:$0xff] %v14100_v11 }
 0x931   : >> { %v14102_v2 = vpop.permute.xlu1 %9784 }
 0x935   : >> { %v14106_v61 = vpop.permute.xlu1 %9788 }
 0x936   : >> { %15780 = vst [vmem:[#allocation86_spill] sm:$0xff] %v14106_v61 }
 0x93a   : >> { %v14104_v55 = vpop.permute.xlu0 %9827 }
 0x93b   : >> { %15779 = vst [vmem:[#allocation85_spill] sm:$0xff] %v14104_v55 }
 0x942   : >> { %v14111_v48 = vpop.permute.xlu1 %9823 }
 0x943   : >> { %15781 = vst [vmem:[#allocation87_spill] sm:$0xff] %v14111_v48 }
 0x946   : >> { %v14119_v4 = vpop.permute.xlu1 %9831 }
 0x947   : >> { %15782 = vst [vmem:[#allocation88_spill] sm:$0xff] %v14119_v4 }
 0x967   : >> { %v9862_v54 = vpop.xlane.xlu0 %9861 }
 0x968   : >> { %v9869_v21 = vsel %vm8637_vm0, %v9862_v54, -1e+30  ;;  %v14121_v54 = vpop.permute.xlu1 %9835 }
 0x969   : >> { %9877 = vrot.lane.b32.xlu1 %v9869_v21, %s12223_s15  ;;  %15783 = vst [vmem:[#allocation89_spill] sm:$0xff] %v14121_v54  ;;  %v12225_v54 = vmov 8  }
 0x96a   : >> { %11860 = vset.pattern.permute.xlu0 %v12225_v54  ;;  %11859 = vset.pattern.permute.xlu1 %v12225_v54 }
 0x96b   : >> { %v9866_v5 = vpop.xlane.xlu0 %9865 }
 0x96c   : >> { %v9871_v57 = vsel %vm8639_vm3, %v9866_v5, -1e+30 }
 0x96d   : >> { %9881 = vrot.lane.b32.xlu1 %v9871_v57, %s12223_s15 }
 0x96f   : >> { %v9868_v29 = vpop.xlane.xlu0 %9867 }
 0x970   : >> { %v9872_v60 = vsel %vm8640_vm2, %v9868_v29, -1e+30 }
 0x971   : >> { %9883 = vrot.lane.b32.xlu1 %v9872_v60, %s12223_s15 }
 0x97c   : >> { %v9864_v35 = vpop.xlane.xlu1 %9863 }
 0x97d   : >> { %v9870_v12 = vsel %vm8638_vm1, %v9864_v35, -1e+30 }
 0x97e   : >> { %9879 = vrot.lane.b32.xlu0 %v9870_v12, %s12223_s15 }
 0x9db   : >> { %v9878_v48 = vpop.permute.xlu1 %9877 }
 0x9dc   : >> { %v14127_v5 = vmax.f32 %v14057_v13, %v9878_v48 }
 0x9de   : >> { %15784 = vst [vmem:[#allocation90_spill] sm:$0xff] %v14127_v5  ;;  %9909 = vrot.lane.b32.xlu0 %v14127_v5, %s12224_s17 }
 0x9df   : >> { %v9882_v29 = vpop.permute.xlu1 %9881 }
 0x9e0   : >> { %v14131_v32 = vmax.f32 %v14061_v52, %v9882_v29 }
 0x9e2   : >> { %9913 = vrot.lane.b32.xlu0 %v14131_v32, %s12224_s17 }
 0x9e3   : >> { %v9884_v55 = vpop.permute.xlu1 %9883 }
 0x9e4   : >> { %v14139_v48 = vmax.f32 %v14069_v27, %v9884_v55 }
 0x9e6   : >> { %15785 = vst [vmem:[#allocation91_spill] sm:$0xff] %v14139_v48 }
 0x9f0   : >> { %v9880_v4 = vpop.permute.xlu0 %9879 }
 0x9f1   : >> { %v14135_v35 = vmax.f32 %v14065_v44, %v9880_v4 }
 0x9f3   : >> { %9911 = vrot.lane.b32.xlu1 %v14135_v35, %s12224_s17 }
 0x9f7   : >> { %9915 = vrot.lane.b32.xlu1 %v14139_v48, %s12224_s17  ;;  %s12240_s17 = smov 12  }
 0xa50   : >> { %v9910_v61 = vpop.permute.xlu0 %9909 }
 0xa51   : >> { %v9921_v29 = vsub.f32 %v9869_v21, %v9910_v61 }
 0xa53   : >> { %v9925_v11 = vmul.f32 1.442695, %v9921_v29 }
 0xa54   : >> { %v9914_v24 = vpop.permute.xlu0 %9913 }
 0xa55   : >> { %11942 = vpow2.f32 %v9925_v11  ;;  %v9923_v13 = vsub.f32 %v9871_v57, %v9914_v24 }
 0xa57   : >> { %v9929_v10 = vmul.f32 1.442695, %v9923_v13  ;;  %v14147_v13 = vld [vmem:[%s13404_s27 + $0x900] sm:$0xff]  }
 0xa58   : >> { %15786 = vst [vmem:[#allocation92_spill] sm:$0xff] %v14147_v13  ;;  %v15586_v29 = vunpack.c.h.bf16 %v14147_v13 }
 0xa59   : >> { %11944 = vpow2.f32 %v9929_v10 }
 0xa62   : >> { %v11943_v54 = vpop.eup %11942 }
 0xa63   : >> { %9941 = vrot.lane.b32.xlu0 %v11943_v54, %s12223_s15 }
 0xa65   : >> { %v9912_v4 = vpop.permute.xlu1 %9911 }
 0xa66   : >> { %v11945_v34 = vpop.eup %11944  ;;  %v9922_v0 = vsub.f32 %v9870_v12, %v9912_v4  ;;  %v14151_v12 = vld [vmem:[%s13404_s27 + $0x908] sm:$0xff]  }
 0xa67   : >> { %9945 = vrot.lane.b32.xlu0 %v11945_v34, %s12223_s15  ;;  %15787 = vst [vmem:[#allocation93_spill] sm:$0xff] %v14151_v12 }
 0xa68   : >> { %v9927_v55 = vmul.f32 1.442695, %v9922_v0  ;;  %v15584_v0 = vunpack.c.l.bf16 %v14147_v13 }
 0xa69   : >> { %v9916_v27 = vpop.permute.xlu1 %9915 }
 0xa6a   : >> { %11946 = vpow2.f32 %v9927_v55  ;;  %v9924_v61 = vsub.f32 %v9872_v60, %v9916_v27  ;;  %v10016_v27 = vmul.f32 %v15584_v0, %v13437_v18  ;;  %v15585_v60 = vunpack.c.l.bf16 %v14151_v12 }
 0xa6c   : >> { %v9931_v21 = vmul.f32 1.442695, %v9924_v61  ;;  %v10018_v24 = vmul.f32 %v15585_v60, %v13428_v14 }
 0xa6e   : >> { %11948 = vpow2.f32 %v9931_v21 }
 0xa77   : >> { %v11947_v11 = vpop.eup %11946 }
 0xa78   : >> { %9943 = vrot.lane.b32.xlu1 %v11947_v11, %s12223_s15  ;;  %9986 = vperm.xlu0 %11860, %v11947_v11  }
 0xa7b   : >> { %v11949_v10 = vpop.eup %11948 }
 0xa7c   : >> { %9947 = vrot.lane.b32.xlu1 %v11949_v10, %s12223_s15  ;;  %s12239_s15 = smov 113  }
 0xa80   : >> { %9982 = vperm.xlu1 %11859, %v11943_v54   ;;  %v10017_v54 = vmul.f32 %v15586_v29, %v13456_v23 }
 0xa84   : >> { %9990 = vperm.xlu1 %11859, %v11945_v34   ;;  %v15583_v34 = vunpack.c.h.bf16 %v14151_v12 }
 0xa86   : >> { %v10019_v57 = vmul.f32 %v15583_v34, %v13443_v19 }
 0xa88   : >> { %9994 = vperm.xlu1 %11859, %v11949_v10  }
 0xa97   : >> { %10020 = vadd.xlane.f32.xlu0 %v10016_v27 }
 0xa9b   : >> { %10024 = vadd.xlane.f32.xlu0 %v10018_v24 }
 0xa9f   : >> { %10026 = vadd.xlane.f32.xlu0 %v10019_v57 }
 0xaac   : >> { %10022 = vadd.xlane.f32.xlu1 %v10017_v54 }
 0xad5   : >> { %v14168_v4 = vpop.permute.xlu0 %9941 }
 0xad6   : >> { %15788 = vst [vmem:[#allocation94_spill] sm:$0xff] %v14168_v4 }
 0xad9   : >> { %v14170_v55 = vpop.permute.xlu0 %9945 }
 0xada   : >> { %15789 = vst [vmem:[#allocation95_spill] sm:$0xff] %v14170_v55 }
 0xaea   : >> { %v14172_v61 = vpop.permute.xlu1 %9943 }
 0xaee   : >> { %v14176_v10 = vpop.permute.xlu1 %9947 }
 0xaef   : >> { %15791 = vst [vmem:[#allocation97_spill] sm:$0xff] %v14176_v10 }
 0xaf3   : >> { %v14174_v21 = vpop.permute.xlu0 %9986 }
 0xaf4   : >> { %15790 = vst [vmem:[#allocation96_spill] sm:$0xff] %v14174_v21 }
 0xafb   : >> { %v14181_v57 = vpop.permute.xlu1 %9982 }
 0xafc   : >> { %15792 = vst [vmem:[#allocation98_spill] sm:$0xff] %v14181_v57 }
 0xaff   : >> { %v14189_v60 = vpop.permute.xlu1 %9990 }
 0xb00   : >> { %15793 = vst [vmem:[#allocation99_spill] sm:$0xff] %v14189_v60 }
 0xb20   : >> { %v10021_v11 = vpop.xlane.xlu0 %10020 }
 0xb21   : >> { %v10028_v27 = vsel %vm8637_vm0, %v10021_v11, -1e+30  ;;  %v14191_v11 = vpop.permute.xlu1 %9994 }
 0xb22   : >> { %10036 = vrot.lane.b32.xlu1 %v10028_v27, %s12226_s18  ;;  %15794 = vst [vmem:[#allocation100_spill] sm:$0xff] %v14191_v11  ;;  %v12228_v11 = vmov 9  }
 0xb23   : >> { %11862 = vset.pattern.permute.xlu0 %v12228_v11  ;;  %11861 = vset.pattern.permute.xlu1 %v12228_v11 }
 0xb24   : >> { %v10025_v24 = vpop.xlane.xlu0 %10024 }
 0xb25   : >> { %v10030_v54 = vsel %vm8639_vm3, %v10025_v24, -1e+30 }
 0xb26   : >> { %10040 = vrot.lane.b32.xlu1 %v10030_v54, %s12226_s18 }
 0xb28   : >> { %v10027_v34 = vpop.xlane.xlu0 %10026 }
 0xb29   : >> { %v10031_v0 = vsel %vm8640_vm2, %v10027_v34, -1e+30 }
 0xb2a   : >> { %10042 = vrot.lane.b32.xlu1 %v10031_v0, %s12226_s18 }
 0xb35   : >> { %v10023_v29 = vpop.xlane.xlu1 %10022 }
 0xb36   : >> { %v10029_v12 = vsel %vm8638_vm1, %v10023_v29, -1e+30 }
 0xb37   : >> { %10038 = vrot.lane.b32.xlu0 %v10029_v12, %s12226_s18 }
 0xb94   : >> { %v10037_v57 = vpop.permute.xlu1 %10036 }
 0xb95   : >> { %v14197_v24 = vmax.f32 %v14127_v5, %v10037_v57 }
 0xb97   : >> { %15795 = vst [vmem:[#allocation101_spill] sm:$0xff] %v14197_v24  ;;  %10068 = vrot.lane.b32.xlu0 %v14197_v24, %s12227_s24 }
 0xb98   : >> { %v10041_v34 = vpop.permute.xlu1 %10040 }
 0xb99   : >> { %v14201_v13 = vmax.f32 %v14131_v32, %v10041_v34 }
 0xb9b   : >> { %10072 = vrot.lane.b32.xlu0 %v14201_v13, %s12227_s24 }
 0xb9c   : >> { %v10043_v21 = vpop.permute.xlu1 %10042 }
 0xb9d   : >> { %v14209_v57 = vmax.f32 %v14139_v48, %v10043_v21 }
 0xb9f   : >> { %15796 = vst [vmem:[#allocation102_spill] sm:$0xff] %v14209_v57 }
 0xba9   : >> { %v10039_v60 = vpop.permute.xlu0 %10038 }
 0xbaa   : >> { %v14205_v29 = vmax.f32 %v14135_v35, %v10039_v60 }
 0xbac   : >> { %10070 = vrot.lane.b32.xlu1 %v14205_v29, %s12227_s24 }
 0xbb0   : >> { %10074 = vrot.lane.b32.xlu1 %v14209_v57, %s12227_s24  ;;  %s12243_s24 = smov 14  }
 0xc09   : >> { %v10069_v10 = vpop.permute.xlu0 %10068 }
 0xc0a   : >> { %v10080_v34 = vsub.f32 %v10028_v27, %v10069_v10 }
 0xc0c   : >> { %v10084_v55 = vmul.f32 1.442695, %v10080_v34 }
 0xc0d   : >> { %v10073_v4 = vpop.permute.xlu0 %10072 }
 0xc0e   : >> { %11950 = vpow2.f32 %v10084_v55  ;;  %v10082_v5 = vsub.f32 %v10030_v54, %v10073_v4 }
 0xc10   : >> { %v10088_v17 = vmul.f32 1.442695, %v10082_v5  ;;  %v14217_v5 = vld [vmem:[%s13404_s27 + $0xa00] sm:$0xff]  }
 0xc11   : >> { %15797 = vst [vmem:[#allocation103_spill] sm:$0xff] %v14217_v5  ;;  %v15604_v34 = vunpack.c.h.bf16 %v14217_v5 }
 0xc12   : >> { %11952 = vpow2.f32 %v10088_v17 }
 0xc1b   : >> { %v11951_v11 = vpop.eup %11950 }
 0xc1c   : >> { %10100 = vrot.lane.b32.xlu0 %v11951_v11, %s12226_s18 }
 0xc1e   : >> { %v10071_v60 = vpop.permute.xlu1 %10070 }
 0xc1f   : >> { %v11953_v41 = vpop.eup %11952  ;;  %v10081_v36 = vsub.f32 %v10029_v12, %v10071_v60  ;;  %v14221_v12 = vld [vmem:[%s13404_s27 + $0xa08] sm:$0xff]  }
 0xc20   : >> { %10104 = vrot.lane.b32.xlu0 %v11953_v41, %s12226_s18  ;;  %15798 = vst [vmem:[#allocation104_spill] sm:$0xff] %v14221_v12 }
 0xc21   : >> { %v10086_v21 = vmul.f32 1.442695, %v10081_v36  ;;  %v15602_v36 = vunpack.c.l.bf16 %v14217_v5 }
 0xc22   : >> { %v10075_v48 = vpop.permute.xlu1 %10074 }
 0xc23   : >> { %11954 = vpow2.f32 %v10086_v21  ;;  %v10083_v10 = vsub.f32 %v10031_v0, %v10075_v48  ;;  %v10175_v48 = vmul.f32 %v15602_v36, %v13437_v18  ;;  %v15603_v0 = vunpack.c.l.bf16 %v14221_v12 }
 0xc25   : >> { %v10090_v27 = vmul.f32 1.442695, %v10083_v10  ;;  %v10177_v4 = vmul.f32 %v15603_v0, %v13428_v14 }
 0xc27   : >> { %11956 = vpow2.f32 %v10090_v27 }
 0xc30   : >> { %v11955_v55 = vpop.eup %11954 }
 0xc31   : >> { %10102 = vrot.lane.b32.xlu1 %v11955_v55, %s12226_s18  ;;  %10145 = vperm.xlu0 %11862, %v11955_v55  }
 0xc34   : >> { %v11957_v17 = vpop.eup %11956 }
 0xc35   : >> { %10106 = vrot.lane.b32.xlu1 %v11957_v17, %s12226_s18  ;;  %s12242_s18 = smov 13  }
 0xc39   : >> { %10141 = vperm.xlu1 %11861, %v11951_v11   ;;  %v10176_v11 = vmul.f32 %v15604_v34, %v13456_v23 }
 0xc3d   : >> { %10149 = vperm.xlu1 %11861, %v11953_v41   ;;  %v15601_v41 = vunpack.c.h.bf16 %v14221_v12 }
 0xc3f   : >> { %v10178_v54 = vmul.f32 %v15601_v41, %v13443_v19 }
 0xc41   : >> { %10153 = vperm.xlu1 %11861, %v11957_v17  }
 0xc50   : >> { %10179 = vadd.xlane.f32.xlu0 %v10175_v48 }
 0xc54   : >> { %10183 = vadd.xlane.f32.xlu0 %v10177_v4 }
 0xc58   : >> { %10185 = vadd.xlane.f32.xlu0 %v10178_v54 }
 0xc65   : >> { %10181 = vadd.xlane.f32.xlu1 %v10176_v11 }
 0xc8e   : >> { %v14238_v60 = vpop.permute.xlu0 %10100 }
 0xc8f   : >> { %15799 = vst [vmem:[#allocation105_spill] sm:$0xff] %v14238_v60 }
 0xc92   : >> { %v14240_v21 = vpop.permute.xlu0 %10104 }
 0xc93   : >> { %15800 = vst [vmem:[#allocation106_spill] sm:$0xff] %v14240_v21 }
 0xca3   : >> { %v14242_v10 = vpop.permute.xlu1 %10102 }
 0xca7   : >> { %v14246_v17 = vpop.permute.xlu1 %10106 }
 0xca8   : >> { %15802 = vst [vmem:[#allocation108_spill] sm:$0xff] %v14246_v17 }
 0xcac   : >> { %v14244_v27 = vpop.permute.xlu0 %10145 }
 0xcad   : >> { %15801 = vst [vmem:[#allocation107_spill] sm:$0xff] %v14244_v27 }
 0xcb4   : >> { %v14251_v54 = vpop.permute.xlu1 %10141 }
 0xcb5   : >> { %15803 = vst [vmem:[#allocation109_spill] sm:$0xff] %v14251_v54 }
 0xcb8   : >> { %v14259_v0 = vpop.permute.xlu1 %10149 }
 0xcb9   : >> { %15804 = vst [vmem:[#allocation110_spill] sm:$0xff] %v14259_v0 }
 0xcd9   : >> { %v10180_v55 = vpop.xlane.xlu0 %10179 }
 0xcda   : >> { %v10187_v48 = vsel %vm8637_vm0, %v10180_v55, -1e+30  ;;  %v14261_v55 = vpop.permute.xlu1 %10153 }
 0xcdb   : >> { %10195 = vrot.lane.b32.xlu1 %v10187_v48, %s12229_s26  ;;  %15805 = vst [vmem:[#allocation111_spill] sm:$0xff] %v14261_v55  ;;  %v12231_v55 = vmov 10  }
 0xcdc   : >> { %11864 = vset.pattern.permute.xlu0 %v12231_v55  ;;  %11863 = vset.pattern.permute.xlu1 %v12231_v55 }
 0xcdd   : >> { %v10184_v4 = vpop.xlane.xlu0 %10183 }
 0xcde   : >> { %v10189_v11 = vsel %vm8639_vm3, %v10184_v4, -1e+30 }
 0xcdf   : >> { %10199 = vrot.lane.b32.xlu1 %v10189_v11, %s12229_s26 }
 0xce1   : >> { %v10186_v41 = vpop.xlane.xlu0 %10185 }
 0xce2   : >> { %v10190_v36 = vsel %vm8640_vm2, %v10186_v41, -1e+30 }
 0xce3   : >> { %10201 = vrot.lane.b32.xlu1 %v10190_v36, %s12229_s26 }
 0xcee   : >> { %v10182_v34 = vpop.xlane.xlu1 %10181 }
 0xcef   : >> { %v10188_v12 = vsel %vm8638_vm1, %v10182_v34, -1e+30 }
 0xcf0   : >> { %10197 = vrot.lane.b32.xlu0 %v10188_v12, %s12229_s26 }
 0xd4d   : >> { %v10196_v54 = vpop.permute.xlu1 %10195 }
 0xd4e   : >> { %v14267_v4 = vmax.f32 %v14197_v24, %v10196_v54 }
 0xd50   : >> { %15806 = vst [vmem:[#allocation112_spill] sm:$0xff] %v14267_v4  ;;  %10227 = vrot.lane.b32.xlu0 %v14267_v4, %s12230_s21 }
 0xd51   : >> { %v10200_v41 = vpop.permute.xlu1 %10199 }
 0xd52   : >> { %v14271_v5 = vmax.f32 %v14201_v13, %v10200_v41 }
 0xd54   : >> { %15807 = vst [vmem:[#allocation113_spill] sm:$0xff] %v14271_v5  ;;  %10231 = vrot.lane.b32.xlu0 %v14271_v5, %s12230_s21 }
 0xd55   : >> { %v10202_v27 = vpop.permute.xlu1 %10201 }
 0xd56   : >> { %v14279_v54 = vmax.f32 %v14209_v57, %v10202_v27 }
 0xd58   : >> { %15808 = vst [vmem:[#allocation114_spill] sm:$0xff] %v14279_v54 }
 0xd62   : >> { %v10198_v0 = vpop.permute.xlu0 %10197 }
 0xd63   : >> { %v14275_v34 = vmax.f32 %v14205_v29, %v10198_v0 }
 0xd65   : >> { %10229 = vrot.lane.b32.xlu1 %v14275_v34, %s12230_s21 }
 0xd69   : >> { %10233 = vrot.lane.b32.xlu1 %v14279_v54, %s12230_s21 }
 0xdc2   : >> { %v10228_v17 = vpop.permute.xlu0 %10227 }
 0xdc3   : >> { %v10239_v41 = vsub.f32 %v10187_v48, %v10228_v17 }
 0xdc5   : >> { %v10243_v21 = vmul.f32 1.442695, %v10239_v41 }
 0xdc6   : >> { %v10232_v60 = vpop.permute.xlu0 %10231 }
 0xdc7   : >> { %11958 = vpow2.f32 %v10243_v21  ;;  %v10241_v24 = vsub.f32 %v10189_v11, %v10232_v60 }
 0xdc9   : >> { %v10247_v59 = vmul.f32 1.442695, %v10241_v24  ;;  %v14287_v24 = vld [vmem:[%s13404_s27 + $0xb00] sm:$0xff]  }
 0xdca   : >> { %15809 = vst [vmem:[#allocation115_spill] sm:$0xff] %v14287_v24 }
 0xdcb   : >> { %11960 = vpow2.f32 %v10247_v59 }
 0xdd4   : >> { %v11959_v55 = vpop.eup %11958 }
 0xdd5   : >> { %10259 = vrot.lane.b32.xlu0 %v11959_v55, %s12229_s26 }
 0xdd7   : >> { %v10230_v0 = vpop.permute.xlu1 %10229 }
 0xdd8   : >> { %v11961_v15 = vpop.eup %11960  ;;  %v10240_v58 = vsub.f32 %v10188_v12, %v10230_v0  ;;  %v15623_v12 = vmov 0   ;;  %v8650_v0 = vsub.f32 -1e+30, %v13669_v38 }
 0xdd9   : >> { %10263 = vrot.lane.b32.xlu0 %v11961_v15, %s12229_s26 }
 0xdda   : >> { %v10245_v27 = vmul.f32 1.442695, %v10240_v58  ;;  %v15620_v58 = vunpack.c.l.bf16 %v14287_v24 }
 0xddb   : >> { %v10234_v57 = vpop.permute.xlu1 %10233 }
 0xddc   : >> { %11962 = vpow2.f32 %v10245_v27  ;;  %v10242_v17 = vsub.f32 %v10190_v36, %v10234_v57  ;;  %v14292_v57 = vld [vmem:[%s13404_s27 + $0xb08] sm:$0xff]   ;;  %v10334_v36 = vmul.f32 %v15620_v58, %v13437_v18  ;;  %v8663_v58 = vsub.f32 %v13711_v47, %v13722_v25 }
 0xddd   : >> { %15810 = vst [vmem:[#allocation116_spill] sm:$0xff] %v14292_v57  ;;  %v15621_v60 = vunpack.c.l.bf16 %v14292_v57  ;;  %v15619_v11 = vunpack.c.h.bf16 %v14292_v57  ;;  %v8780_v47 = vsub.f32 %v13701_v63, %v13714_v31 }
 0xdde   : >> { %v10249_v48 = vmul.f32 1.442695, %v10242_v17  ;;  %v8651_v17 = vsub.f32 -1e+30, %v13722_v25 }
 0xddf   : >> { %v10337_v41 = vmul.f32 %v15619_v11, %v13443_v19  ;;  %v8662_v11 = vsub.f32 %v13662_v37, %v13669_v38 }
 0xde0   : >> { %11964 = vpow2.f32 %v10249_v48  ;;  %v8655_v48 = vmul.f32 1.442695, %v8650_v0 }
 0xde1   : >> { %v8667_v0 = vmul.f32 1.442695, %v8662_v11  ;;  %v8784_v11 = vmul.f32 1.442695, %v8780_v47  ;;  %v9100_v47 = vsub.f32 %v13735_v62, %v13749_v30 }
 0xde2   : >> { %11966 = vpow2.f32 %v8655_v48  ;;  %v8664_v48 = vsub.f32 %v13676_v26, %v13693_v6 }
 0xde4   : >> { %v8671_v37 = vmul.f32 1.442695, %v8664_v48  ;;  %v9099_v48 = vsub.f32 %v13745_v45, %v13759_v33 }
 0xde9   : >> { %v11963_v21 = vpop.eup %11962 }
 0xdea   : >> { %10261 = vrot.lane.b32.xlu1 %v11963_v21, %s12229_s26  ;;  %10304 = vperm.xlu0 %11864, %v11963_v21   ;;  %v8657_v21 = vmul.f32 1.442695, %v8651_v17  ;;  %v8669_v17 = vmul.f32 1.442695, %v8663_v58  ;;  %v8782_v58 = vsub.f32 %v13722_v25, %v13731_v46 }
 0xdec   : >> { %11968 = vpow2.f32 %v8657_v21 }
 0xded   : >> { %v11965_v59 = vpop.eup %11964 }
 0xdee   : >> { %10265 = vrot.lane.b32.xlu1 %v11965_v59, %s12229_s26  ;;  %s12244_s26 = smov 15  }
 0xdf2   : >> { %10300 = vperm.xlu1 %11863, %v11959_v55   ;;  %v15622_v55 = vunpack.c.h.bf16 %v14287_v24 }
 0xdf4   : >> { %v10335_v27 = vmul.f32 %v15622_v55, %v13456_v23 }
 0xdf6   : >> { %10308 = vperm.xlu1 %11863, %v11961_v15   ;;  %v10336_v15 = vmul.f32 %v15621_v60, %v13428_v14 }
 0xdfa   : >> { %10312 = vperm.xlu1 %11863, %v11965_v59   ;;  %v8652_v59 = vsub.f32 -1e+30, %v13693_v6 }
 0xdfe   : >> { %11865 = vset.pattern.permute.xlu1 %v15623_v12 }
 0xe09   : >> { %10338 = vadd.xlane.f32.xlu0 %v10334_v36  ;;  %v8661_v36 = vsub.f32 %v13690_v42, %v13701_v63 }
 0xe0d   : >> { %10342 = vadd.xlane.f32.xlu0 %v10336_v15  ;;  %v8659_v15 = vmul.f32 1.442695, %v8652_v59  ;;  %v8788_v59 = vmul.f32 1.442695, %v8782_v58 }
 0xe0f   : >> { %11970 = vpow2.f32 %v8659_v15 }
 0xe11   : >> { %10344 = vadd.xlane.f32.xlu0 %v10337_v41  ;;  %v8665_v41 = vmul.f32 1.442695, %v8661_v36  ;;  %v8940_v36 = vsub.f32 %v13683_v16, %v13745_v45 }
 0xe13   : >> { %11972 = vpow2.f32 %v8665_v41  ;;  %v8945_v41 = vmul.f32 1.442695, %v8940_v36 }
 0xe14   : >> { %11974 = vpow2.f32 %v8667_v0  ;;  %v8941_v0 = vsub.f32 %v13731_v46, %v13735_v62  ;;  %v9106_v46 = vmul.f32 1.442695, %v9100_v47 }
 0xe15   : >> { %11976 = vpow2.f32 %v8669_v17 }
 0xe16   : >> { %11978 = vpow2.f32 %v8671_v37  ;;  %v8947_v25 = vmul.f32 1.442695, %v8941_v0 }
 0xe17   : >> { %11980 = vpow2.f32 %v8784_v11  ;;  %v9104_v11 = vmul.f32 1.442695, %v9099_v48 }
 0xe18   : >> { %11982 = vpow2.f32 %v8788_v59  ;;  %v9258_v59 = vsub.f32 %v13759_v33, %v13767_v28  ;;  %v9418_v33 = vsub.f32 %v13775_v1, %v13920_v9 }
 0xe19   : >> { %11984 = vpow2.f32 %v8945_v41  ;;  %v9259_v41 = vsub.f32 %v13749_v30, %v13775_v1 }
 0xe1a   : >> { %11986 = vpow2.f32 %v8947_v25  ;;  %v9263_v45 = vmul.f32 1.442695, %v9258_v59  ;;  %v9417_v25 = vsub.f32 %v13767_v28, %v13924_v8  ;;  %v9424_v30 = vmul.f32 1.442695, %v9418_v33 }
 0xe1b   : >> { %11988 = vpow2.f32 %v9104_v11  ;;  %v9265_v0 = vmul.f32 1.442695, %v9259_v41  ;;  %v9577_v28 = vsub.f32 %v13920_v9, %v13991_v20 }
 0xe1c   : >> { %11990 = vpow2.f32 %v9106_v46  ;;  %v9422_v47 = vmul.f32 1.442695, %v9417_v25  ;;  %v9576_v46 = vsub.f32 %v13924_v8, %v13995_v22  ;;  %v9736_v8 = vsub.f32 %v13991_v20, %v14061_v52 }
 0xe1d   : >> { %11992 = vpow2.f32 %v9263_v45  ;;  %v9583_v41 = vmul.f32 1.442695, %v9577_v28 }
 0xe1e   : >> { %10340 = vadd.xlane.f32.xlu1 %v10335_v27  ;;  %v14318_v27 = vpop.eup %11966  ;;  %11994 = vpow2.f32 %v9265_v0  ;;  %v9581_v45 = vmul.f32 1.442695, %v9576_v46  ;;  %v9735_v0 = vsub.f32 %v13995_v22, %v14065_v44  ;;  %v9895_v22 = vsub.f32 %v14061_v52, %v14131_v32 }
 0xe1f   : >> { %v14323_v42 = vpop.eup %11968  ;;  %11996 = vpow2.f32 %v9422_v47  ;;  %v9742_v47 = vmul.f32 1.442695, %v9736_v8 }
 0xe20   : >> { %15811 = vst [vmem:[#allocation117_spill] sm:$0xff] %v14323_v42  ;;  %v14328_v21 = vpop.eup %11970  ;;  %11998 = vpow2.f32 %v9424_v30  ;;  %v9740_v33 = vmul.f32 1.442695, %v9735_v0  ;;  %v9894_v30 = vsub.f32 %v14065_v44, %v14135_v35  ;;  %v10054_v44 = vsub.f32 %v14131_v32, %v14201_v13 }
 0xe21   : >> { %15812 = vst [vmem:[#allocation118_spill] sm:$0xff] %v14328_v21  ;;  %v14333_v26 = vpop.eup %11972  ;;  %12000 = vpow2.f32 %v9581_v45  ;;  %v9901_v45 = vmul.f32 1.442695, %v9895_v22 }
 0xe22   : >> { %15813 = vst [vmem:[#allocation119_spill] sm:$0xff] %v14333_v26  ;;  %v14338_v15 = vpop.eup %11974  ;;  %12002 = vpow2.f32 %v9583_v41  ;;  %v9899_v28 = vmul.f32 1.442695, %v9894_v30  ;;  %v10053_v41 = vsub.f32 %v14135_v35, %v14205_v29  ;;  %v10213_v35 = vsub.f32 %v14201_v13, %v14271_v5 }
 0xe23   : >> { %v14343_v17 = vpop.eup %11976  ;;  %12004 = vpow2.f32 %v9740_v33  ;;  %v10060_v33 = vmul.f32 1.442695, %v10054_v44 }
 0xe24   : >> { %15814 = vst [vmem:[#allocation120_spill] sm:$0xff] %v14343_v17  ;;  %v14348_v37 = vpop.eup %11978  ;;  %12006 = vpow2.f32 %v9742_v47  ;;  %v10058_v8 = vmul.f32 1.442695, %v10053_v41  ;;  %v10212_v47 = vsub.f32 %v14205_v29, %v14275_v34 }
 0xe25   : >> { %15815 = vst [vmem:[#allocation121_spill] sm:$0xff] %v14348_v37  ;;  %v14353_v58 = vpop.eup %11980  ;;  %12008 = vpow2.f32 %v9899_v28 }
 0xe26   : >> { %15816 = vst [vmem:[#allocation122_spill] sm:$0xff] %v14353_v58  ;;  %v14358_v36 = vpop.eup %11982  ;;  %12010 = vpow2.f32 %v9901_v45  ;;  %v10217_v22 = vmul.f32 1.442695, %v10212_v47  ;;  %v10219_v45 = vmul.f32 1.442695, %v10213_v35 }
 0xe27   : >> { %15817 = vst [vmem:[#allocation123_spill] sm:$0xff] %v14358_v36  ;;  %v14363_v62 = vpop.eup %11984  ;;  %12012 = vpow2.f32 %v10058_v8 }
 0xe28   : >> { %v14368_v48 = vpop.eup %11986  ;;  %12014 = vpow2.f32 %v10060_v33 }
 0xe29   : >> { %15818 = vst [vmem:[#allocation124_spill] sm:$0xff] %v14368_v48  ;;  %v14373_v11 = vpop.eup %11988  ;;  %12016 = vpow2.f32 %v10217_v22 }
 0xe2a   : >> { %v14378_v59 = vpop.eup %11990  ;;  %12018 = vpow2.f32 %v10219_v45 }
 0xe2b   : >> { %15819 = vst [vmem:[#allocation125_spill] sm:$0xff] %v14378_v59  ;;  %v14383_v1 = vpop.eup %11992 }
 0xe2c   : >> { %v14388_v25 = vpop.eup %11994 }
 0xe2d   : >> { %15820 = vst [vmem:[#allocation126_spill] sm:$0xff] %v14388_v25  ;;  %v14393_v9 = vpop.eup %11996 }
 0xe2e   : >> { %v14398_v46 = vpop.eup %11998 }
 0xe2f   : >> { %8688 = vperm.xlu1 %11865, %v14318_v27   ;;  %15821 = vst [vmem:[#allocation127_spill] sm:$0xff] %v14398_v46  ;;  %v14403_v20 = vpop.eup %12000 }
 0xe30   : >> { %v14408_v0 = vpop.eup %12002 }
 0xe31   : >> { %15822 = vst [vmem:[#allocation128_spill] sm:$0xff] %v14408_v0  ;;  %v14413_v52 = vpop.eup %12004 }
 0xe32   : >> { %v14418_v30 = vpop.eup %12006 }
 0xe33   : >> { %8693 = vperm.xlu1 %11865, %v14323_v42   ;;  %15823 = vst [vmem:[#allocation129_spill] sm:$0xff] %v14418_v30  ;;  %v14423_v32 = vpop.eup %12008 }
 0xe34   : >> { %v14428_v41 = vpop.eup %12010 }
 0xe35   : >> { %15825 = vst [vmem:[#allocation131_spill] sm:$0xff] %v14428_v41  ;;  %v14431_v29 = vpop.eup %12012 }
 0xe36   : >> { %v14438_v8 = vpop.eup %12014 }
 0xe37   : >> { %8698 = vperm.xlu1 %11865, %v14328_v21   ;;  %15827 = vst [vmem:[#allocation133_spill] sm:$0xff] %v14438_v8  ;;  %v14443_v47 = vpop.eup %12016 }
 0xe38   : >> { %v14448_v45 = vpop.eup %12018 }
 0xe39   : >> { %15830 = vst [vmem:[#allocation136_spill] sm:$0xff] %v14448_v45 }
 0xe3b   : >> { %8707 = vperm.xlu1 %11865, %v14333_v26  }
 0xe3f   : >> { %8712 = vperm.xlu1 %11865, %v14338_v15  }
 0xe43   : >> { %8717 = vperm.xlu1 %11865, %v14343_v17  }
 0xe47   : >> { %8722 = vperm.xlu1 %11865, %v14348_v37   ;;  %v14426_v28 = vpop.permute.xlu0 %10259 }
 0xe48   : >> { %15824 = vst [vmem:[#allocation130_spill] sm:$0xff] %v14426_v28 }
 0xe4b   : >> { %8846 = vperm.xlu1 %11865, %v14353_v58   ;;  %v14433_v44 = vpop.permute.xlu0 %10263 }
 0xe4c   : >> { %15826 = vst [vmem:[#allocation132_spill] sm:$0xff] %v14433_v44 }
 0xe4f   : >> { %8856 = vperm.xlu1 %11865, %v14358_v36  }
 0xe53   : >> { %9010 = vperm.xlu1 %11865, %v14363_v62  }
 0xe57   : >> { %9015 = vperm.xlu1 %11865, %v14368_v48  }
 0xe5b   : >> { %9169 = vperm.xlu1 %11865, %v14373_v11  }
 0xe5c   : >> { %v14436_v13 = vpop.permute.xlu1 %10261 }
 0xe5f   : >> { %9174 = vperm.xlu1 %11865, %v14378_v59  }
 0xe60   : >> { %v14445_v22 = vpop.permute.xlu1 %10265 }
 0xe61   : >> { %15829 = vst [vmem:[#allocation135_spill] sm:$0xff] %v14445_v22 }
 0xe63   : >> { %9328 = vperm.xlu1 %11865, %v14383_v1  }
 0xe65   : >> { %v14440_v33 = vpop.permute.xlu0 %10304 }
 0xe66   : >> { %15828 = vst [vmem:[#allocation134_spill] sm:$0xff] %v14440_v33 }
 0xe67   : >> { %9333 = vperm.xlu1 %11865, %v14388_v25  }
 0xe6b   : >> { %9487 = vperm.xlu1 %11865, %v14393_v9  }
 0xe6d   : >> { %v14450_v60 = vpop.permute.xlu1 %10300 }
 0xe6e   : >> { %15831 = vst [vmem:[#allocation137_spill] sm:$0xff] %v14450_v60 }
 0xe6f   : >> { %9492 = vperm.xlu1 %11865, %v14398_v46  }
 0xe71   : >> { %v14458_v24 = vpop.permute.xlu1 %10308 }
 0xe72   : >> { %15832 = vst [vmem:[#allocation138_spill] sm:$0xff] %v14458_v24 }
 0xe73   : >> { %9646 = vperm.xlu1 %11865, %v14403_v20  }
 0xe75   : >> { %v14463_v22 = vpop.permute.xlu1 %10312 }
 0xe76   : >> { %15833 = vst [vmem:[#allocation139_spill] sm:$0xff] %v14463_v22 }
 0xe77   : >> { %9651 = vperm.xlu1 %11865, %v14408_v0  }
 0xe7b   : >> { %9805 = vperm.xlu1 %11865, %v14413_v52  }
 0xe7f   : >> { %9810 = vperm.xlu1 %11865, %v14418_v30  }
 0xe83   : >> { %9964 = vperm.xlu1 %11865, %v14423_v32  }
 0xe87   : >> { %9969 = vperm.xlu1 %11865, %v14428_v41  }
 0xe8b   : >> { %10123 = vperm.xlu1 %11865, %v14431_v29  }
 0xe8f   : >> { %10128 = vperm.xlu1 %11865, %v14438_v8  }
 0xe92   : >> { %v10339_v35 = vpop.xlane.xlu0 %10338 }
 0xe93   : >> { %10282 = vperm.xlu1 %11865, %v14443_v47   ;;  %v10346_v12 = vsel %vm8637_vm0, %v10339_v35, -1e+30 }
 0xe96   : >> { %v10343_v55 = vpop.xlane.xlu0 %10342 }
 0xe97   : >> { %10287 = vperm.xlu1 %11865, %v14448_v45   ;;  %v10348_v57 = vsel %vm8639_vm3, %v10343_v55, -1e+30 }
 0xe9a   : >> { %v10345_v33 = vpop.xlane.xlu0 %10344 }
 0xe9b   : >> { %10354 = vrot.lane.b32.xlu1 %v10346_v12, %s12233_s30  ;;  %v10349_v60 = vsel %vm8640_vm2, %v10345_v33, -1e+30 }
 0xe9f   : >> { %10358 = vrot.lane.b32.xlu1 %v10348_v57, %s12233_s30 }
 0xea3   : >> { %10360 = vrot.lane.b32.xlu1 %v10349_v60, %s12233_s30 }
 0xea7   : >> { %v10341_v44 = vpop.xlane.xlu1 %10340 }
 0xea8   : >> { %v10347_v35 = vsel %vm8638_vm1, %v10341_v44, -1e+30 }
 0xea9   : >> { %10356 = vrot.lane.b32.xlu0 %v10347_v35, %s12233_s30 }
 0xeab   : >> { %v14469_v45 = vpop.permute.xlu1 %8688 }
 0xeac   : >> { %15834 = vst [vmem:[#allocation140_spill] sm:$0xff] %v14469_v45 }
 0xeaf   : >> { %v14471_v55 = vpop.permute.xlu1 %8693 }
 0xeb0   : >> { %15835 = vst [vmem:[#allocation141_spill] sm:$0xff] %v14471_v55 }
 0xeb3   : >> { %v14473_v24 = vpop.permute.xlu1 %8698 }
 0xeb4   : >> { %15836 = vst [vmem:[#allocation142_spill] sm:$0xff] %v14473_v24 }
 0xeb7   : >> { %v14475_v28 = vpop.permute.xlu1 %8707 }
 0xeb8   : >> { %15837 = vst [vmem:[#allocation143_spill] sm:$0xff] %v14475_v28 }
 0xebb   : >> { %v14477_v8 = vpop.permute.xlu1 %8712 }
 0xebc   : >> { %15838 = vst [vmem:[#allocation144_spill] sm:$0xff] %v14477_v8 }
 0xebf   : >> { %v14479_v33 = vpop.permute.xlu1 %8717 }
 0xec0   : >> { %15839 = vst [vmem:[#allocation145_spill] sm:$0xff] %v14479_v33 }
 0xec3   : >> { %v14481_v22 = vpop.permute.xlu1 %8722 }
 0xec4   : >> { %15840 = vst [vmem:[#allocation146_spill] sm:$0xff] %v14481_v22 }
 0xec7   : >> { %v14483_v41 = vpop.permute.xlu1 %8846 }
 0xec8   : >> { %15841 = vst [vmem:[#allocation147_spill] sm:$0xff] %v14483_v41 }
 0xecb   : >> { %v14485_v30 = vpop.permute.xlu1 %8856 }
 0xecc   : >> { %15842 = vst [vmem:[#allocation148_spill] sm:$0xff] %v14485_v30 }
 0xecf   : >> { %v14487_v44 = vpop.permute.xlu1 %9010 }
 0xed0   : >> { %15843 = vst [vmem:[#allocation149_spill] sm:$0xff] %v14487_v44 }
 0xed3   : >> { %v14489_v0 = vpop.permute.xlu1 %9015 }
 0xed4   : >> { %15844 = vst [vmem:[#allocation150_spill] sm:$0xff] %v14489_v0 }
 0xed7   : >> { %v14491_v45 = vpop.permute.xlu1 %9169 }
 0xed8   : >> { %15845 = vst [vmem:[#allocation151_spill] sm:$0xff] %v14491_v45 }
 0xedb   : >> { %v14493_v55 = vpop.permute.xlu1 %9174 }
 0xedc   : >> { %15846 = vst [vmem:[#allocation152_spill] sm:$0xff] %v14493_v55 }
 0xedf   : >> { %v14495_v24 = vpop.permute.xlu1 %9328 }
 0xee0   : >> { %15847 = vst [vmem:[#allocation153_spill] sm:$0xff] %v14495_v24 }
 0xee3   : >> { %v14497_v28 = vpop.permute.xlu1 %9333 }
 0xee4   : >> { %15848 = vst [vmem:[#allocation154_spill] sm:$0xff] %v14497_v28 }
 0xee7   : >> { %v14499_v8 = vpop.permute.xlu1 %9487 }
 0xee8   : >> { %15849 = vst [vmem:[#allocation155_spill] sm:$0xff] %v14499_v8 }
 0xeeb   : >> { %v14501_v33 = vpop.permute.xlu1 %9492 }
 0xeec   : >> { %15850 = vst [vmem:[#allocation156_spill] sm:$0xff] %v14501_v33 }
 0xeef   : >> { %v14503_v22 = vpop.permute.xlu1 %9646 }
 0xef0   : >> { %15851 = vst [vmem:[#allocation157_spill] sm:$0xff] %v14503_v22 }
 0xef3   : >> { %v14505_v41 = vpop.permute.xlu1 %9651 }
 0xef4   : >> { %15852 = vst [vmem:[#allocation158_spill] sm:$0xff] %v14505_v41 }
 0xef7   : >> { %v14507_v30 = vpop.permute.xlu1 %9805 }
 0xef8   : >> { %15853 = vst [vmem:[#allocation159_spill] sm:$0xff] %v14507_v30 }
 0xefb   : >> { %v14509_v44 = vpop.permute.xlu1 %9810 }
 0xefc   : >> { %15854 = vst [vmem:[#allocation160_spill] sm:$0xff] %v14509_v44 }
 0xeff   : >> { %v14511_v0 = vpop.permute.xlu1 %9964 }
 0xf00   : >> { %15855 = vst [vmem:[#allocation161_spill] sm:$0xff] %v14511_v0 }
 0xf03   : >> { %v14513_v45 = vpop.permute.xlu1 %9969 }
 0xf04   : >> { %15856 = vst [vmem:[#allocation162_spill] sm:$0xff] %v14513_v45 }
 0xf07   : >> { %v14515_v55 = vpop.permute.xlu1 %10123 }
 0xf08   : >> { %15857 = vst [vmem:[#allocation163_spill] sm:$0xff] %v14515_v55 }
 0xf0b   : >> { %v14517_v24 = vpop.permute.xlu1 %10128 }
 0xf0c   : >> { %15858 = vst [vmem:[#allocation164_spill] sm:$0xff] %v14517_v24 }
 0xf0f   : >> { %v14519_v28 = vpop.permute.xlu1 %10282 }
 0xf10   : >> { %15859 = vst [vmem:[#allocation165_spill] sm:$0xff] %v14519_v28 }
 0xf13   : >> { %v14521_v8 = vpop.permute.xlu1 %10287 }
 0xf14   : >> { %15860 = vst [vmem:[#allocation166_spill] sm:$0xff] %v14521_v8 }
 0xf17   : >> { %v10355_v33 = vpop.permute.xlu1 %10354 }
 0xf18   : >> { %v14524_v22 = vmax.f32 %v14267_v4, %v10355_v33 }
 0xf1a   : >> { %15861 = vst [vmem:[#allocation167_spill] sm:$0xff] %v14524_v22  ;;  %10386 = vrot.lane.b32.xlu0 %v14524_v22, %s12234_s6 }
 0xf1b   : >> { %v10359_v44 = vpop.permute.xlu1 %10358  ;;  %v10357_v41 = vpop.permute.xlu0 %10356 }
 0xf1c   : >> { %v14528_v0 = vmax.f32 %v14271_v5, %v10359_v44  ;;  %v14531_v45 = vmax.f32 %v14275_v34, %v10357_v41 }
 0xf1e   : >> { %10390 = vrot.lane.b32.xlu0 %v14528_v0, %s12234_s6  ;;  %10388 = vrot.lane.b32.xlu1 %v14531_v45, %s12234_s6  ;;  %v10371_v4 = vsub.f32 %v14275_v34, %v14531_v45 }
 0xf1f   : >> { %v10361_v8 = vpop.permute.xlu1 %10360 }
 0xf20   : >> { %v14536_v24 = vmax.f32 %v14279_v54, %v10361_v8  ;;  %v10376_v54 = vmul.f32 1.442695, %v10371_v4 }
 0xf22   : >> { %15862 = vst [vmem:[#allocation168_spill] sm:$0xff] %v14536_v24  ;;  %10392 = vrot.lane.b32.xlu1 %v14536_v24, %s12234_s6 }
 0xf8c   : >> { %v10387_v33 = vpop.permute.xlu0 %10386 }
 0xf8d   : >> { %v10398_v28 = vsub.f32 %v10346_v12, %v10387_v33 }
 0xf8f   : >> { %v10402_v55 = vmul.f32 1.442695, %v10398_v28 }
 0xf90   : >> { %v10389_v30 = vpop.permute.xlu1 %10388  ;;  %v10391_v46 = vpop.permute.xlu0 %10390 }
 0xf91   : >> { %12020 = vpow2.f32 %v10402_v55  ;;  %v10399_v44 = vsub.f32 %v10347_v35, %v10389_v30  ;;  %v10400_v5 = vsub.f32 %v10348_v57, %v10391_v46  ;;  %v14572_v46 = vld [vmem:[%s13404_s27 + $0xd00] sm:$0xff]   ;;  %v14579_v35 = vld [vmem:[%s13404_s27 + $0xd08] sm:$0xff]  }
 0xf92   : >> { %15865 = vst [vmem:[#allocation171_spill] sm:$0xff] %v14572_v46  ;;  %v15643_v28 = vunpack.c.l.bf16 %v14572_v46  ;;  %15866 = vst [vmem:[#allocation172_spill] sm:$0xff] %v14579_v35  ;;  %v15646_v33 = vunpack.c.l.bf16 %v14579_v35  ;;  %v15657_v59 = vunpack.c.h.bf16 %v14579_v35 }
 0xf93   : >> { %v10404_v41 = vmul.f32 1.442695, %v10399_v44  ;;  %v10406_v37 = vmul.f32 1.442695, %v10400_v5 }
 0xf94   : >> { %v10393_v25 = vpop.permute.xlu1 %10392  ;;  %v10652_v55 = vmul.f32 %v15643_v28, %v13437_v18 }
 0xf95   : >> { %12022 = vpow2.f32 %v10404_v41  ;;  %v10401_v21 = vsub.f32 %v10349_v60, %v10393_v25  ;;  %v14587_v41 = vld [vmem:[%s13404_s27 + $0xe00] sm:$0xff]  }
 0xf96   : >> { %12024 = vpow2.f32 %v10406_v37  ;;  %15867 = vst [vmem:[#allocation173_spill] sm:$0xff] %v14587_v41 }
 0xf97   : >> { %v10408_v8 = vmul.f32 1.442695, %v10401_v21  ;;  %v14565_v21 = vld [vmem:[%s13404_s27 + $0xc08] sm:$0xff]  }
 0xf98   : >> { %15864 = vst [vmem:[#allocation170_spill] sm:$0xff] %v14565_v21  ;;  %v15644_v25 = vunpack.c.l.bf16 %v14565_v21  ;;  %v15654_v28 = vunpack.c.h.bf16 %v14565_v21  ;;  %v14620_v21 = vld [vmem:[%s13404_s27 + $0xf08] sm:$0xff]  }
 0xf99   : >> { %12026 = vpow2.f32 %v10408_v8  ;;  %v10654_v8 = vmul.f32 %v15646_v33, %v13428_v14  ;;  %15870 = vst [vmem:[#allocation176_spill] sm:$0xff] %v14620_v21 }
 0xf9a   : >> { %12028 = vpow2.f32 %v10376_v54  ;;  %v14561_v54 = vld [vmem:[%s13404_s27 + $0xc00] sm:$0xff]   ;;  %v10495_v30 = vmul.f32 %v15644_v25, %v13428_v14  ;;  %v14598_v25 = vld [vmem:[%s13404_s27 + $0xe08] sm:$0xff]   ;;  %v10496_v33 = vmul.f32 %v15654_v28, %v13443_v19  ;;  %v15658_v28 = vunpack.c.l.bf16 %v14620_v21 }
 0xf9b   : >> { %15863 = vst [vmem:[#allocation169_spill] sm:$0xff] %v14561_v54  ;;  %v15645_v60 = vunpack.c.h.bf16 %v14561_v54  ;;  %v15647_v44 = vunpack.c.l.bf16 %v14561_v54  ;;  %15868 = vst [vmem:[#allocation174_spill] sm:$0xff] %v14598_v25  ;;  %v14609_v54 = vld [vmem:[%s13404_s27 + $0xf00] sm:$0xff]   ;;  %s12236_s27 = smov 116  }
 0xf9c   : >> { %15869 = vst [vmem:[#allocation175_spill] sm:$0xff] %v14609_v54 }
 0xf9d   : >> { %v10494_v37 = vmul.f32 %v15645_v60, %v13456_v23  ;;  %v15655_v60 = vunpack.c.l.bf16 %v14598_v25 }
 0xf9e   : >> { %v14541_v12 = vpop.eup %12020 }
 0xf9f   : >> { %10418 = vrot.lane.b32.xlu0 %v14541_v12, %s12233_s30 }
 0xfa2   : >> { %v14545_v5 = vpop.eup %12022 }
 0xfa3   : >> { %v14547_v57 = vpop.eup %12024  ;;  %10420 = vrot.lane.b32.xlu1 %v14545_v5, %s12233_s30 }
 0xfa4   : >> { %10422 = vrot.lane.b32.xlu0 %v14547_v57, %s12233_s30 }
 0xfa6   : >> { %v14553_v4 = vpop.eup %12026 }
 0xfa7   : >> { %10424 = vrot.lane.b32.xlu1 %v14553_v4, %s12233_s30  ;;  %v14557_v34 = vpop.eup %12028  ;;  %s15423_s30 = scalar_lea.vmem %s8562_s20, %s13383_s14  ;;  %s11292_s14 = scalar_lea.vmem %s13372_s7, %s12200_s9 }
 0xfa8   : >> { %s8582_s9 = sadd.s32 1, %s12200_s9  }
 0xfa9   : >> { %p8579_p10 = scmp.ge.s32.totalorder %s8582_s9, 16  }
 0xfab   : >> { %10441 = vperm.xlu1 %11865, %v14557_v34  }
 0xfc3   : >> { %10499 = vadd.xlane.f32.xlu0 %v10494_v37  ;;  %v10493_v37 = vmul.f32 %v15647_v44, %v13437_v18  ;;  %v15656_v44 = vunpack.c.h.bf16 %v14572_v46 }
 0xfc7   : >> { %10501 = vadd.xlane.f32.xlu0 %v10495_v30  ;;  %v15650_v30 = vunpack.c.l.bf16 %v14587_v41 }
 0xfcb   : >> { %10656 = vadd.xlane.f32.xlu0 %v10652_v55  ;;  %v10811_v55 = vmul.f32 %v15650_v30, %v13437_v18  ;;  %v10653_v30 = vmul.f32 %v15656_v44, %v13456_v23  ;;  %v10972_v44 = vmul.f32 %v15658_v28, %v13428_v14 }
 0xfcf   : >> { %10660 = vadd.xlane.f32.xlu0 %v10654_v8  ;;  %10497 = vadd.xlane.f32.xlu1 %v10493_v37  ;;  %v10813_v8 = vmul.f32 %v15655_v60, %v13428_v14  ;;  %v15660_v37 = vunpack.c.l.bf16 %v14609_v54  ;;  %v15663_v60 = vunpack.c.h.bf16 %v14587_v41 }
 0xfd3   : >> { %10815 = vadd.xlane.f32.xlu0 %v10811_v55  ;;  %10503 = vadd.xlane.f32.xlu1 %v10496_v33  ;;  %v10970_v55 = vmul.f32 %v15660_v37, %v13437_v18  ;;  %v10655_v33 = vmul.f32 %v15657_v59, %v13443_v19  ;;  %v15659_v18 = vunpack.c.h.bf16 %v14598_v25  ;;  %v15662_v59 = vunpack.c.h.bf16 %v14609_v54 }
 0xfd5   : >> { %v10971_v14 = vmul.f32 %v15662_v59, %v13456_v23 }
 0xfd7   : >> { %10819 = vadd.xlane.f32.xlu0 %v10813_v8  ;;  %10658 = vadd.xlane.f32.xlu1 %v10653_v30  ;;  %v10812_v8 = vmul.f32 %v15663_v60, %v13456_v23  ;;  %v10814_v30 = vmul.f32 %v15659_v18, %v13443_v19 }
 0xfdb   : >> { %10974 = vadd.xlane.f32.xlu0 %v10970_v55  ;;  %10662 = vadd.xlane.f32.xlu1 %v10655_v33  ;;  %v15661_v55 = vunpack.c.h.bf16 %v14620_v21 }
 0xfdd   : >> { %v10973_v33 = vmul.f32 %v15661_v55, %v13443_v19 }
 0xfdf   : >> { %10978 = vadd.xlane.f32.xlu0 %v10972_v44  ;;  %10817 = vadd.xlane.f32.xlu1 %v10812_v8  ;;  %v12235_v44 = vmov 11  }
 0xfe0   : >> { %11867 = vset.pattern.permute.xlu0 %v12235_v44  ;;  %11866 = vset.pattern.permute.xlu1 %v12235_v44 }
 0xfe3   : >> { %10821 = vadd.xlane.f32.xlu1 %v10814_v30 }
 0xfe7   : >> { %10976 = vadd.xlane.f32.xlu1 %v10971_v14 }
 0xfeb   : >> { %10980 = vadd.xlane.f32.xlu1 %v10973_v33 }
0x1011   : >> { %v14648_v8 = vpop.permute.xlu0 %10418 }
0x1012   : >> { %15871 = vst [vmem:[#allocation177_spill] sm:$0xff] %v14648_v8 }
0x1015   : >> { %v14652_v30 = vpop.permute.xlu1 %10420 }
0x1016   : >> { %v14650_v28 = vpop.permute.xlu0 %10422 }
0x1017   : >> { %15872 = vst [vmem:[#allocation178_spill] sm:$0xff] %v14650_v28 }
0x1019   : >> { %v14654_v37 = vpop.permute.xlu1 %10424 }
0x101a   : >> { %15873 = vst [vmem:[#allocation179_spill] sm:$0xff] %v14654_v37 }
0x1026   : >> { %v14662_v19 = vpop.permute.xlu1 %10441 }
0x1027   : >> { %15874 = vst [vmem:[#allocation180_spill] sm:$0xff] %v14662_v19 }
0x104c   : >> { %v10500_v18 = vpop.xlane.xlu0 %10499 }
0x1050   : >> { %v10502_v23 = vpop.xlane.xlu0 %10501 }
0x1051   : >> { %v14658_v14 = vsel %vm8639_vm3, %v10502_v23, -1e+30 }
0x1052   : >> { %10517 = vrot.lane.b32.xlu0 %v14658_v14, %s12236_s27 }
0x1054   : >> { %v10657_v33 = vpop.xlane.xlu0 %10656 }
0x1055   : >> { %v14666_v44 = vsel %vm8637_vm0, %v10657_v33, -1e+30  ;;  %v14684_v33 = vsel %vm8638_vm1, %v10500_v18, -1e+30 }
0x1056   : >> { %10672 = vrot.lane.b32.xlu0 %v14666_v44, %s12237_s13 }
0x1058   : >> { %v10661_v55 = vpop.xlane.xlu0 %10660  ;;  %v10498_v59 = vpop.xlane.xlu1 %10497 }
0x1059   : >> { %v14672_v23 = vsel %vm8639_vm3, %v10661_v55, -1e+30  ;;  %v14676_v60 = vsel %vm8637_vm0, %v10498_v59, -1e+30 }
0x105a   : >> { %10676 = vrot.lane.b32.xlu0 %v14672_v23, %s12237_s13  ;;  %10513 = vrot.lane.b32.xlu1 %v14676_v60, %s12236_s27 }
0x105c   : >> { %v10816_v21 = vpop.xlane.xlu0 %10815  ;;  %v10504_v25 = vpop.xlane.xlu1 %10503 }
0x105d   : >> { %v14688_v55 = vsel %vm8637_vm0, %v10816_v21, -1e+30  ;;  %v14696_v59 = vsel %vm8640_vm2, %v10504_v25, -1e+30 }
0x105e   : >> { %10831 = vrot.lane.b32.xlu0 %v14688_v55, %s12238_s11  ;;  %10515 = vrot.lane.b32.xlu1 %v14684_v33, %s12236_s27 }
0x1060   : >> { %v10820_v35 = vpop.xlane.xlu0 %10819  ;;  %v10659_v18 = vpop.xlane.xlu1 %10658 }
0x1061   : >> { %v14700_v54 = vsel %vm8639_vm3, %v10820_v35, -1e+30  ;;  %v14708_v21 = vsel %vm8638_vm1, %v10659_v18, -1e+30 }
0x1062   : >> { %15875 = vst [vmem:[#allocation181_spill] sm:$0xff] %v14700_v54  ;;  %10835 = vrot.lane.b32.xlu0 %v14700_v54, %s12238_s11  ;;  %10519 = vrot.lane.b32.xlu1 %v14696_v59, %s12236_s27 }
0x1064   : >> { %v10975_v41 = vpop.xlane.xlu0 %10974  ;;  %v10663_v46 = vpop.xlane.xlu1 %10662 }
0x1065   : >> { %v14712_v25 = vsel %vm8637_vm0, %v10975_v41, -1e+30  ;;  %v14720_v35 = vsel %vm8640_vm2, %v10663_v46, -1e+30 }
0x1066   : >> { %15876 = vst [vmem:[#allocation182_spill] sm:$0xff] %v14712_v25  ;;  %10990 = vrot.lane.b32.xlu0 %v14712_v25, %s12239_s15  ;;  %10674 = vrot.lane.b32.xlu1 %v14708_v21, %s12237_s13 }
0x1068   : >> { %v10979_v19 = vpop.xlane.xlu0 %10978  ;;  %v10818_v18 = vpop.xlane.xlu1 %10817 }
0x1069   : >> { %v14724_v37 = vsel %vm8639_vm3, %v10979_v19, -1e+30  ;;  %v14732_v49 = vsel %vm8638_vm1, %v10818_v18, -1e+30 }
0x106a   : >> { %15877 = vst [vmem:[#allocation183_spill] sm:$0xff] %v14724_v37  ;;  %10994 = vrot.lane.b32.xlu0 %v14724_v37, %s12239_s15  ;;  %10678 = vrot.lane.b32.xlu1 %v14720_v35, %s12237_s13  ;;  %15878 = vst [vmem:[#allocation184_spill] sm:$0xff] %v14732_v49 }
0x106c   : >> { %v10822_v41 = vpop.xlane.xlu1 %10821 }
0x106d   : >> { %v14739_v56 = vsel %vm8640_vm2, %v10822_v41, -1e+30 }
0x106e   : >> { %10463 = vperm.xlu0 %11867, %v14545_v5   ;;  %10833 = vrot.lane.b32.xlu1 %v14732_v49, %s12238_s11  ;;  %15879 = vst [vmem:[#allocation185_spill] sm:$0xff] %v14739_v56 }
0x1070   : >> { %v10977_v46 = vpop.xlane.xlu1 %10976 }
0x1071   : >> { %v14745_v19 = vsel %vm8638_vm1, %v10977_v46, -1e+30 }
0x1072   : >> { %10837 = vrot.lane.b32.xlu1 %v14739_v56, %s12238_s11  ;;  %15880 = vst [vmem:[#allocation186_spill] sm:$0xff] %v14745_v19 }
0x1074   : >> { %v10981_v18 = vpop.xlane.xlu1 %10980 }
0x1075   : >> { %v14751_v5 = vsel %vm8640_vm2, %v10981_v18, -1e+30 }
0x1076   : >> { %10992 = vrot.lane.b32.xlu1 %v14745_v19, %s12239_s15  ;;  %15881 = vst [vmem:[#allocation187_spill] sm:$0xff] %v14751_v5 }
0x107a   : >> { %10996 = vrot.lane.b32.xlu1 %v14751_v5, %s12239_s15 }
0x107e   : >> { %10459 = vperm.xlu1 %11866, %v14541_v12  }
0x1082   : >> { %10467 = vperm.xlu1 %11866, %v14547_v57  }
0x1086   : >> { %10471 = vperm.xlu1 %11866, %v14553_v4  }
0x108a   : >> { %11868 = vset.pattern.permute.xlu1 %v15882_v51 }
0x10c4   : >> { %v10518_v28 = vpop.permute.xlu0 %10517 }
0x10c5   : >> { %v14764_v18 = vmax.f32 %v14528_v0, %v10518_v28 }
0x10c8   : >> { %v10673_v28 = vpop.permute.xlu0 %10672 }
0x10cc   : >> { %v10514_v41 = vpop.permute.xlu1 %10513  ;;  %v10677_v36 = vpop.permute.xlu0 %10676 }
0x10cd   : >> { %v14760_v46 = vmax.f32 %v14524_v22, %v10514_v41  ;;  %v15690_v41 = vmov 12  }
0x10ce   : >> { %11870 = vset.pattern.permute.xlu0 %v15690_v41 }
0x10cf   : >> { %10545 = vrot.lane.b32.xlu0 %v14760_v46, %s12240_s17 }
0x10d0   : >> { %v10516_v53 = vpop.permute.xlu1 %10515  ;;  %v10832_v58 = vpop.permute.xlu0 %10831 }
0x10d1   : >> { %v14767_v12 = vmax.f32 %v14531_v45, %v10516_v53 }
0x10d3   : >> { %10547 = vrot.lane.b32.xlu1 %v14767_v12, %s12240_s17  ;;  %10549 = vrot.lane.b32.xlu0 %v14764_v18, %s12240_s17 }
0x10d4   : >> { %v10520_v57 = vpop.permute.xlu1 %10519  ;;  %v10836_v26 = vpop.permute.xlu0 %10835 }
0x10d5   : >> { %v14772_v4 = vmax.f32 %v14536_v24, %v10520_v57 }
0x10d7   : >> { %10551 = vrot.lane.b32.xlu1 %v14772_v4, %s12240_s17 }
0x10d8   : >> { %v10675_v8 = vpop.permute.xlu1 %10674  ;;  %v10991_v31 = vpop.permute.xlu0 %10990 }
0x10dc   : >> { %v10679_v22 = vpop.permute.xlu1 %10678  ;;  %v10995_v57 = vpop.permute.xlu0 %10994 }
0x10e0   : >> { %v10834_v48 = vpop.permute.xlu1 %10833 }
0x10e4   : >> { %v10838_v53 = vpop.permute.xlu1 %10837 }
0x10e8   : >> { %v10993_v17 = vpop.permute.xlu1 %10992 }
0x10e9   : >> { %v14780_v63 = vpop.permute.xlu0 %10463 }
0x10ea   : >> { %15885 = vst [vmem:[#allocation190_spill] sm:$0xff] %v14780_v63 }
0x10ec   : >> { %v10997_v42 = vpop.permute.xlu1 %10996 }
0x10f9   : >> { %v14776_v6 = vpop.permute.xlu1 %10459 }
0x10fa   : >> { %15883 = vst [vmem:[#allocation188_spill] sm:$0xff] %v14776_v6  ;;  %v14788_v6 = vmax.f32 %v14760_v46, %v10673_v28 }
0x10fd   : >> { %v14778_v24 = vpop.permute.xlu1 %10467 }
0x10fe   : >> { %15884 = vst [vmem:[#allocation189_spill] sm:$0xff] %v14778_v24 }
0x1101   : >> { %v14782_v5 = vpop.permute.xlu1 %10471 }
0x1141   : >> { %v10546_v41 = vpop.permute.xlu0 %10545 }
0x1142   : >> { %v10557_v19 = vsub.f32 %v14676_v60, %v10546_v41  ;;  %v14793_v60 = vmax.f32 %v14764_v18, %v10677_v36 }
0x1144   : >> { %v10561_v37 = vmul.f32 1.442695, %v10557_v19 }
0x1145   : >> { %v10548_v56 = vpop.permute.xlu1 %10547  ;;  %v10550_v63 = vpop.permute.xlu0 %10549 }
0x1146   : >> { %12030 = vpow2.f32 %v10561_v37  ;;  %v10558_v25 = vsub.f32 %v14684_v33, %v10548_v56  ;;  %v14796_v37 = vmax.f32 %v14767_v12, %v10675_v8  ;;  %v10559_v33 = vsub.f32 %v14658_v14, %v10550_v63 }
0x1147   : >> { %v14805_v56 = vmax.f32 %v14772_v4, %v10679_v22  ;;  %v10530_v63 = vsub.f32 %v14531_v45, %v14767_v12  ;;  %v14813_v8 = vmax.f32 %v14793_v60, %v10836_v26  ;;  %v10531_v14 = vsub.f32 %v14528_v0, %v14764_v18 }
0x1148   : >> { %v10563_v49 = vmul.f32 1.442695, %v10558_v25  ;;  %v10565_v19 = vmul.f32 1.442695, %v10559_v33 }
0x1149   : >> { %v10552_v25 = vpop.permute.xlu1 %10551  ;;  %v14826_v45 = vmax.f32 %v14805_v56, %v10838_v53  ;;  %v10537_v26 = vmul.f32 1.442695, %v10531_v14 }
0x114a   : >> { %12032 = vpow2.f32 %v10563_v49  ;;  %v14802_v49 = vmax.f32 %v14788_v6, %v10832_v58  ;;  %v10560_v36 = vsub.f32 %v14696_v59, %v10552_v25  ;;  %v14816_v58 = vmax.f32 %v14796_v37, %v10834_v48 }
0x114b   : >> { %12034 = vpow2.f32 %v10565_v19  ;;  %v10535_v59 = vmul.f32 1.442695, %v10530_v63  ;;  %v14831_v48 = vmax.f32 %v14813_v8, %v10995_v57  ;;  %v15886_v19 = vmov 12  }
0x114c   : >> { %v10567_v22 = vmul.f32 1.442695, %v10560_v36  ;;  %v14823_v41 = vmax.f32 %v14802_v49, %v10991_v31  ;;  %v14834_v28 = vmax.f32 %v14816_v58, %v10993_v17  ;;  %v14839_v31 = vmax.f32 %v14826_v45, %v10997_v42 }
0x114d   : >> { %v12245_v17 = vmov 13   ;;  %v8781_v42 = vsub.f32 %v13669_v38, %v13683_v16 }
0x114e   : >> { %12036 = vpow2.f32 %v10567_v22 }
0x114f   : >> { %12038 = vpow2.f32 %v10535_v59  ;;  %v8786_v36 = vmul.f32 1.442695, %v8781_v42 }
0x1150   : >> { %12040 = vpow2.f32 %v10537_v26 }
0x1151   : >> { %12042 = vpow2.f32 %v8786_v36 }
0x1153   : >> { %v12031_v54 = vpop.eup %12030 }
0x1154   : >> { %10577 = vrot.lane.b32.xlu0 %v12031_v54, %s12236_s27 }
0x1157   : >> { %v12033_v24 = vpop.eup %12032 }
0x1158   : >> { %10579 = vrot.lane.b32.xlu1 %v12033_v24, %s12236_s27  ;;  %10704 = vrot.lane.b32.xlu0 %v14788_v6, %s12242_s18  ;;  %v12035_v53 = vpop.eup %12034 }
0x115b   : >> { %v12037_v33 = vpop.eup %12036 }
0x115c   : >> { %10706 = vrot.lane.b32.xlu1 %v14796_v37, %s12242_s18  ;;  %10708 = vrot.lane.b32.xlu0 %v14793_v60, %s12242_s18  ;;  %v12039_v57 = vpop.eup %12038 }
0x115d   : >> { %v14845_v25 = vpop.eup %12040 }
0x115e   : >> { %v14853_v63 = vpop.eup %12042 }
0x1160   : >> { %10710 = vrot.lane.b32.xlu1 %v14805_v56, %s12242_s18  ;;  %10863 = vrot.lane.b32.xlu0 %v14802_v49, %s12243_s24 }
0x1164   : >> { %10865 = vrot.lane.b32.xlu1 %v14816_v58, %s12243_s24  ;;  %10867 = vrot.lane.b32.xlu0 %v14813_v8, %s12243_s24 }
0x1168   : >> { %10869 = vrot.lane.b32.xlu1 %v14826_v45, %s12243_s24  ;;  %11022 = vrot.lane.b32.xlu0 %v14823_v41, %s12244_s26 }
0x116c   : >> { %11024 = vrot.lane.b32.xlu1 %v14834_v28, %s12244_s26  ;;  %11026 = vrot.lane.b32.xlu0 %v14831_v48, %s12244_s26 }
0x1170   : >> { %11028 = vrot.lane.b32.xlu1 %v14839_v31, %s12244_s26  ;;  %10581 = vrot.lane.b32.xlu0 %v12035_v53, %s12236_s27 }
0x1174   : >> { %10583 = vrot.lane.b32.xlu1 %v12037_v33, %s12236_s27  ;;  %10622 = vperm.xlu0 %11870, %v12033_v24   ;;  %v8674_v24 = vmul.f32 0.0, %v14318_v27 }
0x1176   : >> { %v8678_v22 = vadd.f32 %v14338_v15, %v8674_v24 }
0x1178   : >> { %10600 = vperm.xlu1 %11868, %v12039_v57   ;;  %11873 = vset.pattern.permute.xlu0 %v12245_v17  ;;  %v8821_v14 = vmul.f32 %v14853_v63, %v8678_v22 }
0x117a   : >> { %v8841_v59 = vadd.f32 %v13871_v7, %v8821_v14 }
0x117c   : >> { %10605 = vperm.xlu1 %11868, %v14845_v25   ;;  %v8980_v38 = vmul.f32 %v14363_v62, %v8841_v59 }
0x117e   : >> { %v9000_v16 = vadd.f32 %v13861_v3, %v8980_v38 }
0x1180   : >> { %11869 = vset.pattern.permute.xlu1 %v15886_v19 }
0x1181   : >> { %10618 = vperm.xlu1 %11869, %v12031_v54   ;;  %v9139_v54 = vmul.f32 %v14373_v11, %v9000_v16  ;;  %v10689_v11 = vsub.f32 %v14767_v12, %v14796_v37 }
0x1183   : >> { %v9159_v26 = vadd.f32 %v13873_v39, %v9139_v54 }
0x1185   : >> { %10626 = vperm.xlu1 %11869, %v12035_v53   ;;  %v9298_v53 = vmul.f32 %v14383_v1, %v9159_v26 }
0x1187   : >> { %v9318_v27 = vadd.f32 %v13893_v50, %v9298_v53  ;;  %v10694_v50 = vmul.f32 1.442695, %v10689_v11  ;;  %v15889_v11 = vld [vmem:[#allocation182_spill] sm:$0xff] }
0x1189   : >> { %10630 = vperm.xlu1 %11869, %v12037_v33   ;;  %v9457_v33 = vmul.f32 %v14393_v9, %v9318_v27  ;;  %12044 = vpow2.f32 %v10694_v50 }
0x118b   : >> { %v9477_v15 = vadd.f32 %v13962_v43, %v9457_v33  ;;  %v10690_v33 = vsub.f32 %v14764_v18, %v14793_v60 }
0x118d   : >> { %11871 = vset.pattern.permute.xlu1 %v15882_v51  ;;  %v9616_v42 = vmul.f32 %v14403_v20, %v9477_v15 }
0x118f   : >> { %v9636_v7 = vadd.f32 %v14032_v40, %v9616_v42 }
0x1191   : >> { %v9775_v62 = vmul.f32 %v14413_v52, %v9636_v7 }
0x1193   : >> { %v9795_v3 = vadd.f32 %v14102_v2, %v9775_v62  ;;  %v10696_v62 = vmul.f32 1.442695, %v10690_v33  ;;  %v15895_v33 = vld [vmem:[#allocation19_spill] sm:$0xff] }
0x1195   : >> { %v9934_v39 = vmul.f32 %v14423_v32, %v9795_v3  ;;  %v15888_v3 = vld [vmem:[#allocation184_spill] sm:$0xff] }
0x1197   : >> { %v9954_v1 = vadd.f32 %v14172_v61, %v9934_v39 }
0x1199   : >> { %v10093_v9 = vmul.f32 %v14431_v29, %v9954_v1  ;;  %v12045_v29 = vpop.eup %12044 }
0x119b   : >> { %v10113_v43 = vadd.f32 %v14242_v10, %v10093_v9 }
0x119d   : >> { %v10252_v20 = vmul.f32 %v14443_v47, %v10113_v43  ;;  %v15890_v43 = vld [vmem:[#allocation185_spill] sm:$0xff] }
0x119f   : >> { %v10272_v40 = vadd.f32 %v14436_v13, %v10252_v20 }
0x11a1   : >> { %v10411_v52 = vmul.f32 %v14557_v34, %v10272_v40  ;;  %v15891_v40 = vld [vmem:[#allocation183_spill] sm:$0xff] }
0x11a3   : >> { %v10431_v12 = vadd.f32 %v14652_v30, %v10411_v52 }
0x11a5   : >> { %v10570_v19 = vmul.f32 %v12039_v57, %v10431_v12 }
0x11c6   : >> { %v14879_v2 = vpop.permute.xlu0 %10577 }
0x11ca   : >> { %v10580_v32 = vpop.permute.xlu1 %10579  ;;  %v10705_v36 = vpop.permute.xlu0 %10704 }
0x11cb   : >> { %v10590_v61 = vadd.f32 %v10580_v32, %v10570_v19  ;;  %v10716_v24 = vsub.f32 %v14666_v44, %v10705_v36 }
0x11cd   : >> { %v10720_v22 = vmul.f32 1.442695, %v10716_v24  ;;  %v14883_v10 = vmul.f32 %v12045_v29, %v10590_v61  ;;  %v15892_v61 = vld [vmem:[#allocation186_spill] sm:$0xff] }
0x11ce   : >> { %v10707_v14 = vpop.permute.xlu1 %10706  ;;  %v10709_v47 = vpop.permute.xlu0 %10708 }
0x11cf   : >> { %12046 = vpow2.f32 %v10720_v22  ;;  %v10717_v13 = vsub.f32 %v14708_v21, %v10707_v14  ;;  %v10718_v34 = vsub.f32 %v14672_v23, %v10709_v47  ;;  %v15887_v21 = vld [vmem:[#allocation181_spill] sm:$0xff] }
0x11d1   : >> { %v10722_v59 = vmul.f32 1.442695, %v10717_v13  ;;  %v10724_v38 = vmul.f32 1.442695, %v10718_v34  ;;  %v15893_v34 = vld [vmem:[#allocation187_spill] sm:$0xff] }
0x11d2   : >> { %v10711_v30 = vpop.permute.xlu1 %10710  ;;  %v10864_v57 = vpop.permute.xlu0 %10863 }
0x11d3   : >> { %12048 = vpow2.f32 %v10722_v59  ;;  %v10719_v16 = vsub.f32 %v14720_v35, %v10711_v30  ;;  %v10875_v44 = vsub.f32 %v14688_v55, %v10864_v57 }
0x11d4   : >> { %12050 = vpow2.f32 %v10724_v38 }
0x11d5   : >> { %v10726_v54 = vmul.f32 1.442695, %v10719_v16  ;;  %v10879_v26 = vmul.f32 1.442695, %v10875_v44  ;;  %v15894_v44 = vld [vmem:[#allocation18_spill] sm:$0xff] }
0x11d6   : >> { %v10866_v53 = vpop.permute.xlu1 %10865  ;;  %v10868_v27 = vpop.permute.xlu0 %10867 }
0x11d7   : >> { %12052 = vpow2.f32 %v10726_v54  ;;  %v10877_v23 = vsub.f32 %v15887_v21, %v10868_v27  ;;  %v10876_v35 = vsub.f32 %v15888_v3, %v10866_v53  ;;  %v8649_v54 = vsub.f32 -1e+30, %v15894_v44  ;;  %v15896_v21 = vld [vmem:[#allocation17_spill] sm:$0xff]  ;;  %v15898_v3 = vld [vmem:[#allocation20_spill] sm:$0xff] }
0x11d8   : >> { %12054 = vpow2.f32 %v10879_v26 }
0x11d9   : >> { %v10883_v15 = vmul.f32 1.442695, %v10877_v23  ;;  %v10881_v9 = vmul.f32 1.442695, %v10876_v35  ;;  %v8783_v23 = vsub.f32 %v15896_v21, %v15895_v33 }
0x11da   : >> { %v10870_v42 = vpop.permute.xlu1 %10869  ;;  %v11023_v7 = vpop.permute.xlu0 %11022 }
0x11db   : >> { %v11034_v55 = vsub.f32 %v15889_v11, %v11023_v7  ;;  %12056 = vpow2.f32 %v10883_v15  ;;  %v10878_v20 = vsub.f32 %v15890_v43, %v10870_v42  ;;  %v10848_v42 = vsub.f32 %v14796_v37, %v14816_v58 }
0x11dc   : >> { %v14894_v39 = vpop.eup %12046  ;;  %12058 = vpow2.f32 %v10696_v62  ;;  %v12246_v7 = vmov 14   ;;  %v15897_v62 = vld [vmem:[#allocation21_spill] sm:$0xff] }
0x11dd   : >> { %v11038_v1 = vmul.f32 1.442695, %v11034_v55  ;;  %10736 = vrot.lane.b32.xlu0 %v14894_v39, %s12237_s13  ;;  %v10885_v36 = vmul.f32 1.442695, %v10878_v20  ;;  %v8939_v35 = vsub.f32 %v15898_v3, %v15897_v62  ;;  %v10849_v55 = vsub.f32 %v14793_v60, %v14813_v8  ;;  %v15900_v60 = vld [vmem:[#allocation22_spill] sm:$0xff]  ;;  %v15907_v3 = vld [vmem:[#allocation119_spill] sm:$0xff] }
0x11de   : >> { %v11025_v18 = vpop.permute.xlu1 %11024  ;;  %v11027_v50 = vpop.permute.xlu0 %11026 }
0x11df   : >> { %v11036_v52 = vsub.f32 %v15891_v40, %v11027_v50  ;;  %12060 = vpow2.f32 %v11038_v1  ;;  %v11035_v24 = vsub.f32 %v15892_v61, %v11025_v18  ;;  %v10853_v1 = vmul.f32 1.442695, %v10848_v42  ;;  %v15899_v18 = vld [vmem:[#allocation23_spill] sm:$0xff]  ;;  %v15902_v61 = vld [vmem:[#allocation25_spill] sm:$0xff] }
0x11e0   : >> { %v12049_v12 = vpop.eup %12048  ;;  %12062 = vpow2.f32 %v10881_v9  ;;  %v8943_v37 = vmul.f32 1.442695, %v8939_v35  ;;  %v8942_v50 = vsub.f32 %v15895_v33, %v15899_v18  ;;  %v12247_v9 = vmov 15   ;;  %v15905_v33 = vld [vmem:[#allocation117_spill] sm:$0xff] }
0x11e1   : >> { %v14900_v19 = vpop.eup %12050  ;;  %v11042_v32 = vmul.f32 1.442695, %v11036_v52  ;;  %10738 = vrot.lane.b32.xlu1 %v12049_v12, %s12237_s13  ;;  %v11040_v13 = vmul.f32 1.442695, %v11035_v24  ;;  %v10855_v43 = vmul.f32 1.442695, %v10849_v55  ;;  %v9098_v40 = vsub.f32 %v15897_v62, %v15900_v60 }
0x11e2   : >> { %10740 = vrot.lane.b32.xlu0 %v14900_v19, %s12237_s13  ;;  %v11029_v14 = vpop.permute.xlu1 %11028  ;;  %v8949_v20 = vmul.f32 1.442695, %v8942_v50  ;;  %v9257_v24 = vsub.f32 %v15900_v60, %v15902_v61  ;;  %v8675_v21 = vmul.f32 0.0, %v15905_v33  ;;  %v11008_v62 = vsub.f32 %v14813_v8, %v14831_v48  ;;  %v15908_v55 = vld [vmem:[#allocation120_spill] sm:$0xff]  ;;  %v15912_v8 = vld [vmem:[#allocation29_spill] sm:$0xff]  ;;  %v15919_v33 = vld [vmem:[#allocation90_spill] sm:$0xff] }
0x11e3   : >> { %12064 = vpow2.f32 %v11042_v32  ;;  %v11037_v59 = vsub.f32 %v15893_v34, %v11029_v14  ;;  %v15901_v32 = vld [vmem:[#allocation24_spill] sm:$0xff] }
0x11e4   : >> { %v14906_v22 = vpop.eup %12052  ;;  %12066 = vpow2.f32 %v10885_v36  ;;  %v9101_v36 = vsub.f32 %v15899_v18, %v15901_v32  ;;  %v15910_v50 = vld [vmem:[#allocation68_spill] sm:$0xff] }
0x11e5   : >> { %v14908_v47 = vpop.eup %12054  ;;  %10742 = vrot.lane.b32.xlu1 %v14906_v22, %s12237_s13  ;;  %12068 = vpow2.f32 %v11040_v13  ;;  %v11044_v30 = vmul.f32 1.442695, %v11037_v59 }
0x11e6   : >> { %10895 = vrot.lane.b32.xlu0 %v14908_v47, %s12238_s11 }
0x11e7   : >> { %12070 = vpow2.f32 %v11044_v30 }
0x11e8   : >> { %v14915_v38 = vpop.eup %12056 }
0x11e9   : >> { %10759 = vperm.xlu1 %11871, %v12045_v29   ;;  %v14919_v57 = vpop.eup %12058  ;;  %v8653_v29 = vmul.f32 1.442695, %v8649_v54 }
0x11ea   : >> { %10899 = vrot.lane.b32.xlu0 %v14915_v38, %s12238_s11 }
0x11eb   : >> { %12072 = vpow2.f32 %v8653_v29 }
0x11ec   : >> { %v14921_v16 = vpop.eup %12060 }
0x11ed   : >> { %10764 = vperm.xlu1 %11871, %v14919_v57   ;;  %v12063_v26 = vpop.eup %12062 }
0x11ee   : >> { %11054 = vrot.lane.b32.xlu0 %v14921_v16, %s12239_s15 }
0x11f0   : >> { %v14927_v53 = vpop.eup %12064 }
0x11f1   : >> { %10897 = vrot.lane.b32.xlu1 %v12063_v26, %s12238_s11  ;;  %v14933_v27 = vpop.eup %12066 }
0x11f2   : >> { %11058 = vrot.lane.b32.xlu0 %v14927_v53, %s12239_s15  ;;  %11872 = vset.pattern.permute.xlu1 %v12245_v17  ;;  %v12069_v15 = vpop.eup %12068  ;;  %v8790_v17 = vmul.f32 1.442695, %v8783_v23 }
0x11f4   : >> { %v14944_v11 = vpop.eup %12070  ;;  %12074 = vpow2.f32 %v8790_v17 }
0x11f5   : >> { %10901 = vrot.lane.b32.xlu1 %v14933_v27, %s12238_s11  ;;  %12076 = vpow2.f32 %v10853_v1  ;;  %v8679_v1 = vadd.f32 %v15908_v55, %v8675_v21  ;;  %v15922_v55 = vld [vmem:[#allocation47_spill] sm:$0xff] }
0x11f6   : >> { %10781 = vperm.xlu0 %11873, %v12049_v12   ;;  %12078 = vpow2.f32 %v8943_v37  ;;  %v9102_v12 = vmul.f32 1.442695, %v9098_v40  ;;  %v15909_v37 = vld [vmem:[#allocation122_spill] sm:$0xff]  ;;  %v11014_v40 = vmul.f32 1.442695, %v11008_v62 }
0x11f7   : >> { %12080 = vpow2.f32 %v10855_v43 }
0x11f8   : >> { %v12073_v52 = vpop.eup %12072  ;;  %12082 = vpow2.f32 %v8949_v20 }
0x11f9   : >> { %11056 = vrot.lane.b32.xlu1 %v12069_v15, %s12239_s15  ;;  %12084 = vpow2.f32 %v9102_v12 }
0x11fa   : >> { %11876 = vset.pattern.permute.xlu0 %v12246_v7 }
0x11fb   : >> { %10940 = vperm.xlu0 %11876, %v12063_v26   ;;  %v15904_v26 = vld [vmem:[#allocation56_spill] sm:$0xff] }
0x11fc   : >> { %v9416_v29 = vsub.f32 %v15902_v61, %v15904_v26  ;;  %v9575_v43 = vsub.f32 %v15904_v26, %v15910_v50 }
0x11fd   : >> { %11060 = vrot.lane.b32.xlu1 %v14944_v11, %s12239_s15 }
0x11fe   : >> { %v9420_v23 = vmul.f32 1.442695, %v9416_v29 }
0x11ff   : >> { %11879 = vset.pattern.permute.xlu0 %v12247_v9 }
0x1200   : >> { %11099 = vperm.xlu0 %11879, %v12069_v15   ;;  %v15906_v15 = vld [vmem:[#allocation58_spill] sm:$0xff] }
0x1201   : >> { %10777 = vperm.xlu1 %11872, %v14894_v39   ;;  %v9108_v39 = vmul.f32 1.442695, %v9101_v36  ;;  %v14964_v14 = vpop.eup %12074  ;;  %v15914_v36 = vld [vmem:[#allocation69_spill] sm:$0xff] }
0x1202   : >> { %v14966_v13 = vpop.eup %12076 }
0x1203   : >> { %12086 = vpow2.f32 %v9108_v39  ;;  %v12079_v59 = vpop.eup %12078  ;;  %v9578_v39 = vsub.f32 %v15906_v15, %v15914_v36 }
0x1204   : >> { %11880 = vset.pattern.permute.xlu0 %v15882_v51  ;;  %v14975_v30 = vpop.eup %12080 }
0x1205   : >> { %8683 = vperm.xlu0 %11880, %v12073_v52   ;;  %10785 = vperm.xlu1 %11872, %v14900_v19   ;;  %v11007_v19 = vsub.f32 %v14816_v58, %v14834_v28  ;;  %v14980_v58 = vpop.eup %12082  ;;  %v8673_v28 = vmul.f32 0.0, %v12073_v52  ;;  %v15913_v52 = vld [vmem:[#allocation30_spill] sm:$0xff]  ;;  %v9585_v26 = vmul.f32 1.442695, %v9578_v39  ;;  %v15928_v39 = vld [vmem:[#allocation53_spill] sm:$0xff] }
0x1206   : >> { %v12085_v17 = vpop.eup %12084 }
0x1207   : >> { %v11012_v44 = vmul.f32 1.442695, %v11007_v19  ;;  %v8677_v35 = vadd.f32 %v15907_v3, %v8673_v28  ;;  %v15921_v3 = vld [vmem:[#allocation125_spill] sm:$0xff] }
0x1209   : >> { %8851 = vperm.xlu0 %11880, %v14853_v63   ;;  %10789 = vperm.xlu1 %11872, %v14906_v22   ;;  %v9261_v63 = vmul.f32 1.442695, %v9257_v24  ;;  %v15903_v22 = vld [vmem:[#allocation26_spill] sm:$0xff]  ;;  %v8820_v18 = vmul.f32 %v15909_v37, %v8677_v35  ;;  %v15915_v24 = vld [vmem:[#allocation79_spill] sm:$0xff] }
0x120a   : >> { %v9260_v34 = vsub.f32 %v15901_v32, %v15903_v22  ;;  %v9419_v42 = vsub.f32 %v15903_v22, %v15906_v15  ;;  %v9579_v32 = vmul.f32 1.442695, %v9575_v43  ;;  %v9734_v19 = vsub.f32 %v15910_v50, %v15915_v24  ;;  %v15920_v15 = vld [vmem:[#allocation80_spill] sm:$0xff] }
0x120b   : >> { %12088 = vpow2.f32 %v9261_v63  ;;  %v8840_v48 = vadd.f32 %v15912_v8, %v8820_v18  ;;  %v15916_v63 = vld [vmem:[#allocation124_spill] sm:$0xff]  ;;  %v9893_v21 = vsub.f32 %v15915_v24, %v15919_v33  ;;  %v15923_v18 = vld [vmem:[#allocation101_spill] sm:$0xff]  ;;  %v15929_v24 = vld [vmem:[#allocation91_spill] sm:$0xff] }
0x120c   : >> { %v9267_v54 = vmul.f32 1.442695, %v9260_v34  ;;  %12090 = vpow2.f32 %v11012_v44  ;;  %v15917_v44 = vld [vmem:[#allocation42_spill] sm:$0xff] }
0x120d   : >> { %8861 = vperm.xlu0 %11880, %v14964_v14   ;;  %11874 = vset.pattern.permute.xlu1 %v15882_v51  ;;  %v9897_v37 = vmul.f32 1.442695, %v9893_v21  ;;  %v15933_v21 = vld [vmem:[#allocation127_spill] sm:$0xff] }
0x120e   : >> { %10918 = vperm.xlu1 %11874, %v14966_v13   ;;  %12092 = vpow2.f32 %v9267_v54 }
0x120f   : >> { %12094 = vpow2.f32 %v9420_v23 }
0x1210   : >> { %v14995_v20 = vpop.eup %12086 }
0x1211   : >> { %9005 = vperm.xlu0 %11880, %v12079_v59  }
0x1212   : >> { %10923 = vperm.xlu1 %11874, %v14975_v30  }
0x1215   : >> { %9020 = vperm.xlu0 %11880, %v14980_v58  }
0x1216   : >> { %11875 = vset.pattern.permute.xlu1 %v12246_v7  ;;  %v9426_v7 = vmul.f32 1.442695, %v9419_v42  ;;  %v9737_v42 = vsub.f32 %v15914_v36, %v15920_v15 }
0x1217   : >> { %10936 = vperm.xlu1 %11875, %v14908_v47   ;;  %v15911_v47 = vld [vmem:[#allocation123_spill] sm:$0xff] }
0x1218   : >> { %v8822_v60 = vmul.f32 %v15911_v47, %v8679_v1  ;;  %12096 = vpow2.f32 %v9426_v7  ;;  %v12089_v61 = vpop.eup %12088  ;;  %v10052_v7 = vsub.f32 %v15919_v33, %v15923_v18  ;;  %v9744_v43 = vmul.f32 1.442695, %v9737_v42  ;;  %v15934_v42 = vld [vmem:[#allocation61_spill] sm:$0xff] }
0x1219   : >> { %9164 = vperm.xlu0 %11880, %v12085_v17   ;;  %12098 = vpow2.f32 %v11014_v40  ;;  %v15007_v34 = vpop.eup %12090 }
0x121a   : >> { %v8842_v12 = vadd.f32 %v15913_v52, %v8822_v60  ;;  %12100 = vpow2.f32 %v9579_v32  ;;  %v15925_v60 = vld [vmem:[#allocation118_spill] sm:$0xff]  ;;  %v10056_v52 = vmul.f32 1.442695, %v10052_v7 }
0x121b   : >> { %10944 = vperm.xlu1 %11875, %v14915_v38   ;;  %v8979_v38 = vmul.f32 %v12079_v59, %v8840_v48  ;;  %v15011_v29 = vpop.eup %12092  ;;  %v9738_v59 = vmul.f32 1.442695, %v9734_v19  ;;  %12102 = vpow2.f32 %v9585_v26  ;;  %v8676_v40 = vmul.f32 0.0, %v15925_v60 }
0x121c   : >> { %v8981_v22 = vmul.f32 %v15916_v63, %v8842_v12  ;;  %v12095_v62 = vpop.eup %12094  ;;  %v15926_v12 = vld [vmem:[#allocation112_spill] sm:$0xff]  ;;  %v9896_v19 = vsub.f32 %v15920_v15, %v15929_v24  ;;  %v15930_v63 = vld [vmem:[#allocation121_spill] sm:$0xff] }
0x121d   : >> { %9179 = vperm.xlu0 %11880, %v14995_v20   ;;  %v8999_v54 = vadd.f32 %v15917_v44, %v8979_v38  ;;  %12104 = vpow2.f32 %v9738_v59  ;;  %v10211_v32 = vsub.f32 %v15923_v18, %v15926_v12  ;;  %v15931_v44 = vld [vmem:[#allocation55_spill] sm:$0xff]  ;;  %v15937_v18 = vld [vmem:[#allocation62_spill] sm:$0xff] }
0x121e   : >> { %12106 = vpow2.f32 %v9897_v37 }
0x121f   : >> { %10948 = vperm.xlu1 %11875, %v14933_v27   ;;  %v15918_v27 = vld [vmem:[#allocation44_spill] sm:$0xff]  ;;  %v9138_v23 = vmul.f32 %v12085_v17, %v8999_v54  ;;  %v15924_v17 = vld [vmem:[#allocation50_spill] sm:$0xff]  ;;  %12108 = vpow2.f32 %v9744_v43 }
0x1220   : >> { %v9001_v28 = vadd.f32 %v15918_v27, %v8981_v22  ;;  %v8680_v22 = vadd.f32 %v15930_v63, %v8676_v40  ;;  %12110 = vpow2.f32 %v10056_v52  ;;  %v10215_v27 = vmul.f32 1.442695, %v10211_v32  ;;  %v15938_v43 = vld [vmem:[#allocation128_spill] sm:$0xff]  ;;  %v15941_v32 = vld [vmem:[#allocation73_spill] sm:$0xff]  ;;  %v15067_v63 = vpop.permute.xlu1 %10583 }
0x1221   : >> { %9323 = vperm.xlu0 %11880, %v12089_v61   ;;  %v9158_v1 = vadd.f32 %v15922_v55, %v9138_v23 }
0x1222   : >> { %v9140_v35 = vmul.f32 %v15921_v3, %v9001_v28  ;;  %v15932_v28 = vld [vmem:[#allocation167_spill] sm:$0xff]  ;;  %v8823_v33 = vmul.f32 %v14964_v14, %v8680_v22  ;;  %v9903_v3 = vmul.f32 1.442695, %v9896_v19  ;;  %12112 = vpow2.f32 %v10215_v27  ;;  %v15942_v19 = vld [vmem:[#allocation34_spill] sm:$0xff] }
0x1223   : >> { %11877 = vset.pattern.permute.xlu1 %v15882_v51  ;;  %v9297_v48 = vmul.f32 %v12089_v61, %v9158_v1  ;;  %v10370_v59 = vsub.f32 %v15926_v12, %v15932_v28  ;;  %v15936_v1 = vld [vmem:[#allocation38_spill] sm:$0xff]  ;;  %v15943_v22 = vld [vmem:[#allocation83_spill] sm:$0xff] }
0x1224   : >> { %11077 = vperm.xlu1 %11877, %v15007_v34   ;;  %v9160_v50 = vadd.f32 %v15924_v17, %v9140_v35  ;;  %v15935_v35 = vld [vmem:[#allocation113_spill] sm:$0xff]  ;;  %v8843_v37 = vadd.f32 %v15936_v1, %v8823_v33  ;;  %12114 = vpow2.f32 %v9903_v3  ;;  %v15947_v3 = vld [vmem:[#allocation131_spill] sm:$0xff] }
0x1225   : >> { %9338 = vperm.xlu0 %11880, %v15011_v29   ;;  %v15027_v47 = vpop.eup %12096  ;;  %v9317_v38 = vadd.f32 %v15928_v39, %v9297_v48  ;;  %v10372_v55 = vsub.f32 %v15935_v35, %v14528_v0  ;;  %v10374_v14 = vmul.f32 1.442695, %v10370_v59  ;;  %v15939_v0 = vld [vmem:[#allocation72_spill] sm:$0xff]  ;;  %v10688_v59 = vsub.f32 %v14760_v46, %v14788_v6  ;;  %v15948_v35 = vld [vmem:[#allocation114_spill] sm:$0xff]  ;;  %v15949_v1 = vld [vmem:[#allocation39_spill] sm:$0xff] }
0x1226   : >> { %v15030_v8 = vpop.eup %12098  ;;  %v8982_v12 = vmul.f32 %v14980_v58, %v8843_v37  ;;  %v15945_v58 = vld [vmem:[#allocation84_spill] sm:$0xff] }
0x1227   : >> { %v12101_v61 = vpop.eup %12100  ;;  %v9456_v26 = vmul.f32 %v12095_v62, %v9317_v38  ;;  %v10378_v52 = vmul.f32 1.442695, %v10372_v55  ;;  %12116 = vpow2.f32 %v10374_v14 }
0x1228   : >> { %11878 = vset.pattern.permute.xlu1 %v12247_v9 }
0x1229   : >> { %9482 = vperm.xlu0 %11880, %v12095_v62   ;;  %11095 = vperm.xlu1 %11878, %v14921_v16   ;;  %v15927_v16 = vld [vmem:[#allocation126_spill] sm:$0xff]  ;;  %v9476_v15 = vadd.f32 %v15934_v42, %v9456_v26  ;;  %v15052_v62 = vpop.eup %12102  ;;  %12118 = vpow2.f32 %v10378_v52 }
0x122a   : >> { %v9299_v36 = vmul.f32 %v15927_v16, %v9160_v50  ;;  %v12105_v50 = vpop.eup %12104  ;;  %v15946_v42 = vld [vmem:[#allocation94_spill] sm:$0xff] }
0x122b   : >> { %v9615_v17 = vmul.f32 %v12101_v61, %v9476_v15  ;;  %v12107_v38 = vpop.eup %12106  ;;  %v15953_v52 = vld [vmem:[#allocation106_spill] sm:$0xff] }
0x122c   : >> { %v9319_v54 = vadd.f32 %v15931_v44, %v9299_v36 }
0x122d   : >> { %9497 = vperm.xlu0 %11880, %v15027_v47   ;;  %11881 = vset.pattern.permute.xlu1 %v15882_v51  ;;  %v9635_v40 = vadd.f32 %v15939_v0, %v9615_v17  ;;  %v10847_v0 = vsub.f32 %v14788_v6, %v14802_v49 }
0x122e   : >> { %11082 = vperm.xlu1 %11881, %v15030_v8   ;;  %v9458_v23 = vmul.f32 %v15933_v21, %v9319_v54  ;;  %v15944_v54 = vld [vmem:[#allocation129_spill] sm:$0xff] }
0x122f   : >> { %v9774_v36 = vmul.f32 %v12105_v50, %v9635_v40  ;;  %v10851_v6 = vmul.f32 1.442695, %v10847_v0 }
0x1230   : >> { %v9478_v7 = vadd.f32 %v15937_v18, %v9458_v23  ;;  %v15079_v23 = vpop.permute.xlu1 %10600  ;;  %v15950_v18 = vld [vmem:[#allocation95_spill] sm:$0xff] }
0x1231   : >> { %9641 = vperm.xlu0 %11880, %v12101_v61   ;;  %v9002_v61 = vadd.f32 %v15942_v19, %v8982_v12  ;;  %v9794_v44 = vadd.f32 %v15943_v22, %v9774_v36  ;;  %v15954_v36 = vld [vmem:[#allocation48_spill] sm:$0xff] }
0x1232   : >> { %11882 = vset.pattern.permute.xlu1 %v12247_v9  ;;  %v10529_v9 = vsub.f32 %v15932_v28, %v14760_v46  ;;  %v9617_v60 = vmul.f32 %v15938_v43, %v9478_v7  ;;  %v10692_v46 = vmul.f32 1.442695, %v10688_v59  ;;  %v11006_v59 = vsub.f32 %v14802_v49, %v14823_v41 }
0x1233   : >> { %11103 = vperm.xlu1 %11882, %v14927_v53   ;;  %v15940_v53 = vld [vmem:[#allocation102_spill] sm:$0xff]  ;;  %v9933_v28 = vmul.f32 %v12107_v38, %v9794_v44  ;;  %v9141_v21 = vmul.f32 %v14995_v20, %v9002_v61  ;;  %v15956_v61 = vld [vmem:[#allocation136_spill] sm:$0xff]  ;;  %v10582_v44 = vpop.permute.xlu0 %10581 }
0x1234   : >> { %v10055_v48 = vsub.f32 %v15929_v24, %v15940_v53  ;;  %v9637_v16 = vadd.f32 %v15941_v32, %v9617_v60  ;;  %v10533_v39 = vmul.f32 1.442695, %v10529_v9  ;;  %v10214_v55 = vsub.f32 %v15940_v53, %v15948_v35  ;;  %v15951_v9 = vld [vmem:[#allocation105_spill] sm:$0xff]  ;;  %v15092_v53 = vpop.permute.xlu1 %10605 }
0x1235   : >> { %9656 = vperm.xlu0 %11880, %v15052_v62   ;;  %v9953_v15 = vadd.f32 %v15946_v42, %v9933_v28  ;;  %v9161_v37 = vadd.f32 %v15949_v1, %v9141_v21  ;;  %v15959_v42 = vld [vmem:[#allocation64_spill] sm:$0xff] }
0x1236   : >> { %v9776_v24 = vmul.f32 %v15944_v54, %v9637_v16  ;;  %v10062_v26 = vmul.f32 1.442695, %v10055_v48  ;;  %12120 = vpow2.f32 %v10533_v39  ;;  %v10221_v60 = vmul.f32 1.442695, %v10214_v55 }
0x1237   : >> { %11107 = vperm.xlu1 %11882, %v14944_v11   ;;  %v15072_v11 = vpop.eup %12108  ;;  %v9300_v48 = vmul.f32 %v15011_v29, %v9161_v37 }
0x1238   : >> { %v9796_v27 = vadd.f32 %v15945_v58, %v9776_v24  ;;  %v12111_v33 = vpop.eup %12110  ;;  %12122 = vpow2.f32 %v10062_v26  ;;  %v15957_v24 = vld [vmem:[#allocation168_spill] sm:$0xff] }
0x1239   : >> { %9800 = vperm.xlu0 %11880, %v12105_v50   ;;  %v10092_v17 = vmul.f32 %v12111_v33, %v9953_v15  ;;  %v12113_v14 = vpop.eup %12112  ;;  %v15952_v50 = vld [vmem:[#allocation133_spill] sm:$0xff]  ;;  %12124 = vpow2.f32 %v10692_v46  ;;  %v9320_v39 = vadd.f32 %v15954_v36, %v9300_v48  ;;  %v10373_v26 = vsub.f32 %v15948_v35, %v15957_v24  ;;  %v15958_v58 = vld [vmem:[#allocation132_spill] sm:$0xff]  ;;  %v15116_v35 = vpop.permute.xlu0 %10622  ;;  %v15962_v46 = vld [vmem:[#allocation75_spill] sm:$0xff] }
0x123a   : >> { %v12115_v40 = vpop.eup %12114  ;;  %12126 = vpow2.f32 %v10221_v60  ;;  %v10532_v41 = vsub.f32 %v15957_v24, %v14772_v4  ;;  %v12166_v36 = vld [vmem:[%s13515_s29] sm:$0xff] }
0x123b   : >> { %11883 = vset.pattern.permute.xlu1 %v15882_v51  ;;  %v9935_v51 = vmul.f32 %v15947_v3, %v9796_v27  ;;  %v10112_v20 = vadd.f32 %v15951_v9, %v10092_v17  ;;  %v15095_v16 = vpop.eup %12116  ;;  %v9459_v29 = vmul.f32 %v15027_v47, %v9320_v39  ;;  %v15112_v3 = vpop.permute.xlu1 %10618  ;;  %12128 = vpow2.f32 %v10851_v6  ;;  %v12167_v6 = vld [vmem:[%s13515_s29 + $0x8] sm:$0xff] }
0x123c   : >> { %v15100_v54 = vpop.eup %12118  ;;  %v10539_v0 = vmul.f32 1.442695, %v10532_v41  ;;  %v11572_v39 = vmul.f32 -1.442695, %v12166_v36 }
0x123d   : >> { %9815 = vperm.xlu0 %11880, %v15072_v11   ;;  %v9955_v7 = vadd.f32 %v15950_v18, %v9935_v51  ;;  %v10251_v32 = vmul.f32 %v12113_v14, %v10112_v20  ;;  %v9479_v15 = vadd.f32 %v15959_v42, %v9459_v29  ;;  %v15960_v51 = vld [vmem:[#allocation177_spill] sm:$0xff]  ;;  %v10380_v18 = vmul.f32 1.442695, %v10373_v26 }
0x123e   : >> { %v15964_v29 = vld [vmem:[#allocation97_spill] sm:$0xff] }
0x123f   : >> { %v10094_v43 = vmul.f32 %v15952_v50, %v9955_v7  ;;  %v9618_v37 = vmul.f32 %v15052_v62, %v9479_v15  ;;  %v15961_v7 = vld [vmem:[#allocation178_spill] sm:$0xff]  ;;  %12130 = vpow2.f32 %v10380_v18  ;;  %v15127_v60 = vpop.permute.xlu1 %10626  ;;  %v12168_v42 = vld [vmem:[%s13515_s29 + $0x10] sm:$0xff] }
0x1240   : >> { %v11574_v15 = vmul.f32 -1.442695, %v12168_v42 }
0x1241   : >> { %9959 = vperm.xlu0 %11880, %v12107_v38   ;;  %v10114_v12 = vadd.f32 %v15953_v52, %v10094_v43  ;;  %v15955_v38 = vld [vmem:[#allocation130_spill] sm:$0xff]  ;;  %v9638_v9 = vadd.f32 %v15962_v46, %v9618_v37 }
0x1242   : >> { %v10271_v19 = vadd.f32 %v15955_v38, %v10251_v32 }
0x1243   : >> { %v10253_v22 = vmul.f32 %v15956_v61, %v10114_v12  ;;  %v15109_v21 = vpop.eup %12120  ;;  %v9777_v62 = vmul.f32 %v15072_v11, %v9638_v9  ;;  %v15963_v12 = vld [vmem:[#allocation86_spill] sm:$0xff]  ;;  %v10691_v11 = vsub.f32 %v14772_v4, %v14805_v56  ;;  %v10850_v4 = vsub.f32 %v14805_v56, %v14826_v45 }
0x1244   : >> { %v10410_v28 = vmul.f32 %v15095_v16, %v10271_v19 }
0x1245   : >> { %9974 = vperm.xlu0 %11880, %v12115_v40   ;;  %v10273_v27 = vadd.f32 %v15958_v58, %v10253_v22  ;;  %v12123_v1 = vpop.eup %12122  ;;  %v9797_v32 = vadd.f32 %v15963_v12, %v9777_v62  ;;  %v11009_v62 = vsub.f32 %v14826_v45, %v14839_v31  ;;  %v15967_v12 = vld [vmem:[#allocation179_spill] sm:$0xff] }
0x1246   : >> { %v10430_v55 = vadd.f32 %v15960_v51, %v10410_v28  ;;  %v15129_v52 = vpop.eup %12124  ;;  %v10698_v28 = vmul.f32 1.442695, %v10691_v11  ;;  %v15965_v51 = vld [vmem:[#allocation108_spill] sm:$0xff] }
0x1247   : >> { %v10412_v47 = vmul.f32 %v15100_v54, %v10273_v27  ;;  %v9936_v38 = vmul.f32 %v12115_v40, %v9797_v32 }
0x1248   : >> { %v10569_v17 = vmul.f32 %v15109_v21, %v10430_v55 }
0x1249   : >> { %10118 = vperm.xlu0 %11880, %v12111_v33   ;;  %v10432_v49 = vadd.f32 %v15961_v7, %v10412_v47  ;;  %v11010_v33 = vmul.f32 1.442695, %v11006_v59  ;;  %v9956_v24 = vadd.f32 %v15964_v29, %v9936_v38 }
0x124a   : >> { %v10589_v20 = vadd.f32 %v14879_v2, %v10569_v17  ;;  %v15966_v17 = vld [vmem:[#allocation135_spill] sm:$0xff] }
0x124b   : >> { %v10571_v50 = vmul.f32 %v14845_v25, %v10432_v49  ;;  %12132 = vpow2.f32 %v11010_v33  ;;  %v12127_v25 = vpop.eup %12126  ;;  %v10095_v27 = vmul.f32 %v12123_v1, %v9956_v24  ;;  %v10857_v49 = vmul.f32 1.442695, %v10850_v4 }
0x124c   : >> { %v10728_v2 = vmul.f32 %v15129_v52, %v10589_v20  ;;  %12134 = vpow2.f32 %v10539_v0  ;;  %v15141_v58 = vpop.eup %12128 }
0x124d   : >> { %10133 = vperm.xlu0 %11880, %v12123_v1   ;;  %v10591_v48 = vadd.f32 %v10582_v44, %v10571_v50  ;;  %12136 = vpow2.f32 %v11572_v39  ;;  %v11573_v44 = vmul.f32 -1.442695, %v12167_v6  ;;  %v10115_v55 = vadd.f32 %v15965_v51, %v10095_v27  ;;  %v12131_v1 = vpop.eup %12130 }
0x124f   : >> { %v10737_v43 = vpop.permute.xlu0 %10736  ;;  %v10730_v22 = vmul.f32 %v14919_v57, %v10591_v48  ;;  %12138 = vpow2.f32 %v11573_v44  ;;  %v10254_v7 = vmul.f32 %v12127_v25, %v10115_v55 }
0x1250   : >> { %v10748_v61 = vadd.f32 %v10737_v43, %v10728_v2  ;;  %12140 = vpow2.f32 %v10698_v28  ;;  %v11016_v2 = vmul.f32 1.442695, %v11009_v62 }
0x1251   : >> { %10277 = vperm.xlu0 %11880, %v12113_v14   ;;  %v15137_v14 = vpop.permute.xlu1 %10630  ;;  %12142 = vpow2.f32 %v11574_v15  ;;  %v10274_v46 = vadd.f32 %v15966_v17, %v10254_v7  ;;  %v15968_v17 = vld [vmem:[#allocation144_spill] sm:$0xff] }
0x1252   : >> { %v10887_v57 = vmul.f32 %v15141_v58, %v10748_v61  ;;  %12144 = vpow2.f32 %v10857_v49  ;;  %v12248_v49 = vmov 16  }
0x1253   : >> { %v10413_v43 = vmul.f32 %v12131_v1, %v10274_v46  ;;  %v15969_v46 = vld [vmem:[#allocation8_spill] sm:$0xff] }
0x1254   : >> { %v10741_v19 = vpop.permute.xlu0 %10740 }
0x1255   : >> { %10292 = vperm.xlu0 %11880, %v12127_v25   ;;  %v10750_v26 = vadd.f32 %v10741_v19, %v10730_v22  ;;  %v10739_v59 = vpop.permute.xlu1 %10738  ;;  %v10433_v32 = vadd.f32 %v15967_v12, %v10413_v43 }
0x1256   : >> { %v10749_v11 = vadd.f32 %v10739_v59, %v14883_v10 }
0x1257   : >> { %v10889_v37 = vmul.f32 %v14975_v30, %v10750_v26 }
0x1258   : >> { %v10896_v40 = vpop.permute.xlu0 %10895  ;;  %v15151_v41 = vpop.eup %12132 }
0x1259   : >> { %10436 = vperm.xlu0 %11880, %v15095_v16   ;;  %v10907_v47 = vadd.f32 %v10896_v40, %v10887_v57  ;;  %v12169_v16 = vld [vmem:[%s13515_s29 + $0x18] sm:$0xff]  ;;  %v10743_v30 = vpop.permute.xlu1 %10742 }
0x125a   : >> { %v11575_v33 = vmul.f32 -1.442695, %v12169_v16 }
0x125b   : >> { %v11046_v9 = vmul.f32 %v15151_v41, %v10907_v47 }
0x125c   : >> { %v10900_v18 = vpop.permute.xlu0 %10899  ;;  %12146 = vpow2.f32 %v11575_v33 }
0x125d   : >> { %v10909_v56 = vadd.f32 %v10900_v18, %v10889_v37  ;;  %10446 = vperm.xlu0 %11880, %v15100_v54   ;;  %v12135_v54 = vpop.eup %12134 }
0x125e   : >> { %v12137_v48 = vpop.eup %12136 }
0x125f   : >> { %v11048_v20 = vmul.f32 %v15030_v8, %v10909_v56  ;;  %v10572_v8 = vmul.f32 %v12135_v54, %v10433_v32  ;;  %v11158_v38 = vadd.f32 1.0, %v12137_v48  ;;  %v12139_v19 = vpop.eup %12138  ;;  %v15972_v32 = vld [vmem:[#allocation40_spill] sm:$0xff] }
0x1260   : >> { %v11055_v50 = vpop.permute.xlu0 %11054  ;;  %v12141_v61 = vpop.eup %12140  ;;  %v11159_v22 = vadd.f32 1.0, %v12139_v19 }
0x1261   : >> { %v11066_v0 = vadd.f32 %v11055_v50, %v11046_v9  ;;  %10451 = vperm.xlu0 %11880, %v12131_v1   ;;  %v10592_v45 = vadd.f32 %v15067_v63, %v10572_v8  ;;  %v12143_v6 = vpop.eup %12142  ;;  %v15970_v9 = vunpack.c.h.bf16 %v15969_v46  ;;  %v15971_v50 = vld [vmem:[#allocation140_spill] sm:$0xff]  ;;  %v15975_v8 = vld [vmem:[#allocation146_spill] sm:$0xff] }
0x1262   : >> { %v12145_v26 = vpop.eup %12144  ;;  %v11160_v63 = vadd.f32 1.0, %v12143_v6  ;;  %v8702_v43 = vmul.f32 0.0, %v15971_v50  ;;  %v15991_v50 = vld [vmem:[#allocation15_spill] sm:$0xff] }
0x1263   : >> { %12148 = vrcp.f32 %v11066_v0  ;;  %v10731_v44 = vmul.f32 %v12141_v61, %v10592_v45 }
0x1264   : >> { %v11059_v36 = vpop.permute.xlu0 %11058  ;;  %v15160_v39 = vpop.permute.xlu1 %10759 }
0x1265   : >> { %v11068_v25 = vadd.f32 %v11059_v36, %v11048_v20  ;;  %10595 = vperm.xlu0 %11880, %v15109_v21   ;;  %v10751_v24 = vadd.f32 %v10743_v30, %v10731_v44  ;;  %v10888_v21 = vmul.f32 %v14966_v13, %v10749_v11  ;;  %v8726_v20 = vmul.f32 %v15970_v9, %v15968_v17  ;;  %v15973_v36 = vld [vmem:[#allocation9_spill] sm:$0xff] }
0x1267   : >> { %12150 = vrcp.f32 %v11068_v25  ;;  %v10890_v10 = vmul.f32 %v12145_v26, %v10751_v24  ;;  %v15976_v25 = vld [vmem:[#allocation6_spill] sm:$0xff] }
0x1268   : >> { %v15164_v31 = vpop.permute.xlu1 %10764  ;;  %12152 = vpow2.f32 %v11016_v2  ;;  %v15979_v24 = vld [vmem:[#allocation46_spill] sm:$0xff] }
0x1269   : >> { %10610 = vperm.xlu0 %11880, %v12135_v54   ;;  %12154 = vrcp.f32 %v11158_v38  ;;  %v12147_v40 = vpop.eup %12146  ;;  %v8730_v54 = vadd.f32 %v8726_v20, %v8702_v43  ;;  %v15977_v38 = vunpack.c.h.bf16 %v15976_v25  ;;  %v15990_v20 = vld [vmem:[#allocation57_spill] sm:$0xff]  ;;  %v15992_v43 = vunpack.c.h.bf16 %v15991_v50 }
0x126a   : >> { %12156 = vrcp.f32 %v11159_v22  ;;  %v11161_v59 = vadd.f32 1.0, %v12147_v40  ;;  %v15982_v40 = vld [vmem:[#allocation149_spill] sm:$0xff] }
0x126b   : >> { %12158 = vrcp.f32 %v11160_v63  ;;  %v8728_v19 = vmul.f32 %v15977_v38, %v15975_v8  ;;  %v15994_v8 = vld [vmem:[#allocation37_spill] sm:$0xff]  ;;  %v15995_v38 = vld [vmem:[#allocation12_spill] sm:$0xff] }
0x126c   : >> { %v10898_v29 = vpop.permute.xlu1 %10897  ;;  %12160 = vrcp.f32 %v11161_v59 }
0x126d   : >> { %10754 = vperm.xlu0 %11880, %v15129_v52   ;;  %v10908_v27 = vadd.f32 %v10898_v29, %v10888_v21  ;;  %v15980_v21 = vld [vmem:[#allocation11_spill] sm:$0xff] }
0x126f   : >> { %v11047_v15 = vmul.f32 %v15007_v34, %v10908_v27 }
0x1270   : >> { %v12149_v28 = vpop.eup %12148  ;;  %v10902_v4 = vpop.permute.xlu1 %10901 }
0x1271   : >> { %10769 = vperm.xlu0 %11880, %v12141_v61   ;;  %11124 = vperm.xlu1 %11883, %v12149_v28   ;;  %v15169_v57 = vpop.permute.xlu0 %10781  ;;  %v10910_v42 = vadd.f32 %v10902_v4, %v10890_v10  ;;  %v15978_v61 = vld [vmem:[#allocation142_spill] sm:$0xff] }
0x1272   : >> { %v8704_v22 = vmul.f32 0.0, %v15978_v61 }
0x1274   : >> { %v12151_v13 = vpop.eup %12150  ;;  %v11057_v51 = vpop.permute.xlu1 %11056  ;;  %v8732_v28 = vadd.f32 %v8728_v19, %v8704_v22  ;;  %v15996_v19 = vunpack.c.h.bf16 %v15995_v38  ;;  %v16000_v22 = vld [vmem:[#allocation155_spill] sm:$0xff] }
0x1275   : >> { %v11067_v52 = vadd.f32 %v11057_v51, %v11047_v15  ;;  %10913 = vperm.xlu0 %11880, %v15141_v58   ;;  %11134 = vperm.xlu1 %11883, %v12151_v13   ;;  %v12153_v55 = vpop.eup %12152  ;;  %v15983_v15 = vld [vmem:[#allocation33_spill] sm:$0xff]  ;;  %v15984_v13 = vld [vmem:[#allocation10_spill] sm:$0xff] }
0x1276   : >> { %v15173_v47 = vpop.permute.xlu0 %10940  ;;  %v12155_v37 = vpop.eup %12154  ;;  %v11049_v18 = vmul.f32 %v12153_v55, %v10910_v42  ;;  %v15985_v51 = vunpack.c.h.bf16 %v15984_v13 }
0x1277   : >> { %12162 = vrcp.f32 %v11067_v52  ;;  %v11194_v34 = vsub.f32 1.0, %v12155_v37  ;;  %v12157_v56 = vpop.eup %12156 }
0x1278   : >> { %v11061_v1 = vpop.permute.xlu1 %11060  ;;  %v11195_v58 = vsub.f32 1.0, %v12157_v56  ;;  %v12159_v33 = vpop.eup %12158  ;;  %v8887_v52 = vmul.f32 %v15985_v51, %v15983_v15  ;;  %v16006_v51 = vld [vmem:[#allocation141_spill] sm:$0xff] }
0x1279   : >> { %v11069_v7 = vadd.f32 %v11061_v1, %v11049_v18  ;;  %10928 = vperm.xlu0 %11880, %v12145_v26   ;;  %11884 = vset.pattern.permute.xlu1 %v12248_v49  ;;  %v11196_v62 = vsub.f32 1.0, %v12159_v33  ;;  %v12161_v0 = vpop.eup %12160  ;;  %v15981_v26 = vunpack.c.h.bf16 %v15980_v21 }
0x127a   : >> { %11172 = vperm.xlu1 %11884, %v12155_v37   ;;  %v11197_v11 = vsub.f32 1.0, %v12161_v0  ;;  %v15987_v37 = vld [vmem:[#allocation13_spill] sm:$0xff] }
0x127b   : >> { %12164 = vrcp.f32 %v11069_v7  ;;  %v15175_v16 = vpop.permute.xlu0 %11099  ;;  %v9044_v63 = vmul.f32 %v15981_v26, %v15979_v24  ;;  %v15988_v18 = vunpack.c.h.bf16 %v15987_v37  ;;  %v15989_v7 = vld [vmem:[#allocation151_spill] sm:$0xff] }
0x127c   : >> { %v15193_v59 = vpop.permute.xlu1 %10777 }
0x127d   : >> { %11072 = vperm.xlu0 %11880, %v15151_v41   ;;  %v15974_v41 = vunpack.c.h.bf16 %v15973_v36 }
0x127e   : >> { %11200 = vperm.xlu1 %11884, %v11194_v34  }
0x127f   : >> { %v8885_v2 = vmul.f32 %v15974_v41, %v15972_v32 }
0x1280   : >> { %v8684_v30 = vpop.permute.xlu0 %8683  ;;  %v15206_v32 = vpop.permute.xlu1 %10785 }
0x1281   : >> { %11087 = vperm.xlu0 %11880, %v12153_v55   ;;  %v15986_v55 = vld [vmem:[#allocation52_spill] sm:$0xff]  ;;  %v8701_v26 = vmul.f32 0.0, %v8684_v30 }
0x1282   : >> { %11205 = vperm.xlu1 %11884, %v11195_v58   ;;  %v9203_v1 = vmul.f32 %v15988_v18, %v15986_v55  ;;  %v16007_v55 = vld [vmem:[#allocation143_spill] sm:$0xff]  ;;  %v16008_v18 = vunpack.c.l.bf16 %v15969_v46  ;;  %v16016_v46 = vunpack.c.l.bf16 %v15984_v13 }
0x1284   : >> { %v12163_v48 = vpop.eup %12162  ;;  %v8852_v12 = vpop.permute.xlu0 %8851 }
0x1285   : >> { %v8865_v45 = vmul.f32 %v8852_v12, %v8730_v54  ;;  %11129 = vperm.xlu0 %11880, %v12163_v48   ;;  %v15993_v54 = vld [vmem:[#allocation153_spill] sm:$0xff] }
0x1286   : >> { %11210 = vperm.xlu1 %11884, %v11196_v62   ;;  %v9362_v62 = vmul.f32 %v15992_v43, %v15990_v20  ;;  %v16011_v20 = vld [vmem:[#allocation70_spill] sm:$0xff] }
0x1287   : >> { %v8889_v6 = vadd.f32 %v8885_v2, %v8865_v45  ;;  %v15998_v45 = vld [vmem:[#allocation27_spill] sm:$0xff]  ;;  %v16012_v43 = vunpack.c.h.bf16 %v16011_v20 }
0x1288   : >> { %v12165_v44 = vpop.eup %12164  ;;  %v8862_v29 = vpop.permute.xlu0 %8861 }
0x1289   : >> { %v9024_v27 = vmul.f32 %v15982_v40, %v8889_v6  ;;  %11139 = vperm.xlu0 %11880, %v12165_v44   ;;  %v8867_v10 = vmul.f32 %v8862_v29, %v8732_v28  ;;  %v16001_v44 = vld [vmem:[#allocation145_spill] sm:$0xff]  ;;  %v16002_v29 = vunpack.c.l.bf16 %v15976_v25  ;;  %v16003_v40 = vld [vmem:[#allocation74_spill] sm:$0xff] }
0x128a   : >> { %11215 = vperm.xlu1 %11884, %v11197_v11   ;;  %v15999_v11 = vunpack.c.h.bf16 %v15998_v45 }
0x128b   : >> { %v9048_v4 = vadd.f32 %v9044_v63, %v9024_v27  ;;  %v8891_v17 = vadd.f32 %v8887_v52, %v8867_v10  ;;  %v8727_v24 = vmul.f32 %v16002_v29, %v16001_v44  ;;  %v16004_v27 = vld [vmem:[#allocation59_spill] sm:$0xff]  ;;  %v15221_v10 = vpop.permute.xlu1 %10789  ;;  %v8703_v52 = vmul.f32 0.0, %v16006_v51 }
0x128c   : >> { %v9006_v42 = vpop.permute.xlu0 %9005  ;;  %v16005_v28 = vunpack.c.h.bf16 %v16004_v27  ;;  %v16019_v44 = vunpack.c.l.bf16 %v15973_v36  ;;  %v16027_v36 = vld [vmem:[#allocation107_spill] sm:$0xff] }
0x128d   : >> { %v9183_v34 = vmul.f32 %v15989_v7, %v9048_v4  ;;  %11885 = vset.pattern.permute.xlu0 %v12248_v49  ;;  %v9046_v49 = vmul.f32 %v15996_v19, %v15994_v8  ;;  %v8731_v30 = vadd.f32 %v8727_v24, %v8703_v52  ;;  %v16015_v19 = vld [vmem:[#allocation32_spill] sm:$0xff] }
0x128e   : >> { %11177 = vperm.xlu0 %11885, %v12157_v56   ;;  %v15997_v56 = vld [vmem:[#allocation63_spill] sm:$0xff]  ;;  %v9680_v4 = vmul.f32 %v16005_v28, %v16003_v40  ;;  %v16020_v24 = vld [vmem:[#allocation96_spill] sm:$0xff]  ;;  %v16023_v28 = vld [vmem:[#allocation161_spill] sm:$0xff] }
0x128f   : >> { %v9207_v58 = vadd.f32 %v9203_v1, %v9183_v34  ;;  %v9521_v61 = vmul.f32 %v15999_v11, %v15997_v56  ;;  %v16009_v1 = vld [vmem:[#allocation157_spill] sm:$0xff]  ;;  %v10919_v8 = vpop.permute.xlu1 %10918  ;;  %v16017_v11 = vld [vmem:[#allocation147_spill] sm:$0xff] }
0x1290   : >> { %v9021_v9 = vpop.permute.xlu0 %9020 }
0x1291   : >> { %v9342_v48 = vmul.f32 %v15993_v54, %v9207_v58  ;;  %v9026_v12 = vmul.f32 %v9021_v9, %v8891_v17  ;;  %v16010_v9 = vld [vmem:[#allocation85_spill] sm:$0xff]  ;;  %v16013_v54 = vld [vmem:[#allocation148_spill] sm:$0xff] }
0x1292   : >> { %11182 = vperm.xlu0 %11885, %v12159_v33  }
0x1293   : >> { %v9366_v41 = vadd.f32 %v9362_v62, %v9342_v48  ;;  %v9050_v33 = vadd.f32 %v9046_v49, %v9026_v12  ;;  %v9839_v62 = vmul.f32 %v16012_v43, %v16010_v9  ;;  %v8866_v48 = vmul.f32 %v16013_v54, %v8731_v30  ;;  %v16014_v12 = vld [vmem:[#allocation159_spill] sm:$0xff]  ;;  %v16028_v30 = vld [vmem:[#allocation92_spill] sm:$0xff] }
0x1294   : >> { %v9165_v2 = vpop.permute.xlu0 %9164  ;;  %v8886_v49 = vmul.f32 %v16016_v46, %v16015_v19  ;;  %v16030_v9 = vld [vmem:[#allocation163_spill] sm:$0xff] }
0x1295   : >> { %v9501_v6 = vmul.f32 %v16000_v22, %v9366_v41  ;;  %v16031_v54 = vld [vmem:[#allocation35_spill] sm:$0xff] }
0x1296   : >> { %11187 = vperm.xlu0 %11885, %v12161_v0   ;;  %v8725_v0 = vmul.f32 %v16008_v18, %v16007_v55  ;;  %v8890_v40 = vadd.f32 %v8886_v49, %v8866_v48  ;;  %v15249_v55 = vpop.permute.xlu1 %10923  ;;  %v16032_v48 = vunpack.c.l.bf16 %v15980_v21  ;;  %v16033_v49 = vld [vmem:[#allocation134_spill] sm:$0xff] }
0x1297   : >> { %v9525_v63 = vadd.f32 %v9521_v61, %v9501_v6  ;;  %v16018_v6 = vld [vmem:[#allocation31_spill] sm:$0xff] }
0x1298   : >> { %v9180_v15 = vpop.permute.xlu0 %9179  ;;  %v8729_v34 = vadd.f32 %v8725_v0, %v8701_v26  ;;  %v8884_v29 = vmul.f32 %v16019_v44, %v16018_v6  ;;  %v16021_v26 = vld [vmem:[#allocation81_spill] sm:$0xff]  ;;  %v16025_v0 = vld [vmem:[#allocation36_spill] sm:$0xff] }
0x1299   : >> { %v9660_v7 = vmul.f32 %v16009_v1, %v9525_v63  ;;  %v15228_v25 = vmul.f32 %v9180_v15, %v9050_v33  ;;  %v16022_v63 = vunpack.c.h.bf16 %v16021_v26  ;;  %v16024_v15 = vld [vmem:[#allocation150_spill] sm:$0xff]  ;;  %v16026_v1 = vunpack.c.l.bf16 %v15995_v38  ;;  %v16037_v44 = vld [vmem:[#allocation165_spill] sm:$0xff] }
0x129a   : >> { %v8864_v61 = vmul.f32 %v16017_v11, %v8729_v34  ;;  %v9025_v51 = vmul.f32 %v16024_v15, %v8890_v40  ;;  %v16029_v34 = vunpack.c.h.bf16 %v16028_v30 }
0x129b   : >> { %v9684_v58 = vadd.f32 %v9680_v4, %v9660_v7  ;;  %v9998_v33 = vmul.f32 %v16022_v63, %v16020_v24  ;;  %v9045_v7 = vmul.f32 %v16026_v1, %v16025_v0  ;;  %v15268_v63 = vpop.permute.xlu1 %10936  ;;  %v16043_v1 = vld [vmem:[#allocation190_spill] sm:$0xff] }
0x129c   : >> { %v9324_v17 = vpop.permute.xlu0 %9323  ;;  %v8888_v52 = vadd.f32 %v8884_v29, %v8864_v61  ;;  %v16036_v61 = vld [vmem:[#allocation152_spill] sm:$0xff] }
0x129d   : >> { %v9819_v41 = vmul.f32 %v16014_v12, %v9684_v58  ;;  %v10157_v58 = vmul.f32 %v16029_v34, %v16027_v36  ;;  %v9043_v12 = vmul.f32 %v16032_v48, %v16031_v54 }
0x129f   : >> { %v9843_v56 = vadd.f32 %v9839_v62, %v9819_v41  ;;  %v9023_v62 = vmul.f32 %v9006_v42, %v8888_v52  ;;  %v9049_v41 = vadd.f32 %v9045_v7, %v9025_v51  ;;  %v16038_v42 = vld [vmem:[#allocation43_spill] sm:$0xff]  ;;  %v16041_v51 = vld [vmem:[#allocation41_spill] sm:$0xff] }
0x12a0   : >> { %v15239_v22 = vpop.permute.xlu0 %9338  ;;  %v16044_v7 = vld [vmem:[#allocation115_spill] sm:$0xff] }
0x12a1   : >> { %v9978_v4 = vmul.f32 %v16023_v28, %v9843_v56  ;;  %v16034_v56 = vld [vmem:[#allocation103_spill] sm:$0xff]  ;;  %v9184_v6 = vmul.f32 %v16036_v61, %v9049_v41  ;;  %v9047_v24 = vadd.f32 %v9043_v12, %v9023_v62  ;;  %v16045_v36 = vunpack.c.h.bf16 %v16044_v7  ;;  %v15281_v12 = vpop.permute.xlu1 %10944 }
0x12a2   : >> { %v16035_v11 = vunpack.c.h.bf16 %v16034_v56 }
0x12a3   : >> { %v10002_v13 = vadd.f32 %v9998_v33, %v9978_v4  ;;  %v16039_v33 = vld [vmem:[#allocation14_spill] sm:$0xff]  ;;  %v9182_v4 = vmul.f32 %v9165_v2, %v9047_v24  ;;  %v10475_v34 = vmul.f32 %v16045_v36, %v16043_v1  ;;  %v16048_v2 = vld [vmem:[#allocation51_spill] sm:$0xff]  ;;  %v16054_v24 = vunpack.c.l.bf16 %v15991_v50 }
0x12a4   : >> { %v9483_v18 = vpop.permute.xlu0 %9482  ;;  %v10316_v38 = vmul.f32 %v16035_v11, %v16033_v49  ;;  %v16040_v40 = vunpack.c.l.bf16 %v16039_v33  ;;  %v16051_v11 = vld [vmem:[#allocation169_spill] sm:$0xff] }
0x12a5   : >> { %v10137_v43 = vmul.f32 %v16030_v9, %v10002_v13  ;;  %v16042_v13 = vunpack.c.l.bf16 %v15987_v37 }
0x12a6   : >> { %v9204_v21 = vmul.f32 %v16040_v40, %v16038_v42 }
0x12a7   : >> { %v10161_v19 = vadd.f32 %v10157_v58, %v10137_v43  ;;  %v9202_v52 = vmul.f32 %v16042_v13, %v16041_v51  ;;  %v16046_v58 = vld [vmem:[#allocation180_spill] sm:$0xff]  ;;  %v16047_v43 = vld [vmem:[#allocation154_spill] sm:$0xff]  ;;  %v16056_v13 = vld [vmem:[#allocation171_spill] sm:$0xff] }
0x12a8   : >> { %v15261_v46 = vpop.permute.xlu0 %9497  ;;  %v9208_v0 = vadd.f32 %v9204_v21, %v9184_v6 }
0x12a9   : >> { %v10296_v29 = vmul.f32 %v16037_v44, %v10161_v19  ;;  %v9206_v48 = vadd.f32 %v9202_v52, %v9182_v4  ;;  %v16049_v19 = vld [vmem:[#allocation16_spill] sm:$0xff]  ;;  %v16057_v52 = vunpack.c.h.bf16 %v16056_v13 }
0x12aa   : >> { %v9343_v62 = vmul.f32 %v16047_v43, %v9208_v0  ;;  %v16050_v49 = vunpack.c.l.bf16 %v16049_v19  ;;  %v16055_v4 = vld [vmem:[#allocation156_spill] sm:$0xff] }
0x12ab   : >> { %v10320_v28 = vadd.f32 %v10316_v38, %v10296_v29  ;;  %v16052_v38 = vunpack.c.h.bf16 %v16051_v11  ;;  %v9341_v44 = vmul.f32 %v9324_v17, %v9206_v48  ;;  %v16053_v29 = vld [vmem:[#allocation49_spill] sm:$0xff]  ;;  %v10793_v0 = vmul.f32 %v16057_v52, %v15169_v57  ;;  %v16059_v17 = vld [vmem:[#allocation28_spill] sm:$0xff] }
0x12ac   : >> { %v9642_v15 = vpop.permute.xlu0 %9641  ;;  %v9363_v37 = vmul.f32 %v16050_v49, %v16048_v2  ;;  %v9361_v42 = vmul.f32 %v16054_v24, %v16053_v29  ;;  %v16063_v57 = vld [vmem:[#allocation173_spill] sm:$0xff] }
0x12ad   : >> { %v10455_v9 = vmul.f32 %v16046_v58, %v10320_v28  ;;  %v10634_v61 = vmul.f32 %v16052_v38, %v15116_v35  ;;  %v15300_v35 = vpop.permute.xlu1 %10948  ;;  %v16064_v49 = vunpack.c.h.bf16 %v16063_v57  ;;  %v16065_v38 = vld [vmem:[#allocation158_spill] sm:$0xff] }
0x12ae   : >> { %v9367_v40 = vadd.f32 %v9363_v37, %v9343_v62  ;;  %v9365_v36 = vadd.f32 %v9361_v42, %v9341_v44  ;;  %v16061_v62 = vld [vmem:[#allocation65_spill] sm:$0xff] }
0x12af   : >> { %v10479_v54 = vadd.f32 %v10475_v34, %v10455_v9  ;;  %v16060_v34 = vunpack.c.l.bf16 %v16059_v17  ;;  %v16066_v42 = vld [vmem:[#allocation77_spill] sm:$0xff] }
0x12b0   : >> { %v15283_v41 = vpop.permute.xlu0 %9656  ;;  %v9502_v51 = vmul.f32 %v16055_v4, %v9367_v40  ;;  %v9500_v9 = vmul.f32 %v9483_v18, %v9365_v36  ;;  %v16067_v18 = vld [vmem:[#allocation60_spill] sm:$0xff]  ;;  %v16069_v4 = vld [vmem:[#allocation175_spill] sm:$0xff] }
0x12b1   : >> { %v10614_v6 = vmul.f32 %v15079_v23, %v10479_v54  ;;  %v16058_v23 = vld [vmem:[#allocation66_spill] sm:$0xff]  ;;  %v16062_v54 = vunpack.c.l.bf16 %v15998_v45  ;;  %v11078_v29 = vpop.permute.xlu1 %11077  ;;  %v16068_v40 = vunpack.c.l.bf16 %v16067_v18  ;;  %v16070_v45 = vunpack.c.h.bf16 %v16069_v4 }
0x12b2   : >> { %v9522_v58 = vmul.f32 %v16060_v34, %v16058_v23 }
0x12b3   : >> { %v10638_v21 = vadd.f32 %v10634_v61, %v10614_v6  ;;  %v9520_v48 = vmul.f32 %v16062_v54, %v16061_v62  ;;  %v11111_v52 = vmul.f32 %v16070_v45, %v15175_v16  ;;  %v16074_v62 = vld [vmem:[#allocation88_spill] sm:$0xff]  ;;  %v16075_v54 = vld [vmem:[#allocation71_spill] sm:$0xff]  ;;  %v16078_v16 = vunpack.c.h.bf16 %v16039_v33 }
0x12b4   : >> { %v9801_v28 = vpop.permute.xlu0 %9800  ;;  %v9526_v2 = vadd.f32 %v9522_v58, %v9502_v51  ;;  %v16073_v58 = vld [vmem:[#allocation160_spill] sm:$0xff] }
0x12b5   : >> { %v10773_v1 = vmul.f32 %v15160_v39, %v10638_v21  ;;  %v10952_v39 = vmul.f32 %v16064_v49, %v15173_v47  ;;  %v9524_v44 = vadd.f32 %v9520_v48, %v9500_v9  ;;  %v9681_v21 = vmul.f32 %v16068_v40, %v16066_v42 }
0x12b6   : >> { %v9661_v61 = vmul.f32 %v16065_v38, %v9526_v2  ;;  %v16072_v47 = vunpack.c.l.bf16 %v16004_v27  ;;  %v16076_v48 = vunpack.c.l.bf16 %v16075_v54  ;;  %v16079_v38 = vld [vmem:[#allocation87_spill] sm:$0xff]  ;;  %v16080_v27 = vunpack.c.l.bf16 %v16011_v20  ;;  %v16087_v20 = vld [vmem:[#allocation98_spill] sm:$0xff] }
0x12b7   : >> { %v10797_v50 = vadd.f32 %v10793_v0, %v10773_v1  ;;  %v9659_v0 = vmul.f32 %v9642_v15, %v9524_v44  ;;  %v16071_v1 = vld [vmem:[#allocation76_spill] sm:$0xff] }
0x12b8   : >> { %v15305_v43 = vpop.permute.xlu0 %9815  ;;  %v9685_v36 = vadd.f32 %v9681_v21, %v9661_v61  ;;  %v9840_v2 = vmul.f32 %v16076_v48, %v16074_v62  ;;  %v9838_v61 = vmul.f32 %v16080_v27, %v16079_v38  ;;  %v16089_v62 = vld [vmem:[#allocation164_spill] sm:$0xff]  ;;  %v16093_v38 = vld [vmem:[#allocation67_spill] sm:$0xff] }
0x12b9   : >> { %v10932_v37 = vmul.f32 %v10919_v8, %v10797_v50  ;;  %v9679_v8 = vmul.f32 %v16072_v47, %v16071_v1  ;;  %v16085_v1 = vld [vmem:[#allocation54_spill] sm:$0xff]  ;;  %v16086_v47 = vunpack.c.h.bf16 %v16049_v19  ;;  %v16094_v19 = vunpack.c.h.bf16 %v16059_v17 }
0x12ba   : >> { %v9820_v50 = vmul.f32 %v16073_v58, %v9685_v36  ;;  %v16088_v36 = vunpack.c.l.bf16 %v16021_v26  ;;  %v16095_v26 = vld [vmem:[#allocation109_spill] sm:$0xff]  ;;  %v16101_v17 = vld [vmem:[#allocation78_spill] sm:$0xff] }
0x12bb   : >> { %v10956_v6 = vadd.f32 %v10952_v39, %v10932_v37  ;;  %v9683_v9 = vadd.f32 %v9679_v8, %v9659_v0  ;;  %v16077_v39 = vld [vmem:[#allocation45_spill] sm:$0xff]  ;;  %v9364_v8 = vmul.f32 %v16086_v47, %v16085_v1  ;;  %v9523_v27 = vmul.f32 %v16094_v19, %v16093_v38 }
0x12bc   : >> { %v9960_v24 = vpop.permute.xlu0 %9959  ;;  %v9205_v15 = vmul.f32 %v16078_v16, %v16077_v39  ;;  %v9997_v58 = vmul.f32 %v16088_v36, %v16087_v20  ;;  %v16091_v39 = vld [vmem:[#allocation93_spill] sm:$0xff]  ;;  %v11096_v36 = vpop.permute.xlu1 %11095  ;;  %v16109_v19 = vunpack.c.h.bf16 %v16075_v54  ;;  %v16114_v54 = vunpack.c.l.bf16 %v16051_v11 }
0x12bd   : >> { %v11091_v51 = vmul.f32 %v11078_v29, %v10956_v6  ;;  %v9818_v49 = vmul.f32 %v9801_v28, %v9683_v9  ;;  %v9844_v6 = vadd.f32 %v9840_v2, %v9820_v50  ;;  %v16081_v29 = vld [vmem:[#allocation162_spill] sm:$0xff]  ;;  %v16092_v16 = vunpack.c.l.bf16 %v16091_v39 }
0x12be   : >> { %v9209_v44 = vadd.f32 %v9205_v15, %v15228_v25  ;;  %v16083_v28 = vld [vmem:[#allocation82_spill] sm:$0xff] }
0x12bf   : >> { %v15323_v23 = vadd.f32 %v11111_v52, %v11091_v51  ;;  %v9979_v42 = vmul.f32 %v16081_v29, %v9844_v6  ;;  %v9842_v40 = vadd.f32 %v9838_v61, %v9818_v49  ;;  %v16082_v52 = vld [vmem:[#allocation99_spill] sm:$0xff]  ;;  %v16084_v51 = vunpack.c.l.bf16 %v16083_v28  ;;  %v16090_v49 = vld [vmem:[#allocation110_spill] sm:$0xff] }
0x12c0   : >> { %v9975_v34 = vpop.permute.xlu0 %9974  ;;  %v9344_v21 = vmul.f32 %v15239_v22, %v9209_v44  ;;  %v16096_v6 = vunpack.c.l.bf16 %v16028_v30  ;;  %v16103_v30 = vld [vmem:[#allocation137_spill] sm:$0xff] }
0x12c1   : >> { %v9999_v0 = vmul.f32 %v16084_v51, %v16082_v52  ;;  %v9977_v33 = vmul.f32 %v9960_v24, %v9842_v40  ;;  %v10158_v24 = vmul.f32 %v16092_v16, %v16090_v49  ;;  %v16097_v40 = vld [vmem:[#allocation166_spill] sm:$0xff] }
0x12c2   : >> { %v9368_v50 = vadd.f32 %v9364_v8, %v9344_v21  ;;  %v10156_v44 = vmul.f32 %v16096_v6, %v16095_v26  ;;  %v16102_v8 = vunpack.c.h.bf16 %v16067_v18  ;;  %v16108_v18 = vld [vmem:[#allocation89_spill] sm:$0xff]  ;;  %v15376_v26 = vpop.permute.xlu1 %11082  ;;  %v16110_v6 = vld [vmem:[#allocation188_spill] sm:$0xff] }
0x12c3   : >> { %v10003_v25 = vadd.f32 %v9999_v0, %v9979_v42  ;;  %v10001_v22 = vadd.f32 %v9997_v58, %v9977_v33  ;;  %v16098_v0 = vld [vmem:[#allocation138_spill] sm:$0xff]  ;;  %v16099_v33 = vld [vmem:[#allocation104_spill] sm:$0xff]  ;;  %v16104_v58 = vunpack.c.l.bf16 %v16034_v56 }
0x12c4   : >> { %v10119_v37 = vpop.permute.xlu0 %10118  ;;  %v9503_v2 = vmul.f32 %v15261_v46, %v9368_v50  ;;  %v9682_v20 = vmul.f32 %v16102_v8, %v16101_v17  ;;  %v16115_v17 = vld [vmem:[#allocation100_spill] sm:$0xff] }
0x12c5   : >> { %v10138_v48 = vmul.f32 %v16089_v62, %v10003_v25  ;;  %v10136_v15 = vmul.f32 %v10119_v37, %v10001_v22  ;;  %v16100_v37 = vunpack.c.l.bf16 %v16099_v33  ;;  %v10315_v25 = vmul.f32 %v16104_v58, %v16103_v30  ;;  %v16105_v22 = vld [vmem:[#allocation189_spill] sm:$0xff] }
0x12c6   : >> { %v9527_v42 = vadd.f32 %v9523_v27, %v9503_v2  ;;  %v9841_v27 = vmul.f32 %v16109_v19, %v16108_v18 }
0x12c7   : >> { %v10162_v29 = vadd.f32 %v10158_v24, %v10138_v48  ;;  %v10160_v52 = vadd.f32 %v10156_v44, %v10136_v15  ;;  %v10317_v1 = vmul.f32 %v16100_v37, %v16098_v0  ;;  %v16111_v44 = vunpack.c.l.bf16 %v16044_v7 }
0x12c8   : >> { %v10134_v45 = vpop.permute.xlu0 %10133  ;;  %v9662_v46 = vmul.f32 %v15283_v41, %v9527_v42  ;;  %v16106_v41 = vld [vmem:[#allocation116_spill] sm:$0xff]  ;;  %v16112_v42 = vld [vmem:[#allocation170_spill] sm:$0xff]  ;;  %v16116_v7 = vunpack.c.h.bf16 %v16083_v28  ;;  %v16120_v28 = vunpack.c.h.bf16 %v16099_v33  ;;  %v16123_v33 = vunpack.c.l.bf16 %v16063_v57 }
0x12c9   : >> { %v10297_v21 = vmul.f32 %v16097_v40, %v10162_v29  ;;  %v16107_v2 = vunpack.c.l.bf16 %v16106_v41  ;;  %v10474_v29 = vmul.f32 %v16111_v44, %v16110_v6  ;;  %v16113_v40 = vunpack.c.l.bf16 %v16112_v42 }
0x12ca   : >> { %v9686_v62 = vadd.f32 %v9682_v20, %v9662_v46  ;;  %v10000_v8 = vmul.f32 %v16116_v7, %v16115_v17  ;;  %v11104_v20 = vpop.permute.xlu1 %11103 }
0x12cb   : >> { %v10321_v50 = vadd.f32 %v10317_v1, %v10297_v21  ;;  %v10476_v49 = vmul.f32 %v16107_v2, %v16105_v22  ;;  %v10635_v21 = vmul.f32 %v16113_v40, %v15127_v60  ;;  %v10633_v1 = vmul.f32 %v16114_v54, %v15112_v3 }
0x12cc   : >> { %v10278_v9 = vpop.permute.xlu0 %10277  ;;  %v16127_v54 = vunpack.c.h.bf16 %v16112_v42 }
0x12cd   : >> { %v10295_v47 = vmul.f32 %v10278_v9, %v10160_v52  ;;  %v9821_v9 = vmul.f32 %v15305_v43, %v9686_v62 }
0x12ce   : >> { %v10636_v57 = vmul.f32 %v16127_v54, %v15137_v14  ;;  %v11725_v14 = vld [vmem:[%s15423_s30] sm:$0xff]  }
0x12cf   : >> { %v10319_v16 = vadd.f32 %v10315_v25, %v10295_v47  ;;  %v9845_v43 = vadd.f32 %v9841_v27, %v9821_v9  ;;  %v16121_v9 = vunpack.c.l.bf16 %v16056_v13 }
0x12d0   : >> { %v10293_v61 = vpop.permute.xlu0 %10292 }
0x12d1   : >> { %v9980_v0 = vmul.f32 %v9975_v34, %v9845_v43  ;;  %v15394_v34 = vpop.permute.xlu1 %11107 }
0x12d3   : >> { %v10004_v58 = vadd.f32 %v10000_v8, %v9980_v0 }
0x12d4   : >> { %v10437_v51 = vpop.permute.xlu0 %10436 }
0x12d5   : >> { %v10454_v15 = vmul.f32 %v10437_v51, %v10319_v16  ;;  %v10139_v25 = vmul.f32 %v10134_v45, %v10004_v58  ;;  %v16119_v16 = vld [vmem:[#allocation139_spill] sm:$0xff]  ;;  %v10792_v45 = vmul.f32 %v16121_v9, %v15193_v59 }
0x12d7   : >> { %v10478_v51 = vadd.f32 %v10474_v29, %v10454_v15  ;;  %v10951_v29 = vmul.f32 %v16123_v33, %v15268_v63 }
0x12d8   : >> { %v10447_v48 = vpop.permute.xlu0 %10446 }
0x12d9   : >> { %v10456_v24 = vmul.f32 %v10447_v48, %v10321_v50  ;;  %v16118_v50 = vunpack.c.h.bf16 %v16091_v39 }
0x12db   : >> { %v10480_v38 = vadd.f32 %v10476_v49, %v10456_v24  ;;  %v10318_v24 = vmul.f32 %v16120_v28, %v16119_v16 }
0x12dc   : >> { %v10452_v56 = vpop.permute.xlu0 %10451 }
0x12dd   : >> { %v10615_v52 = vmul.f32 %v15092_v53, %v10480_v38  ;;  %v16117_v53 = vld [vmem:[#allocation111_spill] sm:$0xff] }
0x12de   : >> { %v10159_v62 = vmul.f32 %v16118_v50, %v16117_v53 }
0x12df   : >> { %v10639_v46 = vadd.f32 %v10635_v21, %v10615_v52  ;;  %v16124_v52 = vld [vmem:[#allocation172_spill] sm:$0xff] }
0x12e0   : >> { %v10596_v37 = vpop.permute.xlu0 %10595  ;;  %v10163_v22 = vadd.f32 %v10159_v62, %v10139_v25 }
0x12e1   : >> { %v10613_v47 = vmul.f32 %v10596_v37, %v10478_v51  ;;  %v10774_v13 = vmul.f32 %v15164_v31, %v10639_v46 }
0x12e2   : >> { %v10298_v11 = vmul.f32 %v10293_v61, %v10163_v22  ;;  %v16122_v61 = vunpack.c.h.bf16 %v16106_v41  ;;  %v16126_v41 = vunpack.c.l.bf16 %v16069_v4  ;;  %v16128_v4 = vld [vmem:[#allocation5_spill] sm:$0xff] }
0x12e3   : >> { %v10637_v30 = vadd.f32 %v10633_v1, %v10613_v47 }
0x12e4   : >> { %v10611_v60 = vpop.permute.xlu0 %10610  ;;  %v10322_v15 = vadd.f32 %v10318_v24, %v10298_v11  ;;  %v10477_v6 = vmul.f32 %v16122_v61, %v14782_v5  ;;  %v11110_v37 = vmul.f32 %v16126_v41, %v11096_v36  ;;  %v16129_v36 = vunpack.c.l.bf16 %v16128_v4 }
0x12e6   : >> { %v10457_v19 = vmul.f32 %v10452_v56, %v10322_v15  ;;  %v16125_v56 = vunpack.c.l.bf16 %v16124_v52 }
0x12e8   : >> { %v10755_v48 = vpop.permute.xlu0 %10754  ;;  %v10481_v59 = vadd.f32 %v10477_v6, %v10457_v19  ;;  %v10794_v43 = vmul.f32 %v16125_v56, %v15206_v32  ;;  %v11765_v56 = vld [vmem:[%s15423_s30 + $0x8] sm:$0xff]  }
0x12e9   : >> { %v10772_v49 = vmul.f32 %v10755_v48, %v10637_v30  ;;  %v16130_v30 = vunpack.c.h.bf16 %v16124_v52  ;;  %v11726_v48 = vunpack.c.l.bf16 %v11725_v14  ;;  %v11727_v52 = vunpack.c.h.bf16 %v11725_v14 }
0x12ea   : >> { %v10616_v51 = vmul.f32 %v10611_v60, %v10481_v59  ;;  %v10798_v63 = vadd.f32 %v10794_v43, %v10774_v13  ;;  %v16131_v60 = vld [vmem:[#allocation174_spill] sm:$0xff]  ;;  %v16140_v43 = vld [vmem:[#allocation3_spill] sm:$0xff]  ;;  %v11731_v14 = vunpack.c.h.bf16 %v11765_v56 }
0x12eb   : >> { %v10796_v18 = vadd.f32 %v10792_v45, %v10772_v49  ;;  %v10795_v58 = vmul.f32 %v16130_v30, %v15221_v10  ;;  %v16132_v25 = vunpack.c.l.bf16 %v16131_v60  ;;  %v16135_v9 = vunpack.c.h.bf16 %v16131_v60 }
0x12ec   : >> { %v11125_v3 = vpop.permute.xlu1 %11124  ;;  %v10770_v2 = vpop.permute.xlu0 %10769  ;;  %v10640_v31 = vadd.f32 %v10636_v57, %v10616_v51  ;;  %v10933_v42 = vmul.f32 %v15249_v55, %v10798_v63 }
0x12ed   : >> { %v10953_v53 = vmul.f32 %v16132_v25, %v15281_v12  ;;  %v10954_v10 = vmul.f32 %v16135_v9, %v15300_v35  ;;  %v16136_v12 = vld [vmem:[#allocation176_spill] sm:$0xff] }
0x12ee   : >> { %v10775_v7 = vmul.f32 %v10770_v2, %v10640_v31  ;;  %v16139_v35 = vunpack.c.h.bf16 %v16136_v12  ;;  %v11730_v31 = vunpack.c.l.bf16 %v11765_v56 }
0x12ef   : >> { %v10957_v22 = vadd.f32 %v10953_v53, %v10933_v42  ;;  %v11264_v53 = vlaneseq }
0x12f0   : >> { %v11135_v38 = vpop.permute.xlu1 %11134  ;;  %v10914_v39 = vpop.permute.xlu0 %10913  ;;  %v10799_v11 = vadd.f32 %v10795_v58, %v10775_v7 }
0x12f1   : >> { %v10931_v27 = vmul.f32 %v10914_v39, %v10796_v18  ;;  %v11092_v45 = vmul.f32 %v15376_v26, %v10957_v22  ;;  %v16137_v39 = vunpack.c.l.bf16 %v16136_v12  ;;  %v11113_v26 = vmul.f32 %v16139_v35, %v15394_v34 }
0x12f2   : >> { %v16143_v34 = vunpack.c.h.bf16 %v16140_v43 }
0x12f3   : >> { %v10955_v21 = vadd.f32 %v10951_v29, %v10931_v27  ;;  %v11112_v18 = vmul.f32 %v16137_v39, %v11104_v20  ;;  %v16138_v29 = vunpack.c.h.bf16 %v16128_v4 }
0x12f4   : >> { %v10929_v44 = vpop.permute.xlu0 %10928 }
0x12f5   : >> { %v11173_v40 = vpop.permute.xlu1 %11172  ;;  %v10934_v55 = vmul.f32 %v10929_v44, %v10799_v11  ;;  %v11116_v44 = vadd.f32 %v11112_v18, %v11092_v45 }
0x12f7   : >> { %v10958_v19 = vadd.f32 %v10954_v10, %v10934_v55 }
0x12f8   : >> { %v11073_v0 = vpop.permute.xlu0 %11072 }
0x12f9   : >> { %v11090_v5 = vmul.f32 %v11073_v0, %v10955_v21  ;;  %v11201_v32 = vpop.permute.xlu1 %11200 }
0x12fa   : >> { %v11218_v17 = vmul.f32 %v16129_v36, %v11201_v32 }
0x12fb   : >> { %v11114_v1 = vadd.f32 %v11110_v37, %v11090_v5 }
0x12fc   : >> { %v11088_v46 = vpop.permute.xlu0 %11087 }
0x12fd   : >> { %v11142_v47 = vmul.f32 %v11125_v3, %v11114_v1  ;;  %v16133_v3 = vld [vmem:[#allocation7_spill] sm:$0xff]  ;;  %v11206_v16 = vpop.permute.xlu1 %11205  ;;  %v11093_v33 = vmul.f32 %v11088_v46, %v10958_v19  ;;  %v16144_v46 = vld [vmem:[#allocation4_spill] sm:$0xff] }
0x12fe   : >> { %v16134_v49 = vunpack.c.l.bf16 %v16133_v3  ;;  %v11219_v13 = vmul.f32 %v16138_v29, %v11206_v16  ;;  %v16142_v41 = vunpack.c.h.bf16 %v16133_v3  ;;  %v11267_v3 = vshrl.u32 %v11264_v53, 7 }
0x12ff   : >> { %v11190_v8 = vmul.f32 %v11173_v40, %v11142_v47  ;;  %v11144_v40 = vmul.f32 %v11135_v38, %v11116_v44  ;;  %v11117_v0 = vadd.f32 %v11113_v26, %v11093_v33  ;;  %v16145_v47 = vunpack.c.l.bf16 %v16144_v46 }
0x1300   : >> { %v11130_v50 = vpop.permute.xlu0 %11129 }
0x1301   : >> { %v11222_v62 = vadd.f32 %v11218_v17, %v11190_v8  ;;  %v11143_v27 = vmul.f32 %v11130_v50, %v15323_v23  ;;  %v11211_v61 = vpop.permute.xlu1 %11210  ;;  %v16141_v23 = vunpack.c.l.bf16 %v16140_v43  ;;  %v16146_v8 = vunpack.c.h.bf16 %v16144_v46 }
0x1302   : >> { %v11265_v50 = vand.u32 127, %v11264_v53 }
0x1303   : >> { %v11236_v2 = vadd.f32 %v16134_v49, %v11222_v62  ;;  %v11220_v51 = vmul.f32 %v16141_v23, %v11211_v61 }
0x1304   : >> { %v11140_v28 = vpop.permute.xlu0 %11139  ;;  %v11270_v62 = vadd.s32 4294967288, %v11265_v50  ;;  %v11277_v11 = vadd.s32 4294967280, %v11265_v50  ;;  %v11284_v16 = vadd.s32 4294967272, %v11265_v50 }
0x1305   : >> { %v11240_v24 = vsub.f32 %v11236_v2, %v11726_v48  ;;  %v11216_v54 = vpop.permute.xlu1 %11215  ;;  %v11145_v57 = vmul.f32 %v11140_v28, %v11117_v0 }
0x1306   : >> { %v11221_v38 = vmul.f32 %v16143_v34, %v11216_v54  ;;  %v11273_v49 = vsub.s32 %v11270_v62, %v11267_v3  ;;  %v11280_v55 = vsub.s32 %v11277_v11, %v11267_v3 }
0x1307   : >> { %v11244_v15 = vand.u32 2147483647, %v11240_v24  ;;  %v11268_v24 = vsub.s32 %v11265_v50, %v11267_v3 }
0x1309   : >> { %11248 = vadd.xlane.f32.xlu0 %v11244_v15  ;;  %v11178_v6 = vpop.permute.xlu0 %11177  ;;  %v11287_v15 = vsub.s32 %v11284_v16, %v11267_v3 }
0x130a   : >> { %v11191_v59 = vmul.f32 %v11178_v6, %v11143_v27 }
0x130c   : >> { %v11223_v21 = vadd.f32 %v11219_v13, %v11191_v59 }
0x130d   : >> { %v11183_v20 = vpop.permute.xlu0 %11182 }
0x130e   : >> { %v11237_v37 = vadd.f32 %v16142_v41, %v11223_v21  ;;  %v11192_v5 = vmul.f32 %v11183_v20, %v11144_v40 }
0x1310   : >> { %v11224_v63 = vadd.f32 %v11220_v51, %v11192_v5  ;;  %v11241_v1 = vsub.f32 %v11237_v37, %v11727_v52 }
0x1311   : >> { %v11188_v32 = vpop.permute.xlu0 %11187 }
0x1312   : >> { %v11238_v4 = vadd.f32 %v16145_v47, %v11224_v63  ;;  %v11193_v36 = vmul.f32 %v11188_v32, %v11145_v57  ;;  %v11245_v17 = vand.u32 2147483647, %v11241_v1 }
0x1314   : >> { %v11225_v7 = vadd.f32 %v11221_v38, %v11193_v36  ;;  %11250 = vadd.xlane.f32.xlu1 %v11245_v17  ;;  %v11242_v42 = vsub.f32 %v11238_v4, %v11730_v31 }
0x1316   : >> { %v11239_v30 = vadd.f32 %v16146_v8, %v11225_v7  ;;  %v11246_v58 = vand.u32 2147483647, %v11242_v42 }
0x1318   : >> { %11252 = vadd.xlane.f32.xlu0 %v11246_v58  ;;  %v11243_v60 = vsub.f32 %v11239_v30, %v11731_v14 }
0x131a   : >> { %v11247_v25 = vand.u32 2147483647, %v11243_v60 }
0x131c   : >> { %11254 = vadd.xlane.f32.xlu0 %v11247_v25 }
0x1392   : >> { %v11249_v48 = vpop.xlane.xlu0 %11248 }
0x1393   : >> { %v11256_v9 = vsub.f32 0.0, %v11249_v48 }
0x1395   : >> { %v11269_v18 = vrot.slane %v11256_v9, %v11268_v24 }
0x139d   : >> { %v11251_v22 = vpop.xlane.xlu1 %11250 }
0x139e   : >> { %v11257_v2 = vsub.f32 0.0, %v11251_v22 }
0x13a0   : >> { %v11274_v45 = vrot.slane %v11257_v2, %v11273_v49 }
0x13a1   : >> { %v11253_v28 = vpop.xlane.xlu0 %11252 }
0x13a2   : >> { %v11258_v10 = vsub.f32 0.0, %v11253_v28  ;;  %v11276_v27 = vsel %vm11275_vm4, %v11274_v45, %v11269_v18 }
0x13a4   : >> { %v11281_v12 = vrot.slane %v11258_v10, %v11280_v55 }
0x13a5   : >> { %v11255_v39 = vpop.xlane.xlu0 %11254 }
0x13a6   : >> { %v11259_v19 = vsub.f32 0.0, %v11255_v39  ;;  %v11283_v6 = vsel %vm11282_vm5, %v11281_v12, %v11276_v27 }
0x13a7   : > { %8581 = sbr.rel (!%p8579_p10) target bundleno = 287 (0x11f), region = 171 }
0x13a8   : >> { %v11288_v61 = vrot.slane %v11259_v19, %v11287_v15 }
0x13aa   : >> { %v11290_v44 = vsel %vm11289_vm6, %v11288_v61, %v11283_v6 }
0x13ab   : >> { %11294 = vst.msk [vmem:[%s11292_s14] sm:$0x1] %vm11293_vm7, %v11290_v44 }
0x13ac PF: > { %p12_p11 = scmp.ge.s32.totalorder %s12296_s22, 4   ;;  %s16147_s18 = smov %s12192_s19 }
0x13ad   : > { %s16148_s19 = smov %s12305_s25  ;;  %s16149_s20 = smov %s12296_s22 }
0x13ae   :  { %14 = sbr.rel (!%p12_p11) target bundleno = 2 (0x2), region = 182 }

</bundles_post_ra>
